<compile_context>
chip_gen: v7x
topology: tpu7x:2x2x1
jax: 0.10.0
libtpu: 0.0.40
codegen_flags: <defaults>
</compile_context>

<pallas_src>
import functools

import jax
import jax.numpy as jnp
from jax.experimental import pallas as pl
from jax.experimental.pallas import tpu as pltpu

C = 512          # feature dim (fixed by the module)
NEG_SLOPE = 0.2  # LeakyReLU slope used by NonLocalMP


def _leaky(x):
    return jnp.where(x >= 0, x, NEG_SLOPE * x)


def _nonlocal_mp_kernel(f_ref, w1ab_ref, w2_ref, w3_ref, wfa_ref, wfb_ref,
                        bias_ref, out_ref, *, n_view):
    V = n_view
    F2 = f_ref[...]                                   # (R, C) bf16, R = b_blk*V
    R = F2.shape[0]
    Bblk = R // V

    bias = bias_ref[...]                              # (4, C) f32
    b1 = bias[0:1, :]
    b2 = bias[1:2, :]
    b3 = bias[2:3, :]
    bf = bias[3:4, :]                                 # BN already folded in

    # ---- Relation layer 1 (single fused matmul, concat-split identity) ----
    #   concat(F_i, F_j) @ w1 == F_i @ w1[:C] + F_j @ w1[C:]
    AB = jnp.dot(F2, w1ab_ref[...], preferred_element_type=jnp.float32)  # (R, 2C)
    A = AB[:, :C].reshape(Bblk, V, C)                 # slice at 512: lane-aligned
    Bm = AB[:, C:].reshape(Bblk, V, C)
    h = _leaky(A[:, :, None, :] + Bm[:, None, :, :] + b1)   # (Bblk, V, V, C) f32
    h = h.reshape(Bblk * V * V, C)

    # ---- Relation layers 2 & 3 (bf16 operands, f32 accumulation) ----
    h = _leaky(jnp.dot(h.astype(jnp.bfloat16), w2_ref[...],
                       preferred_element_type=jnp.float32) + b2)
    h = _leaky(jnp.dot(h.astype(jnp.bfloat16), w3_ref[...],
                       preferred_element_type=jnp.float32) + b3)

    # ---- Sum over the j axis (dim -2 in the PyTorch code) ----
    M_sum = h.reshape(Bblk, V, V, C).sum(axis=2).reshape(R, C)   # f32

    # ---- Fusion (+ folded BatchNorm): concat(F, M_sum) @ wf split into two dots
    g = (jnp.dot(F2, wfa_ref[...], preferred_element_type=jnp.float32)
         + jnp.dot(M_sum.astype(jnp.bfloat16), wfb_ref[...],
                   preferred_element_type=jnp.float32)
         + bf)
    out_ref[...] = _leaky(g).astype(out_ref.dtype)


def _pick_b_blk(B, V):
    """Batch elements per grid step.

    Bigger blocks => more MXU LHS rows for the dominant layer-2/3 matmuls and
    fewer per-step overheads.  A 2-step grid (so v7x's two TensorCores both
    get work) is only kept when each step still has >= 256 rows
    (b_blk * V * V >= 256); otherwise one fat step, which is also what the
    single-TC v5e/v6e want.
    """
    cap = 16  # VMEM stays far below the 32 MiB scoped limit even at 16
    divisors = [d for d in range(1, B + 1) if B % d == 0]
    candidates = [d for d in divisors if d <= cap] or [min(divisors)]
    best = max(candidates)
    two_step = [d for d in candidates if B // d >= 2 and d * V * V >= 256]
    if two_step:
        best = max(two_step)
    return best


def nonlocal_mp(F, params, *, b_blk=None):
    """F: (B, n_view, 512) float32 -> (B, n_view, 512) float32."""
    B, V, Cin = F.shape
    assert Cin == C

    (w1, b1, w2, b2, w3, b3, wf, bf, bn_scale, bn_shift) = params

    if b_blk is None:
        b_blk = _pick_b_blk(B, V)
    assert B % b_blk == 0
    grid_b = B // b_blk

    # ---- Weight prep (all folds in f32, then cast matmul operands to bf16) --
    # Layer-1 fused weight: [w1[:C] | w1[C:]]  ->  (C, 2C)
    w1ab = jnp.concatenate([w1[:C], w1[C:]], axis=1).astype(jnp.bfloat16)
    w2b = w2.astype(jnp.bfloat16)
    w3b = w3.astype(jnp.bfloat16)
    # Fold inference-mode BatchNorm into the Fusion layer (per-output-channel).
    wfa = (wf[:C] * bn_scale).astype(jnp.bfloat16)
    wfb = (wf[C:] * bn_scale).astype(jnp.bfloat16)
    bf_fold = bf * bn_scale + bn_shift
    # Stack the four (1, C) f32 biases into one (4, C) ref.
    biases = jnp.concatenate([b1, b2, b3, bf_fold], axis=0)

    # 2D (B*V, C) layout: sublane-dense bf16 blocks, reshape in-kernel is free.
    F2d = F.reshape(B * V, C).astype(jnp.bfloat16)
    rows_blk = b_blk * V

    def full(a):
        nd = a.ndim
        return pl.BlockSpec(a.shape, lambda b, _nd=nd: (0,) * _nd)

    grid_spec = pltpu.PrefetchScalarGridSpec(
        num_scalar_prefetch=0,
        grid=(grid_b,),
        in_specs=[
            pl.BlockSpec((rows_blk, C), lambda b: (b, 0)),      # F rows
            full(w1ab), full(w2b), full(w3b),
            full(wfa), full(wfb), full(biases),
        ],
        out_specs=pl.BlockSpec((rows_blk, C), lambda b: (b, 0)),
    )

    # Advisory cost estimate so XLA overlaps the wrapper casts with the kernel.
    flops = 4 * C * C * B * V * (2 + V)          # layer1(2C out) + L2 + L3 + fusion
    weight_bytes = (w1ab.size + w2b.size + w3b.size + wfa.size + wfb.size) * 2
    bytes_accessed = weight_bytes + F2d.size * 2 + B * V * C * 4 + biases.size * 4
    cost = pl.CostEstimate(flops=flops, transcendentals=0,
                           bytes_accessed=bytes_accessed)

    out2d = pl.pallas_call(
        functools.partial(_nonlocal_mp_kernel, n_view=V),
        out_shape=jax.ShapeDtypeStruct((B * V, C), jnp.float32),
        grid_spec=grid_spec,
        compiler_params=pltpu.CompilerParams(
            dimension_semantics=("parallel",),
            # ~3 MiB bf16 weights (x2 pipeline buffers) + a few MiB activations;
            # 32 MiB leaves ample headroom on every generation (v7x: 64 MiB phys).
            vmem_limit_bytes=32 << 20,
        ),
        cost_estimate=cost,
    )(F2d, w1ab, w2b, w3b, wfa, wfb, biases)

    return out2d.reshape(B, V, C)


def init_params(key):
    """Deterministic synthetic parameters (weights stored as (in, out))."""
    ks = jax.random.split(key, 12)
    s = 0.02
    w1 = jax.random.normal(ks[0], (2 * C, C), jnp.float32) * s
    b1 = jax.random.normal(ks[1], (1, C), jnp.float32) * s
    w2 = jax.random.normal(ks[2], (C, C), jnp.float32) * s
    b2 = jax.random.normal(ks[3], (1, C), jnp.float32) * s
    w3 = jax.random.normal(ks[4], (C, C), jnp.float32) * s
    b3 = jax.random.normal(ks[5], (1, C), jnp.float32) * s
    wf = jax.random.normal(ks[6], (2 * C, C), jnp.float32) * s
    bf = jax.random.normal(ks[7], (1, C), jnp.float32) * s
    # BatchNorm1d (inference mode) -> fold into scale/shift
    gamma = 1.0 + 0.1 * jax.random.normal(ks[8], (1, C), jnp.float32)
    beta = 0.1 * jax.random.normal(ks[9], (1, C), jnp.float32)
    run_mean = 0.1 * jax.random.normal(ks[10], (1, C), jnp.float32)
    run_var = 1.0 + 0.1 * jnp.abs(jax.random.normal(ks[11], (1, C), jnp.float32))
    eps = 1e-5
    bn_scale = gamma / jnp.sqrt(run_var + eps)
    bn_shift = beta - run_mean * bn_scale
    return (w1, b1, w2, b2, w3, b3, wf, bf, bn_scale, bn_shift)


def nonlocal_mp_ref(F, params):
    """Pure-JAX f32 reference with the original module's semantics."""
    (w1, b1, w2, b2, w3, b3, wf, bf, bn_scale, bn_shift) = params
    B, V, _ = F.shape
    F_i = jnp.broadcast_to(F[:, :, None, :], (B, V, V, C))
    F_j = jnp.broadcast_to(F[:, None, :, :], (B, V, V, C))
    M = jnp.concatenate([F_i, F_j], axis=-1)
    h = _leaky(M @ w1 + b1)
    h = _leaky(h @ w2 + b2)
    h = _leaky(h @ w3 + b3)
    M_sum = h.sum(axis=-2)
    Fcat = jnp.concatenate([F, M_sum], axis=-1).reshape(-1, 2 * C)
    g = Fcat @ wf + bf
    g = g * bn_scale + bn_shift
    g = _leaky(g)
    return g.reshape(B, V, C)


if __name__ == "__main__":
    key = jax.random.PRNGKey(0)
    k_in, k_par = jax.random.split(key)

    B, n_view = 2, 8
    F = jax.random.normal(k_in, (B, n_view, C), jnp.float32)
    params = init_params(k_par)

    out = jax.block_until_ready(nonlocal_mp(F, params))
    ref = nonlocal_mp_ref(F, params)

    assert out.shape == (B, n_view, C)
    # bf16 MXU operands (f32 accumulation) -> tolerance looser than pure-f32.
    assert jnp.allclose(out, ref, atol=3e-2, rtol=3e-2), "mismatch vs reference"

    print("KERNEL_OK")
</pallas_src>

<mosaic_0001>
module attributes {stable_mosaic.version = 11 : i64} {
  func.func @_nonlocal_mp_kernel(%arg0: i32, %arg1: memref<16x512xbf16, #tpu.memory_space<vmem>>, %arg2: memref<512x1024xbf16, #tpu.memory_space<vmem>>, %arg3: memref<512x512xbf16, #tpu.memory_space<vmem>>, %arg4: memref<512x512xbf16, #tpu.memory_space<vmem>>, %arg5: memref<512x512xbf16, #tpu.memory_space<vmem>>, %arg6: memref<512x512xbf16, #tpu.memory_space<vmem>>, %arg7: memref<4x512xf32, #tpu.memory_space<vmem>>, %arg8: memref<16x512xf32, #tpu.memory_space<vmem>>) attributes {dimension_semantics = [#tpu.dimension_semantics<parallel>], iteration_bounds = array<i64: 1>, scalar_prefetch = 0 : i64, scratch_operands = 0 : i64, tpu.core_type = #tpu.core_type<tc>, window_params = [{transform_indices = @transform_0, window_bounds = array<i64: 16, 512>}, {pipeline_mode = #tpu.pipeline_mode<synchronous>, transform_indices = @transform_1, window_bounds = array<i64: 512, 1024>}, {pipeline_mode = #tpu.pipeline_mode<synchronous>, transform_indices = @transform_2, window_bounds = array<i64: 512, 512>}, {pipeline_mode = #tpu.pipeline_mode<synchronous>, transform_indices = @transform_3, window_bounds = array<i64: 512, 512>}, {pipeline_mode = #tpu.pipeline_mode<synchronous>, transform_indices = @transform_4, window_bounds = array<i64: 512, 512>}, {pipeline_mode = #tpu.pipeline_mode<synchronous>, transform_indices = @transform_5, window_bounds = array<i64: 512, 512>}, {pipeline_mode = #tpu.pipeline_mode<synchronous>, transform_indices = @transform_6, window_bounds = array<i64: 4, 512>}, {transform_indices = @transform_7, window_bounds = array<i64: 16, 512>}]} {
    %c0 = arith.constant 0 : index
    %c0_0 = arith.constant 0 : index
    %0 = vector.load %arg1[%c0, %c0_0] : memref<16x512xbf16, #tpu.memory_space<vmem>>, vector<16x512xbf16>
    %c0_1 = arith.constant 0 : index
    %c0_2 = arith.constant 0 : index
    %1 = vector.load %arg7[%c0_1, %c0_2] : memref<4x512xf32, #tpu.memory_space<vmem>>, vector<4x512xf32>
    %2 = vector.extract_strided_slice %1 {offsets = [0, 0], sizes = [1, 512], strides = [1, 1]} : vector<4x512xf32> to vector<1x512xf32>
    %3 = vector.extract_strided_slice %1 {offsets = [1, 0], sizes = [1, 512], strides = [1, 1]} : vector<4x512xf32> to vector<1x512xf32>
    %4 = vector.extract_strided_slice %1 {offsets = [2, 0], sizes = [1, 512], strides = [1, 1]} : vector<4x512xf32> to vector<1x512xf32>
    %5 = vector.extract_strided_slice %1 {offsets = [3, 0], sizes = [1, 512], strides = [1, 1]} : vector<4x512xf32> to vector<1x512xf32>
    %c0_3 = arith.constant 0 : index
    %c0_4 = arith.constant 0 : index
    %6 = vector.load %arg2[%c0_3, %c0_4] : memref<512x1024xbf16, #tpu.memory_space<vmem>>, vector<512x1024xbf16>
    %cst = arith.constant dense<0.000000e+00> : vector<16x1024xf32>
    %7 = tpu.matmul %0, %6, %cst {dimension_numbers = #tpu.dot_dimension_numbers<[1], [0], [0], [1], [0, 0, 1, 1], [], []>} : vector<16x512xbf16>, vector<512x1024xbf16>, vector<16x1024xf32> -> vector<16x1024xf32>
    %8 = vector.extract_strided_slice %7 {offsets = [0, 0], sizes = [16, 512], strides = [1, 1]} : vector<16x1024xf32> to vector<16x512xf32>
    %9 = vector.shape_cast %8 : vector<16x512xf32> to vector<2x8x512xf32>
    %10 = vector.extract_strided_slice %7 {offsets = [0, 512], sizes = [16, 512], strides = [1, 1]} : vector<16x1024xf32> to vector<16x512xf32>
    %11 = vector.shape_cast %10 : vector<16x512xf32> to vector<2x8x512xf32>
    %12 = vector.shape_cast %9 : vector<2x8x512xf32> to vector<2x8x1x512xf32>
    %13 = vector.shape_cast %11 : vector<2x8x512xf32> to vector<2x1x8x512xf32>
    %14 = vector.broadcast %12 : vector<2x8x1x512xf32> to vector<2x8x8x512xf32>
    %15 = vector.broadcast %13 : vector<2x1x8x512xf32> to vector<2x8x8x512xf32>
    %16 = arith.addf %14, %15 : vector<2x8x8x512xf32>
    %17 = vector.shape_cast %2 : vector<1x512xf32> to vector<1x1x1x512xf32>
    %18 = vector.broadcast %17 : vector<1x1x1x512xf32> to vector<2x8x8x512xf32>
    %19 = arith.addf %16, %18 : vector<2x8x8x512xf32>
    %cst_5 = arith.constant 0.000000e+00 : f32
    %20 = vector.broadcast %cst_5 : f32 to vector<2x8x8x512xf32>
    %21 = arith.cmpf oge, %19, %20 : vector<2x8x8x512xf32>
    %cst_6 = arith.constant 2.000000e-01 : f32
    %22 = vector.broadcast %cst_6 : f32 to vector<2x8x8x512xf32>
    %23 = arith.mulf %22, %19 : vector<2x8x8x512xf32>
    %24 = arith.select %21, %19, %23 : vector<2x8x8x512xi1>, vector<2x8x8x512xf32>
    %25 = vector.shape_cast %24 : vector<2x8x8x512xf32> to vector<128x512xf32>
    %26 = arith.truncf %25 : vector<128x512xf32> to vector<128x512xbf16>
    %c0_7 = arith.constant 0 : index
    %c0_8 = arith.constant 0 : index
    %27 = vector.load %arg3[%c0_7, %c0_8] : memref<512x512xbf16, #tpu.memory_space<vmem>>, vector<512x512xbf16>
    %cst_9 = arith.constant dense<0.000000e+00> : vector<128x512xf32>
    %28 = tpu.matmul %26, %27, %cst_9 {dimension_numbers = #tpu.dot_dimension_numbers<[1], [0], [0], [1], [0, 0, 1, 1], [], []>} : vector<128x512xbf16>, vector<512x512xbf16>, vector<128x512xf32> -> vector<128x512xf32>
    %29 = vector.broadcast %3 : vector<1x512xf32> to vector<128x512xf32>
    %30 = arith.addf %28, %29 : vector<128x512xf32>
    %cst_10 = arith.constant 0.000000e+00 : f32
    %31 = vector.broadcast %cst_10 : f32 to vector<128x512xf32>
    %32 = arith.cmpf oge, %30, %31 : vector<128x512xf32>
    %cst_11 = arith.constant 2.000000e-01 : f32
    %33 = vector.broadcast %cst_11 : f32 to vector<128x512xf32>
    %34 = arith.mulf %33, %30 : vector<128x512xf32>
    %35 = arith.select %32, %30, %34 : vector<128x512xi1>, vector<128x512xf32>
    %36 = arith.truncf %35 : vector<128x512xf32> to vector<128x512xbf16>
    %c0_12 = arith.constant 0 : index
    %c0_13 = arith.constant 0 : index
    %37 = vector.load %arg4[%c0_12, %c0_13] : memref<512x512xbf16, #tpu.memory_space<vmem>>, vector<512x512xbf16>
    %cst_14 = arith.constant dense<0.000000e+00> : vector<128x512xf32>
    %38 = tpu.matmul %36, %37, %cst_14 {dimension_numbers = #tpu.dot_dimension_numbers<[1], [0], [0], [1], [0, 0, 1, 1], [], []>} : vector<128x512xbf16>, vector<512x512xbf16>, vector<128x512xf32> -> vector<128x512xf32>
    %39 = vector.broadcast %4 : vector<1x512xf32> to vector<128x512xf32>
    %40 = arith.addf %38, %39 : vector<128x512xf32>
    %cst_15 = arith.constant 0.000000e+00 : f32
    %41 = vector.broadcast %cst_15 : f32 to vector<128x512xf32>
    %42 = arith.cmpf oge, %40, %41 : vector<128x512xf32>
    %cst_16 = arith.constant 2.000000e-01 : f32
    %43 = vector.broadcast %cst_16 : f32 to vector<128x512xf32>
    %44 = arith.mulf %43, %40 : vector<128x512xf32>
    %45 = arith.select %42, %40, %44 : vector<128x512xi1>, vector<128x512xf32>
    %46 = vector.shape_cast %45 : vector<128x512xf32> to vector<2x8x8x512xf32>
    %cst_17 = arith.constant dense<0.000000e+00> : vector<2x8x512xf32>
    %47 = vector.multi_reduction <add>, %46, %cst_17 [2] : vector<2x8x8x512xf32> to vector<2x8x512xf32>
    %48 = vector.shape_cast %47 : vector<2x8x512xf32> to vector<16x512xf32>
    %c0_18 = arith.constant 0 : index
    %c0_19 = arith.constant 0 : index
    %49 = vector.load %arg5[%c0_18, %c0_19] : memref<512x512xbf16, #tpu.memory_space<vmem>>, vector<512x512xbf16>
    %cst_20 = arith.constant dense<0.000000e+00> : vector<16x512xf32>
    %50 = tpu.matmul %0, %49, %cst_20 {dimension_numbers = #tpu.dot_dimension_numbers<[1], [0], [0], [1], [0, 0, 1, 1], [], []>} : vector<16x512xbf16>, vector<512x512xbf16>, vector<16x512xf32> -> vector<16x512xf32>
    %51 = arith.truncf %48 : vector<16x512xf32> to vector<16x512xbf16>
    %c0_21 = arith.constant 0 : index
    %c0_22 = arith.constant 0 : index
    %52 = vector.load %arg6[%c0_21, %c0_22] : memref<512x512xbf16, #tpu.memory_space<vmem>>, vector<512x512xbf16>
    %cst_23 = arith.constant dense<0.000000e+00> : vector<16x512xf32>
    %53 = tpu.matmul %51, %52, %cst_23 {dimension_numbers = #tpu.dot_dimension_numbers<[1], [0], [0], [1], [0, 0, 1, 1], [], []>} : vector<16x512xbf16>, vector<512x512xbf16>, vector<16x512xf32> -> vector<16x512xf32>
    %54 = arith.addf %50, %53 : vector<16x512xf32>
    %55 = vector.broadcast %5 : vector<1x512xf32> to vector<16x512xf32>
    %56 = arith.addf %54, %55 : vector<16x512xf32>
    %cst_24 = arith.constant 0.000000e+00 : f32
    %57 = vector.broadcast %cst_24 : f32 to vector<16x512xf32>
    %58 = arith.cmpf oge, %56, %57 : vector<16x512xf32>
    %cst_25 = arith.constant 2.000000e-01 : f32
    %59 = vector.broadcast %cst_25 : f32 to vector<16x512xf32>
    %60 = arith.mulf %59, %56 : vector<16x512xf32>
    %61 = arith.select %58, %56, %60 : vector<16x512xi1>, vector<16x512xf32>
    %c0_26 = arith.constant 0 : index
    %c0_27 = arith.constant 0 : index
    %62 = vector.load %arg8[%c0_26, %c0_27] : memref<16x512xf32, #tpu.memory_space<vmem>>, vector<16x512xf32>
    tpu.vector_store %arg8[%c0_26, %c0_27], %61 {strides = array<i32>} : memref<16x512xf32, #tpu.memory_space<vmem>>, vector<16x512xf32>,
    return
  }
  func.func @transform_0(%arg0: i32) -> (i32, i32) {
    %c0_i32 = arith.constant 0 : i32
    %c0_i32_0 = arith.constant 0 : i32
    return %arg0, %c0_i32 : i32, i32
  }
  func.func @transform_1(%arg0: i32) -> (i32, i32) {
    %c0_i32 = arith.constant 0 : i32
    %c0_i32_0 = arith.constant 0 : i32
    %c0_i32_1 = arith.constant 0 : i32
    return %c0_i32, %c0_i32_0 : i32, i32
  }
  func.func @transform_2(%arg0: i32) -> (i32, i32) {
    %c0_i32 = arith.constant 0 : i32
    %c0_i32_0 = arith.constant 0 : i32
    %c0_i32_1 = arith.constant 0 : i32
    return %c0_i32, %c0_i32_0 : i32, i32
  }
  func.func @transform_3(%arg0: i32) -> (i32, i32) {
    %c0_i32 = arith.constant 0 : i32
    %c0_i32_0 = arith.constant 0 : i32
    %c0_i32_1 = arith.constant 0 : i32
    return %c0_i32, %c0_i32_0 : i32, i32
  }
  func.func @transform_4(%arg0: i32) -> (i32, i32) {
    %c0_i32 = arith.constant 0 : i32
    %c0_i32_0 = arith.constant 0 : i32
    %c0_i32_1 = arith.constant 0 : i32
    return %c0_i32, %c0_i32_0 : i32, i32
  }
  func.func @transform_5(%arg0: i32) -> (i32, i32) {
    %c0_i32 = arith.constant 0 : i32
    %c0_i32_0 = arith.constant 0 : i32
    %c0_i32_1 = arith.constant 0 : i32
    return %c0_i32, %c0_i32_0 : i32, i32
  }
  func.func @transform_6(%arg0: i32) -> (i32, i32) {
    %c0_i32 = arith.constant 0 : i32
    %c0_i32_0 = arith.constant 0 : i32
    %c0_i32_1 = arith.constant 0 : i32
    return %c0_i32, %c0_i32_0 : i32, i32
  }
  func.func @transform_7(%arg0: i32) -> (i32, i32) {
    %c0_i32 = arith.constant 0 : i32
    %c0_i32_0 = arith.constant 0 : i32
    return %arg0, %c0_i32 : i32, i32
  }
}

</mosaic_0001>

<bundles_post_ra>
// kernel: tpu_custom_call.1
= control target key start
LH: loop header
LB: loop body
LE: loop exit
PB: predicated region body
PF: predicated region fallthrough
CT: control target
= control target key end

     0   :  { %12 = vsyncpa [#allocation3], 0  ;;  %s12268_s0 = inlined_call_operand.hbm [shape: bf16[16,512], index: 0, kind: input, shape index: {}]   ;;  %s12269_s1 = inlined_call_operand.hbm [shape: bf16[512,1024], index: 1, kind: input, shape index: {}]   ;;  %s12270_s2 = inlined_call_operand.hbm [shape: bf16[512,512], index: 2, kind: input, shape index: {}]   ;;  %s12271_s3 = inlined_call_operand.hbm [shape: bf16[512,512], index: 3, kind: input, shape index: {}]   ;;  %s12272_s4 = inlined_call_operand.hbm [shape: bf16[512,512], index: 4, kind: input, shape index: {}]   ;;  %s12273_s5 = inlined_call_operand.hbm [shape: bf16[512,512], index: 5, kind: input, shape index: {}]   ;;  %s12274_s6 = inlined_call_operand.vmem [shape: f32[4,512], index: 6, kind: input, shape index: {}]   ;;  %s12275_s7 = inlined_call_operand.hbm [shape: f32[16,512], index: 7, kind: output, shape index: {}]  }
   0x1   :  { %13 = vsyncpa [#allocation6], 0 }
   0x2   :  { %14 = vsyncpa [#allocation9], 0 }
   0x3   :  { %15 = vsyncpa [#allocation12], 0 }
   0x4   :  { %16 = vsyncpa [#allocation4], 0  ;;  %s10451_s24 = smov [#allocation5]   ;;  %s10287_s28 = scalar_lea.hbm %s12269_s1, 32768 }
   0x5   :  { %s34_s25 = sshll.u32 %s10451_s24, 4  ;;  %p10288_p0 = scmp.ne.s32.totalorder %s12269_s1, %s10287_s28  ;;  %s35_s25 = int_to_ptr.vmem [resolvable:$true] %s34_s25 }
   0x6   :  { %p10291_p1 = scmp.lt.u32.totalorder %s10287_s28, %s12269_s1 }
   0x8   :  { %p10293_p2 = pnand %p10291_p1, %p10288_p0 }
   0xa   :  { %10296 = shalt.err (!%p10293_p2)
}
   0xb   :  { %s10297_s10 = scalar_lea.vmem %s35_s25, 32768  ;;  %p10302_p4 = scmp.lt.s32.totalorder %s35_s25, %s35_s25 }
   0xc   :  { %p10298_p3 = scmp.ne.s32.totalorder %s35_s25, %s10297_s10  ;;  %p10303_p5 = scmp.lt.s32.totalorder %s10297_s10, %s10297_s10 }
   0xe   :  { %p10304_p6 = por %p10303_p5, %p10302_p4 }
  0x10   :  { %p10305_p7 = pnand %p10304_p6, %p10298_p3 }
  0x12   :  { %10308 = shalt.err (!%p10305_p7)
}
  0x13   :  { %s10452_s11 = smov 512   ;;  %s10453_s12 = smov 32  }
  0x14   :  { %40 = dma.hbm_to_vmem [thread:$0]  %s12269_s1, 32768, %s35_s25, [#allocation6], %s10452_s11, %s10452_s11, %s10453_s12  }
  0x15   :  { %s10454_s15 = smov [#allocation8]   ;;  %s10455_s17 = smov [#allocation2]  }
  0x16   :  { %s58_s16 = sshll.u32 %s10454_s15, 4  ;;  %s22_s18 = sshll.u32 %s10455_s17, 4  ;;  %s59_s16 = int_to_ptr.vmem [resolvable:$true] %s58_s16  ;;  %s23_s18 = int_to_ptr.vmem [resolvable:$true] %s22_s18 }
  0x17   :  { %s10309_s21 = scalar_lea.hbm %s12271_s3, 16384 }
  0x18   :  { %p10310_p8 = scmp.ne.s32.totalorder %s12271_s3, %s10309_s21  ;;  %p10313_p9 = scmp.lt.u32.totalorder %s10309_s21, %s12271_s3 }
  0x1a   :  { %p10315_p10 = pnand %p10313_p9, %p10310_p8 }
  0x1c   :  { %10318 = shalt.err (!%p10315_p10)
}
  0x1d   :  { %s10319_s1 = scalar_lea.vmem %s59_s16, 16384  ;;  %p10324_p12 = scmp.lt.s32.totalorder %s59_s16, %s59_s16 }
  0x1e   :  { %p10320_p11 = scmp.ne.s32.totalorder %s59_s16, %s10319_s1  ;;  %p10325_p13 = scmp.lt.s32.totalorder %s10319_s1, %s10319_s1 }
  0x20   :  { %p10326_p0 = por %p10325_p13, %p10324_p12 }
  0x22   :  { %p10327_p1 = pnand %p10326_p0, %p10320_p11 }
  0x24   :  { %10330 = shalt.err (!%p10327_p1)
}
  0x25   :  { %s10456_s25 = smov 256   ;;  %s10457_s27 = smov 16  }
  0x26   :  { %64 = dma.hbm_to_vmem [thread:$0]  %s12271_s3, 16384, %s59_s16, [#allocation9], %s10456_s25, %s10456_s25, %s10457_s27  }
  0x27   :  { %s10331_s9 = scalar_lea.hbm %s12268_s0, 512 }
  0x28   :  { %p10332_p2 = scmp.ne.s32.totalorder %s12268_s0, %s10331_s9  ;;  %p10335_p3 = scmp.lt.u32.totalorder %s10331_s9, %s12268_s0 }
  0x2a   :  { %p10337_p4 = pnand %p10335_p3, %p10332_p2 }
  0x2c   :  { %10340 = shalt.err (!%p10337_p4)
}
  0x2d   :  { %s10341_s17 = scalar_lea.vmem %s23_s18, 512  ;;  %p10346_p6 = scmp.lt.s32.totalorder %s23_s18, %s23_s18 }
  0x2e   :  { %p10342_p5 = scmp.ne.s32.totalorder %s23_s18, %s10341_s17  ;;  %p10347_p7 = scmp.lt.s32.totalorder %s10341_s17, %s10341_s17 }
  0x30   :  { %p10348_p8 = por %p10347_p7, %p10346_p6 }
  0x32   :  { %p10349_p9 = pnand %p10348_p8, %p10342_p5 }
  0x34   :  { %10352 = shalt.err (!%p10349_p9)
}
  0x35   :  { %28 = dma.hbm_to_vmem [thread:$0]  %s12268_s0, 512, %s23_s18, [#allocation3], %s10456_s25, %s10456_s25, %s10457_s27  }
  0x36   :  { %s10458_s19 = smov [#allocation7]   ;;  %s10459_s21 = smov [#allocation10]  }
  0x37   :  { %s46_s20 = sshll.u32 %s10458_s19, 4  ;;  %s70_s22 = sshll.u32 %s10459_s21, 4  ;;  %s47_s20 = int_to_ptr.vmem [resolvable:$true] %s46_s20  ;;  %s71_s22 = int_to_ptr.vmem [resolvable:$true] %s70_s22 }
  0x38   :  { %s10353_s26 = scalar_lea.hbm %s12270_s2, 16384 }
  0x39   :  { %p10354_p10 = scmp.ne.s32.totalorder %s12270_s2, %s10353_s26  ;;  %p10357_p11 = scmp.lt.u32.totalorder %s10353_s26, %s12270_s2 }
  0x3b   :  { %p10359_p12 = pnand %p10357_p11, %p10354_p10 }
  0x3d   :  { %10362 = shalt.err (!%p10359_p12)
}
  0x3e   :  { %s10363_s0 = scalar_lea.vmem %s47_s20, 16384  ;;  %p10368_p0 = scmp.lt.s32.totalorder %s47_s20, %s47_s20 }
  0x3f   :  { %p10364_p13 = scmp.ne.s32.totalorder %s47_s20, %s10363_s0  ;;  %p10369_p1 = scmp.lt.s32.totalorder %s10363_s0, %s10363_s0 }
  0x41   :  { %p10370_p2 = por %p10369_p1, %p10368_p0 }
  0x43   :  { %p10371_p3 = pnand %p10370_p2, %p10364_p13 }
  0x45   :  { %10374 = shalt.err (!%p10371_p3)
}
  0x46   :  { %52 = dma.hbm_to_vmem [thread:$0]  %s12270_s2, 16384, %s47_s20, [#allocation6], %s10456_s25, %s10456_s25, %s10457_s27  }
  0x47   :  { %s10375_s13 = scalar_lea.hbm %s12272_s4, 16384 }
  0x48   :  { %p10376_p4 = scmp.ne.s32.totalorder %s12272_s4, %s10375_s13  ;;  %p10379_p5 = scmp.lt.u32.totalorder %s10375_s13, %s12272_s4 }
  0x4a   :  { %p10381_p6 = pnand %p10379_p5, %p10376_p4 }
  0x4c   :  { %10384 = shalt.err (!%p10381_p6)
}
  0x4d   :  { %s10385_s16 = scalar_lea.vmem %s71_s22, 16384  ;;  %p10390_p8 = scmp.lt.s32.totalorder %s71_s22, %s71_s22 }
  0x4e   :  { %p10386_p7 = scmp.ne.s32.totalorder %s71_s22, %s10385_s16  ;;  %p10391_p9 = scmp.lt.s32.totalorder %s10385_s16, %s10385_s16 }
  0x50   :  { %p10392_p10 = por %p10391_p9, %p10390_p8 }
  0x52   :  { %p10393_p11 = pnand %p10392_p10, %p10386_p7 }
  0x54   :  { %10396 = shalt.err (!%p10393_p11)
}
  0x55   :  { %76 = dma.hbm_to_vmem [thread:$0]  %s12272_s4, 16384, %s71_s22, [#allocation9], %s10456_s25, %s10456_s25, %s10457_s27  }
  0x56   :  { %s10460_s20 = smov [#allocation11]   ;;  %s10397_s26 = scalar_lea.hbm %s12273_s5, 16384 }
  0x57   :  { %s82_s21 = sshll.u32 %s10460_s20, 4  ;;  %p10398_p12 = scmp.ne.s32.totalorder %s12273_s5, %s10397_s26  ;;  %s83_s21 = int_to_ptr.vmem [resolvable:$true] %s82_s21 }
  0x58   :  { %p10401_p13 = scmp.lt.u32.totalorder %s10397_s26, %s12273_s5 }
  0x5a   :  { %p10403_p0 = pnand %p10401_p13, %p10398_p12 }
  0x5c   :  { %10406 = shalt.err (!%p10403_p0)
}
  0x5d   :  { %s10407_s0 = scalar_lea.vmem %s83_s21, 16384  ;;  %p10412_p2 = scmp.lt.s32.totalorder %s83_s21, %s83_s21 }
  0x5e   :  { %p10408_p1 = scmp.ne.s32.totalorder %s83_s21, %s10407_s0  ;;  %p10413_p3 = scmp.lt.s32.totalorder %s10407_s0, %s10407_s0 }
  0x60   :  { %p10414_p4 = por %p10413_p3, %p10412_p2 }
  0x62   :  { %p10415_p5 = pnand %p10414_p4, %p10408_p1 }
  0x64   :  { %10418 = shalt.err (!%p10415_p5)
}
  0x65   :  { %88 = dma.hbm_to_vmem [thread:$0]  %s12273_s5, 16384, %s83_s21, [#allocation12], %s10456_s25, %s10456_s25, %s10457_s27  }
  0x66   :  { %10441 = dma.done.wait [#allocation3], 512  }
  0x67   :  { %10442 = vsyncadd [#allocation3], 4294966784 }
  0x68   :  { %10443 = dma.done.wait [#allocation6], 49152  }
  0x69   :  { %10444 = vsyncadd [#allocation6], 4294918144 }
  0x6a   :  { %10445 = dma.done.wait [#allocation9], 32768  }
  0x6b   :  { %10446 = vsyncadd [#allocation9], 4294934528 }
  0x6c   :  { %10447 = dma.done.wait [#allocation12], 16384  }
  0x6d   :  { %10448 = vsyncadd [#allocation12], 4294950912  ;;  %v115_v0 = vld [vmem:[#allocation5] sm:$0xff]  ;;  %v116_v2 = vld [vmem:[#allocation5 + $0x8] sm:$0xff] }
  0x6e   :  { %v119_v1 = vld [vmem:[#allocation5 + $0x20] sm:$0xff]  ;;  %v120_v4 = vld [vmem:[#allocation5 + $0x28] sm:$0xff] }
  0x6f   :  { %v8425_v3 = vcombine.high %v115_v0, %v119_v1  ;;  %v8424_v5 = vcombine.low %v115_v0, %v119_v1  ;;  %v123_v6 = vld [vmem:[#allocation5 + $0x40] sm:$0xff]  ;;  %v8427_v8 = vcombine.high %v116_v2, %v120_v4  ;;  %v8426_v9 = vcombine.low %v116_v2, %v120_v4  ;;  %v124_v11 = vld [vmem:[#allocation5 + $0x48] sm:$0xff] }
  0x70   :  { %v127_v7 = vld [vmem:[#allocation5 + $0x60] sm:$0xff]  ;;  %v128_v12 = vld [vmem:[#allocation5 + $0x68] sm:$0xff] }
  0x71   :  { %v8433_v10 = vcombine.high %v123_v6, %v127_v7  ;;  %v131_v13 = vld [vmem:[#allocation5 + $0x80] sm:$0xff]  ;;  %1671 = vmatprep.subr.bf16.mxu0 %v8425_v3  ;;  %v8435_v14 = vcombine.high %v124_v11, %v128_v12  ;;  %v132_v16 = vld [vmem:[#allocation5 + $0x88] sm:$0xff]  ;;  %1757 = vmatprep.subr.bf16.mxu1 %v8427_v8  ;;  %v8432_v18 = vcombine.low %v123_v6, %v127_v7 }
  0x72   :  { %v135_v15 = vld [vmem:[#allocation5 + $0xa0] sm:$0xff]  ;;  %v136_v17 = vld [vmem:[#allocation5 + $0xa8] sm:$0xff]  ;;  %1672 = vmatpush1.bf16.msra.mxu0 %v8424_v5  ;;  %1758 = vmatpush1.bf16.msra.mxu1 %v8426_v9  ;;  %v8434_v19 = vcombine.low %v124_v11, %v128_v12 }
  0x73   :  { %1673 = vmatprep.subr.bf16.mxu0 %v8433_v10  ;;  %v8441_v20 = vcombine.high %v131_v13, %v135_v15  ;;  %1759 = vmatprep.subr.bf16.mxu1 %v8435_v14  ;;  %v8443_v21 = vcombine.high %v132_v16, %v136_v17  ;;  %v139_v22 = vld [vmem:[#allocation5 + $0xc0] sm:$0xff]  ;;  %v140_v24 = vld [vmem:[#allocation5 + $0xc8] sm:$0xff]  ;;  %v8440_v26 = vcombine.low %v131_v13, %v135_v15 }
  0x74   :  { %v143_v23 = vld [vmem:[#allocation5 + $0xe0] sm:$0xff]  ;;  %v144_v25 = vld [vmem:[#allocation5 + $0xe8] sm:$0xff]  ;;  %v8442_v27 = vcombine.low %v132_v16, %v136_v17 }
  0x75   :  { %v8449_v28 = vcombine.high %v139_v22, %v143_v23  ;;  %v8451_v29 = vcombine.high %v140_v24, %v144_v25  ;;  %v147_v30 = vld [vmem:[#allocation5 + $0x100] sm:$0xff]  ;;  %v148_v32 = vld [vmem:[#allocation5 + $0x108] sm:$0xff]  ;;  %v8448_v34 = vcombine.low %v139_v22, %v143_v23  ;;  %v8450_v35 = vcombine.low %v140_v24, %v144_v25 }
  0x76   :  { %1674 = vmatpush1.bf16.msra.mxu0 %v8432_v18  ;;  %1760 = vmatpush1.bf16.msra.mxu1 %v8434_v19  ;;  %v151_v31 = vld [vmem:[#allocation5 + $0x120] sm:$0xff]  ;;  %v152_v33 = vld [vmem:[#allocation5 + $0x128] sm:$0xff] }
  0x77   :  { %1675 = vmatprep.subr.bf16.mxu0 %v8441_v20  ;;  %1761 = vmatprep.subr.bf16.mxu1 %v8443_v21  ;;  %v8457_v36 = vcombine.high %v147_v30, %v151_v31  ;;  %v8459_v37 = vcombine.high %v148_v32, %v152_v33  ;;  %v155_v38 = vld [vmem:[#allocation5 + $0x140] sm:$0xff]  ;;  %v156_v40 = vld [vmem:[#allocation5 + $0x148] sm:$0xff]  ;;  %v8456_v42 = vcombine.low %v147_v30, %v151_v31 }
  0x78   :  { %v159_v39 = vld [vmem:[#allocation5 + $0x160] sm:$0xff]  ;;  %v160_v41 = vld [vmem:[#allocation5 + $0x168] sm:$0xff]  ;;  %v8458_v43 = vcombine.low %v148_v32, %v152_v33 }
  0x79   :  { %v8465_v44 = vcombine.high %v155_v38, %v159_v39  ;;  %v8467_v45 = vcombine.high %v156_v40, %v160_v41  ;;  %v163_v46 = vld [vmem:[#allocation5 + $0x180] sm:$0xff]  ;;  %v164_v48 = vld [vmem:[#allocation5 + $0x188] sm:$0xff]  ;;  %v8464_v50 = vcombine.low %v155_v38, %v159_v39  ;;  %v8466_v51 = vcombine.low %v156_v40, %v160_v41 }
  0x7a   :  { %1676 = vmatpush1.bf16.msra.mxu0 %v8440_v26  ;;  %1762 = vmatpush1.bf16.msra.mxu1 %v8442_v27  ;;  %v167_v47 = vld [vmem:[#allocation5 + $0x1a0] sm:$0xff]  ;;  %v168_v49 = vld [vmem:[#allocation5 + $0x1a8] sm:$0xff] }
  0x7b   :  { %1677 = vmatprep.subr.bf16.mxu0 %v8449_v28  ;;  %1763 = vmatprep.subr.bf16.mxu1 %v8451_v29  ;;  %v8473_v52 = vcombine.high %v163_v46, %v167_v47  ;;  %v8475_v53 = vcombine.high %v164_v48, %v168_v49  ;;  %v171_v54 = vld [vmem:[#allocation5 + $0x1c0] sm:$0xff]  ;;  %v172_v57 = vld [vmem:[#allocation5 + $0x1c8] sm:$0xff]  ;;  %v8472_v59 = vcombine.low %v163_v46, %v167_v47 }
  0x7c   :  { %v175_v55 = vld [vmem:[#allocation5 + $0x1e0] sm:$0xff]  ;;  %v176_v58 = vld [vmem:[#allocation5 + $0x1e8] sm:$0xff]  ;;  %v8474_v60 = vcombine.low %v164_v48, %v168_v49 }
  0x7d   :  { %v10593_v56 = vld [vmem:[#allocation2 + $0x4] ss:$16 sps:$4 sm:$0xff]   ;;  %v8481_v61 = vcombine.high %v171_v54, %v175_v55  ;;  %v8483_v62 = vcombine.high %v172_v57, %v176_v58  ;;  %v180_v1 = vld [vmem:[#allocation5 + $0x208] sm:$0xff]  ;;  %v8480_v3 = vcombine.low %v171_v54, %v175_v55  ;;  %v8482_v4 = vcombine.low %v172_v57, %v176_v58 }
  0x7e   :  { %1678 = vmatpush1.bf16.msra.mxu0 %v8448_v34  ;;  %1764 = vmatpush1.bf16.msra.mxu1 %v8450_v35  ;;  %v179_v63 = vld [vmem:[#allocation5 + $0x200] sm:$0xff]  ;;  %v184_v2 = vld [vmem:[#allocation5 + $0x228] sm:$0xff] }
  0x7f   :  { %1679 = vmatprep.subr.bf16.mxu0 %v8457_v36  ;;  %1765 = vmatprep.subr.bf16.mxu1 %v8459_v37  ;;  %v183_v0 = vld [vmem:[#allocation5 + $0x220] sm:$0xff]  ;;  %v8491_v6 = vcombine.high %v180_v1, %v184_v2  ;;  %v188_v9 = vld [vmem:[#allocation5 + $0x248] sm:$0xff]  ;;  %v8490_v12 = vcombine.low %v180_v1, %v184_v2 }
  0x80   :  { %1703 = vmatprep.mubr.bf16.mxu0 %v10593_v56  ;;  %1789 = vmatprep.mubr.bf16.mxu1 %v10593_v56  ;;  %v8489_v5 = vcombine.high %v179_v63, %v183_v0  ;;  %v187_v7 = vld [vmem:[#allocation5 + $0x240] sm:$0xff]  ;;  %v192_v10 = vld [vmem:[#allocation5 + $0x268] sm:$0xff]  ;;  %v8488_v11 = vcombine.low %v179_v63, %v183_v0 }
  0x81   :  { %v191_v8 = vld [vmem:[#allocation5 + $0x260] sm:$0xff]  ;;  %v8499_v14 = vcombine.high %v188_v9, %v192_v10  ;;  %v196_v17 = vld [vmem:[#allocation5 + $0x288] sm:$0xff]  ;;  %v8498_v20 = vcombine.low %v188_v9, %v192_v10 }
  0x82   :  { %1680 = vmatpush1.bf16.msra.mxu0 %v8456_v42  ;;  %1766 = vmatpush1.bf16.msra.mxu1 %v8458_v43  ;;  %v8497_v13 = vcombine.high %v187_v7, %v191_v8  ;;  %v195_v15 = vld [vmem:[#allocation5 + $0x280] sm:$0xff]  ;;  %v200_v18 = vld [vmem:[#allocation5 + $0x2a8] sm:$0xff]  ;;  %v8496_v19 = vcombine.low %v187_v7, %v191_v8 }
  0x83   :  { %1681 = vmatprep.subr.bf16.mxu0 %v8465_v44  ;;  %1767 = vmatprep.subr.bf16.mxu1 %v8467_v45  ;;  %v199_v16 = vld [vmem:[#allocation5 + $0x2a0] sm:$0xff]  ;;  %v8507_v22 = vcombine.high %v196_v17, %v200_v18  ;;  %v204_v25 = vld [vmem:[#allocation5 + $0x2c8] sm:$0xff]  ;;  %v8506_v28 = vcombine.low %v196_v17, %v200_v18 }
  0x84   :  { %v8505_v21 = vcombine.high %v195_v15, %v199_v16  ;;  %v203_v23 = vld [vmem:[#allocation5 + $0x2c0] sm:$0xff]  ;;  %v208_v26 = vld [vmem:[#allocation5 + $0x2e8] sm:$0xff]  ;;  %v8504_v27 = vcombine.low %v195_v15, %v199_v16 }
  0x85   :  { %v207_v24 = vld [vmem:[#allocation5 + $0x2e0] sm:$0xff]  ;;  %v8515_v30 = vcombine.high %v204_v25, %v208_v26  ;;  %v212_v33 = vld [vmem:[#allocation5 + $0x308] sm:$0xff]  ;;  %v8514_v36 = vcombine.low %v204_v25, %v208_v26 }
  0x86   :  { %1682 = vmatpush1.bf16.msra.mxu0 %v8464_v50  ;;  %1768 = vmatpush1.bf16.msra.mxu1 %v8466_v51  ;;  %v8513_v29 = vcombine.high %v203_v23, %v207_v24  ;;  %v211_v31 = vld [vmem:[#allocation5 + $0x300] sm:$0xff]  ;;  %v216_v34 = vld [vmem:[#allocation5 + $0x328] sm:$0xff]  ;;  %v8512_v35 = vcombine.low %v203_v23, %v207_v24 }
  0x87   :  { %1683 = vmatprep.subr.bf16.mxu0 %v8473_v52  ;;  %1769 = vmatprep.subr.bf16.mxu1 %v8475_v53  ;;  %v215_v32 = vld [vmem:[#allocation5 + $0x320] sm:$0xff]  ;;  %v8523_v38 = vcombine.high %v212_v33, %v216_v34  ;;  %v220_v41 = vld [vmem:[#allocation5 + $0x348] sm:$0xff]  ;;  %v8522_v44 = vcombine.low %v212_v33, %v216_v34 }
  0x88   :  { %v8521_v37 = vcombine.high %v211_v31, %v215_v32  ;;  %v219_v39 = vld [vmem:[#allocation5 + $0x340] sm:$0xff]  ;;  %v224_v42 = vld [vmem:[#allocation5 + $0x368] sm:$0xff]  ;;  %v8520_v43 = vcombine.low %v211_v31, %v215_v32 }
  0x89   :  { %v223_v40 = vld [vmem:[#allocation5 + $0x360] sm:$0xff]  ;;  %v8531_v46 = vcombine.high %v220_v41, %v224_v42  ;;  %v228_v49 = vld [vmem:[#allocation5 + $0x388] sm:$0xff]  ;;  %v8530_v52 = vcombine.low %v220_v41, %v224_v42 }
  0x8a   :  { %1684 = vmatpush1.bf16.msra.mxu0 %v8472_v59  ;;  %1770 = vmatpush1.bf16.msra.mxu1 %v8474_v60  ;;  %v8529_v45 = vcombine.high %v219_v39, %v223_v40  ;;  %v227_v47 = vld [vmem:[#allocation5 + $0x380] sm:$0xff]  ;;  %v232_v50 = vld [vmem:[#allocation5 + $0x3a8] sm:$0xff]  ;;  %v8528_v51 = vcombine.low %v219_v39, %v223_v40 }
  0x8b   :  { %1685 = vmatprep.subr.bf16.mxu0 %v8481_v61  ;;  %1771 = vmatprep.subr.bf16.mxu1 %v8483_v62  ;;  %v231_v48 = vld [vmem:[#allocation5 + $0x3a0] sm:$0xff]  ;;  %v8539_v54 = vcombine.high %v228_v49, %v232_v50  ;;  %v236_v58 = vld [vmem:[#allocation5 + $0x3c8] sm:$0xff]  ;;  %v8538_v61 = vcombine.low %v228_v49, %v232_v50 }
  0x8c   :  { %v8537_v53 = vcombine.high %v227_v47, %v231_v48  ;;  %v235_v55 = vld [vmem:[#allocation5 + $0x3c0] sm:$0xff]  ;;  %v240_v59 = vld [vmem:[#allocation5 + $0x3e8] sm:$0xff]  ;;  %v8536_v60 = vcombine.low %v227_v47, %v231_v48 }
  0x8d   :  { %v239_v57 = vld [vmem:[#allocation5 + $0x3e0] sm:$0xff]  ;;  %v8547_v63 = vcombine.high %v236_v58, %v240_v59  ;;  %v244_v2 = vld [vmem:[#allocation5 + $0x408] sm:$0xff] }
  0x8e   :  { %1686 = vmatpush1.bf16.msra.mxu0 %v8480_v3  ;;  %1772 = vmatpush1.bf16.msra.mxu1 %v8482_v4  ;;  %v8545_v62 = vcombine.high %v235_v55, %v239_v57  ;;  %v243_v0 = vld [vmem:[#allocation5 + $0x400] sm:$0xff]  ;;  %v248_v3 = vld [vmem:[#allocation5 + $0x428] sm:$0xff]  ;;  %v8544_v4 = vcombine.low %v235_v55, %v239_v57 }
  0x8f   :  { %1687 = vmatprep.subr.bf16.mxu0 %v8489_v5  ;;  %1773 = vmatprep.subr.bf16.mxu1 %v8491_v6  ;;  %v247_v1 = vld [vmem:[#allocation5 + $0x420] sm:$0xff]  ;;  %v8546_v5 = vcombine.low %v236_v58, %v240_v59  ;;  %v8555_v7 = vcombine.high %v244_v2, %v248_v3 }
  0x90   :  { %v8553_v6 = vcombine.high %v243_v0, %v247_v1  ;;  %v251_v8 = vld [vmem:[#allocation5 + $0x440] sm:$0xff] }
  0x91   :  { %v255_v9 = vld [vmem:[#allocation5 + $0x460] sm:$0xff] }
  0x92   :  { %1688 = vmatpush1.bf16.msra.mxu0 %v8488_v11  ;;  %1774 = vmatpush1.bf16.msra.mxu1 %v8490_v12  ;;  %v9502_v10 = vld [vmem:[#allocation2] ss:$16 sps:$4 sm:$0xff]   ;;  %v252_v11 = vld [vmem:[#allocation5 + $0x448] sm:$0xff]  ;;  %v8561_v15 = vcombine.high %v251_v8, %v255_v9 }
  0x93   :  { %1689 = vmatprep.subr.bf16.mxu0 %v8497_v13  ;;  %1775 = vmatprep.subr.bf16.mxu1 %v8499_v14  ;;  %v256_v12 = vld [vmem:[#allocation5 + $0x468] sm:$0xff]  ;;  %v8552_v13 = vcombine.low %v243_v0, %v247_v1  ;;  %v8554_v14 = vcombine.low %v244_v2, %v248_v3  ;;  %v259_v17 = vld [vmem:[#allocation5 + $0x480] sm:$0xff] }
  0x94   :  { %v8563_v16 = vcombine.high %v252_v11, %v256_v12  ;;  %v263_v18 = vld [vmem:[#allocation5 + $0x4a0] sm:$0xff]  ;;  %v8562_v23 = vcombine.low %v252_v11, %v256_v12  ;;  %v316_v12 = vld [vmem:[#allocation5 + $0x648] sm:$0xff] }
  0x95   :  { %v8569_v24 = vcombine.high %v259_v17, %v263_v18  ;;  %v267_v25 = vld [vmem:[#allocation5 + $0x4c0] sm:$0xff] }
  0x96   :  { %1690 = vmatpush1.bf16.msra.mxu0 %v8496_v19  ;;  %1776 = vmatpush1.bf16.msra.mxu1 %v8498_v20  ;;  %v9503_v19 = vld [vmem:[#allocation2 + $0xc] ss:$16 sps:$4 sm:$0xff]   ;;  %v271_v26 = vld [vmem:[#allocation5 + $0x4e0] sm:$0xff] }
  0x97   :  { %1691 = vmatprep.subr.bf16.mxu0 %v8505_v21  ;;  %1777 = vmatprep.subr.bf16.mxu1 %v8507_v22  ;;  %v260_v20 = vld [vmem:[#allocation5 + $0x488] sm:$0xff]  ;;  %v8560_v22 = vcombine.low %v251_v8, %v255_v9  ;;  %v8577_v32 = vcombine.high %v267_v25, %v271_v26  ;;  %v275_v33 = vld [vmem:[#allocation5 + $0x500] sm:$0xff] }
  0x98   :  { %v264_v21 = vld [vmem:[#allocation5 + $0x4a8] sm:$0xff]  ;;  %v279_v34 = vld [vmem:[#allocation5 + $0x520] sm:$0xff] }
  0x99   :  { %v8570_v31 = vcombine.low %v260_v20, %v264_v21  ;;  %v8585_v40 = vcombine.high %v275_v33, %v279_v34  ;;  %v283_v41 = vld [vmem:[#allocation5 + $0x540] sm:$0xff] }
  0x9a   :  { %1692 = vmatpush1.bf16.msra.mxu0 %v8504_v27  ;;  %1778 = vmatpush1.bf16.msra.mxu1 %v8506_v28  ;;  %v268_v27 = vld [vmem:[#allocation5 + $0x4c8] sm:$0xff]  ;;  %v8571_v28 = vcombine.high %v260_v20, %v264_v21  ;;  %v287_v42 = vld [vmem:[#allocation5 + $0x560] sm:$0xff] }
  0x9b   :  { %1693 = vmatprep.subr.bf16.mxu0 %v8513_v29  ;;  %1779 = vmatprep.subr.bf16.mxu1 %v8515_v30  ;;  %v272_v29 = vld [vmem:[#allocation5 + $0x4e8] sm:$0xff]  ;;  %v8568_v30 = vcombine.low %v259_v17, %v263_v18  ;;  %v8593_v48 = vcombine.high %v283_v41, %v287_v42  ;;  %v291_v49 = vld [vmem:[#allocation5 + $0x580] sm:$0xff] }
  0x9c   :  { %v8578_v39 = vcombine.low %v268_v27, %v272_v29  ;;  %v295_v50 = vld [vmem:[#allocation5 + $0x5a0] sm:$0xff]  ;;  %v324_v20 = vld [vmem:[#allocation5 + $0x688] sm:$0xff] }
  0x9d   :  { %v8601_v57 = vcombine.high %v291_v49, %v295_v50  ;;  %v299_v58 = vld [vmem:[#allocation5 + $0x5c0] sm:$0xff] }
  0x9e   :  { %1694 = vmatpush1.bf16.msra.mxu0 %v8512_v35  ;;  %1780 = vmatpush1.bf16.msra.mxu1 %v8514_v36  ;;  %v276_v35 = vld [vmem:[#allocation5 + $0x508] sm:$0xff]  ;;  %v8579_v36 = vcombine.high %v268_v27, %v272_v29  ;;  %v303_v59 = vld [vmem:[#allocation5 + $0x5e0] sm:$0xff] }
  0x9f   :  { %1695 = vmatprep.subr.bf16.mxu0 %v8521_v37  ;;  %1781 = vmatprep.subr.bf16.mxu1 %v8523_v38  ;;  %v280_v37 = vld [vmem:[#allocation5 + $0x528] sm:$0xff]  ;;  %v8576_v38 = vcombine.low %v267_v25, %v271_v26  ;;  %v8609_v1 = vcombine.high %v299_v58, %v303_v59  ;;  %v307_v2 = vld [vmem:[#allocation5 + $0x600] sm:$0xff] }
  0xa0   :  { %v8586_v47 = vcombine.low %v276_v35, %v280_v37  ;;  %v311_v3 = vld [vmem:[#allocation5 + $0x620] sm:$0xff] }
  0xa1   :  { %v8617_v9 = vcombine.high %v307_v2, %v311_v3  ;;  %v319_v11 = vld [vmem:[#allocation5 + $0x660] sm:$0xff] }
  0xa2   :  { %1696 = vmatpush1.bf16.msra.mxu0 %v8520_v43  ;;  %1782 = vmatpush1.bf16.msra.mxu1 %v8522_v44  ;;  %v284_v43 = vld [vmem:[#allocation5 + $0x548] sm:$0xff]  ;;  %v8587_v44 = vcombine.high %v276_v35, %v280_v37  ;;  %v323_v18 = vld [vmem:[#allocation5 + $0x680] sm:$0xff] }
  0xa3   :  { %1697 = vmatprep.subr.bf16.mxu0 %v8529_v45  ;;  %1783 = vmatprep.subr.bf16.mxu1 %v8531_v46  ;;  %v288_v45 = vld [vmem:[#allocation5 + $0x568] sm:$0xff]  ;;  %v8584_v46 = vcombine.low %v275_v33, %v279_v34  ;;  %v331_v26 = vld [vmem:[#allocation5 + $0x6c0] sm:$0xff] }
  0xa4   :  { %v8594_v55 = vcombine.low %v284_v43, %v288_v45  ;;  %v335_v27 = vld [vmem:[#allocation5 + $0x6e0] sm:$0xff] }
  0xa5   :  { %v8641_v33 = vcombine.high %v331_v26, %v335_v27  ;;  %v339_v34 = vld [vmem:[#allocation5 + $0x700] sm:$0xff] }
  0xa6   :  { %1698 = vmatpush1.bf16.msra.mxu0 %v8528_v51  ;;  %1784 = vmatpush1.bf16.msra.mxu1 %v8530_v52  ;;  %v292_v51 = vld [vmem:[#allocation5 + $0x588] sm:$0xff]  ;;  %v8595_v52 = vcombine.high %v284_v43, %v288_v45  ;;  %v343_v35 = vld [vmem:[#allocation5 + $0x720] sm:$0xff] }
  0xa7   :  { %1699 = vmatprep.subr.bf16.mxu0 %v8537_v53  ;;  %1785 = vmatprep.subr.bf16.mxu1 %v8539_v54  ;;  %v296_v53 = vld [vmem:[#allocation5 + $0x5a8] sm:$0xff]  ;;  %v8592_v54 = vcombine.low %v283_v41, %v287_v42  ;;  %v8649_v41 = vcombine.high %v339_v34, %v343_v35  ;;  %v347_v42 = vld [vmem:[#allocation5 + $0x740] sm:$0xff] }
  0xa8   :  { %v8602_v0 = vcombine.low %v292_v51, %v296_v53  ;;  %v351_v43 = vld [vmem:[#allocation5 + $0x760] sm:$0xff] }
  0xaa   :  { %1700 = vmatpush1.bf16.msra.mxu0 %v8536_v60  ;;  %1786 = vmatpush1.bf16.msra.mxu1 %v8538_v61  ;;  %v300_v60 = vld [vmem:[#allocation5 + $0x5c8] sm:$0xff]  ;;  %v8603_v61 = vcombine.high %v292_v51, %v296_v53  ;;  %v359_v51 = vld [vmem:[#allocation5 + $0x7a0] sm:$0xff] }
  0xab   :  { %1701 = vmatprep.subr.bf16.mxu0 %v8545_v62  ;;  %1787 = vmatprep.subr.bf16.mxu1 %v8547_v63  ;;  %v304_v62 = vld [vmem:[#allocation5 + $0x5e8] sm:$0xff]  ;;  %v8600_v63 = vcombine.low %v291_v49, %v295_v50  ;;  %v8657_v49 = vcombine.high %v347_v42, %v351_v43  ;;  %v355_v50 = vld [vmem:[#allocation5 + $0x780] sm:$0xff] }
  0xac   :  { %v8610_v8 = vcombine.low %v300_v60, %v304_v62 }
  0xae   :  { %1702 = vmatpush1.bf16.msra.mxu0 %v8544_v4  ;;  %1788 = vmatpush1.bf16.msra.mxu1 %v8546_v5  ;;  %v308_v4 = vld [vmem:[#allocation5 + $0x608] sm:$0xff]  ;;  %v8611_v5 = vcombine.high %v300_v60, %v304_v62  ;;  %v367_v60 = vld [vmem:[#allocation5 + $0x7e0] sm:$0xff] }
  0xaf   :  { %1714 = vmatprep.subr.bf16.mxu0 %v8553_v6  ;;  %1800 = vmatprep.subr.bf16.mxu1 %v8555_v7  ;;  %v312_v6 = vld [vmem:[#allocation5 + $0x628] sm:$0xff]  ;;  %v8608_v7 = vcombine.low %v299_v58, %v303_v59  ;;  %v8665_v58 = vcombine.high %v355_v50, %v359_v51  ;;  %v363_v59 = vld [vmem:[#allocation5 + $0x7c0] sm:$0xff] }
  0xb1   :  { %1704 = vmatmul.mubr.bf16.vlgmr.msra.gmra.mrb[0].mxu0 %v9502_v10  ;;  %1790 = vmatmul.mubr.bf16.vlgmr.msra.gmra.mrb[0].mxu1 %v9502_v10  ;;  %v315_v10 = vld [vmem:[#allocation5 + $0x640] sm:$0xff] }
  0xb2   :  { %1715 = vmatpush1.bf16.msra.mxu0 %v8552_v13  ;;  %1801 = vmatpush1.bf16.msra.mxu1 %v8554_v14  ;;  %v8619_v13 = vcombine.high %v308_v4, %v312_v6  ;;  %v320_v14 = vld [vmem:[#allocation5 + $0x668] sm:$0xff]  ;;  %v8625_v17 = vcombine.high %v315_v10, %v319_v11 }
  0xb3   :  { %1716 = vmatprep.subr.bf16.mxu0 %v8561_v15  ;;  %1802 = vmatprep.subr.bf16.mxu1 %v8563_v16  ;;  %v8616_v15 = vcombine.low %v307_v2, %v311_v3  ;;  %v8618_v16 = vcombine.low %v308_v4, %v312_v6  ;;  %v8627_v21 = vcombine.high %v316_v12, %v320_v14  ;;  %v117_v3 = vld [vmem:[#allocation5 + $0x10] sm:$0xff] }
  0xb4   :  { %1746 = vmatprep.mubr.bf16.mxu0 %v9503_v19  ;;  %1832 = vmatprep.mubr.bf16.mxu1 %v9503_v19  ;;  %v327_v19 = vld [vmem:[#allocation5 + $0x6a0] sm:$0xff]  ;;  %v8673_v2 = vcombine.high %v363_v59, %v367_v60  ;;  %v121_v4 = vld [vmem:[#allocation5 + $0x30] sm:$0xff] }
  0xb5   :  { %v8633_v25 = vcombine.high %v323_v18, %v327_v19 }
  0xb6   :  { %1717 = vmatpush1.bf16.msra.mxu0 %v8560_v22  ;;  %1803 = vmatpush1.bf16.msra.mxu1 %v8562_v23  ;;  %v328_v22 = vld [vmem:[#allocation5 + $0x6a8] sm:$0xff]  ;;  %v8624_v23 = vcombine.low %v315_v10, %v319_v11  ;;  %v8429_v11 = vcombine.high %v117_v3, %v121_v4 }
  0xb7   :  { %1718 = vmatprep.subr.bf16.mxu0 %v8569_v24  ;;  %1804 = vmatprep.subr.bf16.mxu1 %v8571_v28  ;;  %v8626_v24 = vcombine.low %v316_v12, %v320_v14  ;;  %v332_v28 = vld [vmem:[#allocation5 + $0x6c8] sm:$0xff]  ;;  %v8635_v29 = vcombine.high %v324_v20, %v328_v22  ;;  %v125_v12 = vld [vmem:[#allocation5 + $0x50] sm:$0xff]  ;;  %v126_v14 = vld [vmem:[#allocation5 + $0x58] sm:$0xff] }
  0xb8   :  { %v9505_v10 = vld [vmem:[#allocation2 + $0x8] ss:$16 sps:$4 sm:$0xff]  }
  0xba   :  { %1719 = vmatpush1.bf16.msra.mxu0 %v8568_v30  ;;  %1805 = vmatpush1.bf16.msra.mxu1 %v8570_v31  ;;  %v336_v30 = vld [vmem:[#allocation5 + $0x6e8] sm:$0xff]  ;;  %v8632_v31 = vcombine.low %v323_v18, %v327_v19  ;;  %v133_v18 = vld [vmem:[#allocation5 + $0x90] sm:$0xff] }
  0xbb   :  { %1720 = vmatprep.subr.bf16.mxu0 %v8577_v32  ;;  %1806 = vmatprep.subr.bf16.mxu1 %v8579_v36  ;;  %v8634_v32 = vcombine.low %v324_v20, %v328_v22  ;;  %v340_v36 = vld [vmem:[#allocation5 + $0x708] sm:$0xff]  ;;  %v8643_v37 = vcombine.high %v332_v28, %v336_v30  ;;  %v137_v19 = vld [vmem:[#allocation5 + $0xb0] sm:$0xff]  ;;  %v134_v22 = vld [vmem:[#allocation5 + $0x98] sm:$0xff] }
  0xbe   :  { %1721 = vmatpush1.bf16.msra.mxu0 %v8576_v38  ;;  %1807 = vmatpush1.bf16.msra.mxu1 %v8578_v39  ;;  %v344_v38 = vld [vmem:[#allocation5 + $0x728] sm:$0xff]  ;;  %v8640_v39 = vcombine.low %v331_v26, %v335_v27  ;;  %v141_v26 = vld [vmem:[#allocation5 + $0xd0] sm:$0xff] }
  0xbf   :  { %1722 = vmatprep.subr.bf16.mxu0 %v8585_v40  ;;  %1808 = vmatprep.subr.bf16.mxu1 %v8587_v44  ;;  %v8642_v40 = vcombine.low %v332_v28, %v336_v30  ;;  %v348_v44 = vld [vmem:[#allocation5 + $0x748] sm:$0xff]  ;;  %v8651_v45 = vcombine.high %v340_v36, %v344_v38  ;;  %v145_v27 = vld [vmem:[#allocation5 + $0xf0] sm:$0xff]  ;;  %v142_v30 = vld [vmem:[#allocation5 + $0xd8] sm:$0xff] }
  0xc2   :  { %1723 = vmatpush1.bf16.msra.mxu0 %v8584_v46  ;;  %1809 = vmatpush1.bf16.msra.mxu1 %v8586_v47  ;;  %v352_v46 = vld [vmem:[#allocation5 + $0x768] sm:$0xff]  ;;  %v8648_v47 = vcombine.low %v339_v34, %v343_v35  ;;  %v149_v34 = vld [vmem:[#allocation5 + $0x110] sm:$0xff] }
  0xc3   :  { %1724 = vmatprep.subr.bf16.mxu0 %v8593_v48  ;;  %1810 = vmatprep.subr.bf16.mxu1 %v8595_v52  ;;  %v8650_v48 = vcombine.low %v340_v36, %v344_v38  ;;  %v356_v52 = vld [vmem:[#allocation5 + $0x788] sm:$0xff]  ;;  %v8659_v53 = vcombine.high %v348_v44, %v352_v46  ;;  %v153_v35 = vld [vmem:[#allocation5 + $0x130] sm:$0xff]  ;;  %v150_v38 = vld [vmem:[#allocation5 + $0x118] sm:$0xff] }
  0xc6   :  { %1725 = vmatpush1.bf16.msra.mxu0 %v8592_v54  ;;  %1811 = vmatpush1.bf16.msra.mxu1 %v8594_v55  ;;  %v360_v54 = vld [vmem:[#allocation5 + $0x7a8] sm:$0xff]  ;;  %v8656_v55 = vcombine.low %v347_v42, %v351_v43  ;;  %v157_v42 = vld [vmem:[#allocation5 + $0x150] sm:$0xff] }
  0xc7   :  { %1726 = vmatprep.subr.bf16.mxu0 %v8601_v57  ;;  %1812 = vmatprep.subr.bf16.mxu1 %v8603_v61  ;;  %v8658_v57 = vcombine.low %v348_v44, %v352_v46  ;;  %v364_v61 = vld [vmem:[#allocation5 + $0x7c8] sm:$0xff]  ;;  %v8667_v62 = vcombine.high %v356_v52, %v360_v54  ;;  %v161_v43 = vld [vmem:[#allocation5 + $0x170] sm:$0xff]  ;;  %v162_v46 = vld [vmem:[#allocation5 + $0x178] sm:$0xff] }
  0xca   :  { %1727 = vmatpush1.bf16.msra.mxu0 %v8600_v63  ;;  %1813 = vmatpush1.bf16.msra.mxu1 %v8602_v0  ;;  %v368_v63 = vld [vmem:[#allocation5 + $0x7e8] sm:$0xff]  ;;  %v8664_v0 = vcombine.low %v355_v50, %v359_v51  ;;  %v169_v50 = vld [vmem:[#allocation5 + $0x1b0] sm:$0xff] }
  0xcb   :  { %1728 = vmatprep.subr.bf16.mxu0 %v8609_v1  ;;  %1814 = vmatprep.subr.bf16.mxu1 %v8611_v5  ;;  %v8666_v1 = vcombine.low %v356_v52, %v360_v54  ;;  %v118_v5 = vld [vmem:[#allocation5 + $0x18] sm:$0xff]  ;;  %v8675_v6 = vcombine.high %v364_v61, %v368_v63  ;;  %v8469_v52 = vcombine.high %v157_v42, %v161_v43 }
  0xcc   :  { %v170_v54 = vld [vmem:[#allocation5 + $0x1b8] sm:$0xff] }
  0xce   :  { %1729 = vmatpush1.bf16.msra.mxu0 %v8608_v7  ;;  %1815 = vmatpush1.bf16.msra.mxu1 %v8610_v8  ;;  %v122_v7 = vld [vmem:[#allocation5 + $0x38] sm:$0xff]  ;;  %v8672_v8 = vcombine.low %v363_v59, %v367_v60  ;;  %v177_v59 = vld [vmem:[#allocation5 + $0x1f0] sm:$0xff] }
  0xcf   :  { %1730 = vmatprep.subr.bf16.mxu0 %v8617_v9  ;;  %1816 = vmatprep.subr.bf16.mxu1 %v8619_v13  ;;  %v8674_v9 = vcombine.low %v364_v61, %v368_v63  ;;  %v129_v13 = vld [vmem:[#allocation5 + $0x70] sm:$0xff]  ;;  %v8430_v20 = vcombine.low %v118_v5, %v122_v7  ;;  %v178_v63 = vld [vmem:[#allocation5 + $0x1f8] sm:$0xff] }
  0xd2   :  { %1731 = vmatpush1.bf16.msra.mxu0 %v8616_v15  ;;  %1817 = vmatpush1.bf16.msra.mxu1 %v8618_v16  ;;  %v8431_v15 = vcombine.high %v118_v5, %v122_v7  ;;  %v130_v16 = vld [vmem:[#allocation5 + $0x78] sm:$0xff] }
  0xd3   :  { %1732 = vmatprep.subr.bf16.mxu0 %v8625_v17  ;;  %1818 = vmatprep.subr.bf16.mxu1 %v8627_v21  ;;  %v8428_v17 = vcombine.low %v117_v3, %v121_v4  ;;  %v8437_v21 = vcombine.high %v125_v12, %v129_v13  ;;  %v8438_v28 = vcombine.low %v126_v14, %v130_v16  ;;  %v185_v3 = vld [vmem:[#allocation5 + $0x230] sm:$0xff]  ;;  %v186_v7 = vld [vmem:[#allocation5 + $0x238] sm:$0xff] }
  0xd6   :  { %1733 = vmatpush1.bf16.msra.mxu0 %v8624_v23  ;;  %1819 = vmatpush1.bf16.msra.mxu1 %v8626_v24  ;;  %v138_v23 = vld [vmem:[#allocation5 + $0xb8] sm:$0xff]  ;;  %v8439_v24 = vcombine.high %v126_v14, %v130_v16 }
  0xd7   :  { %1734 = vmatprep.subr.bf16.mxu0 %v8633_v25  ;;  %1820 = vmatprep.subr.bf16.mxu1 %v8635_v29  ;;  %v8436_v25 = vcombine.low %v125_v12, %v129_v13  ;;  %v8445_v29 = vcombine.high %v133_v18, %v137_v19  ;;  %v8446_v36 = vcombine.low %v134_v22, %v138_v23  ;;  %v190_v14 = vld [vmem:[#allocation5 + $0x258] sm:$0xff] }
  0xda   :  { %1735 = vmatpush1.bf16.msra.mxu0 %v8632_v31  ;;  %1821 = vmatpush1.bf16.msra.mxu1 %v8634_v32  ;;  %v146_v31 = vld [vmem:[#allocation5 + $0xf8] sm:$0xff]  ;;  %v8447_v32 = vcombine.high %v134_v22, %v138_v23 }
  0xdb   :  { %1736 = vmatprep.subr.bf16.mxu0 %v8641_v33  ;;  %1822 = vmatprep.subr.bf16.mxu1 %v8643_v37  ;;  %v8444_v33 = vcombine.low %v133_v18, %v137_v19  ;;  %v8453_v37 = vcombine.high %v141_v26, %v145_v27  ;;  %v8454_v44 = vcombine.low %v142_v30, %v146_v31  ;;  %v197_v18 = vld [vmem:[#allocation5 + $0x290] sm:$0xff]  ;;  %v198_v22 = vld [vmem:[#allocation5 + $0x298] sm:$0xff] }
  0xdc   :  { %v201_v19 = vld [vmem:[#allocation5 + $0x2b0] sm:$0xff]  ;;  %v202_v23 = vld [vmem:[#allocation5 + $0x2b8] sm:$0xff] }
  0xde   :  { %1737 = vmatpush1.bf16.msra.mxu0 %v8640_v39  ;;  %1823 = vmatpush1.bf16.msra.mxu1 %v8642_v40  ;;  %v154_v39 = vld [vmem:[#allocation5 + $0x138] sm:$0xff]  ;;  %v8455_v40 = vcombine.high %v142_v30, %v146_v31 }
  0xdf   :  { %1738 = vmatprep.subr.bf16.mxu0 %v8649_v41  ;;  %1824 = vmatprep.subr.bf16.mxu1 %v8651_v45  ;;  %v8452_v41 = vcombine.low %v141_v26, %v145_v27  ;;  %v158_v45 = vld [vmem:[#allocation5 + $0x158] sm:$0xff]  ;;  %v8462_v51 = vcombine.low %v150_v38, %v154_v39  ;;  %v205_v26 = vld [vmem:[#allocation5 + $0x2d0] sm:$0xff] }
  0xe0   :  { %v8470_v60 = vcombine.low %v158_v45, %v162_v46  ;;  %v209_v27 = vld [vmem:[#allocation5 + $0x2f0] sm:$0xff]  ;;  %v206_v30 = vld [vmem:[#allocation5 + $0x2d8] sm:$0xff] }
  0xe1   :  { %v210_v31 = vld [vmem:[#allocation5 + $0x2f8] sm:$0xff] }
  0xe2   :  { %1739 = vmatpush1.bf16.msra.mxu0 %v8648_v47  ;;  %1825 = vmatpush1.bf16.msra.mxu1 %v8650_v48  ;;  %v8463_v47 = vcombine.high %v150_v38, %v154_v39  ;;  %v8460_v48 = vcombine.low %v149_v34, %v153_v35  ;;  %v214_v38 = vld [vmem:[#allocation5 + $0x318] sm:$0xff] }
  0xe3   :  { %1740 = vmatprep.subr.bf16.mxu0 %v8657_v49  ;;  %1826 = vmatprep.subr.bf16.mxu1 %v8659_v53  ;;  %v165_v49 = vld [vmem:[#allocation5 + $0x190] sm:$0xff]  ;;  %v166_v53 = vld [vmem:[#allocation5 + $0x198] sm:$0xff] }
  0xe4   :  { %v8477_v61 = vcombine.high %v165_v49, %v169_v50  ;;  %v8478_v4 = vcombine.low %v166_v53, %v170_v54  ;;  %v218_v39 = vld [vmem:[#allocation5 + $0x338] sm:$0xff] }
  0xe6   :  { %1741 = vmatpush1.bf16.msra.mxu0 %v8656_v55  ;;  %1827 = vmatpush1.bf16.msra.mxu1 %v8658_v57  ;;  %v8471_v55 = vcombine.high %v158_v45, %v162_v46  ;;  %v8468_v57 = vcombine.low %v157_v42, %v161_v43  ;;  %v221_v42 = vld [vmem:[#allocation5 + $0x350] sm:$0xff]  ;;  %v222_v45 = vld [vmem:[#allocation5 + $0x358] sm:$0xff] }
  0xe7   :  { %1742 = vmatprep.subr.bf16.mxu0 %v8665_v58  ;;  %1828 = vmatprep.subr.bf16.mxu1 %v8667_v62  ;;  %v173_v58 = vld [vmem:[#allocation5 + $0x1d0] sm:$0xff]  ;;  %v174_v62 = vld [vmem:[#allocation5 + $0x1d8] sm:$0xff] }
  0xe8   :  { %v8485_v5 = vcombine.high %v173_v58, %v177_v59  ;;  %v8486_v12 = vcombine.low %v174_v62, %v178_v63  ;;  %v225_v43 = vld [vmem:[#allocation5 + $0x370] sm:$0xff]  ;;  %v226_v46 = vld [vmem:[#allocation5 + $0x378] sm:$0xff] }
  0xea   :  { %1743 = vmatpush1.bf16.msra.mxu0 %v8664_v0  ;;  %1829 = vmatpush1.bf16.msra.mxu1 %v8666_v1  ;;  %v8479_v0 = vcombine.high %v166_v53, %v170_v54  ;;  %v8476_v1 = vcombine.low %v165_v49, %v169_v50  ;;  %v229_v49 = vld [vmem:[#allocation5 + $0x390] sm:$0xff]  ;;  %v230_v53 = vld [vmem:[#allocation5 + $0x398] sm:$0xff] }
  0xeb   :  { %1744 = vmatprep.subr.bf16.mxu0 %v8673_v2  ;;  %1830 = vmatprep.subr.bf16.mxu1 %v8675_v6  ;;  %v181_v2 = vld [vmem:[#allocation5 + $0x210] sm:$0xff]  ;;  %v182_v6 = vld [vmem:[#allocation5 + $0x218] sm:$0xff] }
  0xec   :  { %v8493_v13 = vcombine.high %v181_v2, %v185_v3  ;;  %v8495_v16 = vcombine.high %v182_v6, %v186_v7  ;;  %v233_v50 = vld [vmem:[#allocation5 + $0x3b0] sm:$0xff]  ;;  %v234_v54 = vld [vmem:[#allocation5 + $0x3b8] sm:$0xff] }
  0xee   :  { %1745 = vmatpush1.bf16.msra.mxu0 %v8672_v8  ;;  %1831 = vmatpush1.bf16.msra.mxu1 %v8674_v9  ;;  %v8487_v8 = vcombine.high %v174_v62, %v178_v63  ;;  %v8484_v9 = vcombine.low %v173_v58, %v177_v59  ;;  %v237_v58 = vld [vmem:[#allocation5 + $0x3d0] sm:$0xff]  ;;  %v238_v62 = vld [vmem:[#allocation5 + $0x3d8] sm:$0xff] }
  0xef   :  { %1843 = vmatprep.subr.bf16.mxu0 %v8429_v11  ;;  %1929 = vmatprep.subr.bf16.mxu1 %v8431_v15  ;;  %v193_v11 = vld [vmem:[#allocation5 + $0x270] sm:$0xff]  ;;  %v194_v15 = vld [vmem:[#allocation5 + $0x278] sm:$0xff] }
  0xf0   :  { %v241_v59 = vld [vmem:[#allocation5 + $0x3f0] sm:$0xff]  ;;  %v242_v63 = vld [vmem:[#allocation5 + $0x3f8] sm:$0xff] }
  0xf1   :  { %1747 = vmatmul.mubr.bf16.vlgmr.msra.gmra.mrb[0].mxu0 %v9505_v10  ;;  %1833 = vmatmul.mubr.bf16.vlgmr.msra.gmra.mrb[0].mxu1 %v9505_v10  ;;  %v189_v10 = vld [vmem:[#allocation5 + $0x250] sm:$0xff] }
  0xf2   :  { %1844 = vmatpush1.bf16.msra.mxu0 %v8428_v17  ;;  %1930 = vmatpush1.bf16.msra.mxu1 %v8430_v20  ;;  %v8492_v17 = vcombine.low %v181_v2, %v185_v3  ;;  %v8494_v20 = vcombine.low %v182_v6, %v186_v7  ;;  %v245_v2 = vld [vmem:[#allocation5 + $0x410] sm:$0xff]  ;;  %v246_v6 = vld [vmem:[#allocation5 + $0x418] sm:$0xff] }
  0xf3   :  { %1845 = vmatprep.subr.bf16.mxu0 %v8437_v21  ;;  %1931 = vmatprep.subr.bf16.mxu1 %v8439_v24  ;;  %v8501_v21 = vcombine.high %v189_v10, %v193_v11  ;;  %v8503_v24 = vcombine.high %v190_v14, %v194_v15  ;;  %v249_v3 = vld [vmem:[#allocation5 + $0x430] sm:$0xff]  ;;  %v250_v7 = vld [vmem:[#allocation5 + $0x438] sm:$0xff] }
  0xf4   :  { %1875 = vmatprep.mubr.bf16.mxu0 %v10593_v56  ;;  %1961 = vmatprep.mubr.bf16.mxu1 %v10593_v56  ;;  %v8461_v56 = vcombine.high %v149_v34, %v153_v35  ;;  %v213_v34 = vld [vmem:[#allocation5 + $0x310] sm:$0xff] }
  0xf5   :  { %v217_v35 = vld [vmem:[#allocation5 + $0x330] sm:$0xff] }
  0xf6   :  { %1846 = vmatpush1.bf16.msra.mxu0 %v8436_v25  ;;  %1932 = vmatpush1.bf16.msra.mxu1 %v8438_v28  ;;  %v8500_v25 = vcombine.low %v189_v10, %v193_v11  ;;  %v8502_v28 = vcombine.low %v190_v14, %v194_v15  ;;  %v253_v10 = vld [vmem:[#allocation5 + $0x450] sm:$0xff]  ;;  %v254_v14 = vld [vmem:[#allocation5 + $0x458] sm:$0xff] }
  0xf7   :  { %1847 = vmatprep.subr.bf16.mxu0 %v8445_v29  ;;  %1933 = vmatprep.subr.bf16.mxu1 %v8447_v32  ;;  %v8509_v29 = vcombine.high %v197_v18, %v201_v19  ;;  %v8511_v32 = vcombine.high %v198_v22, %v202_v23  ;;  %v257_v11 = vld [vmem:[#allocation5 + $0x470] sm:$0xff]  ;;  %v258_v15 = vld [vmem:[#allocation5 + $0x478] sm:$0xff] }
  0xfa   :  { %1848 = vmatpush1.bf16.msra.mxu0 %v8444_v33  ;;  %1934 = vmatpush1.bf16.msra.mxu1 %v8446_v36  ;;  %v8508_v33 = vcombine.low %v197_v18, %v201_v19  ;;  %v8510_v36 = vcombine.low %v198_v22, %v202_v23  ;;  %v261_v18 = vld [vmem:[#allocation5 + $0x490] sm:$0xff]  ;;  %v262_v22 = vld [vmem:[#allocation5 + $0x498] sm:$0xff] }
  0xfb   :  { %1849 = vmatprep.subr.bf16.mxu0 %v8453_v37  ;;  %1935 = vmatprep.subr.bf16.mxu1 %v8455_v40  ;;  %v8517_v37 = vcombine.high %v205_v26, %v209_v27  ;;  %v8519_v40 = vcombine.high %v206_v30, %v210_v31  ;;  %v265_v19 = vld [vmem:[#allocation5 + $0x4b0] sm:$0xff]  ;;  %v266_v23 = vld [vmem:[#allocation5 + $0x4b8] sm:$0xff] }
  0xfe   :  { %1850 = vmatpush1.bf16.msra.mxu0 %v8452_v41  ;;  %1936 = vmatpush1.bf16.msra.mxu1 %v8454_v44  ;;  %v8516_v41 = vcombine.low %v205_v26, %v209_v27  ;;  %v8518_v44 = vcombine.low %v206_v30, %v210_v31  ;;  %v8564_v26 = vcombine.low %v253_v10, %v257_v11  ;;  %v269_v27 = vld [vmem:[#allocation5 + $0x4d0] sm:$0xff]  ;;  %v270_v31 = vld [vmem:[#allocation5 + $0x4d8] sm:$0xff] }
  0xff   :  { %1851 = vmatprep.subr.bf16.mxu0 %v8461_v56  ;;  %1937 = vmatprep.subr.bf16.mxu1 %v8463_v47  ;;  %v8525_v56 = vcombine.high %v213_v34, %v217_v35  ;;  %v8527_v47 = vcombine.high %v214_v38, %v218_v39  ;;  %v8573_v30 = vcombine.high %v261_v18, %v265_v19 }
 0x102   :  { %1852 = vmatpush1.bf16.msra.mxu0 %v8460_v48  ;;  %1938 = vmatpush1.bf16.msra.mxu1 %v8462_v51  ;;  %v8524_v48 = vcombine.low %v213_v34, %v217_v35  ;;  %v8526_v51 = vcombine.low %v214_v38, %v218_v39  ;;  %v10275_v34 = vld [vmem:[#allocation2 + $0xc] ss:$16 sps:$4 sm:$0xff]   ;;  %v8572_v35 = vcombine.low %v261_v18, %v265_v19 }
 0x103   :  { %1853 = vmatprep.subr.bf16.mxu0 %v8469_v52  ;;  %1939 = vmatprep.subr.bf16.mxu1 %v8471_v55  ;;  %v8533_v52 = vcombine.high %v221_v42, %v225_v43  ;;  %v8535_v55 = vcombine.high %v222_v45, %v226_v46  ;;  %v8574_v38 = vcombine.low %v262_v22, %v266_v23 }
 0x106   :  { %1854 = vmatpush1.bf16.msra.mxu0 %v8468_v57  ;;  %1940 = vmatpush1.bf16.msra.mxu1 %v8470_v60  ;;  %v8532_v57 = vcombine.low %v221_v42, %v225_v43  ;;  %v8534_v60 = vcombine.low %v222_v45, %v226_v46 }
 0x107   :  { %1855 = vmatprep.subr.bf16.mxu0 %v8477_v61  ;;  %1941 = vmatprep.subr.bf16.mxu1 %v8479_v0  ;;  %v8541_v61 = vcombine.high %v229_v49, %v233_v50  ;;  %v8543_v0 = vcombine.high %v230_v53, %v234_v54 }
 0x10a   :  { %1856 = vmatpush1.bf16.msra.mxu0 %v8476_v1  ;;  %1942 = vmatpush1.bf16.msra.mxu1 %v8478_v4  ;;  %v8540_v1 = vcombine.low %v229_v49, %v233_v50  ;;  %v8542_v4 = vcombine.low %v230_v53, %v234_v54 }
 0x10b   :  { %1857 = vmatprep.subr.bf16.mxu0 %v8485_v5  ;;  %1943 = vmatprep.subr.bf16.mxu1 %v8487_v8  ;;  %v8549_v5 = vcombine.high %v237_v58, %v241_v59  ;;  %v8551_v8 = vcombine.high %v238_v62, %v242_v63 }
 0x10e   :  { %1858 = vmatpush1.bf16.msra.mxu0 %v8484_v9  ;;  %1944 = vmatpush1.bf16.msra.mxu1 %v8486_v12  ;;  %v8548_v9 = vcombine.low %v237_v58, %v241_v59  ;;  %v8550_v12 = vcombine.low %v238_v62, %v242_v63 }
 0x10f   :  { %1859 = vmatprep.subr.bf16.mxu0 %v8493_v13  ;;  %1945 = vmatprep.subr.bf16.mxu1 %v8495_v16  ;;  %v8557_v13 = vcombine.high %v245_v2, %v249_v3  ;;  %v8559_v16 = vcombine.high %v246_v6, %v250_v7 }
 0x112   :  { %1860 = vmatpush1.bf16.msra.mxu0 %v8492_v17  ;;  %1946 = vmatpush1.bf16.msra.mxu1 %v8494_v20  ;;  %v8556_v17 = vcombine.low %v245_v2, %v249_v3  ;;  %v8558_v20 = vcombine.low %v246_v6, %v250_v7 }
 0x113   :  { %1861 = vmatprep.subr.bf16.mxu0 %v8501_v21  ;;  %1947 = vmatprep.subr.bf16.mxu1 %v8503_v24  ;;  %v8565_v21 = vcombine.high %v253_v10, %v257_v11  ;;  %v8567_v24 = vcombine.high %v254_v14, %v258_v15 }
 0x116   :  { %1862 = vmatpush1.bf16.msra.mxu0 %v8500_v25  ;;  %1948 = vmatpush1.bf16.msra.mxu1 %v8502_v28  ;;  %v10274_v25 = vld [vmem:[#allocation2] ss:$16 sps:$4 sm:$0xff]  }
 0x117   :  { %1863 = vmatprep.subr.bf16.mxu0 %v8509_v29  ;;  %1949 = vmatprep.subr.bf16.mxu1 %v8511_v32  ;;  %v273_v28 = vld [vmem:[#allocation5 + $0x4f0] sm:$0xff]  ;;  %v8566_v29 = vcombine.low %v254_v14, %v258_v15  ;;  %v274_v32 = vld [vmem:[#allocation5 + $0x4f8] sm:$0xff] }
 0x118   :  { %v8581_v39 = vcombine.high %v269_v27, %v273_v28  ;;  %v8583_v42 = vcombine.high %v270_v31, %v274_v32  ;;  %v8580_v43 = vcombine.low %v269_v27, %v273_v28  ;;  %v8582_v45 = vcombine.low %v270_v31, %v274_v32  ;;  %v333_v31 = vld [vmem:[#allocation5 + $0x6d0] sm:$0xff] }
 0x119   :  { %v337_v32 = vld [vmem:[#allocation5 + $0x6f0] sm:$0xff] }
 0x11a   :  { %1864 = vmatpush1.bf16.msra.mxu0 %v8508_v33  ;;  %1950 = vmatpush1.bf16.msra.mxu1 %v8510_v36  ;;  %v8575_v33 = vcombine.high %v262_v22, %v266_v23  ;;  %v277_v36 = vld [vmem:[#allocation5 + $0x510] sm:$0xff] }
 0x11b   :  { %1865 = vmatprep.subr.bf16.mxu0 %v8517_v37  ;;  %1951 = vmatprep.subr.bf16.mxu1 %v8519_v40  ;;  %v281_v37 = vld [vmem:[#allocation5 + $0x530] sm:$0xff]  ;;  %v278_v40 = vld [vmem:[#allocation5 + $0x518] sm:$0xff] }
 0x11c   :  { %v8589_v46 = vcombine.high %v277_v36, %v281_v37  ;;  %v8588_v50 = vcombine.low %v277_v36, %v281_v37  ;;  %v8645_v37 = vcombine.high %v333_v31, %v337_v32 }
 0x11e   :  { %1866 = vmatpush1.bf16.msra.mxu0 %v8516_v41  ;;  %1952 = vmatpush1.bf16.msra.mxu1 %v8518_v44  ;;  %v282_v41 = vld [vmem:[#allocation5 + $0x538] sm:$0xff]  ;;  %v285_v44 = vld [vmem:[#allocation5 + $0x550] sm:$0xff] }
 0x11f   :  { %1867 = vmatprep.subr.bf16.mxu0 %v8525_v56  ;;  %1953 = vmatprep.subr.bf16.mxu1 %v8527_v47  ;;  %v289_v56 = vld [vmem:[#allocation5 + $0x570] sm:$0xff]  ;;  %v286_v47 = vld [vmem:[#allocation5 + $0x558] sm:$0xff]  ;;  %v8591_v49 = vcombine.high %v278_v40, %v282_v41  ;;  %v8590_v53 = vcombine.low %v278_v40, %v282_v41 }
 0x120   :  { %v8597_v54 = vcombine.high %v285_v44, %v289_v56  ;;  %v8596_v59 = vcombine.low %v285_v44, %v289_v56  ;;  %v345_v40 = vld [vmem:[#allocation5 + $0x730] sm:$0xff]  ;;  %v342_v41 = vld [vmem:[#allocation5 + $0x718] sm:$0xff] }
 0x122   :  { %1868 = vmatpush1.bf16.msra.mxu0 %v8524_v48  ;;  %1954 = vmatpush1.bf16.msra.mxu1 %v8526_v51  ;;  %v290_v48 = vld [vmem:[#allocation5 + $0x578] sm:$0xff]  ;;  %v293_v51 = vld [vmem:[#allocation5 + $0x590] sm:$0xff] }
 0x123   :  { %1869 = vmatprep.subr.bf16.mxu0 %v8533_v52  ;;  %1955 = vmatprep.subr.bf16.mxu1 %v8535_v55  ;;  %v297_v52 = vld [vmem:[#allocation5 + $0x5b0] sm:$0xff]  ;;  %v294_v55 = vld [vmem:[#allocation5 + $0x598] sm:$0xff]  ;;  %v8599_v58 = vcombine.high %v286_v47, %v290_v48  ;;  %v8598_v62 = vcombine.low %v286_v47, %v290_v48 }
 0x124   :  { %v8605_v63 = vcombine.high %v293_v51, %v297_v52  ;;  %v8604_v3 = vcombine.low %v293_v51, %v297_v52  ;;  %v353_v47 = vld [vmem:[#allocation5 + $0x770] sm:$0xff]  ;;  %v350_v48 = vld [vmem:[#allocation5 + $0x758] sm:$0xff] }
 0x126   :  { %1870 = vmatpush1.bf16.msra.mxu0 %v8532_v57  ;;  %1956 = vmatpush1.bf16.msra.mxu1 %v8534_v60  ;;  %v298_v57 = vld [vmem:[#allocation5 + $0x5b8] sm:$0xff]  ;;  %v301_v60 = vld [vmem:[#allocation5 + $0x5d0] sm:$0xff] }
 0x127   :  { %1871 = vmatprep.subr.bf16.mxu0 %v8541_v61  ;;  %1957 = vmatprep.subr.bf16.mxu1 %v8543_v0  ;;  %v305_v61 = vld [vmem:[#allocation5 + $0x5f0] sm:$0xff]  ;;  %v302_v0 = vld [vmem:[#allocation5 + $0x5d8] sm:$0xff]  ;;  %v8607_v2 = vcombine.high %v294_v55, %v298_v57  ;;  %v8606_v6 = vcombine.low %v294_v55, %v298_v57 }
 0x128   :  { %v8613_v7 = vcombine.high %v301_v60, %v305_v61  ;;  %v8612_v11 = vcombine.low %v301_v60, %v305_v61  ;;  %v361_v55 = vld [vmem:[#allocation5 + $0x7b0] sm:$0xff]  ;;  %v358_v57 = vld [vmem:[#allocation5 + $0x798] sm:$0xff] }
 0x12a   :  { %1872 = vmatpush1.bf16.msra.mxu0 %v8540_v1  ;;  %1958 = vmatpush1.bf16.msra.mxu1 %v8542_v4  ;;  %v306_v1 = vld [vmem:[#allocation5 + $0x5f8] sm:$0xff]  ;;  %v309_v4 = vld [vmem:[#allocation5 + $0x610] sm:$0xff] }
 0x12b   :  { %1873 = vmatprep.subr.bf16.mxu0 %v8549_v5  ;;  %1959 = vmatprep.subr.bf16.mxu1 %v8551_v8  ;;  %v313_v5 = vld [vmem:[#allocation5 + $0x630] sm:$0xff]  ;;  %v310_v8 = vld [vmem:[#allocation5 + $0x618] sm:$0xff]  ;;  %v8615_v10 = vcombine.high %v302_v0, %v306_v1  ;;  %v8614_v14 = vcombine.low %v302_v0, %v306_v1 }
 0x12c   :  { %v8621_v15 = vcombine.high %v309_v4, %v313_v5  ;;  %v8620_v19 = vcombine.low %v309_v4, %v313_v5  ;;  %v369_v0 = vld [vmem:[#allocation5 + $0x7f0] sm:$0xff]  ;;  %v366_v1 = vld [vmem:[#allocation5 + $0x7d8] sm:$0xff] }
 0x12e   :  { %1874 = vmatpush1.bf16.msra.mxu0 %v8548_v9  ;;  %1960 = vmatpush1.bf16.msra.mxu1 %v8550_v12  ;;  %v314_v9 = vld [vmem:[#allocation5 + $0x638] sm:$0xff]  ;;  %v317_v12 = vld [vmem:[#allocation5 + $0x650] sm:$0xff] }
 0x12f   :  { %1886 = vmatprep.subr.bf16.mxu0 %v8557_v13  ;;  %1972 = vmatprep.subr.bf16.mxu1 %v8559_v16  ;;  %v321_v13 = vld [vmem:[#allocation5 + $0x670] sm:$0xff]  ;;  %v318_v16 = vld [vmem:[#allocation5 + $0x658] sm:$0xff]  ;;  %v8623_v18 = vcombine.high %v310_v8, %v314_v9  ;;  %v8622_v22 = vcombine.low %v310_v8, %v314_v9 }
 0x130   :  { %v8629_v23 = vcombine.high %v317_v12, %v321_v13  ;;  %v8628_v27 = vcombine.low %v317_v12, %v321_v13  ;;  %v9511_v9 = vld [vmem:[#allocation7 + $0xc] ss:$16 sps:$4 sm:$0xff]   ;;  %v9509_v12 = vld [vmem:[#allocation7 + $0x8] ss:$16 sps:$4 sm:$0xff]   ;;  %v9514_v13 = vld [vmem:[#allocation7 + $0x24] ss:$16 sps:$4 sm:$0xff]  }
 0x131   :  { %1876 = vmatmul.mubr.bf16.vlgmr.msra.gmra.mrb[4].mxu0 %v10274_v25  ;;  %1962 = vmatmul.mubr.bf16.vlgmr.msra.gmra.mrb[4].mxu1 %v10274_v25  ;;  %v330_v25 = vld [vmem:[#allocation5 + $0x6b8] sm:$0xff] }
 0x132   :  { %1887 = vmatpush1.bf16.msra.mxu0 %v8556_v17  ;;  %1973 = vmatpush1.bf16.msra.mxu1 %v8558_v20  ;;  %v322_v17 = vld [vmem:[#allocation5 + $0x678] sm:$0xff]  ;;  %v325_v20 = vld [vmem:[#allocation5 + $0x690] sm:$0xff] }
 0x133   :  { %1888 = vmatprep.subr.bf16.mxu0 %v8565_v21  ;;  %1974 = vmatprep.subr.bf16.mxu1 %v8567_v24  ;;  %v329_v21 = vld [vmem:[#allocation5 + $0x6b0] sm:$0xff]  ;;  %v326_v24 = vld [vmem:[#allocation5 + $0x698] sm:$0xff]  ;;  %v8630_v28 = vcombine.low %v318_v16, %v322_v17 }
 0x134   :  { %1918 = vmatprep.mubr.bf16.mxu0 %v10275_v34  ;;  %2004 = vmatprep.mubr.bf16.mxu1 %v10275_v34  ;;  %v338_v34 = vld [vmem:[#allocation5 + $0x6f8] sm:$0xff]  ;;  %v8638_v36 = vcombine.low %v326_v24, %v330_v25 }
 0x136   :  { %1889 = vmatpush1.bf16.msra.mxu0 %v8564_v26  ;;  %1975 = vmatpush1.bf16.msra.mxu1 %v8566_v29  ;;  %v8631_v26 = vcombine.high %v318_v16, %v322_v17  ;;  %v8637_v29 = vcombine.high %v325_v20, %v329_v21  ;;  %v10276_v16 = vld [vmem:[#allocation2 + $0x8] ss:$16 sps:$4 sm:$0xff]  }
 0x137   :  { %1890 = vmatprep.subr.bf16.mxu0 %v8573_v30  ;;  %1976 = vmatprep.subr.bf16.mxu1 %v8575_v33  ;;  %v8639_v30 = vcombine.high %v326_v24, %v330_v25  ;;  %v334_v33 = vld [vmem:[#allocation5 + $0x6d8] sm:$0xff]  ;;  %v9524_v24 = vld [vmem:[#allocation7 + $0x60] ss:$16 sps:$4 sm:$0xff]  }
 0x138   :  { %v8646_v44 = vcombine.low %v334_v33, %v338_v34  ;;  %v9515_v17 = vld [vmem:[#allocation7 + $0x28] ss:$16 sps:$4 sm:$0xff]  }
 0x139   :  { %v9527_v25 = vld [vmem:[#allocation7 + $0x68] ss:$16 sps:$4 sm:$0xff]  }
 0x13a   :  { %1891 = vmatpush1.bf16.msra.mxu0 %v8572_v35  ;;  %1977 = vmatpush1.bf16.msra.mxu1 %v8574_v38  ;;  %v8636_v35 = vcombine.low %v325_v20, %v329_v21  ;;  %v8647_v38 = vcombine.high %v334_v33, %v338_v34  ;;  %v9518_v20 = vld [vmem:[#allocation7 + $0x40] ss:$16 sps:$4 sm:$0xff]   ;;  %v9521_v21 = vld [vmem:[#allocation7 + $0x48] ss:$16 sps:$4 sm:$0xff]   ;;  %v9544_v34 = vld [vmem:[#allocation7 + $0xc4] ss:$16 sps:$4 sm:$0xff]  }
 0x13b   :  { %1892 = vmatprep.subr.bf16.mxu0 %v8581_v39  ;;  %1978 = vmatprep.subr.bf16.mxu1 %v8583_v42  ;;  %v341_v39 = vld [vmem:[#allocation5 + $0x710] sm:$0xff]  ;;  %v346_v42 = vld [vmem:[#allocation5 + $0x738] sm:$0xff] }
 0x13c   :  { %v8653_v56 = vcombine.high %v341_v39, %v345_v40  ;;  %v8654_v51 = vcombine.low %v342_v41, %v346_v42  ;;  %v9539_v33 = vld [vmem:[#allocation7 + $0xa8] ss:$16 sps:$4 sm:$0xff]  }
 0x13e   :  { %1893 = vmatpush1.bf16.msra.mxu0 %v8580_v43  ;;  %1979 = vmatpush1.bf16.msra.mxu1 %v8582_v45  ;;  %v8644_v43 = vcombine.low %v333_v31, %v337_v32  ;;  %v8655_v45 = vcombine.high %v342_v41, %v346_v42  ;;  %v9541_v31 = vld [vmem:[#allocation7 + $0xac] ss:$16 sps:$4 sm:$0xff]   ;;  %v9536_v32 = vld [vmem:[#allocation7 + $0xa0] ss:$16 sps:$4 sm:$0xff]   ;;  %v9551_v41 = vld [vmem:[#allocation7 + $0xe8] ss:$16 sps:$4 sm:$0xff]  }
 0x13f   :  { %1894 = vmatprep.subr.bf16.mxu0 %v8589_v46  ;;  %1980 = vmatprep.subr.bf16.mxu1 %v8591_v49  ;;  %v349_v46 = vld [vmem:[#allocation5 + $0x750] sm:$0xff]  ;;  %v354_v49 = vld [vmem:[#allocation5 + $0x778] sm:$0xff] }
 0x140   :  { %v8661_v52 = vcombine.high %v349_v46, %v353_v47  ;;  %v8662_v60 = vcombine.low %v350_v48, %v354_v49  ;;  %v9556_v42 = vld [vmem:[#allocation7 + $0x104] ss:$16 sps:$4 sm:$0xff]  }
 0x142   :  { %1895 = vmatpush1.bf16.msra.mxu0 %v8588_v50  ;;  %1981 = vmatpush1.bf16.msra.mxu1 %v8590_v53  ;;  %v8652_v50 = vcombine.low %v341_v39, %v345_v40  ;;  %v8663_v53 = vcombine.high %v350_v48, %v354_v49  ;;  %v9553_v39 = vld [vmem:[#allocation7 + $0xec] ss:$16 sps:$4 sm:$0xff]   ;;  %v9548_v40 = vld [vmem:[#allocation7 + $0xe0] ss:$16 sps:$4 sm:$0xff]   ;;  %v9563_v48 = vld [vmem:[#allocation7 + $0x128] ss:$16 sps:$4 sm:$0xff]  }
 0x143   :  { %1896 = vmatprep.subr.bf16.mxu0 %v8597_v54  ;;  %1982 = vmatprep.subr.bf16.mxu1 %v8599_v58  ;;  %v357_v54 = vld [vmem:[#allocation5 + $0x790] sm:$0xff]  ;;  %v362_v58 = vld [vmem:[#allocation5 + $0x7b8] sm:$0xff] }
 0x144   :  { %v8669_v61 = vcombine.high %v357_v54, %v361_v55  ;;  %v8670_v4 = vcombine.low %v358_v57, %v362_v58  ;;  %v9568_v49 = vld [vmem:[#allocation7 + $0x144] ss:$16 sps:$4 sm:$0xff]  }
 0x146   :  { %1897 = vmatpush1.bf16.msra.mxu0 %v8596_v59  ;;  %1983 = vmatpush1.bf16.msra.mxu1 %v8598_v62  ;;  %v8660_v59 = vcombine.low %v349_v46, %v353_v47  ;;  %v365_v62 = vld [vmem:[#allocation5 + $0x7d0] sm:$0xff]  ;;  %v9565_v46 = vld [vmem:[#allocation7 + $0x12c] ss:$16 sps:$4 sm:$0xff]  }
 0x147   :  { %1898 = vmatprep.subr.bf16.mxu0 %v8605_v63  ;;  %1984 = vmatprep.subr.bf16.mxu1 %v8607_v2  ;;  %v8671_v63 = vcombine.high %v358_v57, %v362_v58  ;;  %v370_v2 = vld [vmem:[#allocation5 + $0x7f8] sm:$0xff]  ;;  %v8677_v5 = vcombine.high %v365_v62, %v369_v0  ;;  %v8676_v8 = vcombine.low %v365_v62, %v369_v0  ;;  %v9560_v47 = vld [vmem:[#allocation7 + $0x120] ss:$16 sps:$4 sm:$0xff]   ;;  %v9580_v58 = vld [vmem:[#allocation7 + $0x184] ss:$16 sps:$4 sm:$0xff]  }
 0x148   :  { %v9575_v57 = vld [vmem:[#allocation7 + $0x168] ss:$16 sps:$4 sm:$0xff]   ;;  %v9586_v62 = vld [vmem:[#allocation7 + $0x1a4] ss:$16 sps:$4 sm:$0xff]   ;;  %v10461_v0 = vmov 1966171168  }
 0x14a   :  { %1899 = vmatpush1.bf16.msra.mxu0 %v8604_v3  ;;  %1985 = vmatpush1.bf16.msra.mxu1 %v8606_v6  ;;  %v8668_v3 = vcombine.low %v357_v54, %v361_v55  ;;  %v8679_v6 = vcombine.high %v366_v1, %v370_v2  ;;  %v9577_v54 = vld [vmem:[#allocation7 + $0x16c] ss:$16 sps:$4 sm:$0xff]   ;;  %v9572_v55 = vld [vmem:[#allocation7 + $0x160] ss:$16 sps:$4 sm:$0xff]  }
 0x14b   :  { %1900 = vmatprep.subr.bf16.mxu0 %v8613_v7  ;;  %1986 = vmatprep.subr.bf16.mxu1 %v8615_v10  ;;  %v9508_v7 = vld [vmem:[#allocation7 + $0x4] ss:$16 sps:$4 sm:$0xff]   ;;  %v8678_v10 = vcombine.low %v366_v1, %v370_v2  ;;  %v2028_v1 = vunpack.c.l.s4 %v10461_v0  ;;  %v2030_v2 = vlaneseq }
 0x14e   :  { %1901 = vmatpush1.bf16.msra.mxu0 %v8612_v11  ;;  %1987 = vmatpush1.bf16.msra.mxu1 %v8614_v14  ;;  %v9506_v11 = vld [vmem:[#allocation7] ss:$16 sps:$4 sm:$0xff]   ;;  %v9517_v14 = vld [vmem:[#allocation7 + $0x2c] ss:$16 sps:$4 sm:$0xff]  }
 0x14f   :  { %1902 = vmatprep.subr.bf16.mxu0 %v8621_v15  ;;  %1988 = vmatprep.subr.bf16.mxu1 %v8623_v18  ;;  %v9512_v15 = vld [vmem:[#allocation7 + $0x20] ss:$16 sps:$4 sm:$0xff]   ;;  %v9520_v18 = vld [vmem:[#allocation7 + $0x44] ss:$16 sps:$4 sm:$0xff]  }
 0x152   :  { %1903 = vmatpush1.bf16.msra.mxu0 %v8620_v19  ;;  %1989 = vmatpush1.bf16.msra.mxu1 %v8622_v22  ;;  %v9523_v19 = vld [vmem:[#allocation7 + $0x4c] ss:$16 sps:$4 sm:$0xff]   ;;  %v9526_v22 = vld [vmem:[#allocation7 + $0x64] ss:$16 sps:$4 sm:$0xff]  }
 0x153   :  { %1904 = vmatprep.subr.bf16.mxu0 %v8629_v23  ;;  %1990 = vmatprep.subr.bf16.mxu1 %v8631_v26  ;;  %v9529_v23 = vld [vmem:[#allocation7 + $0x6c] ss:$16 sps:$4 sm:$0xff]   ;;  %v9532_v26 = vld [vmem:[#allocation7 + $0x84] ss:$16 sps:$4 sm:$0xff]  }
 0x156   :  { %1905 = vmatpush1.bf16.msra.mxu0 %v8628_v27  ;;  %1991 = vmatpush1.bf16.msra.mxu1 %v8630_v28  ;;  %v9535_v27 = vld [vmem:[#allocation7 + $0x8c] ss:$16 sps:$4 sm:$0xff]   ;;  %v9530_v28 = vld [vmem:[#allocation7 + $0x80] ss:$16 sps:$4 sm:$0xff]  }
 0x157   :  { %1906 = vmatprep.subr.bf16.mxu0 %v8637_v29  ;;  %1992 = vmatprep.subr.bf16.mxu1 %v8639_v30  ;;  %v9533_v29 = vld [vmem:[#allocation7 + $0x88] ss:$16 sps:$4 sm:$0xff]   ;;  %v9538_v30 = vld [vmem:[#allocation7 + $0xa4] ss:$16 sps:$4 sm:$0xff]  }
 0x15a   :  { %1907 = vmatpush1.bf16.msra.mxu0 %v8636_v35  ;;  %1993 = vmatpush1.bf16.msra.mxu1 %v8638_v36  ;;  %v9547_v35 = vld [vmem:[#allocation7 + $0xcc] ss:$16 sps:$4 sm:$0xff]   ;;  %v9542_v36 = vld [vmem:[#allocation7 + $0xc0] ss:$16 sps:$4 sm:$0xff]  }
 0x15b   :  { %1908 = vmatprep.subr.bf16.mxu0 %v8645_v37  ;;  %1994 = vmatprep.subr.bf16.mxu1 %v8647_v38  ;;  %v9545_v37 = vld [vmem:[#allocation7 + $0xc8] ss:$16 sps:$4 sm:$0xff]   ;;  %v9550_v38 = vld [vmem:[#allocation7 + $0xe4] ss:$16 sps:$4 sm:$0xff]  }
 0x15e   :  { %1909 = vmatpush1.bf16.msra.mxu0 %v8644_v43  ;;  %1995 = vmatpush1.bf16.msra.mxu1 %v8646_v44  ;;  %v9559_v43 = vld [vmem:[#allocation7 + $0x10c] ss:$16 sps:$4 sm:$0xff]   ;;  %v9554_v44 = vld [vmem:[#allocation7 + $0x100] ss:$16 sps:$4 sm:$0xff]  }
 0x15f   :  { %1910 = vmatprep.subr.bf16.mxu0 %v8653_v56  ;;  %1996 = vmatprep.subr.bf16.mxu1 %v8655_v45  ;;  %v9557_v56 = vld [vmem:[#allocation7 + $0x108] ss:$16 sps:$4 sm:$0xff]   ;;  %v9562_v45 = vld [vmem:[#allocation7 + $0x124] ss:$16 sps:$4 sm:$0xff]  }
 0x162   :  { %1911 = vmatpush1.bf16.msra.mxu0 %v8652_v50  ;;  %1997 = vmatpush1.bf16.msra.mxu1 %v8654_v51  ;;  %v9571_v50 = vld [vmem:[#allocation7 + $0x14c] ss:$16 sps:$4 sm:$0xff]   ;;  %v9566_v51 = vld [vmem:[#allocation7 + $0x140] ss:$16 sps:$4 sm:$0xff]  }
 0x163   :  { %1912 = vmatprep.subr.bf16.mxu0 %v8661_v52  ;;  %1998 = vmatprep.subr.bf16.mxu1 %v8663_v53  ;;  %v9569_v52 = vld [vmem:[#allocation7 + $0x148] ss:$16 sps:$4 sm:$0xff]   ;;  %v9574_v53 = vld [vmem:[#allocation7 + $0x164] ss:$16 sps:$4 sm:$0xff]  }
 0x166   :  { %1913 = vmatpush1.bf16.msra.mxu0 %v8660_v59  ;;  %1999 = vmatpush1.bf16.msra.mxu1 %v8662_v60  ;;  %v9583_v59 = vld [vmem:[#allocation7 + $0x18c] ss:$16 sps:$4 sm:$0xff]   ;;  %v9578_v60 = vld [vmem:[#allocation7 + $0x180] ss:$16 sps:$4 sm:$0xff]  }
 0x167   :  { %1914 = vmatprep.subr.bf16.mxu0 %v8669_v61  ;;  %2000 = vmatprep.subr.bf16.mxu1 %v8671_v63  ;;  %v9581_v61 = vld [vmem:[#allocation7 + $0x188] ss:$16 sps:$4 sm:$0xff]   ;;  %v9584_v63 = vld [vmem:[#allocation7 + $0x1a0] ss:$16 sps:$4 sm:$0xff]  }
 0x16a   :  { %1915 = vmatpush1.bf16.msra.mxu0 %v8668_v3  ;;  %2001 = vmatpush1.bf16.msra.mxu1 %v8670_v4  ;;  %v2029_v3 = vunpack.c.0.s8 %v2028_v1  ;;  %v10599_v4 = vshrl.u32 %v2030_v2, 7 }
 0x16b   :  { %1916 = vmatprep.subr.bf16.mxu0 %v8677_v5  ;;  %2002 = vmatprep.subr.bf16.mxu1 %v8679_v6 }
 0x16c   :  { %12286 = vst [vmem:[#allocation19_spill] sm:$0xff] %v10599_v4  ;;  %v10602_v6 = vsub.s32 %v2029_v3, %v10599_v4 }
 0x16e   :  { %1917 = vmatpush1.bf16.msra.mxu0 %v8676_v8  ;;  %2003 = vmatpush1.bf16.msra.mxu1 %v8678_v10  ;;  %v9589_v10 = vld [vmem:[#allocation7 + $0x1ac] ss:$16 sps:$4 sm:$0xff]  }
 0x16f   :  { %3673 = vmatprep.subr.bf16.mxu0 %v9508_v7  ;;  %3899 = vmatprep.subr.bf16.mxu1 %v9511_v9  ;;  %v9587_v9 = vld [vmem:[#allocation7 + $0x1a8] ss:$16 sps:$4 sm:$0xff]  }
 0x171   :  { %1919 = vmatmul.mubr.bf16.vlgmr.msra.gmra.mrb[4].mxu0 %v10276_v16  ;;  %2005 = vmatmul.mubr.bf16.vlgmr.msra.gmra.mrb[4].mxu1 %v10276_v16 }
 0x172   :  { %3674 = vmatpush1.bf16.msra.mxu0 %v9506_v11  ;;  %3900 = vmatpush1.bf16.msra.mxu1 %v9509_v12 }
 0x173   :  { %3675 = vmatprep.subr.bf16.mxu0 %v9514_v13  ;;  %3901 = vmatprep.subr.bf16.mxu1 %v9517_v14 }
 0x176   :  { %3676 = vmatpush1.bf16.msra.mxu0 %v9512_v15  ;;  %3902 = vmatpush1.bf16.msra.mxu1 %v9515_v17 }
 0x177   :  { %3677 = vmatprep.subr.bf16.mxu0 %v9520_v18  ;;  %3903 = vmatprep.subr.bf16.mxu1 %v9523_v19 }
 0x17a   :  { %3678 = vmatpush1.bf16.msra.mxu0 %v9518_v20  ;;  %3904 = vmatpush1.bf16.msra.mxu1 %v9521_v21 }
 0x17b   :  { %3679 = vmatprep.subr.bf16.mxu0 %v9526_v22  ;;  %3905 = vmatprep.subr.bf16.mxu1 %v9529_v23 }
 0x17e   :  { %3680 = vmatpush1.bf16.msra.mxu0 %v9524_v24  ;;  %3906 = vmatpush1.bf16.msra.mxu1 %v9527_v25  ;;  %v9590_v24 = vld [vmem:[#allocation7 + $0x1c0] ss:$16 sps:$4 sm:$0xff]   ;;  %v9592_v25 = vld [vmem:[#allocation7 + $0x1c4] ss:$16 sps:$4 sm:$0xff]  }
 0x17f   :  { %3681 = vmatprep.subr.bf16.mxu0 %v9532_v26  ;;  %3907 = vmatprep.subr.bf16.mxu1 %v9535_v27 }
 0x182   :  { %3682 = vmatpush1.bf16.msra.mxu0 %v9530_v28  ;;  %3908 = vmatpush1.bf16.msra.mxu1 %v9533_v29 }
 0x183   :  { %3683 = vmatprep.subr.bf16.mxu0 %v9538_v30  ;;  %3909 = vmatprep.subr.bf16.mxu1 %v9541_v31  ;;  %v9593_v30 = vld [vmem:[#allocation7 + $0x1c8] ss:$16 sps:$4 sm:$0xff]   ;;  %v9595_v31 = vld [vmem:[#allocation7 + $0x1cc] ss:$16 sps:$4 sm:$0xff]  }
 0x186   :  { %3684 = vmatpush1.bf16.msra.mxu0 %v9536_v32  ;;  %3910 = vmatpush1.bf16.msra.mxu1 %v9539_v33 }
 0x187   :  { %3685 = vmatprep.subr.bf16.mxu0 %v9544_v34  ;;  %3911 = vmatprep.subr.bf16.mxu1 %v9547_v35  ;;  %v9598_v34 = vld [vmem:[#allocation7 + $0x1e4] ss:$16 sps:$4 sm:$0xff]   ;;  %v9601_v35 = vld [vmem:[#allocation7 + $0x1ec] ss:$16 sps:$4 sm:$0xff]  }
 0x18a   :  { %3686 = vmatpush1.bf16.msra.mxu0 %v9542_v36  ;;  %3912 = vmatpush1.bf16.msra.mxu1 %v9545_v37 }
 0x18b   :  { %3687 = vmatprep.subr.bf16.mxu0 %v9550_v38  ;;  %3913 = vmatprep.subr.bf16.mxu1 %v9553_v39 }
 0x18e   :  { %3688 = vmatpush1.bf16.msra.mxu0 %v9548_v40  ;;  %3914 = vmatpush1.bf16.msra.mxu1 %v9551_v41  ;;  %v9596_v40 = vld [vmem:[#allocation7 + $0x1e0] ss:$16 sps:$4 sm:$0xff]  }
 0x18f   :  { %3689 = vmatprep.subr.bf16.mxu0 %v9556_v42  ;;  %3915 = vmatprep.subr.bf16.mxu1 %v9559_v43  ;;  %v9599_v43 = vld [vmem:[#allocation7 + $0x1e8] ss:$16 sps:$4 sm:$0xff]  }
 0x192   :  { %3690 = vmatpush1.bf16.msra.mxu0 %v9554_v44  ;;  %3916 = vmatpush1.bf16.msra.mxu1 %v9557_v56 }
 0x193   :  { %3691 = vmatprep.subr.bf16.mxu0 %v9562_v45  ;;  %3917 = vmatprep.subr.bf16.mxu1 %v9565_v46 }
 0x196   :  { %3692 = vmatpush1.bf16.msra.mxu0 %v9560_v47  ;;  %3918 = vmatpush1.bf16.msra.mxu1 %v9563_v48  ;;  %v9604_v47 = vld [vmem:[#allocation7 + $0x204] ss:$16 sps:$4 sm:$0xff]   ;;  %v9607_v48 = vld [vmem:[#allocation7 + $0x20c] ss:$16 sps:$4 sm:$0xff]  }
 0x197   :  { %3693 = vmatprep.subr.bf16.mxu0 %v9568_v49  ;;  %3919 = vmatprep.subr.bf16.mxu1 %v9571_v50  ;;  %v2551_v49 = vsub.s32 4, %v10599_v4  ;;  %v113_v50 = vld [vmem:[%s12274_s6] sm:$0xff] }
 0x19a   :  { %3694 = vmatpush1.bf16.msra.mxu0 %v9566_v51  ;;  %3920 = vmatpush1.bf16.msra.mxu1 %v9569_v52  ;;  %v10617_v51 = vsub.s32 0, %v10599_v4 }
 0x19b   :  { %3695 = vmatprep.subr.bf16.mxu0 %v9574_v53  ;;  %3921 = vmatprep.subr.bf16.mxu1 %v9577_v54 }
 0x19e   :  { %3696 = vmatpush1.bf16.msra.mxu0 %v9572_v55  ;;  %3922 = vmatpush1.bf16.msra.mxu1 %v9575_v57  ;;  %v2552_v57 = vrot.slane %v113_v50, %v2551_v49 }
 0x19f   :  { %3697 = vmatprep.subr.bf16.mxu0 %v9580_v58  ;;  %3923 = vmatprep.subr.bf16.mxu1 %v9583_v59  ;;  %v2548_v58 = vrot.slane %v113_v50, %v10617_v51  ;;  %v10635_v59 = vsub.s32 2, %v10599_v4 }
 0x1a1   :  { %12287 = vst [vmem:[#allocation20_spill] sm:$0xff] %v10635_v59 }
 0x1a2   :  { %3698 = vmatpush1.bf16.msra.mxu0 %v9578_v60  ;;  %3924 = vmatpush1.bf16.msra.mxu1 %v9581_v61  ;;  %v10638_v60 = vsub.s32 1, %v10599_v4 }
 0x1a3   :  { %3699 = vmatprep.subr.bf16.mxu0 %v9586_v62  ;;  %3925 = vmatprep.subr.bf16.mxu1 %v9589_v10 }
 0x1a6   :  { %3700 = vmatpush1.bf16.msra.mxu0 %v9584_v63  ;;  %3926 = vmatpush1.bf16.msra.mxu1 %v9587_v9  ;;  %v10647_v63 = vsub.s32 3, %v10599_v4  ;;  %v10675_v9 = vrot.slane %v2548_v58, %v10617_v51 }
 0x1a7   :  { %3701 = vmatprep.subr.bf16.mxu0 %v9592_v25  ;;  %3927 = vmatprep.subr.bf16.mxu1 %v9595_v31 }
 0x1a8   :  { %12288 = vst [vmem:[#allocation21_spill] sm:$0xff] %v10647_v63 }
 0x1aa   :  { %3702 = vmatpush1.bf16.msra.mxu0 %v9590_v24  ;;  %3928 = vmatpush1.bf16.msra.mxu1 %v9593_v30 }
 0x1ab   :  { %3703 = vmatprep.subr.bf16.mxu0 %v9598_v34  ;;  %3929 = vmatprep.subr.bf16.mxu1 %v9601_v35  ;;  %v9602_v34 = vld [vmem:[#allocation7 + $0x200] ss:$16 sps:$4 sm:$0xff]  }
 0x1ae   :  { %3704 = vmatpush1.bf16.msra.mxu0 %v9596_v40  ;;  %3930 = vmatpush1.bf16.msra.mxu1 %v9599_v43 }
 0x1af   :  { %3786 = vmatprep.subr.bf16.mxu0 %v9604_v47  ;;  %4012 = vmatprep.subr.bf16.mxu1 %v9607_v48  ;;  %v114_v48 = vld [vmem:[%s12274_s6 + $0x8] sm:$0xff] }
 0x1b0   :  { %v2560_v47 = vrot.slane %v114_v48, %v2551_v49 }
 0x1b2   :  { %v10826_v50 = vrot.slane %v2560_v47, %v10617_v51 }
 0x1c4   :  { %v1748_v5 = vpop.f32.mrb[0].mxu0  ;;  %v1834_v7 = vpop.f32.mrb[0].mxu1 }
 0x1c5   :  { %v1750_v8 = vpop.f32.mrb[1].mxu0  ;;  %v1836_v13 = vpop.f32.mrb[1].mxu1 }
 0x1c6   :  { %v2023_v11 = vcombine.low %v1748_v5, %v1750_v8  ;;  %v2024_v12 = vcombine.high %v1748_v5, %v1750_v8  ;;  %v1752_v14 = vpop.f32.mrb[2].mxu0  ;;  %v2025_v15 = vcombine.low %v1834_v7, %v1836_v13  ;;  %v2026_v16 = vcombine.high %v1834_v7, %v1836_v13  ;;  %v1838_v17 = vpop.f32.mrb[2].mxu1 }
 0x1c7   :  { %v1754_v18 = vpop.f32.mrb[3].mxu0  ;;  %v1840_v23 = vpop.f32.mrb[3].mxu1  ;;  %v10672_v8 = vrot.slane %v2552_v57, %v10617_v51 }
 0x1c8   :  { %v2033_v19 = vrot.slane %v2023_v11, %v10602_v6  ;;  %v2040_v20 = vrot.slane %v2024_v12, %v10602_v6  ;;  %v2091_v21 = vcombine.low %v1752_v14, %v1754_v18  ;;  %v2092_v22 = vcombine.high %v1752_v14, %v1754_v18 }
 0x1c9   :  { %v2047_v26 = vrot.slane %v2025_v15, %v10602_v6  ;;  %v2054_v27 = vrot.slane %v2026_v16, %v10602_v6  ;;  %v2093_v28 = vcombine.low %v1838_v17, %v1840_v23  ;;  %v2094_v29 = vcombine.high %v1838_v17, %v1840_v23 }
 0x1ca   :  { %v2101_v32 = vrot.slane %v2091_v21, %v10602_v6  ;;  %v2108_v33 = vrot.slane %v2092_v22, %v10602_v6 }
 0x1cb   :  { %v2055_v36 = vcombine.low %v2033_v19, %v2047_v26  ;;  %v2056_v37 = vcombine.high %v2033_v19, %v2047_v26  ;;  %v2057_v38 = vcombine.low %v2040_v20, %v2054_v27  ;;  %v2058_v39 = vcombine.high %v2040_v20, %v2054_v27 }
 0x1cc   :  { %v2115_v41 = vrot.slane %v2093_v28, %v10602_v6  ;;  %v2122_v42 = vrot.slane %v2094_v29, %v10602_v6 }
 0x1cd   :  { %v10620_v52 = vrot.slane %v2055_v36, %v10602_v6  ;;  %v10623_v53 = vrot.slane %v2056_v37, %v10602_v6  ;;  %v10626_v54 = vrot.slane %v2057_v38, %v10602_v6  ;;  %v10629_v55 = vrot.slane %v2058_v39, %v10602_v6 }
 0x1ce   :  { %v2123_v44 = vcombine.low %v2101_v32, %v2115_v41  ;;  %v2124_v56 = vcombine.high %v2101_v32, %v2115_v41  ;;  %v2125_v45 = vcombine.low %v2108_v33, %v2122_v42  ;;  %v2126_v46 = vcombine.high %v2108_v33, %v2122_v42  ;;  %v9605_v32 = vld [vmem:[#allocation7 + $0x208] ss:$16 sps:$4 sm:$0xff]  }
 0x1cf   :  { %v10651_v0 = vcombine.high %v10620_v52, %v10620_v52  ;;  %v10655_v1 = vcombine.high %v10623_v53, %v10623_v53  ;;  %v10665_v5 = vcombine.high %v10626_v54, %v10626_v54  ;;  %v10669_v7 = vcombine.high %v10629_v55, %v10629_v55 }
 0x1d0   :  { %v10641_v61 = vrot.slane %v2123_v44, %v10602_v6  ;;  %v10644_v62 = vrot.slane %v2125_v45, %v10602_v6  ;;  %v10658_v2 = vrot.slane %v2124_v56, %v10602_v6  ;;  %v10661_v3 = vrot.slane %v2126_v46, %v10602_v6 }
 0x1d1   :  { %v2166_v11 = vrot.slane %v10620_v52, %v10638_v60  ;;  %v2182_v12 = vrot.slane %v10623_v53, %v10638_v60  ;;  %v2162_v15 = vrot.slane %v10620_v52, %v10617_v51  ;;  %v2178_v16 = vrot.slane %v10623_v53, %v10617_v51 }
 0x1d2   :  { %v10687_v13 = vcombine.high %v10641_v61, %v10641_v61  ;;  %v10691_v14 = vcombine.high %v10644_v62, %v10644_v62  ;;  %v10699_v17 = vcombine.high %v10658_v2, %v10658_v2  ;;  %v10703_v18 = vcombine.high %v10661_v3, %v10661_v3 }
 0x1d3   :  { %v2198_v19 = vrot.slane %v10651_v0, %v10638_v60  ;;  %v2214_v20 = vrot.slane %v10655_v1, %v10638_v60  ;;  %v2194_v21 = vrot.slane %v10651_v0, %v10617_v51  ;;  %v2210_v22 = vrot.slane %v10655_v1, %v10617_v51 }
 0x1d4   :  { %v2230_v23 = vrot.slane %v10626_v54, %v10638_v60  ;;  %v2246_v24 = vrot.slane %v10629_v55, %v10638_v60  ;;  %v2226_v25 = vrot.slane %v10626_v54, %v10617_v51  ;;  %v2242_v26 = vrot.slane %v10629_v55, %v10617_v51 }
 0x1d5   :  { %v2262_v27 = vrot.slane %v10665_v5, %v10638_v60  ;;  %v2278_v28 = vrot.slane %v10669_v7, %v10638_v60  ;;  %v2556_v46 = vrot.slane %v114_v48, %v10617_v51 }
 0x1d7   :  { %v10829_v57 = vrot.slane %v2556_v46, %v10617_v51 }
 0x244   :  { %v10823_v45 = vpop.f32.mrb[4].mxu0  ;;  %v10835_v58 = vpop.f32.mrb[4].mxu1 }
 0x245   :  { %v10837_v49 = vpop.f32.mrb[5].mxu0  ;;  %v2479_v48 = vadd.f32 %v2162_v15, %v10823_v45  ;;  %v2483_v46 = vadd.f32 %v2178_v16, %v10823_v45  ;;  %v2487_v47 = vadd.f32 %v2194_v21, %v10823_v45  ;;  %v2491_v10 = vadd.f32 %v2210_v22, %v10823_v45  ;;  %v10855_v6 = vpop.f32.mrb[5].mxu1 }
 0x246   :  { %v10857_v56 = vpop.f32.mrb[6].mxu0  ;;  %v2480_v15 = vadd.f32 %v2166_v11, %v10837_v49  ;;  %v2484_v16 = vadd.f32 %v2182_v12, %v10837_v49  ;;  %v2488_v21 = vadd.f32 %v2198_v19, %v10837_v49  ;;  %v2492_v22 = vadd.f32 %v2214_v20, %v10837_v49  ;;  %v10875_v44 = vpop.f32.mrb[6].mxu1 }
 0x247   :  { %v10877_v43 = vpop.f32.mrb[7].mxu0  ;;  %v2581_v11 = vadd.f32 %v10675_v9, %v2479_v48  ;;  %v2585_v42 = vadd.f32 %v10675_v9, %v2483_v46  ;;  %v2589_v12 = vadd.f32 %v10675_v9, %v2487_v47  ;;  %v2593_v41 = vadd.f32 %v10675_v9, %v2491_v10  ;;  %v10883_v40 = vpop.f32.mrb[7].mxu1 }
 0x248   :  { %v2582_v19 = vadd.f32 %v10672_v8, %v2480_v15  ;;  %v2586_v39 = vadd.f32 %v10672_v8, %v2484_v16  ;;  %v2590_v20 = vadd.f32 %v10672_v8, %v2488_v21  ;;  %v2594_v38 = vadd.f32 %v10672_v8, %v2492_v22 }
 0x249   :  { %vm2645_vm0 = vcmp.ge.f32.partialorder %v2581_v11, 0.0  ;;  %vm2649_vm1 = vcmp.ge.f32.partialorder %v2585_v42, 0.0  ;;  %v2709_v37 = vmul.f32 0.2, %v2581_v11  ;;  %v2713_v48 = vmul.f32 0.2, %v2585_v42 }
 0x24a   :  { %vm2646_vm2 = vcmp.ge.f32.partialorder %v2582_v19, 0.0  ;;  %vm2650_vm3 = vcmp.ge.f32.partialorder %v2586_v39, 0.0  ;;  %v2710_v46 = vmul.f32 0.2, %v2582_v19  ;;  %v2714_v47 = vmul.f32 0.2, %v2586_v39 }
 0x24b   :  { %v2773_v36 = vsel %vm2645_vm0, %v2581_v11, %v2709_v37  ;;  %v2777_v10 = vsel %vm2649_vm1, %v2585_v42, %v2713_v48  ;;  %vm2654_vm4 = vcmp.ge.f32.partialorder %v2590_v20, 0.0  ;;  %vm2658_vm5 = vcmp.ge.f32.partialorder %v2594_v38, 0.0  ;;  %v9610_v42 = vld [vmem:[#allocation7 + $0x224] ss:$16 sps:$4 sm:$0xff]  }
 0x24c   :  { %v2774_v35 = vsel %vm2646_vm2, %v2582_v19, %v2710_v46  ;;  %v2778_v15 = vsel %vm2650_vm3, %v2586_v39, %v2714_v47  ;;  %v2837_v16 = vpack.c.bf16 %v2777_v10, %v2773_v36  ;;  %v2718_v33 = vmul.f32 0.2, %v2590_v20  ;;  %v9613_v36 = vld [vmem:[#allocation7 + $0x22c] ss:$16 sps:$4 sm:$0xff]   ;;  %v9616_v47 = vld [vmem:[#allocation7 + $0x244] ss:$16 sps:$4 sm:$0xff]  }
 0x24d   :  { %v2838_v21 = vpack.c.bf16 %v2778_v15, %v2774_v35  ;;  %v2722_v22 = vmul.f32 0.2, %v2594_v38  ;;  %vm2653_vm6 = vcmp.ge.f32.partialorder %v2589_v12, 0.0  ;;  %vm2657_vm7 = vcmp.ge.f32.partialorder %v2593_v41, 0.0  ;;  %v9614_v10 = vld [vmem:[#allocation7 + $0x240] ss:$16 sps:$4 sm:$0xff]  }
 0x24e   :  { %v2782_v31 = vsel %vm2654_vm4, %v2590_v20, %v2718_v33  ;;  %v2717_v30 = vmul.f32 0.2, %v2589_v12  ;;  %v2721_v29 = vmul.f32 0.2, %v2593_v41  ;;  %v2496_v37 = vadd.f32 %v2230_v23, %v10837_v49  ;;  %v9611_v20 = vld [vmem:[#allocation7 + $0x228] ss:$16 sps:$4 sm:$0xff]  }
 0x24f   :  { %3705 = vmatprep.mubr.bf16.mxu0 %v2838_v21  ;;  %3931 = vmatprep.mubr.bf16.mxu1 %v2838_v21  ;;  %v2786_v39 = vsel %vm2658_vm5, %v2594_v38, %v2722_v22  ;;  %v2500_v35 = vadd.f32 %v2246_v24, %v10837_v49  ;;  %v2495_v33 = vadd.f32 %v2226_v25, %v10823_v45  ;;  %v9608_v38 = vld [vmem:[#allocation7 + $0x220] ss:$16 sps:$4 sm:$0xff]   ;;  %v9619_v25 = vld [vmem:[#allocation7 + $0x24c] ss:$16 sps:$4 sm:$0xff]   ;;  %v9617_v15 = vld [vmem:[#allocation7 + $0x248] ss:$16 sps:$4 sm:$0xff]  }
 0x250   :  { %3706 = vmatmul.mubr.bf16.vlgmr.msra.gmra.mrb[8].mxu0 %v2837_v16  ;;  %3932 = vmatmul.mubr.bf16.vlgmr.msra.gmra.mrb[8].mxu1 %v2837_v16  ;;  %v2842_v11 = vpack.c.bf16 %v2786_v39, %v2782_v31  ;;  %v2781_v23 = vsel %vm2653_vm6, %v2589_v12, %v2717_v30  ;;  %v2785_v19 = vsel %vm2657_vm7, %v2593_v41, %v2721_v29 }
 0x251   :  { %3787 = vmatpush1.bf16.msra.mxu0 %v9602_v34  ;;  %4013 = vmatpush1.bf16.msra.mxu1 %v9605_v32  ;;  %v2841_v48 = vpack.c.bf16 %v2785_v19, %v2781_v23  ;;  %v2598_v46 = vadd.f32 %v10672_v8, %v2496_v37  ;;  %v2602_v24 = vadd.f32 %v10672_v8, %v2500_v35  ;;  %v9622_v37 = vld [vmem:[#allocation7 + $0x264] ss:$16 sps:$4 sm:$0xff]  }
 0x252   :  { %3715 = vmatprep.mubr.bf16.mxu0 %v2842_v11  ;;  %3941 = vmatprep.mubr.bf16.mxu1 %v2842_v11  ;;  %v2499_v30 = vadd.f32 %v2242_v26, %v10823_v45  ;;  %v2597_v29 = vadd.f32 %v10675_v9, %v2495_v33  ;;  %v2504_v31 = vadd.f32 %v2262_v27, %v10837_v49 }
 0x253   :  { %3788 = vmatprep.subr.bf16.mxu0 %v9610_v42  ;;  %4014 = vmatprep.subr.bf16.mxu1 %v9613_v36  ;;  %vm2662_vm8 = vcmp.ge.f32.partialorder %v2598_v46, 0.0  ;;  %vm2666_vm9 = vcmp.ge.f32.partialorder %v2602_v24, 0.0  ;;  %v2726_v32 = vmul.f32 0.2, %v2598_v46  ;;  %v2730_v34 = vmul.f32 0.2, %v2602_v24 }
 0x254   :  { %v2601_v41 = vadd.f32 %v10675_v9, %v2499_v30  ;;  %vm2661_vm10 = vcmp.ge.f32.partialorder %v2597_v29, 0.0  ;;  %v2725_v12 = vmul.f32 0.2, %v2597_v29  ;;  %v2508_v26 = vadd.f32 %v2278_v28, %v10837_v49  ;;  %v9625_v36 = vld [vmem:[#allocation7 + $0x26c] ss:$16 sps:$4 sm:$0xff]  }
 0x255   :  { %3789 = vmatpush1.bf16.msra.mxu0 %v9608_v38  ;;  %4015 = vmatpush1.bf16.msra.mxu1 %v9611_v20  ;;  %v2790_v27 = vsel %vm2662_vm8, %v2598_v46, %v2726_v32  ;;  %v2794_v16 = vsel %vm2666_vm9, %v2602_v24, %v2730_v34  ;;  %v2606_v21 = vadd.f32 %v10672_v8, %v2504_v31  ;;  %v9620_v46 = vld [vmem:[#allocation7 + $0x260] ss:$16 sps:$4 sm:$0xff]   ;;  %v9628_v30 = vld [vmem:[#allocation7 + $0x284] ss:$16 sps:$4 sm:$0xff]   ;;  %v9631_v34 = vld [vmem:[#allocation7 + $0x28c] ss:$16 sps:$4 sm:$0xff]  }
 0x256   :  { %3790 = vmatprep.subr.bf16.mxu0 %v9616_v47  ;;  %4016 = vmatprep.subr.bf16.mxu1 %v9619_v25  ;;  %v2846_v22 = vpack.c.bf16 %v2794_v16, %v2790_v27  ;;  %vm2665_vm11 = vcmp.ge.f32.partialorder %v2601_v41, 0.0  ;;  %v2729_v39 = vmul.f32 0.2, %v2601_v41  ;;  %v2789_v42 = vsel %vm2661_vm10, %v2597_v29, %v2725_v12 }
 0x257   :  { %v2610_v35 = vadd.f32 %v10672_v8, %v2508_v26  ;;  %vm2670_vm12 = vcmp.ge.f32.partialorder %v2606_v21, 0.0  ;;  %v2734_v28 = vmul.f32 0.2, %v2606_v21  ;;  %v12289_v49 = vrot.slane %v10665_v5, %v10617_v51 }
 0x258   :  { %3716 = vmatmul.mubr.bf16.gmra.mrb[12].mxu0 %v2841_v48  ;;  %3942 = vmatmul.mubr.bf16.gmra.mrb[12].mxu1 %v2841_v48  ;;  %v2793_v11 = vsel %vm2665_vm11, %v2601_v41, %v2729_v39  ;;  %v12290_v23 = vrot.slane %v10669_v7, %v10617_v51  ;;  %v12291_v38 = vrot.slane %v10641_v61, %v10638_v60  ;;  %v9623_v48 = vld [vmem:[#allocation7 + $0x268] ss:$16 sps:$4 sm:$0xff]  }
 0x259   :  { %v2503_v33 = vadd.f32 %v12289_v49, %v10823_v45  ;;  %3791 = vmatpush1.bf16.msra.mxu0 %v9614_v10  ;;  %3725 = vmatprep.mubr.bf16.mxu0 %v2846_v22  ;;  %v2845_v24 = vpack.c.bf16 %v2793_v11, %v2789_v42  ;;  %vm2674_vm13 = vcmp.ge.f32.partialorder %v2610_v35, 0.0  ;;  %v2738_v47 = vmul.f32 0.2, %v2610_v35  ;;  %v9629_v39 = vld [vmem:[#allocation7 + $0x288] ss:$16 sps:$4 sm:$0xff]  }
 0x25a   :  { %v2507_v19 = vadd.f32 %v12290_v23, %v10823_v45  ;;  %v2512_v20 = vadd.f32 %v12291_v38, %v10877_v43  ;;  %v2798_v25 = vsel %vm2670_vm12, %v2606_v21, %v2734_v28  ;;  %3951 = vmatprep.mubr.bf16.mxu1 %v2846_v22  ;;  %4017 = vmatpush1.bf16.msra.mxu1 %v9617_v15  ;;  %v9626_v15 = vld [vmem:[#allocation7 + $0x280] ss:$16 sps:$4 sm:$0xff]   ;;  %v9634_v42 = vld [vmem:[#allocation7 + $0x2a4] ss:$16 sps:$4 sm:$0xff]  }
 0x25b   :  { %v2605_v29 = vadd.f32 %v10675_v9, %v2503_v33  ;;  %v12292_v31 = vrot.slane %v10658_v2, %v10638_v60  ;;  %3792 = vmatprep.subr.bf16.mxu0 %v9622_v37  ;;  %4018 = vmatprep.subr.bf16.mxu1 %v9625_v36  ;;  %v2802_v41 = vsel %vm2674_vm13, %v2610_v35, %v2738_v47  ;;  %v9637_v33 = vld [vmem:[#allocation7 + $0x2ac] ss:$16 sps:$4 sm:$0xff]   ;;  %v9632_v47 = vld [vmem:[#allocation7 + $0x2a0] ss:$16 sps:$4 sm:$0xff]  }
 0x25c   :  { %v2609_v45 = vadd.f32 %v10675_v9, %v2507_v19  ;;  %v2614_v12 = vadd.f32 %v10672_v8, %v2512_v20  ;;  %v12293_v26 = vrot.slane %v10641_v61, %v10617_v51  ;;  %v2850_v27 = vpack.c.bf16 %v2802_v41, %v2798_v25  ;;  %v9635_v25 = vld [vmem:[#allocation7 + $0x2a8] ss:$16 sps:$4 sm:$0xff]  }
 0x25d   :  { %v2516_v32 = vadd.f32 %v12292_v31, %v10877_v43  ;;  %vm2669_vm14 = vcmp.ge.f32.partialorder %v2605_v29, 0.0  ;;  %v2733_v16 = vmul.f32 0.2, %v2605_v29  ;;  %3793 = vmatpush1.bf16.msra.mxu0 %v9620_v46  ;;  %v12294_v35 = vrot.slane %v10658_v2, %v10617_v51  ;;  %v9640_v31 = vld [vmem:[#allocation7 + $0x2c4] ss:$16 sps:$4 sm:$0xff]  }
 0x25e   :  { %v2511_v10 = vadd.f32 %v12293_v26, %v10857_v56  ;;  %vm2673_vm15 = vcmp.ge.f32.partialorder %v2609_v45, 0.0  ;;  %v2737_v21 = vmul.f32 0.2, %v2609_v45  ;;  %vm2678_vm0 = vcmp.ge.f32.partialorder %v2614_v12, 0.0  ;;  %4019 = vmatpush1.bf16.msra.mxu1 %v9623_v48  ;;  %3794 = vmatprep.subr.bf16.mxu0 %v9628_v30 }
 0x25f   :  { %v2618_v22 = vadd.f32 %v10672_v8, %v2516_v32  ;;  %v2742_v37 = vmul.f32 0.2, %v2614_v12  ;;  %v2797_v36 = vsel %vm2669_vm14, %v2605_v29, %v2733_v16  ;;  %v2515_v28 = vadd.f32 %v12294_v35, %v10857_v56  ;;  %4020 = vmatprep.subr.bf16.mxu1 %v9631_v34  ;;  %v9638_v35 = vld [vmem:[#allocation7 + $0x2c0] ss:$16 sps:$4 sm:$0xff]  }
 0x260   :  { %v2613_v49 = vadd.f32 %v10675_v9, %v2511_v10  ;;  %v2801_v11 = vsel %vm2673_vm15, %v2609_v45, %v2737_v21  ;;  %3726 = vmatmul.mubr.bf16.gmra.mrb[16].mxu0 %v2845_v24  ;;  %3952 = vmatmul.mubr.bf16.gmra.mrb[16].mxu1 %v2845_v24  ;;  %v12295_v30 = vrot.slane %v10687_v13, %v10638_v60 }
 0x261   :  { %vm2682_vm1 = vcmp.ge.f32.partialorder %v2618_v22, 0.0  ;;  %v2746_v23 = vmul.f32 0.2, %v2618_v22  ;;  %v2806_v19 = vsel %vm2678_vm0, %v2614_v12, %v2742_v37  ;;  %v2849_v38 = vpack.c.bf16 %v2801_v11, %v2797_v36  ;;  %3795 = vmatpush1.bf16.msra.mxu0 %v9626_v15  ;;  %3735 = vmatprep.mubr.bf16.mxu0 %v2850_v27  ;;  %v9643_v12 = vld [vmem:[#allocation7 + $0x2cc] ss:$16 sps:$4 sm:$0xff]  }
 0x262   :  { %v2617_v20 = vadd.f32 %v10675_v9, %v2515_v28  ;;  %vm2677_vm2 = vcmp.ge.f32.partialorder %v2613_v49, 0.0  ;;  %v2741_v46 = vmul.f32 0.2, %v2613_v49  ;;  %v2520_v29 = vadd.f32 %v12295_v30, %v10877_v43  ;;  %3961 = vmatprep.mubr.bf16.mxu1 %v2850_v27  ;;  %4021 = vmatpush1.bf16.msra.mxu1 %v9629_v39 }
 0x263   :  { %v2810_v48 = vsel %vm2682_vm1, %v2618_v22, %v2746_v23  ;;  %v12296_v45 = vrot.slane %v10699_v17, %v10638_v60  ;;  %3796 = vmatprep.subr.bf16.mxu0 %v9634_v42  ;;  %4022 = vmatprep.subr.bf16.mxu1 %v9637_v33  ;;  %v12297_v15 = vrot.slane %v10687_v13, %v10617_v51  ;;  %v9641_v33 = vld [vmem:[#allocation7 + $0x2c8] ss:$16 sps:$4 sm:$0xff]  }
 0x264   :  { %v2854_v32 = vpack.c.bf16 %v2810_v48, %v2806_v19  ;;  %vm2681_vm3 = vcmp.ge.f32.partialorder %v2617_v20, 0.0  ;;  %v2745_v34 = vmul.f32 0.2, %v2617_v20  ;;  %v2805_v41 = vsel %vm2677_vm2, %v2613_v49, %v2741_v46  ;;  %v9646_v46 = vld [vmem:[#allocation7 + $0x2e4] ss:$16 sps:$4 sm:$0xff]  }
 0x265   :  { %v2524_v24 = vadd.f32 %v12296_v45, %v10877_v43  ;;  %v2622_v26 = vadd.f32 %v10672_v8, %v2520_v29  ;;  %v2519_v16 = vadd.f32 %v12297_v15, %v10857_v56  ;;  %v12298_v27 = vrot.slane %v10699_v17, %v10617_v51  ;;  %3797 = vmatpush1.bf16.msra.mxu0 %v9632_v47  ;;  %v9649_v48 = vld [vmem:[#allocation7 + $0x2ec] ss:$16 sps:$4 sm:$0xff]  }
 0x266   :  { %v2809_v21 = vsel %vm2681_vm3, %v2617_v20, %v2745_v34  ;;  %v12299_v37 = vrot.slane %v10644_v62, %v10638_v60  ;;  %v12300_v42 = vrot.slane %v10661_v3, %v10638_v60  ;;  %4023 = vmatpush1.bf16.msra.mxu1 %v9635_v25  ;;  %3798 = vmatprep.subr.bf16.mxu0 %v9640_v31  ;;  %v9644_v31 = vld [vmem:[#allocation7 + $0x2e0] ss:$16 sps:$4 sm:$0xff]  }
 0x267   :  { %v2626_v10 = vadd.f32 %v10672_v8, %v2524_v24  ;;  %v2523_v22 = vadd.f32 %v12298_v27, %v10857_v56  ;;  %v10980_v28 = vpack.c.bf16 %v2809_v21, %v2805_v41  ;;  %vm2686_vm4 = vcmp.ge.f32.partialorder %v2622_v26, 0.0  ;;  %4024 = vmatprep.subr.bf16.mxu1 %v9643_v12  ;;  %v9647_v12 = vld [vmem:[#allocation7 + $0x2e8] ss:$16 sps:$4 sm:$0xff]  }
 0x268   :  { %v2528_v39 = vadd.f32 %v12299_v37, %v10877_v43  ;;  %v2532_v36 = vadd.f32 %v12300_v42, %v10877_v43  ;;  %v2750_v49 = vmul.f32 0.2, %v2622_v26  ;;  %v2621_v23 = vadd.f32 %v10675_v9, %v2519_v16  ;;  %3736 = vmatmul.mubr.bf16.gmra.mrb[20].mxu0 %v2849_v38  ;;  %3962 = vmatmul.mubr.bf16.gmra.mrb[20].mxu1 %v2849_v38  ;;  %v9652_v16 = vld [vmem:[#allocation7 + $0x304] ss:$16 sps:$4 sm:$0xff]  }
 0x269   :  { %vm2690_vm5 = vcmp.ge.f32.partialorder %v2626_v10, 0.0  ;;  %v2754_v11 = vmul.f32 0.2, %v2626_v10  ;;  %v2625_v19 = vadd.f32 %v10675_v9, %v2523_v22  ;;  %v12301_v29 = vrot.slane %v10644_v62, %v10617_v51  ;;  %3799 = vmatpush1.bf16.msra.mxu0 %v9638_v35  ;;  %3745 = vmatprep.mubr.bf16.mxu0 %v2854_v32 }
 0x26a   :  { %v2630_v20 = vadd.f32 %v10672_v8, %v2528_v39  ;;  %v2814_v47 = vsel %vm2686_vm4, %v2622_v26, %v2750_v49  ;;  %v2634_v30 = vadd.f32 %v10672_v8, %v2532_v36  ;;  %v12302_v45 = vrot.slane %v10661_v3, %v10617_v51  ;;  %3971 = vmatprep.mubr.bf16.mxu1 %v2854_v32  ;;  %v9650_v32 = vld [vmem:[#allocation7 + $0x300] ss:$16 sps:$4 sm:$0xff]  }
 0x26b   :  { %v2527_v25 = vadd.f32 %v12301_v29, %v10857_v56  ;;  %v2818_v34 = vsel %vm2690_vm5, %v2626_v10, %v2754_v11  ;;  %vm2685_vm6 = vcmp.ge.f32.partialorder %v2621_v23, 0.0  ;;  %vm2689_vm7 = vcmp.ge.f32.partialorder %v2625_v19, 0.0  ;;  %4025 = vmatpush1.bf16.msra.mxu1 %v9641_v33  ;;  %3800 = vmatprep.subr.bf16.mxu0 %v9646_v46  ;;  %v9655_v10 = vld [vmem:[#allocation7 + $0x30c] ss:$16 sps:$4 sm:$0xff]   ;;  %v9653_v46 = vld [vmem:[#allocation7 + $0x308] ss:$16 sps:$4 sm:$0xff]  }
 0x26c   :  { %v2531_v24 = vadd.f32 %v12302_v45, %v10857_v56  ;;  %v2749_v41 = vmul.f32 0.2, %v2621_v23  ;;  %v2858_v26 = vpack.c.bf16 %v2818_v34, %v2814_v47  ;;  %v2753_v15 = vmul.f32 0.2, %v2625_v19  ;;  %4026 = vmatprep.subr.bf16.mxu1 %v9649_v48  ;;  %v9661_v45 = vld [vmem:[#allocation7 + $0x32c] ss:$16 sps:$4 sm:$0xff]  }
 0x26d   :  { %vm2694_vm8 = vcmp.ge.f32.partialorder %v2630_v20, 0.0  ;;  %vm2698_vm9 = vcmp.ge.f32.partialorder %v2634_v30, 0.0  ;;  %v2758_v27 = vmul.f32 0.2, %v2630_v20  ;;  %v2762_v22 = vmul.f32 0.2, %v2634_v30  ;;  %3801 = vmatpush1.bf16.msra.mxu0 %v9644_v31 }
 0x26e   :  { %v2813_v21 = vsel %vm2685_vm6, %v2621_v23, %v2749_v41  ;;  %v2629_v38 = vadd.f32 %v10675_v9, %v2527_v25  ;;  %v2817_v37 = vsel %vm2689_vm7, %v2625_v19, %v2753_v15  ;;  %v2633_v39 = vadd.f32 %v10675_v9, %v2531_v24  ;;  %3802 = vmatprep.subr.bf16.mxu0 %v9652_v16  ;;  %v9658_v25 = vld [vmem:[#allocation7 + $0x324] ss:$16 sps:$4 sm:$0xff]  }
 0x26f   :  { %v12303_v42 = vrot.slane %v10691_v14, %v10638_v60  ;;  %v11002_v35 = vpack.c.bf16 %v2817_v37, %v2813_v21  ;;  %v2822_v49 = vsel %vm2694_vm8, %v2630_v20, %v2758_v27  ;;  %v2826_v33 = vsel %vm2698_vm9, %v2634_v30, %v2762_v22  ;;  %4027 = vmatpush1.bf16.msra.mxu1 %v9647_v12  ;;  %v9656_v27 = vld [vmem:[#allocation7 + $0x320] ss:$16 sps:$4 sm:$0xff]   ;;  %v9667_v37 = vld [vmem:[#allocation7 + $0x34c] ss:$16 sps:$4 sm:$0xff]  }
 0x270   :  { %vm2693_vm10 = vcmp.ge.f32.partialorder %v2629_v38, 0.0  ;;  %v11006_v11 = vpack.c.bf16 %v2826_v33, %v2822_v49  ;;  %vm2697_vm11 = vcmp.ge.f32.partialorder %v2633_v39, 0.0  ;;  %v2757_v23 = vmul.f32 0.2, %v2629_v38  ;;  %4028 = vmatprep.subr.bf16.mxu1 %v9655_v10  ;;  %3746 = vmatmul.mubr.bf16.gmra.mrb[24].mxu0 %v10980_v28 }
 0x271   :  { %v2536_v36 = vadd.f32 %v12303_v42, %v10877_v43  ;;  %v2761_v19 = vmul.f32 0.2, %v2633_v39  ;;  %v12304_v48 = vrot.slane %v10703_v18, %v10638_v60  ;;  %v12305_v20 = vrot.slane %v10691_v14, %v10617_v51  ;;  %3972 = vmatmul.mubr.bf16.gmra.mrb[24].mxu1 %v10980_v28  ;;  %3803 = vmatpush1.bf16.msra.mxu0 %v9650_v32 }
 0x272   :  { %v2821_v24 = vsel %vm2693_vm10, %v2629_v38, %v2757_v23  ;;  %v12306_v34 = vrot.slane %v10703_v18, %v10617_v51  ;;  %3755 = vmatprep.mubr.bf16.mxu0 %v2858_v26  ;;  %v9659_v51 = vld [vmem:[#allocation7 + $0x328] ss:$16 sps:$4 sm:$0xff]   ;;  %v12308_v10 = vrot.slane %v10623_v53, %v10647_v63  ;;  %3981 = vmatprep.mubr.bf16.mxu1 %v2858_v26  ;;  %v9662_v26 = vld [vmem:[#allocation7 + $0x340] ss:$16 sps:$4 sm:$0xff]  }
 0x273   :  { %v2540_v47 = vadd.f32 %v12304_v48, %v10877_v43  ;;  %v2638_v29 = vadd.f32 %v10672_v8, %v2536_v36  ;;  %v2535_v30 = vadd.f32 %v12305_v20, %v10857_v56  ;;  %v2825_v31 = vsel %vm2697_vm11, %v2633_v39, %v2761_v19  ;;  %4029 = vmatpush1.bf16.msra.mxu1 %v9653_v46 }
 0x274   :  { %v2539_v41 = vadd.f32 %v12306_v34, %v10857_v56  ;;  %v12307_v43 = vrot.slane %v10620_v52, %v10647_v63  ;;  %v11027_v15 = vpack.c.bf16 %v2825_v31, %v2821_v24  ;;  %v9664_v56 = vld [vmem:[#allocation7 + $0x344] ss:$16 sps:$4 sm:$0xff]   ;;  %v2486_v28 = vadd.f32 %v12308_v10, %v10855_v6  ;;  %3804 = vmatprep.subr.bf16.mxu0 %v9658_v25  ;;  %v9673_v24 = vld [vmem:[#allocation7 + $0x36c] ss:$16 sps:$4 sm:$0xff]  }
 0x275   :  { %v2642_v16 = vadd.f32 %v10672_v8, %v2540_v47  ;;  %vm2702_vm12 = vcmp.ge.f32.partialorder %v2638_v29, 0.0  ;;  %v2766_v21 = vmul.f32 0.2, %v2638_v29  ;;  %v2637_v22 = vadd.f32 %v10675_v9, %v2535_v30  ;;  %4030 = vmatprep.subr.bf16.mxu1 %v9661_v45  ;;  %3805 = vmatpush1.bf16.msra.mxu0 %v9656_v27  ;;  %v9670_v45 = vld [vmem:[#allocation7 + $0x364] ss:$16 sps:$4 sm:$0xff]  }
 0x276   :  { %v2482_v12 = vadd.f32 %v12307_v43, %v10855_v6  ;;  %v2641_v38 = vadd.f32 %v10675_v9, %v2539_v41  ;;  %v2588_v49 = vadd.f32 %v10826_v50, %v2486_v28  ;;  %v12309_v48 = vrot.slane %v10620_v52, %v10635_v59  ;;  %3806 = vmatprep.subr.bf16.mxu0 %v9664_v56  ;;  %v9676_v28 = vld [vmem:[#allocation7 + $0x384] ss:$16 sps:$4 sm:$0xff]  }
 0x277   :  { %vm2706_vm13 = vcmp.ge.f32.partialorder %v2642_v16, 0.0  ;;  %v2770_v8 = vmul.f32 0.2, %v2642_v16  ;;  %v2830_v39 = vsel %vm2702_vm12, %v2638_v29, %v2766_v21  ;;  %vm2701_vm14 = vcmp.ge.f32.partialorder %v2637_v22, 0.0  ;;  %4031 = vmatpush1.bf16.msra.mxu1 %v9659_v51  ;;  %v9665_v29 = vld [vmem:[#allocation7 + $0x348] ss:$16 sps:$4 sm:$0xff]  }
 0x278   :  { %v2584_v42 = vadd.f32 %v10826_v50, %v2482_v12  ;;  %vm2705_vm15 = vcmp.ge.f32.partialorder %v2641_v38, 0.0  ;;  %v2765_v36 = vmul.f32 0.2, %v2637_v22  ;;  %v2769_v32 = vmul.f32 0.2, %v2641_v38  ;;  %4032 = vmatprep.subr.bf16.mxu1 %v9667_v37  ;;  %3756 = vmatmul.mubr.bf16.gmra.mrb[28].mxu0 %v11002_v35 }
 0x279   :  { %v2834_v9 = vsel %vm2706_vm13, %v2642_v16, %v2770_v8  ;;  %v2481_v47 = vadd.f32 %v12309_v48, %v10835_v58  ;;  %vm2652_vm1 = vcmp.ge.f32.partialorder %v2588_v49, 0.0  ;;  %v2716_v30 = vmul.f32 0.2, %v2588_v49  ;;  %3982 = vmatmul.mubr.bf16.gmra.mrb[28].mxu1 %v11002_v35  ;;  %3807 = vmatpush1.bf16.msra.mxu0 %v9662_v26 }
 0x27a   :  { %vm2648_vm0 = vcmp.ge.f32.partialorder %v2584_v42, 0.0  ;;  %v2712_v33 = vmul.f32 0.2, %v2584_v42  ;;  %v11038_v23 = vpack.c.bf16 %v2834_v9, %v2830_v39  ;;  %v2829_v19 = vsel %vm2701_vm14, %v2637_v22, %v2765_v36  ;;  %3765 = vmatprep.mubr.bf16.mxu0 %v11006_v11  ;;  %v9668_v22 = vld [vmem:[#allocation7 + $0x360] ss:$16 sps:$4 sm:$0xff]   ;;  %3991 = vmatprep.mubr.bf16.mxu1 %v11006_v11 }
 0x27b   :  { %v2833_v46 = vsel %vm2705_vm15, %v2641_v38, %v2769_v32  ;;  %v12310_v31 = vrot.slane %v10623_v53, %v10635_v59  ;;  %v2583_v41 = vadd.f32 %v10829_v57, %v2481_v47  ;;  %v12311_v52 = vrot.slane %v10651_v0, %v10647_v63  ;;  %4033 = vmatpush1.bf16.msra.mxu1 %v9665_v29  ;;  %v9679_v39 = vld [vmem:[#allocation7 + $0x38c] ss:$16 sps:$4 sm:$0xff]  }
 0x27c   :  { %v11044_v20 = vpack.c.bf16 %v2833_v46, %v2829_v19  ;;  %v2776_v25 = vsel %vm2648_vm0, %v2584_v42, %v2712_v33  ;;  %v12312_v12 = vrot.slane %v10655_v1, %v10647_v63  ;;  %v2780_v21 = vsel %vm2652_vm1, %v2588_v49, %v2716_v30  ;;  %3808 = vmatprep.subr.bf16.mxu0 %v9670_v45  ;;  %v9674_v49 = vld [vmem:[#allocation7 + $0x380] ss:$16 sps:$4 sm:$0xff]   ;;  %v9677_v19 = vld [vmem:[#allocation7 + $0x388] ss:$16 sps:$4 sm:$0xff]   ;;  %v9682_v30 = vld [vmem:[#allocation7 + $0x3a4] ss:$16 sps:$4 sm:$0xff]  }
 0x27d   :  { %v2485_v34 = vadd.f32 %v12310_v31, %v10835_v58  ;;  %v2490_v43 = vadd.f32 %v12311_v52, %v10855_v6  ;;  %v12313_v53 = vrot.slane %v10651_v0, %v10635_v59  ;;  %v12314_v51 = vrot.slane %v10655_v1, %v10635_v59  ;;  %v9671_v0 = vld [vmem:[#allocation7 + $0x368] ss:$16 sps:$4 sm:$0xff]   ;;  %4034 = vmatprep.subr.bf16.mxu1 %v9673_v24 }
 0x27e   :  { %v2494_v16 = vadd.f32 %v12312_v12, %v10855_v6  ;;  %v11070_v38 = vpack.c.bf16 %v2780_v21, %v2776_v25  ;;  %vm2647_vm2 = vcmp.ge.f32.partialorder %v2583_v41, 0.0  ;;  %v2711_v35 = vmul.f32 0.2, %v2583_v41  ;;  %3809 = vmatpush1.bf16.msra.mxu0 %v9668_v22  ;;  %v9685_v25 = vld [vmem:[#allocation7 + $0x3ac] ss:$16 sps:$4 sm:$0xff]  }
 0x27f   :  { %v2489_v27 = vadd.f32 %v12313_v53, %v10835_v58  ;;  %v2493_v56 = vadd.f32 %v12314_v51, %v10835_v58  ;;  %v2587_v10 = vadd.f32 %v10829_v57, %v2485_v34  ;;  %v2592_v37 = vadd.f32 %v10826_v50, %v2490_v43  ;;  %4035 = vmatpush1.bf16.msra.mxu1 %v9671_v0  ;;  %v9688_v22 = vld [vmem:[#allocation7 + $0x3c4] ss:$16 sps:$4 sm:$0xff]  }
 0x280   :  { %v2596_v1 = vadd.f32 %v10826_v50, %v2494_v16  ;;  %v2775_v36 = vsel %vm2647_vm2, %v2583_v41, %v2711_v35  ;;  %3810 = vmatprep.subr.bf16.mxu0 %v9676_v28  ;;  %4036 = vmatprep.subr.bf16.mxu1 %v9679_v39  ;;  %v12315_v31 = vrot.slane %v10626_v54, %v10647_v63  ;;  %v9686_v39 = vld [vmem:[#allocation7 + $0x3c0] ss:$16 sps:$4 sm:$0xff]  }
 0x281   :  { %v2591_v8 = vadd.f32 %v10829_v57, %v2489_v27  ;;  %vm2651_vm3 = vcmp.ge.f32.partialorder %v2587_v10, 0.0  ;;  %v2715_v42 = vmul.f32 0.2, %v2587_v10  ;;  %v2595_v32 = vadd.f32 %v10829_v57, %v2493_v56  ;;  %3766 = vmatmul.mubr.bf16.gmra.mrb[32].mxu0 %v11027_v15  ;;  %3992 = vmatmul.mubr.bf16.gmra.mrb[32].mxu1 %v11027_v15  ;;  %v9680_v27 = vld [vmem:[#allocation7 + $0x3a0] ss:$16 sps:$4 sm:$0xff]  }
 0x282   :  { %vm2656_vm4 = vcmp.ge.f32.partialorder %v2592_v37, 0.0  ;;  %vm2660_vm5 = vcmp.ge.f32.partialorder %v2596_v1, 0.0  ;;  %v2720_v11 = vmul.f32 0.2, %v2592_v37  ;;  %v2724_v9 = vmul.f32 0.2, %v2596_v1  ;;  %3811 = vmatpush1.bf16.msra.mxu0 %v9674_v49  ;;  %3775 = vmatprep.mubr.bf16.mxu0 %v11038_v23 }
 0x283   :  { %v2779_v33 = vsel %vm2651_vm3, %v2587_v10, %v2715_v42  ;;  %vm2655_vm6 = vcmp.ge.f32.partialorder %v2591_v8, 0.0  ;;  %vm2659_vm7 = vcmp.ge.f32.partialorder %v2595_v32, 0.0  ;;  %v2719_v26 = vmul.f32 0.2, %v2591_v8  ;;  %4001 = vmatprep.mubr.bf16.mxu1 %v11038_v23  ;;  %4037 = vmatpush1.bf16.msra.mxu1 %v9677_v19  ;;  %v9691_v10 = vld [vmem:[#allocation7 + $0x3cc] ss:$16 sps:$4 sm:$0xff]  }
 0x284   :  { %v11078_v46 = vpack.c.bf16 %v2779_v33, %v2775_v36  ;;  %v2784_v48 = vsel %vm2656_vm4, %v2592_v37, %v2720_v11  ;;  %v2788_v47 = vsel %vm2660_vm5, %v2596_v1, %v2724_v9  ;;  %v2723_v29 = vmul.f32 0.2, %v2595_v32  ;;  %3812 = vmatprep.subr.bf16.mxu0 %v9682_v30  ;;  %4038 = vmatprep.subr.bf16.mxu1 %v9685_v25  ;;  %v9689_v49 = vld [vmem:[#allocation7 + $0x3c8] ss:$16 sps:$4 sm:$0xff]   ;;  %v9694_v33 = vld [vmem:[#allocation7 + $0x3e4] ss:$16 sps:$4 sm:$0xff]  }
 0x285   :  { %v11080_v45 = vpack.c.bf16 %v2788_v47, %v2784_v48  ;;  %v2783_v24 = vsel %vm2655_vm6, %v2591_v8, %v2719_v26  ;;  %v2498_v34 = vadd.f32 %v12315_v31, %v10855_v6  ;;  %v12316_v41 = vrot.slane %v10629_v55, %v10647_v63  ;;  %v9697_v47 = vld [vmem:[#allocation7 + $0x3ec] ss:$16 sps:$4 sm:$0xff]  }
 0x286   :  { %v2787_v43 = vsel %vm2659_vm7, %v2595_v32, %v2723_v29  ;;  %v12317_v12 = vrot.slane %v10626_v54, %v10635_v59  ;;  %v12318_v21 = vrot.slane %v10629_v55, %v10635_v59  ;;  %v9683_v54 = vld [vmem:[#allocation7 + $0x3a8] ss:$16 sps:$4 sm:$0xff]   ;;  %v12319_v0 = vrot.slane %v10665_v5, %v10647_v63  ;;  %3813 = vmatpush1.bf16.msra.mxu0 %v9680_v27  ;;  %v9700_v27 = vld [vmem:[#allocation8 + $0x4] ss:$16 sps:$4 sm:$0xff]  }
 0x287   :  { %v2502_v52 = vadd.f32 %v12316_v41, %v10855_v6  ;;  %v11102_v51 = vpack.c.bf16 %v2787_v43, %v2783_v24  ;;  %v2600_v15 = vadd.f32 %v10826_v50, %v2498_v34  ;;  %v12320_v32 = vrot.slane %v10669_v7, %v10647_v63  ;;  %4039 = vmatpush1.bf16.msra.mxu1 %v9683_v54  ;;  %v9692_v43 = vld [vmem:[#allocation7 + $0x3e0] ss:$16 sps:$4 sm:$0xff]  }
 0x288   :  { %v2497_v16 = vadd.f32 %v12317_v12, %v10835_v58  ;;  %v2501_v53 = vadd.f32 %v12318_v21, %v10835_v58  ;;  %v2506_v28 = vadd.f32 %v12319_v0, %v10855_v6  ;;  %3814 = vmatprep.subr.bf16.mxu0 %v9688_v22  ;;  %4040 = vmatprep.subr.bf16.mxu1 %v9691_v10  ;;  %v9703_v10 = vld [vmem:[#allocation8 + $0xc] ss:$16 sps:$4 sm:$0xff]  }
 0x289   :  { %v2604_v56 = vadd.f32 %v10826_v50, %v2502_v52  ;;  %vm2664_vm8 = vcmp.ge.f32.partialorder %v2600_v15, 0.0  ;;  %v2728_v37 = vmul.f32 0.2, %v2600_v15  ;;  %v2510_v11 = vadd.f32 %v12320_v32, %v10855_v6  ;;  %3776 = vmatmul.mubr.bf16.gmra.mrb[36].mxu0 %v11044_v20  ;;  %4002 = vmatmul.mubr.bf16.gmra.mrb[36].mxu1 %v11044_v20 }
 0x28a   :  { %v2599_v35 = vadd.f32 %v10829_v57, %v2497_v16  ;;  %v2603_v55 = vadd.f32 %v10829_v57, %v2501_v53  ;;  %v2608_v9 = vadd.f32 %v10826_v50, %v2506_v28  ;;  %v12321_v6 = vrot.slane %v10665_v5, %v10635_v59  ;;  %3815 = vmatpush1.bf16.msra.mxu0 %v9686_v39 }
 0x28b   :  { %vm2668_vm9 = vcmp.ge.f32.partialorder %v2604_v56, 0.0  ;;  %v2732_v1 = vmul.f32 0.2, %v2604_v56  ;;  %v2792_v42 = vsel %vm2664_vm8, %v2600_v15, %v2728_v37  ;;  %v2612_v30 = vadd.f32 %v10826_v50, %v2510_v11  ;;  %3818 = vmatprep.mubr.bf16.mxu0 %v11070_v38  ;;  %4041 = vmatpush1.bf16.msra.mxu1 %v9689_v49  ;;  %v9701_v49 = vld [vmem:[#allocation8 + $0x8] ss:$16 sps:$4 sm:$0xff]  }
 0x28c   :  { %vm2663_vm10 = vcmp.ge.f32.partialorder %v2599_v35, 0.0  ;;  %vm2667_vm11 = vcmp.ge.f32.partialorder %v2603_v55, 0.0  ;;  %v2727_v23 = vmul.f32 0.2, %v2599_v35  ;;  %v2731_v8 = vmul.f32 0.2, %v2603_v55  ;;  %4044 = vmatprep.mubr.bf16.mxu1 %v11070_v38  ;;  %3816 = vmatprep.subr.bf16.mxu0 %v9694_v33 }
 0x28d   :  { %v2796_v36 = vsel %vm2668_vm9, %v2604_v56, %v2732_v1  ;;  %vm2672_vm12 = vcmp.ge.f32.partialorder %v2608_v9, 0.0  ;;  %v2736_v25 = vmul.f32 0.2, %v2608_v9  ;;  %v2505_v24 = vadd.f32 %v12321_v6, %v10835_v58  ;;  %4042 = vmatprep.subr.bf16.mxu1 %v9697_v47  ;;  %v9709_v47 = vld [vmem:[#allocation8 + $0x2c] ss:$16 sps:$4 sm:$0xff]  }
 0x28e   :  { %v11118_v26 = vpack.c.bf16 %v2796_v36, %v2792_v42  ;;  %v2791_v19 = vsel %vm2663_vm10, %v2599_v35, %v2727_v23  ;;  %v2795_v48 = vsel %vm2667_vm11, %v2603_v55, %v2731_v8  ;;  %v12322_v31 = vrot.slane %v10669_v7, %v10635_v59  ;;  %v9695_v7 = vld [vmem:[#allocation7 + $0x3e8] ss:$16 sps:$4 sm:$0xff]   ;;  %3817 = vmatpush1.bf16.msra.mxu0 %v9692_v43  ;;  %v9698_v8 = vld [vmem:[#allocation8] ss:$16 sps:$4 sm:$0xff]  }
 0x28f   :  { %v11120_v29 = vpack.c.bf16 %v2795_v48, %v2791_v19  ;;  %v12323_v41 = vrot.slane %v10641_v61, %v10647_v63  ;;  %vm2676_vm13 = vcmp.ge.f32.partialorder %v2612_v30, 0.0  ;;  %v2740_v20 = vmul.f32 0.2, %v2612_v30  ;;  %4043 = vmatpush1.bf16.msra.mxu1 %v9695_v7  ;;  %5153 = vmatprep.subr.bf16.mxu0 %v9700_v27 }
 0x290   :  { %v2509_v34 = vadd.f32 %v12322_v31, %v10835_v58  ;;  %v2800_v12 = vsel %vm2672_vm12, %v2608_v9, %v2736_v25  ;;  %v12324_v5 = vrot.slane %v10658_v2, %v10647_v63  ;;  %v2607_v58 = vadd.f32 %v10829_v57, %v2505_v24  ;;  %5379 = vmatprep.subr.bf16.mxu1 %v9703_v10  ;;  %v9704_v31 = vld [vmem:[#allocation8 + $0x20] ss:$16 sps:$4 sm:$0xff]  }
 0x291   :  { %v2514_v52 = vadd.f32 %v12323_v41, %v10883_v40  ;;  %v2804_v15 = vsel %vm2676_vm13, %v2612_v30, %v2740_v20  ;;  %v12325_v54 = vrot.slane %v10641_v61, %v10635_v59  ;;  %v12326_v1 = vrot.slane %v10658_v2, %v10635_v59  ;;  %v9706_v2 = vld [vmem:[#allocation8 + $0x24] ss:$16 sps:$4 sm:$0xff]   ;;  %3819 = vmatmul.mubr.bf16.vlgmr.msra.gmra.mrb[8].mxu0 %v11078_v46  ;;  %v9707_v20 = vld [vmem:[#allocation8 + $0x28] ss:$16 sps:$4 sm:$0xff]   ;;  %v9710_v10 = vld [vmem:[#allocation8 + $0x40] ss:$16 sps:$4 sm:$0xff]  }
 0x292   :  { %v2518_v16 = vadd.f32 %v12324_v5, %v10883_v40  ;;  %v2611_v21 = vadd.f32 %v10829_v57, %v2509_v34  ;;  %v11151_v38 = vpack.c.bf16 %v2804_v15, %v2800_v12  ;;  %vm2671_vm14 = vcmp.ge.f32.partialorder %v2607_v58, 0.0  ;;  %4045 = vmatmul.mubr.bf16.vlgmr.msra.gmra.mrb[8].mxu1 %v11078_v46  ;;  %3828 = vmatprep.mubr.bf16.mxu0 %v11080_v45 }
 0x293   :  { %v2616_v53 = vadd.f32 %v10826_v50, %v2514_v52  ;;  %v2513_v22 = vadd.f32 %v12325_v54, %v10875_v44  ;;  %v2735_v35 = vmul.f32 0.2, %v2607_v58  ;;  %v2517_v61 = vadd.f32 %v12326_v1, %v10875_v44  ;;  %4054 = vmatprep.mubr.bf16.mxu1 %v11080_v45  ;;  %5154 = vmatpush1.bf16.msra.mxu0 %v9698_v8  ;;  %v9712_v45 = vld [vmem:[#allocation8 + $0x44] ss:$16 sps:$4 sm:$0xff]  }
 0x294   :  { %v2620_v56 = vadd.f32 %v10826_v50, %v2518_v16  ;;  %vm2675_vm15 = vcmp.ge.f32.partialorder %v2611_v21, 0.0  ;;  %v2739_v55 = vmul.f32 0.2, %v2611_v21  ;;  %v12327_v36 = vrot.slane %v10687_v13, %v10647_v63  ;;  %5380 = vmatpush1.bf16.msra.mxu1 %v9701_v49  ;;  %5155 = vmatprep.subr.bf16.mxu0 %v9706_v2  ;;  %v9721_v49 = vld [vmem:[#allocation8 + $0x6c] ss:$16 sps:$4 sm:$0xff]  }
 0x295   :  { %vm2680_vm0 = vcmp.ge.f32.partialorder %v2616_v53, 0.0  ;;  %v2744_v0 = vmul.f32 0.2, %v2616_v53  ;;  %v2799_v28 = vsel %vm2671_vm14, %v2607_v58, %v2735_v35  ;;  %v2615_v23 = vadd.f32 %v10829_v57, %v2513_v22  ;;  %5381 = vmatprep.subr.bf16.mxu1 %v9709_v47  ;;  %v9716_v47 = vld [vmem:[#allocation8 + $0x60] ss:$16 sps:$4 sm:$0xff]  }
 0x296   :  { %vm2684_vm1 = vcmp.ge.f32.partialorder %v2620_v56, 0.0  ;;  %v2748_v37 = vmul.f32 0.2, %v2620_v56  ;;  %v2803_v39 = vsel %vm2675_vm15, %v2611_v21, %v2739_v55  ;;  %v2522_v32 = vadd.f32 %v12327_v36, %v10883_v40 }
 0x297   :  { %v2808_v42 = vsel %vm2680_vm0, %v2616_v53, %v2744_v0  ;;  %v12328_v11 = vrot.slane %v10699_v17, %v10647_v63  ;;  %v11167_v33 = vpack.c.bf16 %v2803_v39, %v2799_v28  ;;  %v2619_v48 = vadd.f32 %v10829_v57, %v2517_v61  ;;  %5156 = vmatpush1.bf16.msra.mxu0 %v9704_v31 }
 0x298   :  { %v2812_v19 = vsel %vm2684_vm1, %v2620_v56, %v2748_v37  ;;  %vm2679_vm2 = vcmp.ge.f32.partialorder %v2615_v23, 0.0  ;;  %v2743_v25 = vmul.f32 0.2, %v2615_v23  ;;  %v2624_v6 = vadd.f32 %v10826_v50, %v2522_v32  ;;  %5382 = vmatpush1.bf16.msra.mxu1 %v9707_v20  ;;  %5157 = vmatprep.subr.bf16.mxu0 %v9712_v45  ;;  %v9715_v37 = vld [vmem:[#allocation8 + $0x4c] ss:$16 sps:$4 sm:$0xff]  }
 0x299   :  { %v2526_v9 = vadd.f32 %v12328_v11, %v10883_v40  ;;  %v11173_v30 = vpack.c.bf16 %v2812_v19, %v2808_v42  ;;  %vm2683_vm3 = vcmp.ge.f32.partialorder %v2619_v48, 0.0  ;;  %v2747_v34 = vmul.f32 0.2, %v2619_v48  ;;  %3829 = vmatmul.mubr.bf16.gmra.mrb[12].mxu0 %v11102_v51  ;;  %v9713_v32 = vld [vmem:[#allocation8 + $0x48] ss:$16 sps:$4 sm:$0xff]   ;;  %5383 = vmatprep.subr.bf16.mxu1 %v9715_v37 }
 0x29a   :  { %v12329_v41 = vrot.slane %v10687_v13, %v10635_v59  ;;  %v12330_v46 = vrot.slane %v10699_v17, %v10635_v59  ;;  %v2807_v12 = vsel %vm2679_vm2, %v2615_v23, %v2743_v25  ;;  %vm2688_vm4 = vcmp.ge.f32.partialorder %v2624_v6, 0.0  ;;  %v9718_v11 = vld [vmem:[#allocation8 + $0x64] ss:$16 sps:$4 sm:$0xff]   ;;  %4055 = vmatmul.mubr.bf16.gmra.mrb[12].mxu1 %v11102_v51  ;;  %3838 = vmatprep.mubr.bf16.mxu0 %v11118_v26 }
 0x29b   :  { %v2628_v24 = vadd.f32 %v10826_v50, %v2526_v9  ;;  %v2752_v5 = vmul.f32 0.2, %v2624_v6  ;;  %v2811_v16 = vsel %vm2683_vm3, %v2619_v48, %v2747_v34  ;;  %v12331_v53 = vrot.slane %v10644_v62, %v10647_v63  ;;  %4064 = vmatprep.mubr.bf16.mxu1 %v11118_v26  ;;  %5158 = vmatpush1.bf16.msra.mxu0 %v9710_v10  ;;  %v9724_v34 = vld [vmem:[#allocation8 + $0x84] ss:$16 sps:$4 sm:$0xff]  }
 0x29c   :  { %v2521_v52 = vadd.f32 %v12329_v41, %v10875_v44  ;;  %v2525_v43 = vadd.f32 %v12330_v46, %v10875_v44  ;;  %v11189_v21 = vpack.c.bf16 %v2811_v16, %v2807_v12  ;;  %v12332_v15 = vrot.slane %v10661_v3, %v10647_v63  ;;  %5384 = vmatpush1.bf16.msra.mxu1 %v9713_v32  ;;  %v9719_v46 = vld [vmem:[#allocation8 + $0x68] ss:$16 sps:$4 sm:$0xff]   ;;  %v9746_v32 = vld [vmem:[#allocation8 + $0x100] ss:$16 sps:$4 sm:$0xff]  }
 0x29d   :  { %vm2692_vm5 = vcmp.ge.f32.partialorder %v2628_v24, 0.0  ;;  %v2756_v7 = vmul.f32 0.2, %v2628_v24  ;;  %v2816_v17 = vsel %vm2688_vm4, %v2624_v6, %v2752_v5  ;;  %v2530_v27 = vadd.f32 %v12331_v53, %v10883_v40  ;;  %5159 = vmatprep.subr.bf16.mxu0 %v9718_v11  ;;  %5385 = vmatprep.subr.bf16.mxu1 %v9721_v49  ;;  %v9751_v11 = vld [vmem:[#allocation8 + $0x10c] ss:$16 sps:$4 sm:$0xff]  }
 0x29e   :  { %v2623_v13 = vadd.f32 %v10829_v57, %v2521_v52  ;;  %v2627_v58 = vadd.f32 %v10829_v57, %v2525_v43  ;;  %v2534_v56 = vadd.f32 %v12332_v15, %v10883_v40  ;;  %v12333_v61 = vrot.slane %v10644_v62, %v10635_v59  ;;  %v9760_v49 = vld [vmem:[#allocation8 + $0x144] ss:$16 sps:$4 sm:$0xff]  }
 0x29f   :  { %v2820_v54 = vsel %vm2692_vm5, %v2628_v24, %v2756_v7  ;;  %v2632_v0 = vadd.f32 %v10826_v50, %v2530_v27  ;;  %v12334_v8 = vrot.slane %v10661_v3, %v10635_v59  ;;  %v12335_v42 = vrot.slane %v10691_v14, %v10647_v63  ;;  %5160 = vmatpush1.bf16.msra.mxu0 %v9716_v47  ;;  %v9722_v7 = vld [vmem:[#allocation8 + $0x80] ss:$16 sps:$4 sm:$0xff]   ;;  %v9766_v47 = vld [vmem:[#allocation8 + $0x164] ss:$16 sps:$4 sm:$0xff]  }
 0x2a0   :  { %vm2687_vm6 = vcmp.ge.f32.partialorder %v2623_v13, 0.0  ;;  %vm2691_vm7 = vcmp.ge.f32.partialorder %v2627_v58, 0.0  ;;  %v2751_v22 = vmul.f32 0.2, %v2623_v13  ;;  %v11199_v35 = vpack.c.bf16 %v2820_v54, %v2816_v17  ;;  %5161 = vmatprep.subr.bf16.mxu0 %v9724_v34  ;;  %5386 = vmatpush1.bf16.msra.mxu1 %v9719_v46  ;;  %v9733_v54 = vld [vmem:[#allocation8 + $0xac] ss:$16 sps:$4 sm:$0xff]  }
 0x2a1   :  { %v2755_v55 = vmul.f32 0.2, %v2627_v58  ;;  %v2636_v28 = vadd.f32 %v10826_v50, %v2534_v56  ;;  %v2529_v23 = vadd.f32 %v12333_v61, %v10875_v44  ;;  %v2533_v39 = vadd.f32 %v12334_v8, %v10875_v44  ;;  %3839 = vmatmul.mubr.bf16.gmra.mrb[16].mxu0 %v11120_v29  ;;  %v9742_v61 = vld [vmem:[#allocation8 + $0xe4] ss:$16 sps:$4 sm:$0xff]   ;;  %v9745_v8 = vld [vmem:[#allocation8 + $0xec] ss:$16 sps:$4 sm:$0xff]  }
 0x2a2   :  { %v2815_v1 = vsel %vm2687_vm6, %v2623_v13, %v2751_v22  ;;  %v2538_v36 = vadd.f32 %v12335_v42, %v10883_v40  ;;  %vm2696_vm8 = vcmp.ge.f32.partialorder %v2632_v0, 0.0  ;;  %v2760_v62 = vmul.f32 0.2, %v2632_v0  ;;  %v9727_v13 = vld [vmem:[#allocation8 + $0x8c] ss:$16 sps:$4 sm:$0xff]   ;;  %4065 = vmatmul.mubr.bf16.gmra.mrb[16].mxu1 %v11120_v29  ;;  %3848 = vmatprep.mubr.bf16.mxu0 %v11151_v38 }
 0x2a3   :  { %v2819_v9 = vsel %vm2691_vm7, %v2627_v58, %v2755_v55  ;;  %vm2700_vm9 = vcmp.ge.f32.partialorder %v2636_v28, 0.0  ;;  %v2764_v2 = vmul.f32 0.2, %v2636_v28  ;;  %v2631_v19 = vadd.f32 %v10829_v57, %v2529_v23  ;;  %4074 = vmatprep.mubr.bf16.mxu1 %v11151_v38  ;;  %5162 = vmatpush1.bf16.msra.mxu0 %v9722_v7  ;;  %v9728_v55 = vld [vmem:[#allocation8 + $0xa0] ss:$16 sps:$4 sm:$0xff]  }
 0x2a4   :  { %v11220_v3 = vpack.c.bf16 %v2819_v9, %v2815_v1  ;;  %v2635_v48 = vadd.f32 %v10829_v57, %v2533_v39  ;;  %v2824_v51 = vsel %vm2696_vm8, %v2632_v0, %v2760_v62  ;;  %v12336_v25 = vrot.slane %v10703_v18, %v10647_v63  ;;  %5387 = vmatprep.subr.bf16.mxu1 %v9727_v13  ;;  %v9731_v29 = vld [vmem:[#allocation8 + $0xa8] ss:$16 sps:$4 sm:$0xff]   ;;  %v9734_v1 = vld [vmem:[#allocation8 + $0xc0] ss:$16 sps:$4 sm:$0xff]   ;;  %v9739_v38 = vld [vmem:[#allocation8 + $0xcc] ss:$16 sps:$4 sm:$0xff]  }
 0x2a5   :  { %v2640_v24 = vadd.f32 %v10826_v50, %v2538_v36  ;;  %v12337_v26 = vrot.slane %v10691_v14, %v10635_v59  ;;  %v2828_v41 = vsel %vm2700_vm9, %v2636_v28, %v2764_v2  ;;  %vm2695_vm10 = vcmp.ge.f32.partialorder %v2631_v19, 0.0  ;;  %v9737_v23 = vld [vmem:[#allocation8 + $0xc8] ss:$16 sps:$4 sm:$0xff]   ;;  %v9740_v39 = vld [vmem:[#allocation8 + $0xe0] ss:$16 sps:$4 sm:$0xff]  }
 0x2a6   :  { %v2542_v6 = vadd.f32 %v12336_v25, %v10883_v40  ;;  %vm2699_vm11 = vcmp.ge.f32.partialorder %v2635_v48, 0.0  ;;  %v2759_v52 = vmul.f32 0.2, %v2631_v19  ;;  %v11234_v43 = vpack.c.bf16 %v2828_v41, %v2824_v51  ;;  %v9748_v42 = vld [vmem:[#allocation8 + $0x104] ss:$16 sps:$4 sm:$0xff]  }
 0x2a7   :  { %v2537_v31 = vadd.f32 %v12337_v26, %v10875_v44  ;;  %v2763_v40 = vmul.f32 0.2, %v2635_v48  ;;  %vm2704_vm12 = vcmp.ge.f32.partialorder %v2640_v24, 0.0  ;;  %v2768_v14 = vmul.f32 0.2, %v2640_v24  ;;  %v10277_v13 = vld [vmem:[%s12274_s6] sm:$0xff] }
 0x2a8   :  { %v2644_v20 = vadd.f32 %v10826_v50, %v2542_v6  ;;  %v2823_v12 = vsel %vm2695_vm10, %v2631_v19, %v2759_v52  ;;  %v12338_v5 = vrot.slane %v10703_v18, %v10635_v59  ;;  %v9730_v50 = vld [vmem:[#allocation8 + $0xa4] ss:$16 sps:$4 sm:$0xff]   ;;  %v9743_v36 = vld [vmem:[#allocation8 + $0xe8] ss:$16 sps:$4 sm:$0xff]   ;;  %v9752_v62 = vld [vmem:[#allocation8 + $0x120] ss:$16 sps:$4 sm:$0xff]  }
 0x2a9   :  { %v2639_v16 = vadd.f32 %v10829_v57, %v2537_v31  ;;  %v2827_v58 = vsel %vm2699_vm11, %v2635_v48, %v2763_v40  ;;  %v2832_v27 = vsel %vm2704_vm12, %v2640_v24, %v2768_v14  ;;  %5163 = vmatprep.subr.bf16.mxu0 %v9730_v50  ;;  %3849 = vmatmul.mubr.bf16.gmra.mrb[20].mxu0 %v11167_v33  ;;  %v9754_v9 = vld [vmem:[#allocation8 + $0x124] ss:$16 sps:$4 sm:$0xff]   ;;  %v9755_v2 = vld [vmem:[#allocation8 + $0x128] ss:$16 sps:$4 sm:$0xff]   ;;  %v9758_v19 = vld [vmem:[#allocation8 + $0x140] ss:$16 sps:$4 sm:$0xff]  }
 0x2aa   :  { %v2541_v45 = vadd.f32 %v12338_v5, %v10875_v44  ;;  %vm2708_vm13 = vcmp.ge.f32.partialorder %v2644_v20, 0.0  ;;  %v2772_v17 = vmul.f32 0.2, %v2644_v20  ;;  %v11244_v53 = vpack.c.bf16 %v2827_v58, %v2823_v12  ;;  %v9725_v44 = vld [vmem:[#allocation8 + $0x88] ss:$16 sps:$4 sm:$0xff]   ;;  %5164 = vmatpush1.bf16.msra.mxu0 %v9728_v55  ;;  %4075 = vmatmul.mubr.bf16.gmra.mrb[20].mxu1 %v11167_v33 }
 0x2ab   :  { %vm2703_vm14 = vcmp.ge.f32.partialorder %v2639_v16, 0.0  ;;  %v2767_v56 = vmul.f32 0.2, %v2639_v16  ;;  %5388 = vmatpush1.bf16.msra.mxu1 %v9725_v44  ;;  %3858 = vmatprep.mubr.bf16.mxu0 %v11173_v30  ;;  %v9749_v33 = vld [vmem:[#allocation8 + $0x108] ss:$16 sps:$4 sm:$0xff]   ;;  %v3000_v58 = vrot.slane %v10277_v13, %v10638_v60 }
 0x2ac   :  { %v2643_v18 = vadd.f32 %v10829_v57, %v2541_v45  ;;  %v2836_v15 = vsel %vm2708_vm13, %v2644_v20, %v2772_v17  ;;  %v9736_v57 = vld [vmem:[#allocation8 + $0xc4] ss:$16 sps:$4 sm:$0xff]   ;;  %5389 = vmatprep.subr.bf16.mxu1 %v9733_v54  ;;  %4084 = vmatprep.mubr.bf16.mxu1 %v11173_v30  ;;  %v9757_v30 = vld [vmem:[#allocation8 + $0x12c] ss:$16 sps:$4 sm:$0xff]   ;;  %v9764_v51 = vld [vmem:[#allocation8 + $0x160] ss:$16 sps:$4 sm:$0xff]  }
 0x2ad   :  { %v11251_v22 = vpack.c.bf16 %v2836_v15, %v2832_v27  ;;  %v2831_v0 = vsel %vm2703_vm14, %v2639_v16, %v2767_v56  ;;  %5165 = vmatprep.subr.bf16.mxu0 %v9736_v57  ;;  %v9763_v48 = vld [vmem:[#allocation8 + $0x14c] ss:$16 sps:$4 sm:$0xff]   ;;  %v9772_v25 = vld [vmem:[#allocation8 + $0x184] ss:$16 sps:$4 sm:$0xff]   ;;  %v9767_v6 = vld [vmem:[#allocation8 + $0x168] ss:$16 sps:$4 sm:$0xff]   ;;  %v11283_v27 = vrot.slane %v3000_v58, %v10638_v60 }
 0x2ae   :  { %vm2707_vm15 = vcmp.ge.f32.partialorder %v2643_v18, 0.0  ;;  %v2771_v10 = vmul.f32 0.2, %v2643_v18  ;;  %5166 = vmatpush1.bf16.msra.mxu0 %v9734_v1  ;;  %v9770_v24 = vld [vmem:[#allocation8 + $0x180] ss:$16 sps:$4 sm:$0xff]   ;;  %v3003_v17 = vsub.s32 5, %v10599_v4 }
 0x2af   :  { %5390 = vmatpush1.bf16.msra.mxu1 %v9731_v29  ;;  %5167 = vmatprep.subr.bf16.mxu0 %v9742_v61  ;;  %v9775_v26 = vld [vmem:[#allocation8 + $0x18c] ss:$16 sps:$4 sm:$0xff]   ;;  %v9778_v31 = vld [vmem:[#allocation8 + $0x1a4] ss:$16 sps:$4 sm:$0xff]   ;;  %v9776_v34 = vld [vmem:[#allocation8 + $0x1a0] ss:$16 sps:$4 sm:$0xff]  }
 0x2b0   :  { %v2835_v28 = vsel %vm2707_vm15, %v2643_v18, %v2771_v10  ;;  %5391 = vmatprep.subr.bf16.mxu1 %v9739_v38  ;;  %v9779_v41 = vld [vmem:[#allocation8 + $0x1a8] ss:$16 sps:$4 sm:$0xff]   ;;  %v9781_v52 = vld [vmem:[#allocation8 + $0x1ac] ss:$16 sps:$4 sm:$0xff]   ;;  %v9782_v46 = vld [vmem:[#allocation8 + $0x1c0] ss:$16 sps:$4 sm:$0xff]   ;;  %v3004_v18 = vrot.slane %v10277_v13, %v3003_v17 }
 0x2b1   :  { %v11253_v37 = vpack.c.bf16 %v2835_v28, %v2831_v0  ;;  %3859 = vmatmul.mubr.bf16.gmra.mrb[24].mxu0 %v11189_v21  ;;  %v9785_v40 = vld [vmem:[#allocation8 + $0x1c8] ss:$16 sps:$4 sm:$0xff]   ;;  %v9787_v20 = vld [vmem:[#allocation8 + $0x1cc] ss:$16 sps:$4 sm:$0xff]   ;;  %v9790_v12 = vld [vmem:[#allocation8 + $0x1e4] ss:$16 sps:$4 sm:$0xff]  }
 0x2b2   :  { %5168 = vmatpush1.bf16.msra.mxu0 %v9740_v39  ;;  %4085 = vmatmul.mubr.bf16.gmra.mrb[24].mxu1 %v11189_v21  ;;  %v9761_v21 = vld [vmem:[#allocation8 + $0x148] ss:$16 sps:$4 sm:$0xff]   ;;  %v9793_v14 = vld [vmem:[#allocation8 + $0x1ec] ss:$16 sps:$4 sm:$0xff]   ;;  %v9788_v5 = vld [vmem:[#allocation8 + $0x1e0] ss:$16 sps:$4 sm:$0xff]  }
 0x2b3   :  { %5392 = vmatpush1.bf16.msra.mxu1 %v9737_v23  ;;  %5169 = vmatprep.subr.bf16.mxu0 %v9748_v42  ;;  %v9791_v45 = vld [vmem:[#allocation8 + $0x1e8] ss:$16 sps:$4 sm:$0xff]   ;;  %v9796_v16 = vld [vmem:[#allocation8 + $0x204] ss:$16 sps:$4 sm:$0xff]   ;;  %v9799_v7 = vld [vmem:[#allocation8 + $0x20c] ss:$16 sps:$4 sm:$0xff]  }
 0x2b4   :  { %5393 = vmatprep.subr.bf16.mxu1 %v9745_v8  ;;  %3868 = vmatprep.mubr.bf16.mxu0 %v11199_v35  ;;  %v10278_v50 = vld [vmem:[%s12274_s6 + $0x8] sm:$0xff]  ;;  %v9856_v4 = vld [vmem:[#allocation8 + $0x344] ss:$16 sps:$4 sm:$0xff]  }
 0x2b5   :  { %4094 = vmatprep.mubr.bf16.mxu1 %v11199_v35  ;;  %v9769_v35 = vld [vmem:[#allocation8 + $0x16c] ss:$16 sps:$4 sm:$0xff]   ;;  %v3012_v55 = vrot.slane %v10278_v50, %v3003_v17 }
 0x2b6   :  { %5170 = vmatpush1.bf16.msra.mxu0 %v9746_v32  ;;  %v9805_v13 = vld [vmem:[#allocation8 + $0x22c] ss:$16 sps:$4 sm:$0xff]  }
 0x2b7   :  { %5394 = vmatpush1.bf16.msra.mxu1 %v9743_v36  ;;  %5171 = vmatprep.subr.bf16.mxu0 %v9754_v9  ;;  %v11296_v23 = vrot.slane %v3012_v55, %v10638_v60 }
 0x2b8   :  { %5395 = vmatprep.subr.bf16.mxu1 %v9751_v11 }
 0x2b9   :  { %3869 = vmatmul.mubr.bf16.gmra.mrb[28].mxu0 %v11220_v3 }
 0x2ba   :  { %5172 = vmatpush1.bf16.msra.mxu0 %v9752_v62  ;;  %4095 = vmatmul.mubr.bf16.gmra.mrb[28].mxu1 %v11220_v3  ;;  %v9773_v3 = vld [vmem:[#allocation8 + $0x188] ss:$16 sps:$4 sm:$0xff]  }
 0x2bb   :  { %5396 = vmatpush1.bf16.msra.mxu1 %v9749_v33  ;;  %5173 = vmatprep.subr.bf16.mxu0 %v9760_v49 }
 0x2bc   :  { %5397 = vmatprep.subr.bf16.mxu1 %v9757_v30  ;;  %3878 = vmatprep.mubr.bf16.mxu0 %v11234_v43 }
 0x2bd   :  { %4104 = vmatprep.mubr.bf16.mxu1 %v11234_v43  ;;  %v9784_v43 = vld [vmem:[#allocation8 + $0x1c4] ss:$16 sps:$4 sm:$0xff]  }
 0x2be   :  { %5174 = vmatpush1.bf16.msra.mxu0 %v9758_v19 }
 0x2bf   :  { %5398 = vmatpush1.bf16.msra.mxu1 %v9755_v2  ;;  %5175 = vmatprep.subr.bf16.mxu0 %v9766_v47 }
 0x2c0   :  { %5399 = vmatprep.subr.bf16.mxu1 %v9763_v48 }
 0x2c1   :  { %3879 = vmatmul.mubr.bf16.gmra.mrb[32].mxu0 %v11244_v53 }
 0x2c2   :  { %5176 = vmatpush1.bf16.msra.mxu0 %v9764_v51  ;;  %4105 = vmatmul.mubr.bf16.gmra.mrb[32].mxu1 %v11244_v53  ;;  %v3008_v53 = vrot.slane %v10278_v50, %v10638_v60 }
 0x2c3   :  { %5400 = vmatpush1.bf16.msra.mxu1 %v9761_v21  ;;  %5177 = vmatprep.subr.bf16.mxu0 %v9772_v25 }
 0x2c4   :  { %5401 = vmatprep.subr.bf16.mxu1 %v9769_v35  ;;  %3888 = vmatprep.mubr.bf16.mxu0 %v11251_v22  ;;  %v11286_v44 = vrot.slane %v3008_v53, %v10638_v60 }
 0x2c5   :  { %4114 = vmatprep.mubr.bf16.mxu1 %v11251_v22  ;;  %v11290_v22 = vrot.slane %v3004_v18, %v10638_v60  ;;  %v9800_v18 = vld [vmem:[#allocation8 + $0x220] ss:$16 sps:$4 sm:$0xff]  }
 0x2c6   :  { %5178 = vmatpush1.bf16.msra.mxu0 %v9770_v24 }
 0x2c7   :  { %5402 = vmatpush1.bf16.msra.mxu1 %v9767_v6  ;;  %5179 = vmatprep.subr.bf16.mxu0 %v9778_v31 }
 0x2c8   :  { %5403 = vmatprep.subr.bf16.mxu1 %v9775_v26 }
 0x2c9   :  { %3889 = vmatmul.mubr.bf16.gmra.mrb[36].mxu0 %v11253_v37 }
 0x2ca   :  { %5180 = vmatpush1.bf16.msra.mxu0 %v9776_v34  ;;  %4115 = vmatmul.mubr.bf16.gmra.mrb[36].mxu1 %v11253_v37 }
 0x2cb   :  { %5404 = vmatpush1.bf16.msra.mxu1 %v9773_v3  ;;  %5181 = vmatprep.subr.bf16.mxu0 %v9784_v43  ;;  %v9797_v43 = vld [vmem:[#allocation8 + $0x208] ss:$16 sps:$4 sm:$0xff]  }
 0x2cc   :  { %5405 = vmatprep.subr.bf16.mxu1 %v9781_v52 }
 0x2ce   :  { %5182 = vmatpush1.bf16.msra.mxu0 %v9782_v46 }
 0x2cf   :  { %5406 = vmatpush1.bf16.msra.mxu1 %v9779_v41  ;;  %5183 = vmatprep.subr.bf16.mxu0 %v9790_v12  ;;  %v9794_v41 = vld [vmem:[#allocation8 + $0x200] ss:$16 sps:$4 sm:$0xff]  }
 0x2d0   :  { %5407 = vmatprep.subr.bf16.mxu1 %v9787_v20 }
 0x2d2   :  { %5184 = vmatpush1.bf16.msra.mxu0 %v9788_v5 }
 0x2d3   :  { %5408 = vmatpush1.bf16.msra.mxu1 %v9785_v40  ;;  %5266 = vmatprep.subr.bf16.mxu0 %v9796_v16  ;;  %v9802_v40 = vld [vmem:[#allocation8 + $0x224] ss:$16 sps:$4 sm:$0xff]  }
 0x2d4   :  { %5409 = vmatprep.subr.bf16.mxu1 %v9793_v14 }
 0x2d7   :  { %5410 = vmatpush1.bf16.msra.mxu1 %v9791_v45 }
 0x2d8   :  { %5492 = vmatprep.subr.bf16.mxu1 %v9799_v7 }
 0x364   :  { %v3820_v15 = vpop.f32.mrb[8].mxu0 }
 0x365   :  { %v9192_v56 = vadd.f32 %v3820_v15, %v11283_v27  ;;  %v4046_v54 = vpop.f32.mrb[8].mxu1  ;;  %v3822_v10 = vpop.f32.mrb[9].mxu0 }
 0x366   :  { %v9224_v0 = vadd.f32 %v4046_v54, %v11286_v44  ;;  %v4048_v57 = vpop.f32.mrb[9].mxu1  ;;  %v3824_v28 = vpop.f32.mrb[10].mxu0  ;;  %v9193_v61 = vadd.f32 %v3822_v10, %v11290_v22  ;;  %v9803_v54 = vld [vmem:[#allocation8 + $0x228] ss:$16 sps:$4 sm:$0xff]  }
 0x367   :  { %v4189_v29 = vmul.f32 0.2, %v9192_v56  ;;  %v9194_v37 = vadd.f32 %v3824_v28, %v11283_v27  ;;  %v4050_v1 = vpop.f32.mrb[10].mxu1  ;;  %v3826_v38 = vpop.f32.mrb[11].mxu0  ;;  %vm4125_vm0 = vcmp.ge.f32.partialorder %v9192_v56, 0.0  ;;  %v9225_v60 = vadd.f32 %v4048_v57, %v11296_v23 }
 0x368   :  { %v4052_v8 = vpop.f32.mrb[11].mxu1  ;;  %v4191_v39 = vmul.f32 0.2, %v9224_v0  ;;  %v9226_v36 = vadd.f32 %v4050_v1, %v11286_v44  ;;  %v9195_v32 = vadd.f32 %v3826_v38, %v11290_v22  ;;  %vm4127_vm2 = vcmp.ge.f32.partialorder %v9224_v0, 0.0  ;;  %v9808_v38 = vld [vmem:[#allocation8 + $0x244] ss:$16 sps:$4 sm:$0xff]  }
 0x369   :  { %vm4129_vm1 = vcmp.ge.f32.partialorder %v9194_v37, 0.0  ;;  %v4193_v42 = vmul.f32 0.2, %v9194_v37  ;;  %v4253_v11 = vsel %vm4125_vm0, %v9192_v56, %v4189_v29  ;;  %v9227_v9 = vadd.f32 %v4052_v8, %v11296_v23 }
 0x36a   :  { %vm4131_vm3 = vcmp.ge.f32.partialorder %v9226_v36, 0.0  ;;  %v4195_v30 = vmul.f32 0.2, %v9226_v36  ;;  %vm4130_vm4 = vcmp.ge.f32.partialorder %v9195_v32, 0.0  ;;  %v4190_v49 = vmul.f32 0.2, %v9193_v61 }
 0x36b   :  { %v4257_v33 = vsel %vm4129_vm1, %v9194_v37, %v4193_v42  ;;  %v4194_v19 = vmul.f32 0.2, %v9195_v32  ;;  %v4255_v47 = vsel %vm4127_vm2, %v9224_v0, %v4191_v39  ;;  %vm4126_vm5 = vcmp.ge.f32.partialorder %v9193_v61, 0.0 }
 0x36c   :  { %v3830_v62 = vpop.f32.mrb[12].mxu0  ;;  %v4317_v2 = vpack.c.bf16 %v4257_v33, %v4253_v11  ;;  %v4259_v21 = vsel %vm4131_vm3, %v9226_v36, %v4195_v30  ;;  %v4196_v24 = vmul.f32 0.2, %v9227_v9  ;;  %vm4132_vm6 = vcmp.ge.f32.partialorder %v9227_v9, 0.0  ;;  %v9811_v36 = vld [vmem:[#allocation8 + $0x24c] ss:$16 sps:$4 sm:$0xff]  }
 0x36d   :  { %v11302_v48 = vpop.f32.mrb[12].mxu1  ;;  %v9196_v35 = vadd.f32 %v3830_v62, %v11283_v27  ;;  %v3832_v51 = vpop.f32.mrb[13].mxu0  ;;  %v11307_v6 = vpack.c.bf16 %v4259_v21, %v4255_v47  ;;  %v4258_v34 = vsel %vm4130_vm4, %v9195_v32, %v4194_v19  ;;  %v4192_v52 = vmul.f32 0.2, %v9225_v60  ;;  %v9806_v32 = vld [vmem:[#allocation8 + $0x240] ss:$16 sps:$4 sm:$0xff]  }
 0x36e   :  { %v11305_v25 = vpop.f32.mrb[13].mxu1  ;;  %v9197_v26 = vadd.f32 %v3832_v51, %v11290_v22  ;;  %v3834_v31 = vpop.f32.mrb[14].mxu0  ;;  %v4254_v46 = vsel %vm4126_vm5, %v9193_v61, %v4190_v49  ;;  %vm4128_vm7 = vcmp.ge.f32.partialorder %v9225_v60, 0.0  ;;  %v4260_v58 = vsel %vm4132_vm6, %v9227_v9, %v4196_v24  ;;  %v9809_v11 = vld [vmem:[#allocation8 + $0x248] ss:$16 sps:$4 sm:$0xff]  }
 0x36f   :  { %12339 = vst [vmem:[#allocation22_spill] sm:$0xff] %v11307_v6  ;;  %v11310_v3 = vpop.f32.mrb[14].mxu1  ;;  %v4197_v20 = vmul.f32 0.2, %v9196_v35  ;;  %v9198_v12 = vadd.f32 %v3834_v31, %v11283_v27  ;;  %v3836_v14 = vpop.f32.mrb[15].mxu0  ;;  %v4318_v45 = vpack.c.bf16 %v4258_v34, %v4254_v46  ;;  %vm4133_vm8 = vcmp.ge.f32.partialorder %v9196_v35, 0.0 }
 0x370   :  { %v11314_v5 = vpop.f32.mrb[15].mxu1  ;;  %v4198_v16 = vmul.f32 0.2, %v9197_v26  ;;  %v9199_v7 = vadd.f32 %v3836_v14, %v11290_v22  ;;  %vm4134_vm9 = vcmp.ge.f32.partialorder %v9197_v26, 0.0  ;;  %v4256_v53 = vsel %vm4128_vm7, %v9225_v60, %v4192_v52  ;;  %v9814_v9 = vld [vmem:[#allocation8 + $0x264] ss:$16 sps:$4 sm:$0xff]  }
 0x371   :  { %vm4137_vm10 = vcmp.ge.f32.partialorder %v9198_v12, 0.0  ;;  %v4201_v17 = vmul.f32 0.2, %v9198_v12  ;;  %5185 = vmatprep.mubr.bf16.mxu0 %v4318_v45  ;;  %5411 = vmatprep.mubr.bf16.mxu1 %v4318_v45  ;;  %v4261_v10 = vsel %vm4133_vm8, %v9196_v35, %v4197_v20  ;;  %v11323_v0 = vpack.c.bf16 %v4260_v58, %v4256_v53  ;;  %v9812_v47 = vld [vmem:[#allocation8 + $0x260] ss:$16 sps:$4 sm:$0xff]  }
 0x372   :  { %vm4138_vm11 = vcmp.ge.f32.partialorder %v9199_v7, 0.0  ;;  %v4202_v50 = vmul.f32 0.2, %v9199_v7  ;;  %5186 = vmatmul.mubr.bf16.vlgmr.msra.gmra.mrb[40].mxu0 %v4317_v2  ;;  %5412 = vmatmul.mubr.bf16.vlgmr.msra.gmra.mrb[40].mxu1 %v4317_v2  ;;  %v4262_v37 = vsel %vm4134_vm9, %v9197_v26, %v4198_v16  ;;  %v9817_v2 = vld [vmem:[#allocation8 + $0x26c] ss:$16 sps:$4 sm:$0xff]  }
 0x373   :  { %5267 = vmatpush1.bf16.msra.mxu0 %v9794_v41  ;;  %5493 = vmatpush1.bf16.msra.mxu1 %v9797_v43  ;;  %v4265_v55 = vsel %vm4137_vm10, %v9198_v12, %v4201_v17  ;;  %12340 = vst [vmem:[#allocation23_spill] sm:$0xff] %v11323_v0  ;;  %v9815_v51 = vld [vmem:[#allocation8 + $0x268] ss:$16 sps:$4 sm:$0xff]   ;;  %v9820_v26 = vld [vmem:[#allocation8 + $0x284] ss:$16 sps:$4 sm:$0xff]  }
 0x374   :  { %v3840_v15 = vpop.f32.mrb[16].mxu0  ;;  %5268 = vmatprep.subr.bf16.mxu0 %v9802_v40  ;;  %5494 = vmatprep.subr.bf16.mxu1 %v9805_v13  ;;  %v4266_v1 = vsel %vm4138_vm11, %v9199_v7, %v4202_v50  ;;  %v4321_v42 = vpack.c.bf16 %v4265_v55, %v4261_v10  ;;  %v9823_v43 = vld [vmem:[#allocation8 + $0x28c] ss:$16 sps:$4 sm:$0xff]   ;;  %v9818_v50 = vld [vmem:[#allocation8 + $0x280] ss:$16 sps:$4 sm:$0xff]  }
 0x375   :  { %v11319_v56 = vpop.f32.mrb[16].mxu1  ;;  %v9200_v57 = vadd.f32 %v3840_v15, %v11283_v27  ;;  %v3842_v28 = vpop.f32.mrb[17].mxu0  ;;  %v4322_v39 = vpack.c.bf16 %v4266_v1, %v4262_v37  ;;  %v9821_v53 = vld [vmem:[#allocation8 + $0x288] ss:$16 sps:$4 sm:$0xff]   ;;  %v11356_v37 = vadd.f32 %v11305_v25, %v11296_v23  ;;  %v11370_v25 = vadd.f32 %v11314_v5, %v11296_v23  ;;  %v9832_v5 = vld [vmem:[#allocation8 + $0x2c4] ss:$16 sps:$4 sm:$0xff]  }
 0x376   :  { %v11326_v29 = vpop.f32.mrb[17].mxu1  ;;  %v3844_v61 = vpop.f32.mrb[18].mxu0  ;;  %v9201_v30 = vadd.f32 %v3842_v28, %v11290_v22  ;;  %v9829_v28 = vld [vmem:[#allocation8 + $0x2ac] ss:$16 sps:$4 sm:$0xff]  }
 0x377   :  { %v11330_v8 = vpop.f32.mrb[18].mxu1  ;;  %5269 = vmatpush1.bf16.msra.mxu0 %v9800_v18  ;;  %5495 = vmatpush1.bf16.msra.mxu1 %v9803_v54  ;;  %v4205_v33 = vmul.f32 0.2, %v9200_v57  ;;  %v9202_v62 = vadd.f32 %v3844_v61, %v11283_v27  ;;  %v3846_v49 = vpop.f32.mrb[19].mxu0  ;;  %vm4141_vm12 = vcmp.ge.f32.partialorder %v9200_v57, 0.0  ;;  %vm4136_vm4 = vcmp.ge.f32.partialorder %v11356_v37, 0.0 }
 0x378   :  { %v11334_v60 = vpop.f32.mrb[19].mxu1  ;;  %5195 = vmatprep.mubr.bf16.mxu0 %v4322_v39  ;;  %5270 = vmatprep.subr.bf16.mxu0 %v9808_v38  ;;  %v9203_v19 = vadd.f32 %v3846_v49, %v11290_v22  ;;  %v4206_v31 = vmul.f32 0.2, %v9201_v30  ;;  %vm4142_vm15 = vcmp.ge.f32.partialorder %v9201_v30, 0.0  ;;  %v9826_v18 = vld [vmem:[#allocation8 + $0x2a4] ss:$16 sps:$4 sm:$0xff]  }
 0x379   :  { %5421 = vmatprep.mubr.bf16.mxu1 %v4322_v39  ;;  %5496 = vmatprep.subr.bf16.mxu1 %v9811_v36  ;;  %vm4145_vm13 = vcmp.ge.f32.partialorder %v9202_v62, 0.0  ;;  %v4209_v35 = vmul.f32 0.2, %v9202_v62  ;;  %v4269_v52 = vsel %vm4141_vm12, %v9200_v57, %v4205_v33  ;;  %v11362_v39 = vadd.f32 %v11302_v48, %v11286_v44  ;;  %v9859_v0 = vld [vmem:[#allocation8 + $0x34c] ss:$16 sps:$4 sm:$0xff]  }
 0x37a   :  { %5196 = vmatmul.mubr.bf16.gmra.mrb[44].mxu0 %v4321_v42  ;;  %5422 = vmatmul.mubr.bf16.gmra.mrb[44].mxu1 %v4321_v42  ;;  %vm4146_vm14 = vcmp.ge.f32.partialorder %v9203_v19, 0.0  ;;  %v4210_v24 = vmul.f32 0.2, %v9203_v19  ;;  %v4270_v17 = vsel %vm4142_vm15, %v9201_v30, %v4206_v31  ;;  %v11366_v36 = vadd.f32 %v11310_v3, %v11286_v44 }
 0x37b   :  { %5271 = vmatpush1.bf16.msra.mxu0 %v9806_v32  ;;  %5497 = vmatpush1.bf16.msra.mxu1 %v9809_v11  ;;  %v4273_v46 = vsel %vm4145_vm13, %v9202_v62, %v4209_v35  ;;  %v9824_v11 = vld [vmem:[#allocation8 + $0x2a0] ss:$16 sps:$4 sm:$0xff]   ;;  %v4200_v49 = vmul.f32 0.2, %v11356_v37  ;;  %v9835_v35 = vld [vmem:[#allocation8 + $0x2cc] ss:$16 sps:$4 sm:$0xff]  }
 0x37c   :  { %v3850_v21 = vpop.f32.mrb[20].mxu0  ;;  %5272 = vmatprep.subr.bf16.mxu0 %v9814_v9  ;;  %5498 = vmatprep.subr.bf16.mxu1 %v9817_v2  ;;  %v4325_v14 = vpack.c.bf16 %v4273_v46, %v4269_v52  ;;  %v4274_v13 = vsel %vm4146_vm14, %v9203_v19, %v4210_v24  ;;  %v9827_v9 = vld [vmem:[#allocation8 + $0x2a8] ss:$16 sps:$4 sm:$0xff]   ;;  %v9830_v24 = vld [vmem:[#allocation8 + $0x2c0] ss:$16 sps:$4 sm:$0xff]   ;;  %vm4140_vm6 = vcmp.ge.f32.partialorder %v11370_v25, 0.0 }
 0x37d   :  { %v11337_v34 = vpop.f32.mrb[20].mxu1  ;;  %v3852_v41 = vpop.f32.mrb[21].mxu0  ;;  %v9204_v58 = vadd.f32 %v3850_v21, %v11283_v27  ;;  %v4326_v55 = vpack.c.bf16 %v4274_v13, %v4270_v17  ;;  %v11391_v31 = vmul.f32 0.2, %v11370_v25  ;;  %v9833_v46 = vld [vmem:[#allocation8 + $0x2c8] ss:$16 sps:$4 sm:$0xff]   ;;  %v11406_v13 = vadd.f32 %v11330_v8, %v11286_v44 }
 0x37e   :  { %v9205_v40 = vadd.f32 %v3852_v41, %v11290_v22  ;;  %v11342_v20 = vpop.f32.mrb[21].mxu1  ;;  %v3854_v12 = vpop.f32.mrb[22].mxu0  ;;  %v11395_v41 = vadd.f32 %v11319_v56, %v11286_v44  ;;  %v9841_v17 = vld [vmem:[#allocation8 + $0x2ec] ss:$16 sps:$4 sm:$0xff]   ;;  %v11422_v8 = vadd.f32 %v11334_v60, %v11296_v23  ;;  %vm4135_vm15 = vcmp.ge.f32.partialorder %v11362_v39, 0.0 }
 0x37f   :  { %v9206_v45 = vadd.f32 %v3854_v12, %v11283_v27  ;;  %v11345_v16 = vpop.f32.mrb[22].mxu1  ;;  %v3856_v7 = vpop.f32.mrb[23].mxu0  ;;  %5273 = vmatpush1.bf16.msra.mxu0 %v9812_v47  ;;  %5499 = vmatpush1.bf16.msra.mxu1 %v9815_v51  ;;  %v4213_v32 = vmul.f32 0.2, %v9204_v58  ;;  %vm4149_vm3 = vcmp.ge.f32.partialorder %v9204_v58, 0.0 }
 0x380   :  { %5274 = vmatprep.subr.bf16.mxu0 %v9820_v26  ;;  %5500 = vmatprep.subr.bf16.mxu1 %v9823_v43  ;;  %v4214_v15 = vmul.f32 0.2, %v9205_v40  ;;  %v9207_v54 = vadd.f32 %v3856_v7, %v11290_v22  ;;  %v11350_v10 = vpop.f32.mrb[23].mxu1  ;;  %vm4150_vm0 = vcmp.ge.f32.partialorder %v9205_v40, 0.0  ;;  %v11384_v51 = vmul.f32 0.2, %v11362_v39 }
 0x381   :  { %v4217_v1 = vmul.f32 0.2, %v9206_v45  ;;  %vm4153_vm1 = vcmp.ge.f32.partialorder %v9206_v45, 0.0  ;;  %5205 = vmatprep.mubr.bf16.mxu0 %v4326_v55  ;;  %5431 = vmatprep.mubr.bf16.mxu1 %v4326_v55  ;;  %v11388_v26 = vmul.f32 0.2, %v11366_v36  ;;  %v4277_v52 = vsel %vm4149_vm3, %v9204_v58, %v4213_v32 }
 0x382   :  { %vm4154_vm2 = vcmp.ge.f32.partialorder %v9207_v54, 0.0  ;;  %v4218_v42 = vmul.f32 0.2, %v9207_v54  ;;  %5206 = vmatmul.mubr.bf16.gmra.mrb[48].mxu0 %v4325_v14  ;;  %5432 = vmatmul.mubr.bf16.gmra.mrb[48].mxu1 %v4325_v14  ;;  %v4278_v3 = vsel %vm4150_vm0, %v9205_v40, %v4214_v15  ;;  %v11400_v43 = vadd.f32 %v11326_v29, %v11296_v23  ;;  %v9838_v7 = vld [vmem:[#allocation8 + $0x2e4] ss:$16 sps:$4 sm:$0xff]  }
 0x383   :  { %5275 = vmatpush1.bf16.msra.mxu0 %v9818_v50  ;;  %5501 = vmatpush1.bf16.msra.mxu1 %v9821_v53  ;;  %v4281_v21 = vsel %vm4153_vm1, %v9206_v45, %v4217_v1  ;;  %v11417_v53 = vsel %vm4136_vm4, %v11356_v37, %v4200_v49  ;;  %v11427_v55 = vmul.f32 0.2, %v11395_v41  ;;  %v11435_v37 = vadd.f32 %v11342_v20, %v11296_v23  ;;  %v9844_v1 = vld [vmem:[#allocation8 + $0x304] ss:$16 sps:$4 sm:$0xff]  }
 0x384   :  { %v11352_v57 = vpop.f32.mrb[24].mxu0  ;;  %v4282_v62 = vsel %vm4154_vm2, %v9207_v54, %v4218_v42  ;;  %5276 = vmatprep.subr.bf16.mxu0 %v9826_v18  ;;  %5502 = vmatprep.subr.bf16.mxu1 %v9829_v28  ;;  %v4329_v45 = vpack.c.bf16 %v4281_v21, %v4277_v52  ;;  %v9836_v54 = vld [vmem:[#allocation8 + $0x2e0] ss:$16 sps:$4 sm:$0xff]   ;;  %v11431_v28 = vadd.f32 %v11337_v34, %v11286_v44  ;;  %v11461_v49 = vmul.f32 0.2, %v11422_v8 }
 0x385   :  { %v11358_v38 = vpop.f32.mrb[24].mxu1  ;;  %v3862_v61 = vpop.f32.mrb[25].mxu0  ;;  %v4330_v47 = vpack.c.bf16 %v4282_v62, %v4278_v3  ;;  %v9208_v18 = vadd.f32 %v11352_v57, %v11283_v27  ;;  %v11439_v60 = vadd.f32 %v11345_v16, %v11286_v44  ;;  %v9839_v57 = vld [vmem:[#allocation8 + $0x2e8] ss:$16 sps:$4 sm:$0xff]   ;;  %v11446_v42 = vadd.f32 %v11350_v10, %v11296_v23 }
 0x386   :  { %v11373_v48 = vadd.f32 %v3862_v61, %v11290_v22  ;;  %v11375_v33 = vpop.f32.mrb[25].mxu1  ;;  %v3864_v30 = vpop.f32.mrb[26].mxu0  ;;  %v11442_v61 = vmul.f32 0.2, %v11400_v43  ;;  %v11469_v21 = vmul.f32 0.2, %v11431_v28 }
 0x387   :  { %v11380_v2 = vpop.f32.mrb[26].mxu1  ;;  %v3866_v19 = vpop.f32.mrb[27].mxu0  ;;  %5215 = vmatprep.mubr.bf16.mxu0 %v4330_v47  ;;  %5441 = vmatprep.mubr.bf16.mxu1 %v4330_v47  ;;  %v11410_v58 = vadd.f32 %v3864_v30, %v11283_v27  ;;  %12341 = vst [vmem:[#allocation24_spill] sm:$0xff] %v11439_v60  ;;  %v11457_v30 = vadd.f32 %v11358_v38, %v11286_v44  ;;  %v9842_v47 = vld [vmem:[#allocation8 + $0x300] ss:$16 sps:$4 sm:$0xff]   ;;  %vm4157_vm9 = vcmp.ge.f32.partialorder %v9208_v18, 0.0 }
 0x388   :  { %5277 = vmatpush1.bf16.msra.mxu0 %v9824_v11  ;;  %v4222_v40 = vmul.f32 0.2, %v11373_v48  ;;  %5503 = vmatpush1.bf16.msra.mxu1 %v9827_v9  ;;  %v9211_v12 = vadd.f32 %v3866_v19, %v11290_v22  ;;  %v4092_v14 = vpop.f32.mrb[27].mxu1  ;;  %vm4158_vm5 = vcmp.ge.f32.partialorder %v11373_v48, 0.0  ;;  %v9847_v11 = vld [vmem:[#allocation8 + $0x30c] ss:$16 sps:$4 sm:$0xff]   ;;  %v11465_v19 = vadd.f32 %v11375_v33, %v11296_v23 }
 0x389   :  { %5278 = vmatprep.subr.bf16.mxu0 %v9832_v5  ;;  %5504 = vmatprep.subr.bf16.mxu1 %v9835_v35  ;;  %v11453_v9 = vmul.f32 0.2, %v11406_v13  ;;  %v4225_v10 = vmul.f32 0.2, %v11410_v58  ;;  %vm4161_vm8 = vcmp.ge.f32.partialorder %v11410_v58, 0.0  ;;  %vm4139_vm0 = vcmp.ge.f32.partialorder %v11366_v36, 0.0 }
 0x38a   :  { %vm4162_vm7 = vcmp.ge.f32.partialorder %v9211_v12, 0.0  ;;  %v4226_v15 = vmul.f32 0.2, %v9211_v12  ;;  %5216 = vmatmul.mubr.bf16.gmra.mrb[52].mxu0 %v4329_v45  ;;  %5442 = vmatmul.mubr.bf16.gmra.mrb[52].mxu1 %v4329_v45  ;;  %v4286_v16 = vsel %vm4158_vm5, %v11373_v48, %v4222_v40  ;;  %v4221_v48 = vmul.f32 0.2, %v9208_v18 }
 0x38b   :  { %v9845_v38 = vld [vmem:[#allocation8 + $0x308] ss:$16 sps:$4 sm:$0xff]   ;;  %v11472_v35 = vmul.f32 0.2, %v11435_v37  ;;  %v11479_v33 = vmul.f32 0.2, %v11439_v60 }
 0x38c   :  { %v3870_v56 = vpop.f32.mrb[28].mxu0  ;;  %5279 = vmatpush1.bf16.msra.mxu0 %v9830_v24  ;;  %5505 = vmatpush1.bf16.msra.mxu1 %v9833_v46  ;;  %v4290_v32 = vsel %vm4162_vm7, %v9211_v12, %v4226_v15  ;;  %v11476_v24 = vadd.f32 %v11380_v2, %v11286_v44  ;;  %v11482_v52 = vmul.f32 0.2, %v11446_v42  ;;  %v11485_v46 = vadd.f32 %v4092_v14, %v11296_v23  ;;  %v9850_v15 = vld [vmem:[#allocation8 + $0x324] ss:$16 sps:$4 sm:$0xff]  }
 0x38d   :  { %v11412_v29 = vpop.f32.mrb[28].mxu1  ;;  %v3872_v50 = vpop.f32.mrb[29].mxu0  ;;  %5280 = vmatprep.subr.bf16.mxu0 %v9838_v7  ;;  %5506 = vmatprep.subr.bf16.mxu1 %v9841_v17  ;;  %v4334_v5 = vpack.c.bf16 %v4290_v32, %v4286_v16  ;;  %v11488_v40 = vadd.f32 %v3870_v56, %v11283_v27  ;;  %v11491_v2 = vmul.f32 0.2, %v11457_v30  ;;  %v4289_v14 = vsel %vm4161_vm8, %v11410_v58, %v4225_v10 }
 0x38e   :  { %v4098_v34 = vpop.f32.mrb[29].mxu1  ;;  %v3874_v20 = vpop.f32.mrb[30].mxu0  ;;  %v9213_v7 = vadd.f32 %v3872_v50, %v11290_v22  ;;  %v4285_v32 = vsel %vm4157_vm9, %v9208_v18, %v4221_v48  ;;  %v11508_v58 = vmul.f32 0.2, %v11476_v24  ;;  %vm4144_vm1 = vcmp.ge.f32.partialorder %v11400_v43, 0.0 }
 0x38f   :  { %v4100_v3 = vpop.f32.mrb[30].mxu1  ;;  %v3876_v62 = vpop.f32.mrb[31].mxu0  ;;  %5225 = vmatprep.mubr.bf16.mxu0 %v4334_v5  ;;  %5451 = vmatprep.mubr.bf16.mxu1 %v4334_v5  ;;  %12342 = vst [vmem:[#allocation25_spill] sm:$0xff] %v11491_v2  ;;  %v9214_v50 = vadd.f32 %v3874_v20, %v11283_v27  ;;  %v9853_v5 = vld [vmem:[#allocation8 + $0x32c] ss:$16 sps:$4 sm:$0xff]   ;;  %v4333_v63 = vpack.c.bf16 %v4289_v14, %v4285_v32  ;;  %vm4165_vm10 = vcmp.ge.f32.partialorder %v11488_v40, 0.0 }
 0x390   :  { %5281 = vmatpush1.bf16.msra.mxu0 %v9836_v54  ;;  %5507 = vmatpush1.bf16.msra.mxu1 %v9839_v57  ;;  %v4102_v12 = vpop.f32.mrb[31].mxu1  ;;  %v9215_v17 = vadd.f32 %v3876_v62, %v11290_v22  ;;  %v11499_v54 = vmul.f32 0.2, %v11465_v19  ;;  %v11503_v57 = vadd.f32 %v11412_v29, %v11286_v44  ;;  %v9851_v62 = vld [vmem:[#allocation8 + $0x328] ss:$16 sps:$4 sm:$0xff]   ;;  %12344 = vst [vmem:[#allocation27_spill] sm:$0xff] %v11508_v58 }
 0x391   :  { %5282 = vmatprep.subr.bf16.mxu0 %v9844_v1  ;;  %5508 = vmatprep.subr.bf16.mxu1 %v9847_v11  ;;  %v9848_v1 = vld [vmem:[#allocation8 + $0x320] ss:$16 sps:$4 sm:$0xff]   ;;  %v11511_v11 = vadd.f32 %v4098_v34, %v11296_v23  ;;  %v11514_v10 = vadd.f32 %v4100_v3, %v11286_v44  ;;  %v11517_v20 = vmul.f32 0.2, %v11485_v46  ;;  %v4229_v18 = vmul.f32 0.2, %v11488_v40 }
 0x392   :  { %12343 = vst [vmem:[#allocation26_spill] sm:$0xff] %v11499_v54  ;;  %v11521_v48 = vadd.f32 %v4102_v12, %v11296_v23  ;;  %v4230_v14 = vmul.f32 0.2, %v9213_v7  ;;  %v4234_v32 = vmul.f32 0.2, %v9215_v17  ;;  %5226 = vmatmul.mubr.bf16.gmra.mrb[56].mxu0 %v4333_v63  ;;  %5452 = vmatmul.mubr.bf16.gmra.mrb[56].mxu1 %v4333_v63  ;;  %vm4166_vm11 = vcmp.ge.f32.partialorder %v9213_v7, 0.0 }
 0x393   :  { %12345 = vst [vmem:[#allocation28_spill] sm:$0xff] %v11517_v20  ;;  %v4233_v12 = vmul.f32 0.2, %v9214_v50  ;;  %vm4170_vm12 = vcmp.ge.f32.partialorder %v9215_v17, 0.0  ;;  %vm4169_vm13 = vcmp.ge.f32.partialorder %v9214_v50, 0.0  ;;  %vm4148_vm2 = vcmp.ge.f32.partialorder %v11422_v8, 0.0 }
 0x394   :  { %v3880_v45 = vpop.f32.mrb[32].mxu0  ;;  %5283 = vmatpush1.bf16.msra.mxu0 %v9842_v47  ;;  %5509 = vmatpush1.bf16.msra.mxu1 %v9845_v38  ;;  %v11533_v47 = vsel %vm4140_vm6, %v11370_v25, %v11391_v31  ;;  %v11536_v38 = vmul.f32 0.2, %v11503_v57  ;;  %v11542_v63 = vmul.f32 0.2, %v11514_v10  ;;  %vm4172_vm5 = vcmp.ge.f32.partialorder %v11521_v48, 0.0 }
 0x395   :  { %v4106_v56 = vpop.f32.mrb[32].mxu1  ;;  %v3882_v16 = vpop.f32.mrb[33].mxu0  ;;  %v11524_v34 = vadd.f32 %v3880_v45, %v11283_v27  ;;  %5284 = vmatprep.subr.bf16.mxu0 %v9850_v15  ;;  %5510 = vmatprep.subr.bf16.mxu1 %v9853_v5  ;;  %v11539_v45 = vmul.f32 0.2, %v11511_v11  ;;  %v11548_v25 = vmul.f32 0.2, %v11521_v48 }
 0x396   :  { %v4108_v59 = vpop.f32.mrb[33].mxu1  ;;  %v3884_v29 = vpop.f32.mrb[34].mxu0  ;;  %12346 = vst [vmem:[#allocation29_spill] sm:$0xff] %v11536_v38  ;;  %12348 = vst [vmem:[#allocation31_spill] sm:$0xff] %v11542_v63  ;;  %v11545_v2 = vadd.f32 %v4106_v56, %v11286_v44  ;;  %v11552_v31 = vadd.f32 %v3882_v16, %v11290_v22  ;;  %v4294_v56 = vsel %vm4166_vm11, %v9213_v7, %v4230_v14  ;;  %v9857_v20 = vld [vmem:[#allocation8 + $0x348] ss:$16 sps:$4 sm:$0xff]  }
 0x397   :  { %v4110_v6 = vpop.f32.mrb[34].mxu1  ;;  %v3886_v3 = vpop.f32.mrb[35].mxu0  ;;  %12347 = vst [vmem:[#allocation30_spill] sm:$0xff] %v11539_v45  ;;  %12349 = vst [vmem:[#allocation32_spill] sm:$0xff] %v11548_v25  ;;  %vm4173_vm14 = vcmp.ge.f32.partialorder %v11524_v34, 0.0  ;;  %v11555_v15 = vadd.f32 %v3884_v29, %v11283_v27  ;;  %v4298_v38 = vsel %vm4170_vm12, %v9215_v17, %v4234_v32  ;;  %v4297_v29 = vsel %vm4169_vm13, %v9214_v50, %v4233_v12 }
 0x398   :  { %v11527_v58 = vpop.f32.mrb[35].mxu1  ;;  %5285 = vmatpush1.bf16.msra.mxu0 %v9848_v1  ;;  %5511 = vmatpush1.bf16.msra.mxu1 %v9851_v62  ;;  %v11558_v5 = vmul.f32 0.2, %v11524_v34  ;;  %v11561_v63 = vadd.f32 %v3886_v3, %v11290_v22  ;;  %v9854_v25 = vld [vmem:[#allocation8 + $0x340] ss:$16 sps:$4 sm:$0xff]   ;;  %v4338_v16 = vpack.c.bf16 %v4298_v38, %v4294_v56  ;;  %v4293_v62 = vsel %vm4165_vm10, %v11488_v40, %v4229_v18 }
 0x399   :  { %5286 = vmatprep.subr.bf16.mxu0 %v9856_v4  ;;  %5512 = vmatprep.subr.bf16.mxu1 %v9859_v0  ;;  %v9862_v3 = vld [vmem:[#allocation8 + $0x364] ss:$16 sps:$4 sm:$0xff]   ;;  %v11577_v4 = vmul.f32 0.2, %v11545_v2  ;;  %v11580_v40 = vadd.f32 %v4108_v59, %v11296_v23  ;;  %v4337_v50 = vpack.c.bf16 %v4297_v29, %v4293_v62  ;;  %v9865_v0 = vld [vmem:[#allocation8 + $0x36c] ss:$16 sps:$4 sm:$0xff]  }
 0x39a   :  { %vm4174_vm4 = vcmp.ge.f32.partialorder %v11552_v31, 0.0  ;;  %v4238_v12 = vmul.f32 0.2, %v11552_v31  ;;  %v4241_v56 = vmul.f32 0.2, %v11555_v15  ;;  %5235 = vmatprep.mubr.bf16.mxu0 %v4338_v16  ;;  %5461 = vmatprep.mubr.bf16.mxu1 %v4338_v16  ;;  %vm4177_vm8 = vcmp.ge.f32.partialorder %v11555_v15, 0.0 }
 0x39b   :  { %12350 = vst [vmem:[#allocation33_spill] sm:$0xff] %v11577_v4  ;;  %v9860_v59 = vld [vmem:[#allocation8 + $0x360] ss:$16 sps:$4 sm:$0xff]   ;;  %v9863_v62 = vld [vmem:[#allocation8 + $0x368] ss:$16 sps:$4 sm:$0xff]   ;;  %vm4178_vm9 = vcmp.ge.f32.partialorder %v11561_v63, 0.0  ;;  %5236 = vmatmul.mubr.bf16.gmra.mrb[60].mxu0 %v4337_v50  ;;  %5462 = vmatmul.mubr.bf16.gmra.mrb[60].mxu1 %v4337_v50  ;;  %v11603_v4 = vadd.f32 %v11527_v58, %v11296_v23 }
 0x39c   :  { %v3890_v1 = vpop.f32.mrb[36].mxu0  ;;  %v4242_v29 = vmul.f32 0.2, %v11561_v63  ;;  %5287 = vmatpush1.bf16.msra.mxu0 %v9854_v25  ;;  %5513 = vmatpush1.bf16.msra.mxu1 %v9857_v20  ;;  %vm4168_vm13 = vcmp.ge.f32.partialorder %v11511_v11, 0.0  ;;  %vm4167_vm6 = vcmp.ge.f32.partialorder %v11503_v57, 0.0  ;;  %vm4171_vm7 = vcmp.ge.f32.partialorder %v11514_v10, 0.0 }
 0x39d   :  { %v4116_v45 = vpop.f32.mrb[36].mxu1  ;;  %v11571_v7 = vadd.f32 %v3890_v1, %v11283_v27  ;;  %v3892_v17 = vpop.f32.mrb[37].mxu0  ;;  %v11590_v1 = vadd.f32 %v4110_v6, %v11286_v44  ;;  %5288 = vmatprep.subr.bf16.mxu0 %v9862_v3  ;;  %5514 = vmatprep.subr.bf16.mxu1 %v9865_v0 }
 0x39e   :  { %v4118_v14 = vpop.f32.mrb[37].mxu1  ;;  %v11583_v18 = vadd.f32 %v3892_v17, %v11290_v22  ;;  %v3894_v32 = vpop.f32.mrb[38].mxu0  ;;  %v11607_v54 = vadd.f32 %v4116_v45, %v11286_v44  ;;  %v4306_v0 = vsel %vm4178_vm9, %v11561_v63, %v4242_v29  ;;  %v4305_v63 = vsel %vm4177_vm8, %v11555_v15, %v4241_v56 }
 0x39f   :  { %v4120_v38 = vpop.f32.mrb[38].mxu1  ;;  %v9222_v6 = vadd.f32 %v3894_v32, %v11283_v27  ;;  %v3896_v17 = vpop.f32.mrb[39].mxu0  ;;  %vm4181_vm12 = vcmp.ge.f32.partialorder %v11571_v7, 0.0  ;;  %v9868_v27 = vld [vmem:[#allocation8 + $0x384] ss:$16 sps:$4 sm:$0xff]   ;;  %v11616_v20 = vadd.f32 %v4118_v14, %v11296_v23  ;;  %v4302_v14 = vsel %vm4174_vm4, %v11552_v31, %v4238_v12 }
 0x3a0   :  { %v4122_v16 = vpop.f32.mrb[39].mxu1  ;;  %v9223_v50 = vadd.f32 %v3896_v17, %v11290_v22  ;;  %v9871_v32 = vld [vmem:[#allocation8 + $0x38c] ss:$16 sps:$4 sm:$0xff]   ;;  %v4245_v60 = vmul.f32 0.2, %v11571_v7  ;;  %vm4182_vm11 = vcmp.ge.f32.partialorder %v11583_v18, 0.0  ;;  %v11621_v45 = vadd.f32 %v4120_v38, %v11286_v44  ;;  %5289 = vmatpush1.bf16.msra.mxu0 %v9860_v59  ;;  %5515 = vmatpush1.bf16.msra.mxu1 %v9863_v62 }
 0x3a1   :  { %v4246_v58 = vmul.f32 0.2, %v11583_v18  ;;  %v4249_v22 = vmul.f32 0.2, %v9222_v6  ;;  %vm4185_vm3 = vcmp.ge.f32.partialorder %v9222_v6, 0.0  ;;  %v11626_v3 = vadd.f32 %v4122_v16, %v11296_v23  ;;  %5290 = vmatprep.subr.bf16.mxu0 %v9868_v27  ;;  %5516 = vmatprep.subr.bf16.mxu1 %v9871_v32 }
 0x3a2   :  { %vm4186_vm10 = vcmp.ge.f32.partialorder %v9223_v50, 0.0  ;;  %v4250_v25 = vmul.f32 0.2, %v9223_v50  ;;  %v11637_v44 = vmul.f32 0.2, %v11580_v40  ;;  %v4342_v38 = vpack.c.bf16 %v4306_v0, %v4302_v14  ;;  %v12360_v14 = vld [vmem:[#allocation28_spill] sm:$0xff] }
 0x3a3   :  { %v9866_v23 = vld [vmem:[#allocation8 + $0x380] ss:$16 sps:$4 sm:$0xff]   ;;  %v4301_v31 = vsel %vm4173_vm14, %v11524_v34, %v11558_v5  ;;  %v9869_v12 = vld [vmem:[#allocation8 + $0x388] ss:$16 sps:$4 sm:$0xff]   ;;  %vm4176_vm4 = vcmp.ge.f32.partialorder %v11580_v40, 0.0  ;;  %v4310_v16 = vsel %vm4182_vm11, %v11583_v18, %v4246_v58  ;;  %vm4175_vm14 = vcmp.ge.f32.partialorder %v11545_v2, 0.0 }
 0x3a4   :  { %v11648_v29 = vmul.f32 0.2, %v11590_v1  ;;  %v4341_v59 = vpack.c.bf16 %v4305_v63, %v4301_v31  ;;  %v9874_v62 = vld [vmem:[#allocation8 + $0x3a4] ss:$16 sps:$4 sm:$0xff]   ;;  %v9877_v17 = vld [vmem:[#allocation8 + $0x3ac] ss:$16 sps:$4 sm:$0xff]   ;;  %v4314_v34 = vsel %vm4186_vm10, %v9223_v50, %v4250_v25  ;;  %5245 = vmatprep.mubr.bf16.mxu0 %v4342_v38  ;;  %5471 = vmatprep.mubr.bf16.mxu1 %v4342_v38  ;;  %v4309_v5 = vsel %vm4181_vm12, %v11571_v7, %v4245_v60 }
 0x3a5   :  { %vm4179_vm8 = vcmp.ge.f32.partialorder %v11590_v1, 0.0  ;;  %vm4180_vm9 = vcmp.ge.f32.partialorder %v11603_v4, 0.0  ;;  %v4346_v15 = vpack.c.bf16 %v4314_v34, %v4310_v16  ;;  %v4313_v56 = vsel %vm4185_vm3, %v9222_v6, %v4249_v22  ;;  %5291 = vmatpush1.bf16.msra.mxu0 %v9866_v23  ;;  %5517 = vmatpush1.bf16.msra.mxu1 %v9869_v12  ;;  %v9872_v60 = vld [vmem:[#allocation8 + $0x3a0] ss:$16 sps:$4 sm:$0xff]   ;;  %v9875_v7 = vld [vmem:[#allocation8 + $0x3a8] ss:$16 sps:$4 sm:$0xff]  }
 0x3a6   :  { %v11662_v27 = vmul.f32 0.2, %v11603_v4  ;;  %5246 = vmatmul.mubr.bf16.gmra.mrb[64].mxu0 %v4341_v59  ;;  %5472 = vmatmul.mubr.bf16.gmra.mrb[64].mxu1 %v4341_v59  ;;  %v4345_v18 = vpack.c.bf16 %v4313_v56, %v4309_v5  ;;  %v11666_v50 = vpack.c.bf16 %v11533_v47, %v11417_v53  ;;  %v4263_v32 = vsel %vm4135_vm15, %v11362_v39, %v11384_v51  ;;  %v9880_v47 = vld [vmem:[#allocation8 + $0x3c4] ss:$16 sps:$4 sm:$0xff]   ;;  %v9883_v58 = vld [vmem:[#allocation8 + $0x3cc] ss:$16 sps:$4 sm:$0xff]  }
 0x3a7   :  { %vm4183_vm10 = vcmp.ge.f32.partialorder %v11607_v54, 0.0  ;;  %v4267_v6 = vsel %vm4139_vm0, %v11366_v36, %v11388_v26  ;;  %v4272_v53 = vsel %vm4144_vm1, %v11400_v43, %v11442_v61  ;;  %v4276_v39 = vsel %vm4148_vm2, %v11422_v8, %v11461_v49  ;;  %5292 = vmatprep.subr.bf16.mxu0 %v9874_v62  ;;  %5518 = vmatprep.subr.bf16.mxu1 %v9877_v17  ;;  %v12362_v38 = vld [vmem:[#allocation25_spill] sm:$0xff]  ;;  %v12364_v31 = vld [vmem:[#allocation27_spill] sm:$0xff]  ;;  %v12366_v62 = vld [vmem:[#allocation30_spill] sm:$0xff] }
 0x3a8   :  { %v11686_v51 = vmul.f32 0.2, %v11607_v54  ;;  %v11688_v22 = vpack.c.bf16 %v4267_v6, %v4263_v32  ;;  %v11690_v36 = vpack.c.bf16 %v4276_v39, %v4272_v53  ;;  %vm12351_vm15 = vcmp.ge.f32.partialorder %v11395_v41, 0.0  ;;  %5255 = vmatprep.mubr.bf16.mxu0 %v4346_v15  ;;  %5481 = vmatprep.mubr.bf16.mxu1 %v4346_v15  ;;  %v9886_v12 = vld [vmem:[#allocation8 + $0x3e4] ss:$16 sps:$4 sm:$0xff]   ;;  %v12367_v16 = vld [vmem:[#allocation32_spill] sm:$0xff] }
 0x3a9   :  { %v4271_v26 = vsel %vm12351_vm15, %v11395_v41, %v11427_v55  ;;  %vm4184_vm0 = vcmp.ge.f32.partialorder %v11616_v20, 0.0  ;;  %vm12352_vm1 = vcmp.ge.f32.partialorder %v11406_v13, 0.0  ;;  %vm12353_vm2 = vcmp.ge.f32.partialorder %v11435_v37, 0.0  ;;  %5293 = vmatpush1.bf16.msra.mxu0 %v9872_v60  ;;  %5519 = vmatpush1.bf16.msra.mxu1 %v9875_v7  ;;  %v12368_v34 = vld [vmem:[#allocation29_spill] sm:$0xff]  ;;  %v12369_v5 = vld [vmem:[#allocation31_spill] sm:$0xff]  ;;  %v12372_v39 = vld [vmem:[#allocation22_spill] sm:$0xff] }
 0x3aa   :  { %v4275_v43 = vsel %vm12352_vm1, %v11406_v13, %v11453_v9  ;;  %v4280_v8 = vsel %vm12353_vm2, %v11435_v37, %v11472_v35  ;;  %vm12354_vm3 = vcmp.ge.f32.partialorder %v11446_v42, 0.0  ;;  %vm12355_vm11 = vcmp.ge.f32.partialorder %v11431_v28, 0.0  ;;  %v12356_v13 = vld [vmem:[#allocation24_spill] sm:$0xff]  ;;  %v9878_v35 = vld [vmem:[#allocation8 + $0x3c0] ss:$16 sps:$4 sm:$0xff]   ;;  %5294 = vmatprep.subr.bf16.mxu0 %v9880_v47  ;;  %5520 = vmatprep.subr.bf16.mxu1 %v9883_v58 }
 0x3ab   :  { %v4284_v61 = vsel %vm12354_vm3, %v11446_v42, %v11482_v52  ;;  %v4327_v41 = vpack.c.bf16 %v4275_v43, %v4271_v26  ;;  %v4279_v49 = vsel %vm12355_vm11, %v11431_v28, %v11469_v21  ;;  %vm12357_vm12 = vcmp.ge.f32.partialorder %v12356_v13, 0.0  ;;  %v12358_v42 = vld [vmem:[#allocation26_spill] sm:$0xff]  ;;  %v12370_v56 = vld [vmem:[#allocation23_spill] sm:$0xff]  ;;  %v12371_v7 = vld [vmem:[#allocation33_spill] sm:$0xff] }
 0x3ac   :  { %v11709_v55 = vpack.c.bf16 %v4284_v61, %v4280_v8  ;;  %v4283_v9 = vsel %vm12357_vm12, %v12356_v13, %v11479_v33  ;;  %v4248_v37 = vmul.f32 0.2, %v11616_v20  ;;  %vm12359_vm15 = vcmp.ge.f32.partialorder %v11465_v19, 0.0  ;;  %v9881_v33 = vld [vmem:[#allocation8 + $0x3c8] ss:$16 sps:$4 sm:$0xff]  }
 0x3ad   :  { %v4331_v25 = vpack.c.bf16 %v4283_v9, %v4279_v49  ;;  %v4288_v52 = vsel %vm12359_vm15, %v11465_v19, %v12358_v42  ;;  %vm12361_vm1 = vcmp.ge.f32.partialorder %v11485_v46, 0.0  ;;  %v4251_v21 = vmul.f32 0.2, %v11621_v45  ;;  %5295 = vmatpush1.bf16.msra.mxu0 %v9878_v35  ;;  %5521 = vmatpush1.bf16.msra.mxu1 %v9881_v33  ;;  %v9899_v47 = vld [vmem:[#allocation11 + $0x28] ss:$16 sps:$4 sm:$0xff]   ;;  %v12373_v35 = vld [vmem:[#allocation19_spill] sm:$0xff] }
 0x3ae   :  { %v4292_v28 = vsel %vm12361_vm1, %v11485_v46, %v12360_v14  ;;  %vm12363_vm2 = vcmp.ge.f32.partialorder %v11457_v30, 0.0  ;;  %vm12365_vm3 = vcmp.ge.f32.partialorder %v11476_v24, 0.0  ;;  %v4252_v63 = vmul.f32 0.2, %v11626_v3  ;;  %v9889_v46 = vld [vmem:[#allocation8 + $0x3ec] ss:$16 sps:$4 sm:$0xff]   ;;  %5256 = vmatmul.mubr.bf16.gmra.mrb[68].mxu0 %v4345_v18  ;;  %5482 = vmatmul.mubr.bf16.gmra.mrb[68].mxu1 %v4345_v18 }
 0x3af   :  { %v4336_v0 = vpack.c.bf16 %v4292_v28, %v4288_v52  ;;  %v4287_v23 = vsel %vm12363_vm2, %v11457_v30, %v12362_v38  ;;  %v4291_v19 = vsel %vm12365_vm3, %v11476_v24, %v12364_v31  ;;  %v4296_v17 = vsel %vm4168_vm13, %v11511_v11, %v12366_v62  ;;  %5298 = vmatprep.mubr.bf16.mxu0 %v12370_v56  ;;  %v9901_v58 = vld [vmem:[#allocation11 + $0x2c] ss:$16 sps:$4 sm:$0xff]   ;;  %v9902_v26 = vld [vmem:[#allocation11 + $0x40] ss:$16 sps:$4 sm:$0xff]   ;;  %v9905_v43 = vld [vmem:[#allocation11 + $0x48] ss:$16 sps:$4 sm:$0xff]  }
 0x3b0   :  { %v4335_v59 = vpack.c.bf16 %v4291_v19, %v4287_v23  ;;  %v4300_v30 = vsel %vm4172_vm5, %v11521_v48, %v12367_v16  ;;  %vm4188_vm11 = vcmp.ge.f32.partialorder %v11626_v3, 0.0  ;;  %v4295_v15 = vsel %vm4167_vm6, %v11503_v57, %v12368_v34  ;;  %v9884_v48 = vld [vmem:[#allocation8 + $0x3e0] ss:$16 sps:$4 sm:$0xff]   ;;  %5524 = vmatprep.mubr.bf16.mxu1 %v12370_v56  ;;  %5296 = vmatprep.subr.bf16.mxu0 %v9886_v12  ;;  %v9910_v8 = vld [vmem:[#allocation11 + $0x64] ss:$16 sps:$4 sm:$0xff]   ;;  %v12374_v33 = vld [vmem:[#allocation20_spill] sm:$0xff] }
 0x3b1   :  { %v4340_v24 = vpack.c.bf16 %v4300_v30, %v4296_v17  ;;  %v4299_v11 = vsel %vm4171_vm7, %v11514_v10, %v12369_v5  ;;  %vm4187_vm13 = vcmp.ge.f32.partialorder %v11621_v45, 0.0  ;;  %v4304_v18 = vsel %vm4176_vm4, %v11580_v40, %v11637_v44  ;;  %v9887_v10 = vld [vmem:[#allocation8 + $0x3e8] ss:$16 sps:$4 sm:$0xff]   ;;  %5522 = vmatprep.subr.bf16.mxu1 %v9889_v46  ;;  %5297 = vmatpush1.bf16.msra.mxu0 %v9884_v48  ;;  %v9913_v61 = vld [vmem:[#allocation11 + $0x6c] ss:$16 sps:$4 sm:$0xff]  }
 0x3b2   :  { %v4339_v32 = vpack.c.bf16 %v4299_v11, %v4295_v15  ;;  %v4308_v57 = vsel %vm4180_vm9, %v11603_v4, %v11662_v27  ;;  %v4303_v6 = vsel %vm4175_vm14, %v11545_v2, %v12371_v7  ;;  %v4307_v40 = vsel %vm4179_vm8, %v11590_v1, %v11648_v29  ;;  %5523 = vmatpush1.bf16.msra.mxu1 %v9887_v10  ;;  %v9916_v49 = vld [vmem:[#allocation11 + $0x84] ss:$16 sps:$4 sm:$0xff]   ;;  %v9919_v13 = vld [vmem:[#allocation11 + $0x8c] ss:$16 sps:$4 sm:$0xff]   ;;  %v9914_v9 = vld [vmem:[#allocation11 + $0x80] ss:$16 sps:$4 sm:$0xff]  }
 0x3b3   :  { %v4344_v60 = vpack.c.bf16 %v4308_v57, %v4304_v18  ;;  %v4343_v44 = vpack.c.bf16 %v4307_v40, %v4303_v6  ;;  %v4312_v4 = vsel %vm4184_vm0, %v11616_v20, %v4248_v37  ;;  %v4316_v27 = vsel %vm4188_vm11, %v11626_v3, %v4252_v63  ;;  %v9892_v20 = vld [vmem:[#allocation11 + $0x4] ss:$16 sps:$4 sm:$0xff]   ;;  %v9895_v3 = vld [vmem:[#allocation11 + $0xc] ss:$16 sps:$4 sm:$0xff]   ;;  %v9917_v37 = vld [vmem:[#allocation11 + $0x88] ss:$16 sps:$4 sm:$0xff]  }
 0x3b4   :  { %v4348_v53 = vpack.c.bf16 %v4316_v27, %v4312_v4  ;;  %v4311_v2 = vsel %vm4183_vm10, %v11607_v54, %v11686_v51  ;;  %v4315_v1 = vsel %vm4187_vm13, %v11621_v45, %v4251_v21  ;;  %v9890_v54 = vld [vmem:[#allocation11] ss:$16 sps:$4 sm:$0xff]   ;;  %v9893_v45 = vld [vmem:[#allocation11 + $0x8] ss:$16 sps:$4 sm:$0xff]   ;;  %7340 = vmatprep.subr.bf16.mxu0 %v9892_v20  ;;  %7426 = vmatprep.subr.bf16.mxu1 %v9895_v3  ;;  %v9898_v51 = vld [vmem:[#allocation11 + $0x24] ss:$16 sps:$4 sm:$0xff]  }
 0x3b5   :  { %v4347_v29 = vpack.c.bf16 %v4315_v1, %v4311_v2  ;;  %v9922_v42 = vld [vmem:[#allocation11 + $0xa4] ss:$16 sps:$4 sm:$0xff]   ;;  %v9925_v52 = vld [vmem:[#allocation11 + $0xac] ss:$16 sps:$4 sm:$0xff]   ;;  %v9920_v14 = vld [vmem:[#allocation11 + $0xa0] ss:$16 sps:$4 sm:$0xff]  }
 0x3b6   :  { %5299 = vmatmul.mubr.bf16.vlgmr.msra.gmra.mrb[40].mxu0 %v12372_v39  ;;  %5525 = vmatmul.mubr.bf16.vlgmr.msra.gmra.mrb[40].mxu1 %v12372_v39  ;;  %v9923_v28 = vld [vmem:[#allocation11 + $0xa8] ss:$16 sps:$4 sm:$0xff]   ;;  %v10279_v21 = vld [vmem:[%s12274_s6] sm:$0xff]  ;;  %vm6629_vm10 = vcmask 1041409   ;;  %vm6631_vm11 = vcmask 1042434  }
 0x3b7   :  { %5308 = vmatprep.mubr.bf16.mxu0 %v11666_v50  ;;  %5534 = vmatprep.mubr.bf16.mxu1 %v11666_v50  ;;  %v9896_v50 = vld [vmem:[#allocation11 + $0x20] ss:$16 sps:$4 sm:$0xff]   ;;  %v10280_v38 = vld [vmem:[%s12274_s6 + $0x8] sm:$0xff] }
 0x3b8   :  { %7341 = vmatpush1.bf16.msra.mxu0 %v9890_v54  ;;  %7427 = vmatpush1.bf16.msra.mxu1 %v9893_v45  ;;  %v4488_v23 = vrot.slane %v10280_v38, %v12374_v33 }
 0x3b9   :  { %7342 = vmatprep.subr.bf16.mxu0 %v9898_v51  ;;  %7428 = vmatprep.subr.bf16.mxu1 %v9901_v58 }
 0x3ba   :  { %v11810_v12 = vrot.slane %v4488_v23, %v12374_v33 }
 0x3bc   :  { %7343 = vmatpush1.bf16.msra.mxu0 %v9896_v50  ;;  %7429 = vmatpush1.bf16.msra.mxu1 %v9899_v47 }
 0x3be   :  { %5309 = vmatmul.mubr.bf16.gmra.mrb[44].mxu0 %v11688_v22  ;;  %5535 = vmatmul.mubr.bf16.gmra.mrb[44].mxu1 %v11688_v22  ;;  %v9904_v22 = vld [vmem:[#allocation11 + $0x44] ss:$16 sps:$4 sm:$0xff]  }
 0x3bf   :  { %5318 = vmatprep.mubr.bf16.mxu0 %v11690_v36  ;;  %5544 = vmatprep.mubr.bf16.mxu1 %v11690_v36  ;;  %v9907_v36 = vld [vmem:[#allocation11 + $0x4c] ss:$16 sps:$4 sm:$0xff]  }
 0x3c0   :  { %7344 = vmatprep.subr.bf16.mxu0 %v9904_v22  ;;  %7430 = vmatprep.subr.bf16.mxu1 %v9907_v36  ;;  %v9928_v36 = vld [vmem:[#allocation11 + $0xc4] ss:$16 sps:$4 sm:$0xff]  }
 0x3c1   :  { %7345 = vmatpush1.bf16.msra.mxu0 %v9902_v26  ;;  %7431 = vmatpush1.bf16.msra.mxu1 %v9905_v43 }
 0x3c2   :  { %7346 = vmatprep.subr.bf16.mxu0 %v9910_v8  ;;  %7432 = vmatprep.subr.bf16.mxu1 %v9913_v61 }
 0x3c6   :  { %5319 = vmatmul.mubr.bf16.gmra.mrb[48].mxu0 %v4327_v41  ;;  %5545 = vmatmul.mubr.bf16.gmra.mrb[48].mxu1 %v4327_v41  ;;  %v9908_v41 = vld [vmem:[#allocation11 + $0x60] ss:$16 sps:$4 sm:$0xff]  }
 0x3c7   :  { %5328 = vmatprep.mubr.bf16.mxu0 %v11709_v55  ;;  %5554 = vmatprep.mubr.bf16.mxu1 %v11709_v55  ;;  %v9911_v55 = vld [vmem:[#allocation11 + $0x68] ss:$16 sps:$4 sm:$0xff]  }
 0x3c8   :  { %7347 = vmatpush1.bf16.msra.mxu0 %v9908_v41  ;;  %7433 = vmatpush1.bf16.msra.mxu1 %v9911_v55 }
 0x3c9   :  { %7348 = vmatprep.subr.bf16.mxu0 %v9916_v49  ;;  %7434 = vmatprep.subr.bf16.mxu1 %v9919_v13 }
 0x3cc   :  { %7349 = vmatpush1.bf16.msra.mxu0 %v9914_v9  ;;  %7435 = vmatpush1.bf16.msra.mxu1 %v9917_v37 }
 0x3cd   :  { %7350 = vmatprep.subr.bf16.mxu0 %v9922_v42  ;;  %7436 = vmatprep.subr.bf16.mxu1 %v9925_v52 }
 0x3ce   :  { %5329 = vmatmul.mubr.bf16.gmra.mrb[52].mxu0 %v4331_v25  ;;  %5555 = vmatmul.mubr.bf16.gmra.mrb[52].mxu1 %v4331_v25  ;;  %v4483_v25 = vsub.s32 6, %v12373_v35 }
 0x3cf   :  { %5338 = vmatprep.mubr.bf16.mxu0 %v4336_v0  ;;  %5564 = vmatprep.mubr.bf16.mxu1 %v4336_v0  ;;  %v4480_v0 = vrot.slane %v10279_v21, %v12374_v33 }
 0x3d0   :  { %7351 = vmatpush1.bf16.msra.mxu0 %v9920_v14  ;;  %7437 = vmatpush1.bf16.msra.mxu1 %v9923_v28  ;;  %v4484_v31 = vrot.slane %v10279_v21, %v4483_v25  ;;  %v4492_v19 = vrot.slane %v10280_v38, %v4483_v25 }
 0x3d1   :  { %v11807_v63 = vrot.slane %v4480_v0, %v12374_v33  ;;  %7352 = vmatprep.subr.bf16.mxu0 %v9928_v36  ;;  %v9929_v0 = vld [vmem:[#allocation11 + $0xc8] ss:$16 sps:$4 sm:$0xff]  }
 0x3d2   :  { %v11813_v46 = vrot.slane %v4484_v31, %v12374_v33 }
 0x3d6   :  { %5339 = vmatmul.mubr.bf16.gmra.mrb[56].mxu0 %v4335_v59  ;;  %5565 = vmatmul.mubr.bf16.gmra.mrb[56].mxu1 %v4335_v59  ;;  %v11816_v59 = vrot.slane %v4492_v19, %v12374_v33  ;;  %v9926_v33 = vld [vmem:[#allocation11 + $0xc0] ss:$16 sps:$4 sm:$0xff]  }
 0x3d7   :  { %5348 = vmatprep.mubr.bf16.mxu0 %v4340_v24  ;;  %5574 = vmatprep.mubr.bf16.mxu1 %v4340_v24 }
 0x3d8   :  { %7353 = vmatpush1.bf16.msra.mxu0 %v9926_v33 }
 0x3de   :  { %5349 = vmatmul.mubr.bf16.gmra.mrb[60].mxu0 %v4339_v32  ;;  %5575 = vmatmul.mubr.bf16.gmra.mrb[60].mxu1 %v4339_v32 }
 0x3df   :  { %5358 = vmatprep.mubr.bf16.mxu0 %v4344_v60  ;;  %5584 = vmatprep.mubr.bf16.mxu1 %v4344_v60 }
 0x3e6   :  { %5359 = vmatmul.mubr.bf16.gmra.mrb[64].mxu0 %v4343_v44  ;;  %5585 = vmatmul.mubr.bf16.gmra.mrb[64].mxu1 %v4343_v44 }
 0x3e7   :  { %5368 = vmatprep.mubr.bf16.mxu0 %v4348_v53  ;;  %5594 = vmatprep.mubr.bf16.mxu1 %v4348_v53 }
 0x3ee   :  { %5369 = vmatmul.mubr.bf16.gmra.mrb[68].mxu0 %v4347_v29  ;;  %5595 = vmatmul.mubr.bf16.gmra.mrb[68].mxu1 %v4347_v29 }
 0x489   :  { %v5300_v62 = vpop.f32.mrb[40].mxu0  ;;  %v5526_v16 = vpop.f32.mrb[40].mxu1 }
 0x48a   :  { %v9256_v17 = vadd.f32 %v5300_v62, %v11807_v63  ;;  %v5302_v30 = vpop.f32.mrb[41].mxu0  ;;  %v9288_v24 = vadd.f32 %v5526_v16, %v11810_v12  ;;  %v5528_v15 = vpop.f32.mrb[41].mxu1  ;;  %v9931_v62 = vld [vmem:[#allocation11 + $0xcc] ss:$16 sps:$4 sm:$0xff]  }
 0x48b   :  { %v9257_v34 = vadd.f32 %v5302_v30, %v11813_v46  ;;  %v5304_v5 = vpop.f32.mrb[42].mxu0  ;;  %v9289_v56 = vadd.f32 %v5528_v15, %v11816_v59  ;;  %v5530_v32 = vpop.f32.mrb[42].mxu1  ;;  %7438 = vmatprep.subr.bf16.mxu1 %v9931_v62 }
 0x48c   :  { %vm5605_vm5 = vcmp.ge.f32.partialorder %v9256_v17, 0.0  ;;  %v5669_v11 = vmul.f32 0.2, %v9256_v17  ;;  %v9258_v48 = vadd.f32 %v5304_v5, %v11807_v63  ;;  %v5306_v18 = vpop.f32.mrb[43].mxu0  ;;  %vm5607_vm6 = vcmp.ge.f32.partialorder %v9288_v24, 0.0  ;;  %v5532_v6 = vpop.f32.mrb[43].mxu1  ;;  %7439 = vmatpush1.bf16.msra.mxu1 %v9929_v0 }
 0x48d   :  { %v5671_v57 = vmul.f32 0.2, %v9288_v24  ;;  %vm5606_vm7 = vcmp.ge.f32.partialorder %v9257_v34, 0.0  ;;  %v5670_v10 = vmul.f32 0.2, %v9257_v34  ;;  %vm5608_vm4 = vcmp.ge.f32.partialorder %v9289_v56, 0.0 }
 0x48e   :  { %v5733_v60 = vsel %vm5605_vm5, %v9256_v17, %v5669_v11  ;;  %v5672_v7 = vmul.f32 0.2, %v9289_v56  ;;  %vm5609_vm14 = vcmp.ge.f32.partialorder %v9258_v48, 0.0  ;;  %v5673_v27 = vmul.f32 0.2, %v9258_v48 }
 0x48f   :  { %v5797_v40 = vrot.slane %v5733_v60, 4  ;;  %v5735_v44 = vsel %vm5607_vm6, %v9288_v24, %v5671_v57  ;;  %v5734_v4 = vsel %vm5606_vm7, %v9257_v34, %v5670_v10  ;;  %v9290_v29 = vadd.f32 %v5530_v32, %v11810_v12 }
 0x490   :  { %v5809_v53 = vrot.slane %v5735_v44, 4  ;;  %v5803_v2 = vrot.slane %v5734_v4, 4  ;;  %v5736_v1 = vsel %vm5608_vm4, %v9289_v56, %v5672_v7  ;;  %v5737_v20 = vsel %vm5609_vm14, %v9258_v48, %v5673_v27 }
 0x491   :  { %v5798_v39 = vadd.f32 %v5797_v40, %v5733_v60  ;;  %v5815_v54 = vrot.slane %v5736_v1, 4  ;;  %v9259_v45 = vadd.f32 %v5306_v18, %v11813_v46  ;;  %v11825_v3 = vpop.f32.mrb[44].mxu0  ;;  %v5821_v47 = vrot.slane %v5737_v20, 4  ;;  %v11827_v58 = vpop.f32.mrb[44].mxu1 }
 0x492   :  { %v5810_v50 = vadd.f32 %v5809_v53, %v5735_v44  ;;  %v5804_v51 = vadd.f32 %v5803_v2, %v5734_v4  ;;  %vm5611_vm8 = vcmp.ge.f32.partialorder %v9290_v29, 0.0  ;;  %v11829_v22 = vpop.f32.mrb[45].mxu0  ;;  %v5675_v8 = vmul.f32 0.2, %v9290_v29  ;;  %v11831_v61 = vpop.f32.mrb[45].mxu1 }
 0x493   :  { %v5799_v26 = vrot.slane %v5798_v39, 2  ;;  %v5816_v43 = vadd.f32 %v5815_v54, %v5736_v1  ;;  %vm5610_vm9 = vcmp.ge.f32.partialorder %v9259_v45, 0.0  ;;  %v11833_v41 = vpop.f32.mrb[46].mxu0  ;;  %v5822_v13 = vadd.f32 %v5821_v47, %v5737_v20  ;;  %v11835_v37 = vpop.f32.mrb[46].mxu1  ;;  %v9932_v44 = vld [vmem:[#allocation11 + $0xe0] ss:$16 sps:$4 sm:$0xff]  }
 0x494   :  { %v5811_v55 = vrot.slane %v5810_v50, 2  ;;  %v5805_v49 = vrot.slane %v5804_v51, 2  ;;  %v5674_v9 = vmul.f32 0.2, %v9259_v45  ;;  %v11837_v25 = vpop.f32.mrb[47].mxu0  ;;  %v5739_v14 = vsel %vm5611_vm8, %v9290_v29, %v5675_v8  ;;  %v11841_v21 = vpop.f32.mrb[47].mxu1 }
 0x495   :  { %v5800_v42 = vadd.f32 %v5799_v26, %v5798_v39  ;;  %v5817_v52 = vrot.slane %v5816_v43, 2  ;;  %v9291_v28 = vadd.f32 %v5532_v6, %v11816_v59  ;;  %v5823_v31 = vrot.slane %v5822_v13, 2  ;;  %v9934_v39 = vld [vmem:[#allocation11 + $0xe4] ss:$16 sps:$4 sm:$0xff]   ;;  %v9935_v54 = vld [vmem:[#allocation11 + $0xe8] ss:$16 sps:$4 sm:$0xff]  }
 0x496   :  { %v5812_v38 = vadd.f32 %v5811_v55, %v5810_v50  ;;  %v5806_v23 = vadd.f32 %v5805_v49, %v5804_v51  ;;  %v5833_v19 = vrot.slane %v5739_v14, 4  ;;  %v5738_v30 = vsel %vm5610_vm9, %v9259_v45, %v5674_v9  ;;  %v9937_v26 = vld [vmem:[#allocation11 + $0xec] ss:$16 sps:$4 sm:$0xff]   ;;  %7354 = vmatprep.subr.bf16.mxu0 %v9934_v39 }
 0x497   :  { %v5801_v17 = vrot.slane %v5800_v42, 1  ;;  %v5818_v16 = vadd.f32 %v5817_v52, %v5816_v43  ;;  %vm5612_vm0 = vcmp.ge.f32.partialorder %v9291_v28, 0.0  ;;  %v5824_v15 = vadd.f32 %v5823_v31, %v5822_v13  ;;  %7440 = vmatprep.subr.bf16.mxu1 %v9937_v26  ;;  %7355 = vmatpush1.bf16.msra.mxu0 %v9932_v44 }
 0x498   :  { %v5813_v24 = vrot.slane %v5812_v38, 1  ;;  %v5807_v34 = vrot.slane %v5806_v23, 1  ;;  %v5834_v5 = vadd.f32 %v5833_v19, %v5739_v14  ;;  %v5827_v48 = vrot.slane %v5738_v30, 4  ;;  %7441 = vmatpush1.bf16.msra.mxu1 %v9935_v54 }
 0x499   :  { %v5802_v11 = vadd.f32 %v5801_v17, %v5800_v42  ;;  %v5819_v56 = vrot.slane %v5818_v16, 1  ;;  %v5676_v32 = vmul.f32 0.2, %v9291_v28  ;;  %v11844_v18 = vpop.f32.mrb[48].mxu0  ;;  %v5825_v60 = vrot.slane %v5824_v15, 1  ;;  %v11846_v6 = vpop.f32.mrb[48].mxu1 }
 0x49a   :  { %v5814_v57 = vadd.f32 %v5813_v24, %v5812_v38  ;;  %v5808_v10 = vadd.f32 %v5807_v34, %v5806_v23  ;;  %v5835_v7 = vrot.slane %v5834_v5, 2  ;;  %v11848_v40 = vpop.f32.mrb[49].mxu0  ;;  %v5828_v53 = vadd.f32 %v5827_v48, %v5738_v30  ;;  %v11851_v1 = vpop.f32.mrb[49].mxu1 }
 0x49b   :  { %v6309_v4 = vpack.c.bf16 %v5802_v11, %v5802_v11  ;;  %v5820_v27 = vadd.f32 %v5819_v56, %v5818_v16  ;;  %v5740_v2 = vsel %vm5612_vm0, %v9291_v28, %v5676_v32  ;;  %v11853_v29 = vpop.f32.mrb[50].mxu0  ;;  %v5826_v50 = vadd.f32 %v5825_v60, %v5824_v15  ;;  %v11855_v47 = vpop.f32.mrb[50].mxu1 }
 0x49c   :  { %v6311_v20 = vpack.c.bf16 %v5814_v57, %v5814_v57  ;;  %v6310_v45 = vpack.c.bf16 %v5808_v10, %v5808_v10  ;;  %v5836_v51 = vadd.f32 %v5835_v7, %v5834_v5  ;;  %v11857_v36 = vpop.f32.mrb[51].mxu0  ;;  %v5829_v55 = vrot.slane %v5828_v53, 2  ;;  %v11859_v13 = vpop.f32.mrb[51].mxu1 }
 0x49d   :  { %v6565_v43 = vunpack.c.l.b16 %v6309_v4  ;;  %v6312_v8 = vpack.c.bf16 %v5820_v27, %v5820_v27  ;;  %v5839_v49 = vrot.slane %v5740_v2, 4  ;;  %v6313_v52 = vpack.c.bf16 %v5826_v50, %v5826_v50 }
 0x49e   :  { %v6567_v9 = vunpack.c.l.b16 %v6311_v20  ;;  %v6566_v42 = vunpack.c.l.b16 %v6310_v45  ;;  %v5837_v14 = vrot.slane %v5836_v51, 1  ;;  %v5830_v33 = vadd.f32 %v5829_v55, %v5828_v53 }
 0x49f   :  { %v11861_v28 = vunpack.c.l.b16 %v6312_v8  ;;  %v5840_v0 = vadd.f32 %v5839_v49, %v5740_v2  ;;  %v9260_v38 = vadd.f32 %v11825_v3, %v11807_v63  ;;  %v6569_v23 = vunpack.c.l.b16 %v6313_v52 }
 0x4a0   :  { %v5838_v31 = vadd.f32 %v5837_v14, %v5836_v51  ;;  %v9292_v19 = vadd.f32 %v11827_v58, %v11810_v12  ;;  %v9261_v62 = vadd.f32 %v11829_v22, %v11813_v46  ;;  %v5831_v17 = vrot.slane %v5830_v33, 1 }
 0x4a1   :  { %v5841_v16 = vrot.slane %v5840_v0, 2  ;;  %vm5613_vm12 = vcmp.ge.f32.partialorder %v9260_v38, 0.0  ;;  %v5677_v30 = vmul.f32 0.2, %v9260_v38  ;;  %v11869_v24 = vpop.f32.mrb[52].mxu0  ;;  %v11872_v34 = vsel %vm6629_vm10, %v6569_v23, %v6565_v43  ;;  %v11874_v5 = vpop.f32.mrb[52].mxu1 }
 0x4a2   :  { %v6315_v15 = vpack.c.bf16 %v5838_v31, %v5838_v31  ;;  %vm5615_vm15 = vcmp.ge.f32.partialorder %v9292_v19, 0.0  ;;  %v5679_v3 = vmul.f32 0.2, %v9292_v19  ;;  %v11876_v11 = vpop.f32.mrb[53].mxu0  ;;  %v5832_v58 = vadd.f32 %v5831_v17, %v5830_v33  ;;  %v11878_v22 = vpop.f32.mrb[53].mxu1 }
 0x4a3   :  { %v5842_v56 = vadd.f32 %v5841_v16, %v5840_v0  ;;  %v5741_v48 = vsel %vm5613_vm12, %v9260_v38, %v5677_v30  ;;  %vm5614_vm1 = vcmp.ge.f32.partialorder %v9261_v62, 0.0  ;;  %v11880_v32 = vpop.f32.mrb[54].mxu0  ;;  %v5678_v7 = vmul.f32 0.2, %v9261_v62  ;;  %v11882_v44 = vpop.f32.mrb[54].mxu1 }
 0x4a4   :  { %v6571_v57 = vunpack.c.l.b16 %v6315_v15  ;;  %v5845_v10 = vrot.slane %v5741_v48, 4  ;;  %v5743_v60 = vsel %vm5615_vm15, %v9292_v19, %v5679_v3  ;;  %v11884_v4 = vpop.f32.mrb[55].mxu0  ;;  %v6314_v27 = vpack.c.bf16 %v5832_v58, %v5832_v58  ;;  %v11888_v54 = vpop.f32.mrb[55].mxu1 }
 0x4a5   :  { %v5843_v53 = vrot.slane %v5842_v56, 1  ;;  %v5857_v2 = vrot.slane %v5743_v60, 4  ;;  %v9293_v39 = vadd.f32 %v11831_v61, %v11816_v59  ;;  %v5742_v50 = vsel %vm5614_vm1, %v9261_v62, %v5678_v7 }
 0x4a6   :  { %v11891_v20 = vsel %vm6629_vm10, %v6571_v57, %v6567_v9  ;;  %v5846_v45 = vadd.f32 %v5845_v10, %v5741_v48  ;;  %v9262_v51 = vadd.f32 %v11833_v41, %v11807_v63  ;;  %v6570_v26 = vunpack.c.l.b16 %v6314_v27 }
 0x4a7   :  { %v5844_v43 = vadd.f32 %v5843_v53, %v5842_v56  ;;  %v5858_v8 = vadd.f32 %v5857_v2, %v5743_v60  ;;  %v5851_v55 = vrot.slane %v5742_v50, 4  ;;  %vm5616_vm2 = vcmp.ge.f32.partialorder %v9293_v39, 0.0  ;;  %v9938_v2 = vld [vmem:[#allocation11 + $0x100] ss:$16 sps:$4 sm:$0xff]  }
 0x4a8   :  { %v5847_v49 = vrot.slane %v5846_v45, 2  ;;  %v5680_v52 = vmul.f32 0.2, %v9293_v39  ;;  %vm5617_vm3 = vcmp.ge.f32.partialorder %v9262_v51, 0.0  ;;  %v11897_v61 = vsel %vm6629_vm10, %v6570_v26, %v6566_v42 }
 0x4a9   :  { %v6316_v14 = vpack.c.bf16 %v5844_v43, %v5844_v43  ;;  %v5859_v9 = vrot.slane %v5858_v8, 2  ;;  %v5852_v33 = vadd.f32 %v5851_v55, %v5742_v50  ;;  %v11899_v0 = vpop.f32.mrb[56].mxu0  ;;  %v5681_v41 = vmul.f32 0.2, %v9262_v51  ;;  %v11903_v19 = vpop.f32.mrb[56].mxu1 }
 0x4aa   :  { %v5848_v38 = vadd.f32 %v5847_v49, %v5846_v45  ;;  %v5744_v23 = vsel %vm5616_vm2, %v9293_v39, %v5680_v52  ;;  %v9294_v31 = vadd.f32 %v11835_v37, %v11810_v12  ;;  %v11905_v62 = vpop.f32.mrb[57].mxu0  ;;  %v11907_v15 = vpop.f32.mrb[57].mxu1  ;;  %v9940_v39 = vld [vmem:[#allocation11 + $0x104] ss:$16 sps:$4 sm:$0xff]   ;;  %v9263_v26 = vadd.f32 %v11837_v25, %v11813_v46  ;;  %v9941_v43 = vld [vmem:[#allocation11 + $0x108] ss:$16 sps:$4 sm:$0xff]  }
 0x4ab   :  { %v6572_v17 = vunpack.c.l.b16 %v6316_v14  ;;  %v5860_v16 = vadd.f32 %v5859_v9, %v5858_v8  ;;  %v5853_v42 = vrot.slane %v5852_v33, 2  ;;  %v5863_v30 = vrot.slane %v5744_v23, 4  ;;  %v11909_v3 = vpop.f32.mrb[58].mxu0  ;;  %v11912_v57 = vpop.f32.mrb[58].mxu1  ;;  %v9943_v8 = vld [vmem:[#allocation11 + $0x10c] ss:$16 sps:$4 sm:$0xff]   ;;  %7356 = vmatprep.subr.bf16.mxu0 %v9940_v39 }
 0x4ac   :  { %v5849_v58 = vrot.slane %v5848_v38, 1  ;;  %v5745_v56 = vsel %vm5617_vm3, %v9262_v51, %v5681_v41  ;;  %vm5619_vm13 = vcmp.ge.f32.partialorder %v9294_v31, 0.0  ;;  %v5683_v48 = vmul.f32 0.2, %v9294_v31  ;;  %v11914_v37 = vpop.f32.mrb[59].mxu0  ;;  %v11920_v53 = vpop.f32.mrb[59].mxu1  ;;  %7442 = vmatprep.subr.bf16.mxu1 %v9943_v8  ;;  %7357 = vmatpush1.bf16.msra.mxu0 %v9938_v2 }
 0x4ad   :  { %v11918_v10 = vsel %vm6629_vm10, %v6572_v17, %v11861_v28  ;;  %v5861_v60 = vrot.slane %v5860_v16, 1  ;;  %v5854_v7 = vadd.f32 %v5853_v42, %v5852_v33  ;;  %v5864_v27 = vadd.f32 %v5863_v30, %v5744_v23  ;;  %7443 = vmatpush1.bf16.msra.mxu1 %v9941_v43  ;;  %v9946_v25 = vld [vmem:[#allocation11 + $0x124] ss:$16 sps:$4 sm:$0xff]   ;;  %v9949_v42 = vld [vmem:[#allocation11 + $0x12c] ss:$16 sps:$4 sm:$0xff]  }
 0x4ae   :  { %v5850_v45 = vadd.f32 %v5849_v58, %v5848_v38  ;;  %v5869_v50 = vrot.slane %v5745_v56, 4  ;;  %v5747_v51 = vsel %vm5619_vm13, %v9294_v31, %v5683_v48  ;;  %vm5618_vm5 = vcmp.ge.f32.partialorder %v9263_v26, 0.0  ;;  %v9944_v2 = vld [vmem:[#allocation11 + $0x120] ss:$16 sps:$4 sm:$0xff]   ;;  %7358 = vmatprep.subr.bf16.mxu0 %v9946_v25  ;;  %v9947_v43 = vld [vmem:[#allocation11 + $0x128] ss:$16 sps:$4 sm:$0xff]   ;;  %7444 = vmatprep.subr.bf16.mxu1 %v9949_v42 }
 0x4af   :  { %v5862_v55 = vadd.f32 %v5861_v60, %v5860_v16  ;;  %v5855_v49 = vrot.slane %v5854_v7, 1  ;;  %v5865_v52 = vrot.slane %v5864_v27, 2  ;;  %v5881_v28 = vrot.slane %v5747_v51, 4 }
 0x4b0   :  { %v6317_v14 = vpack.c.bf16 %v5850_v45, %v5850_v45  ;;  %v5870_v9 = vadd.f32 %v5869_v50, %v5745_v56  ;;  %v5682_v33 = vmul.f32 0.2, %v9263_v26  ;;  %v9295_v48 = vadd.f32 %v11841_v21, %v11816_v59  ;;  %7359 = vmatpush1.bf16.msra.mxu0 %v9944_v2 }
 0x4b1   :  { %v6319_v23 = vpack.c.bf16 %v5862_v55, %v5862_v55  ;;  %v5856_v38 = vadd.f32 %v5855_v49, %v5854_v7  ;;  %v5866_v41 = vadd.f32 %v5865_v52, %v5864_v27  ;;  %v5882_v31 = vadd.f32 %v5881_v28, %v5747_v51  ;;  %v11924_v17 = vpop.f32.mrb[60].mxu0  ;;  %v11928_v56 = vpop.f32.mrb[60].mxu1  ;;  %7445 = vmatpush1.bf16.msra.mxu1 %v9947_v43 }
 0x4b2   :  { %v6573_v16 = vunpack.c.l.b16 %v6317_v14  ;;  %v5871_v30 = vrot.slane %v5870_v9, 2  ;;  %v5746_v58 = vsel %vm5618_vm5, %v9263_v26, %v5682_v33  ;;  %v11930_v60 = vpop.f32.mrb[61].mxu0  ;;  %vm6633_vm6 = vcmask 1043459   ;;  %v11932_v50 = vpop.f32.mrb[61].mxu1 }
 0x4b3   :  { %v6575_v39 = vunpack.c.l.b16 %v6319_v23  ;;  %v6318_v7 = vpack.c.bf16 %v5856_v38, %v5856_v38  ;;  %v5867_v27 = vrot.slane %v5866_v41, 1  ;;  %v5883_v45 = vrot.slane %v5882_v31, 2  ;;  %v11934_v51 = vpop.f32.mrb[62].mxu0  ;;  %v11938_v55 = vpop.f32.mrb[62].mxu1 }
 0x4b4   :  { %v6632_v21 = vsel %vm6631_vm11, %v6573_v16, %v11872_v34  ;;  %v5872_v26 = vadd.f32 %v5871_v30, %v5870_v9  ;;  %v5875_v8 = vrot.slane %v5746_v58, 4  ;;  %vm5620_vm7 = vcmp.ge.f32.partialorder %v9295_v48, 0.0  ;;  %v11940_v49 = vpop.f32.mrb[63].mxu0  ;;  %v11944_v23 = vpop.f32.mrb[63].mxu1 }
 0x4b5   :  { %v6651_v52 = vsel %vm6631_vm11, %v6575_v39, %v11891_v20  ;;  %v6574_v28 = vunpack.c.l.b16 %v6318_v7  ;;  %v5868_v14 = vadd.f32 %v5867_v27, %v5866_v41  ;;  %v5884_v33 = vadd.f32 %v5883_v45, %v5882_v31 }
 0x4b6   :  { %v5873_v38 = vrot.slane %v5872_v26, 1  ;;  %v5876_v25 = vadd.f32 %v5875_v8, %v5746_v58  ;;  %v5684_v34 = vmul.f32 0.2, %v9295_v48  ;;  %v9264_v9 = vadd.f32 %v11844_v18, %v11807_v63 }
 0x4b7   :  { %v11950_v42 = vsel %vm6631_vm11, %v6574_v28, %v11897_v61  ;;  %v6320_v16 = vpack.c.bf16 %v5868_v14, %v5868_v14  ;;  %v5885_v30 = vrot.slane %v5884_v33, 1  ;;  %v9296_v20 = vadd.f32 %v11846_v6, %v11810_v12 }
 0x4b8   :  { %12375 = vst [vmem:[#allocation24_spill] sm:$0xff] %v11950_v42  ;;  %v5874_v41 = vadd.f32 %v5873_v38, %v5872_v26  ;;  %v5877_v31 = vrot.slane %v5876_v25, 2  ;;  %v5748_v2 = vsel %vm5620_vm7, %v9295_v48, %v5684_v34  ;;  %vm5621_vm4 = vcmp.ge.f32.partialorder %v9264_v9, 0.0 }
 0x4b9   :  { %v6576_v39 = vunpack.c.l.b16 %v6320_v16  ;;  %v5886_v58 = vadd.f32 %v5885_v30, %v5884_v33  ;;  %v5887_v7 = vrot.slane %v5748_v2, 4  ;;  %v5685_v27 = vmul.f32 0.2, %v9264_v9  ;;  %v11955_v45 = vpop.f32.mrb[64].mxu0  ;;  %v11957_v8 = vpop.f32.mrb[64].mxu1 }
 0x4ba   :  { %v6321_v18 = vpack.c.bf16 %v5874_v41, %v5874_v41  ;;  %v5878_v43 = vadd.f32 %v5877_v31, %v5876_v25  ;;  %vm5623_vm14 = vcmp.ge.f32.partialorder %v9296_v20, 0.0  ;;  %v5687_v61 = vmul.f32 0.2, %v9296_v20  ;;  %v11959_v28 = vpop.f32.mrb[65].mxu0  ;;  %v11965_v33 = vpop.f32.mrb[65].mxu1 }
 0x4bb   :  { %12376 = vst [vmem:[#allocation26_spill] sm:$0xff] %v11959_v28  ;;  %v11963_v6 = vsel %vm6631_vm11, %v6576_v39, %v11918_v10  ;;  %v6323_v48 = vpack.c.bf16 %v5886_v58, %v5886_v58  ;;  %v5888_v26 = vadd.f32 %v5887_v7, %v5748_v2  ;;  %v5749_v14 = vsel %vm5621_vm4, %v9264_v9, %v5685_v27  ;;  %v11967_v38 = vpop.f32.mrb[66].mxu0  ;;  %v11969_v41 = vpop.f32.mrb[66].mxu1 }
 0x4bc   :  { %12377 = vst [vmem:[#allocation28_spill] sm:$0xff] %v11963_v6  ;;  %v6577_v34 = vunpack.c.l.b16 %v6321_v18  ;;  %v5879_v16 = vrot.slane %v5878_v43, 1  ;;  %v5893_v25 = vrot.slane %v5749_v14, 4  ;;  %v5751_v30 = vsel %vm5623_vm14, %v9296_v20, %v5687_v61  ;;  %v11971_v31 = vpop.f32.mrb[67].mxu0  ;;  %v11975_v2 = vpop.f32.mrb[67].mxu1 }
 0x4bd   :  { %12378 = vst [vmem:[#allocation25_spill] sm:$0xff] %v11971_v31  ;;  %v6579_v35 = vunpack.c.l.b16 %v6323_v48  ;;  %v5889_v42 = vrot.slane %v5888_v26, 2  ;;  %v5905_v28 = vrot.slane %v5751_v30, 4  ;;  %v9265_v10 = vadd.f32 %v11848_v40, %v11813_v46  ;;  %12379 = vst [vmem:[#allocation27_spill] sm:$0xff] %v11975_v2 }
 0x4be   :  { %v11978_v9 = vsel %vm6633_vm6, %v6577_v34, %v6632_v21  ;;  %v5880_v39 = vadd.f32 %v5879_v16, %v5878_v43  ;;  %v5894_v58 = vadd.f32 %v5893_v25, %v5749_v14  ;;  %v9297_v20 = vadd.f32 %v11851_v1, %v11816_v59 }
 0x4bf   :  { %v11983_v7 = vsel %vm6633_vm6, %v6579_v35, %v6651_v52  ;;  %v5890_v27 = vadd.f32 %v5889_v42, %v5888_v26  ;;  %v5906_v18 = vadd.f32 %v5905_v28, %v5751_v30  ;;  %vm5622_vm8 = vcmp.ge.f32.partialorder %v9265_v10, 0.0 }
 0x4c0   :  { %12380 = vst [vmem:[#allocation30_spill] sm:$0xff] %v11983_v7  ;;  %v6322_v61 = vpack.c.bf16 %v5880_v39, %v5880_v39  ;;  %v5895_v48 = vrot.slane %v5894_v58, 2  ;;  %v5686_v6 = vmul.f32 0.2, %v9265_v10  ;;  %vm5624_vm9 = vcmp.ge.f32.partialorder %v9297_v20, 0.0 }
 0x4c1   :  { %v5891_v40 = vrot.slane %v5890_v27, 1  ;;  %vm6635_vm0 = vcmask 1044484   ;;  %v5907_v2 = vrot.slane %v5906_v18, 2  ;;  %v5688_v21 = vmul.f32 0.2, %v9297_v20  ;;  %v11987_v14 = vpop.f32.mrb[68].mxu0 }
 0x4c2   :  { %v9266_v43 = vadd.f32 %v11853_v29, %v11807_v63  ;;  %12381 = vst [vmem:[#allocation32_spill] sm:$0xff] %v11987_v14  ;;  %v11989_v1 = vunpack.c.l.b16 %v6322_v61  ;;  %v5896_v35 = vadd.f32 %v5895_v48, %v5894_v58  ;;  %v5750_v52 = vsel %vm5622_vm8, %v9265_v10, %v5686_v6  ;;  %v11993_v28 = vpop.f32.mrb[68].mxu1  ;;  %v11995_v26 = vpop.f32.mrb[69].mxu0 }
 0x4c3   :  { %v9298_v42 = vadd.f32 %v11855_v47, %v11810_v12  ;;  %12383 = vst [vmem:[#allocation31_spill] sm:$0xff] %v11993_v28  ;;  %12384 = vst [vmem:[#allocation23_spill] sm:$0xff] %v11995_v26  ;;  %v5892_v34 = vadd.f32 %v5891_v40, %v5890_v27  ;;  %v5908_v16 = vadd.f32 %v5907_v2, %v5906_v18  ;;  %v5899_v25 = vrot.slane %v5750_v52, 4  ;;  %v11998_v39 = vpop.f32.mrb[69].mxu1  ;;  %v12000_v29 = vpop.f32.mrb[70].mxu0 }
 0x4c4   :  { %12382 = vst [vmem:[#allocation29_spill] sm:$0xff] %v11989_v1  ;;  %v5752_v30 = vsel %vm5624_vm9, %v9297_v20, %v5688_v21  ;;  %12385 = vst [vmem:[#allocation33_spill] sm:$0xff] %v11998_v39  ;;  %v5897_v61 = vrot.slane %v5896_v35, 1  ;;  %vm5625_vm12 = vcmp.ge.f32.partialorder %v9266_v43, 0.0  ;;  %v5689_v6 = vmul.f32 0.2, %v9266_v43 }
 0x4c5   :  { %12386 = vst [vmem:[#allocation22_spill] sm:$0xff] %v12000_v29  ;;  %v5911_v7 = vrot.slane %v5752_v30, 4  ;;  %v12002_v10 = vpop.f32.mrb[70].mxu1  ;;  %v6324_v47 = vpack.c.bf16 %v5892_v34, %v5892_v34  ;;  %v5909_v58 = vrot.slane %v5908_v16, 1  ;;  %v5900_v48 = vadd.f32 %v5899_v25, %v5750_v52  ;;  %v12004_v1 = vpop.f32.mrb[71].mxu0 }
 0x4c6   :  { %12387 = vst [vmem:[#allocation20_spill] sm:$0xff] %v12002_v10  ;;  %vm5627_vm15 = vcmp.ge.f32.partialorder %v9298_v42, 0.0  ;;  %v12006_v2 = vpop.f32.mrb[71].mxu1  ;;  %v9950_v27 = vld [vmem:[#allocation11 + $0x140] ss:$16 sps:$4 sm:$0xff]   ;;  %v5898_v20 = vadd.f32 %v5897_v61, %v5896_v35  ;;  %v5753_v40 = vsel %vm5625_vm12, %v9266_v43, %v5689_v6  ;;  %vm6637_vm2 = vcmask 1045509  }
 0x4c7   :  { %12388 = vst [vmem:[#allocation34_spill] sm:$0xff] %v12006_v2  ;;  %v5912_v18 = vadd.f32 %v5911_v7, %v5752_v30  ;;  %v5691_v21 = vmul.f32 0.2, %v9298_v42  ;;  %v9952_v29 = vld [vmem:[#allocation11 + $0x144] ss:$16 sps:$4 sm:$0xff]   ;;  %v12008_v26 = vunpack.c.l.b16 %v6324_v47  ;;  %v5910_v28 = vadd.f32 %v5909_v58, %v5908_v16 }
 0x4c8   :  { %v9953_v39 = vld [vmem:[#allocation11 + $0x148] ss:$16 sps:$4 sm:$0xff]   ;;  %v5901_v14 = vrot.slane %v5900_v48, 2  ;;  %v5917_v10 = vrot.slane %v5753_v40, 4  ;;  %v9955_v34 = vld [vmem:[#allocation11 + $0x14c] ss:$16 sps:$4 sm:$0xff]   ;;  %v6325_v31 = vpack.c.bf16 %v5898_v20, %v5898_v20  ;;  %v9267_v2 = vadd.f32 %v11857_v36, %v11813_v46  ;;  %7360 = vmatprep.subr.bf16.mxu0 %v9952_v29 }
 0x4c9   :  { %12389 = vst [vmem:[#allocation35_spill] sm:$0xff] %v12008_v26  ;;  %v5913_v52 = vrot.slane %v5912_v18, 2  ;;  %v5755_v25 = vsel %vm5627_vm15, %v9298_v42, %v5691_v21  ;;  %v9958_v35 = vld [vmem:[#allocation11 + $0x164] ss:$16 sps:$4 sm:$0xff]   ;;  %v9961_v7 = vld [vmem:[#allocation11 + $0x16c] ss:$16 sps:$4 sm:$0xff]   ;;  %v6327_v43 = vpack.c.bf16 %v5910_v28, %v5910_v28  ;;  %7446 = vmatprep.subr.bf16.mxu1 %v9955_v34  ;;  %7361 = vmatpush1.bf16.msra.mxu0 %v9950_v27 }
 0x4ca   :  { %v5902_v30 = vadd.f32 %v5901_v14, %v5900_v48  ;;  %v5918_v61 = vadd.f32 %v5917_v10, %v5753_v40  ;;  %v5929_v6 = vrot.slane %v5755_v25, 4  ;;  %v9956_v16 = vld [vmem:[#allocation11 + $0x160] ss:$16 sps:$4 sm:$0xff]   ;;  %v6581_v47 = vunpack.c.l.b16 %v6325_v31  ;;  %7447 = vmatpush1.bf16.msra.mxu1 %v9953_v39  ;;  %7362 = vmatprep.subr.bf16.mxu0 %v9958_v35  ;;  %v9959_v42 = vld [vmem:[#allocation11 + $0x168] ss:$16 sps:$4 sm:$0xff]  }
 0x4cb   :  { %v5914_v58 = vadd.f32 %v5913_v52, %v5912_v18  ;;  %vm5626_vm1 = vcmp.ge.f32.partialorder %v9267_v2, 0.0  ;;  %v5690_v20 = vmul.f32 0.2, %v9267_v2  ;;  %v12013_v21 = vunpack.c.l.b16 %v6327_v43  ;;  %7448 = vmatprep.subr.bf16.mxu1 %v9961_v7  ;;  %v9964_v48 = vld [vmem:[#allocation11 + $0x184] ss:$16 sps:$4 sm:$0xff]  }
 0x4cc   :  { %v5903_v36 = vrot.slane %v5902_v30, 1  ;;  %v5919_v29 = vrot.slane %v5918_v61, 2  ;;  %v5930_v26 = vadd.f32 %v5929_v6, %v5755_v25  ;;  %v12017_v14 = vsel %vm6635_vm0, %v6581_v47, %v11978_v9  ;;  %v9967_v39 = vld [vmem:[#allocation11 + $0x18c] ss:$16 sps:$4 sm:$0xff]   ;;  %v9962_v52 = vld [vmem:[#allocation11 + $0x180] ss:$16 sps:$4 sm:$0xff]  }
 0x4cd   :  { %v5915_v28 = vrot.slane %v5914_v58, 1  ;;  %v5754_v10 = vsel %vm5626_vm1, %v9267_v2, %v5690_v20  ;;  %v9299_v31 = vadd.f32 %v11859_v13, %v11816_v59  ;;  %7363 = vmatpush1.bf16.msra.mxu0 %v9956_v16  ;;  %v9268_v9 = vadd.f32 %v11869_v24, %v11807_v63  ;;  %v9965_v2 = vld [vmem:[#allocation11 + $0x188] ss:$16 sps:$4 sm:$0xff]   ;;  %v9970_v16 = vld [vmem:[#allocation11 + $0x1a4] ss:$16 sps:$4 sm:$0xff]  }
 0x4ce   :  { %v5904_v27 = vadd.f32 %v5903_v36, %v5902_v30  ;;  %v5920_v18 = vadd.f32 %v5919_v29, %v5918_v61  ;;  %v5931_v40 = vrot.slane %v5930_v26, 2  ;;  %v5923_v34 = vrot.slane %v5754_v10, 4  ;;  %7449 = vmatpush1.bf16.msra.mxu1 %v9959_v42  ;;  %7364 = vmatprep.subr.bf16.mxu0 %v9964_v48  ;;  %v9968_v24 = vld [vmem:[#allocation11 + $0x1a0] ss:$16 sps:$4 sm:$0xff]  }
 0x4cf   :  { %v5916_v25 = vadd.f32 %v5915_v28, %v5914_v58  ;;  %vm5628_vm3 = vcmp.ge.f32.partialorder %v9299_v31, 0.0  ;;  %v5692_v35 = vmul.f32 0.2, %v9299_v31  ;;  %7450 = vmatprep.subr.bf16.mxu1 %v9967_v39  ;;  %vm5629_vm13 = vcmp.ge.f32.partialorder %v9268_v9, 0.0 }
 0x4d0   :  { %v6326_v7 = vpack.c.bf16 %v5904_v27, %v5904_v27  ;;  %v5921_v43 = vrot.slane %v5920_v18, 1  ;;  %v5932_v13 = vadd.f32 %v5931_v40, %v5930_v26  ;;  %v5924_v6 = vadd.f32 %v5923_v34, %v5754_v10  ;;  %v9971_v10 = vld [vmem:[#allocation11 + $0x1a8] ss:$16 sps:$4 sm:$0xff]  }
 0x4d1   :  { %v6328_v30 = vpack.c.bf16 %v5916_v25, %v5916_v25  ;;  %v5756_v61 = vsel %vm5628_vm3, %v9299_v31, %v5692_v35  ;;  %v5693_v47 = vmul.f32 0.2, %v9268_v9  ;;  %7365 = vmatpush1.bf16.msra.mxu0 %v9962_v52  ;;  %v9300_v26 = vadd.f32 %v11874_v5, %v11810_v12  ;;  %v9973_v31 = vld [vmem:[#allocation11 + $0x1ac] ss:$16 sps:$4 sm:$0xff]   ;;  %v9976_v35 = vld [vmem:[#allocation11 + $0x1c4] ss:$16 sps:$4 sm:$0xff]  }
 0x4d2   :  { %v12023_v20 = vunpack.c.l.b16 %v6326_v7  ;;  %v5922_v58 = vadd.f32 %v5921_v43, %v5920_v18  ;;  %v5933_v36 = vrot.slane %v5932_v13, 1  ;;  %v5925_v29 = vrot.slane %v5924_v6, 2  ;;  %7451 = vmatpush1.bf16.msra.mxu1 %v9965_v2  ;;  %7366 = vmatprep.subr.bf16.mxu0 %v9970_v16  ;;  %v9974_v2 = vld [vmem:[#allocation11 + $0x1c0] ss:$16 sps:$4 sm:$0xff]  }
 0x4d3   :  { %v12025_v42 = vunpack.c.l.b16 %v6328_v30  ;;  %v5935_v28 = vrot.slane %v5756_v61, 4  ;;  %v5757_v48 = vsel %vm5629_vm13, %v9268_v9, %v5693_v47  ;;  %vm5631_vm5 = vcmp.ge.f32.partialorder %v9300_v26, 0.0  ;;  %7452 = vmatprep.subr.bf16.mxu1 %v9973_v31  ;;  %v9977_v30 = vld [vmem:[#allocation11 + $0x1c8] ss:$16 sps:$4 sm:$0xff]   ;;  %v9985_v31 = vld [vmem:[#allocation11 + $0x1ec] ss:$16 sps:$4 sm:$0xff]  }
 0x4d4   :  { %v6329_v39 = vpack.c.bf16 %v5922_v58, %v5922_v58  ;;  %v5934_v27 = vadd.f32 %v5933_v36, %v5932_v13  ;;  %v5926_v40 = vadd.f32 %v5925_v29, %v5924_v6  ;;  %v5941_v34 = vrot.slane %v5757_v48, 4  ;;  %v9979_v6 = vld [vmem:[#allocation11 + $0x1cc] ss:$16 sps:$4 sm:$0xff]   ;;  %v9982_v29 = vld [vmem:[#allocation11 + $0x1e4] ss:$16 sps:$4 sm:$0xff]  }
 0x4d5   :  { %v5936_v18 = vadd.f32 %v5935_v28, %v5756_v61  ;;  %v5695_v25 = vmul.f32 0.2, %v9300_v26  ;;  %v9269_v52 = vadd.f32 %v11876_v11, %v11813_v46  ;;  %7367 = vmatpush1.bf16.msra.mxu0 %v9968_v24 }
 0x4d6   :  { %v6585_v9 = vunpack.c.l.b16 %v6329_v39  ;;  %v6331_v7 = vpack.c.bf16 %v5934_v27, %v5934_v27  ;;  %v5927_v43 = vrot.slane %v5926_v40, 1  ;;  %v5942_v5 = vadd.f32 %v5941_v34, %v5757_v48  ;;  %7453 = vmatpush1.bf16.msra.mxu1 %v9971_v10  ;;  %7368 = vmatprep.subr.bf16.mxu0 %v9976_v35  ;;  %v9980_v34 = vld [vmem:[#allocation11 + $0x1e0] ss:$16 sps:$4 sm:$0xff]  }
 0x4d7   :  { %v5937_v47 = vrot.slane %v5936_v18, 2  ;;  %v5759_v16 = vsel %vm5631_vm5, %v9300_v26, %v5695_v25  ;;  %vm5630_vm7 = vcmp.ge.f32.partialorder %v9269_v52, 0.0  ;;  %v5694_v13 = vmul.f32 0.2, %v9269_v52  ;;  %7454 = vmatprep.subr.bf16.mxu1 %v9979_v6 }
 0x4d8   :  { %v12033_v61 = vsel %vm6637_vm2, %v6585_v9, %v12017_v14  ;;  %v12035_v11 = vunpack.c.l.b16 %v6331_v7  ;;  %v5928_v58 = vadd.f32 %v5927_v43, %v5926_v40  ;;  %v5943_v36 = vrot.slane %v5942_v5, 2  ;;  %v9988_v7 = vld [vmem:[#allocation11 + $0x204] ss:$16 sps:$4 sm:$0xff]  }
 0x4d9   :  { %v5938_v28 = vadd.f32 %v5937_v47, %v5936_v18  ;;  %v5953_v24 = vrot.slane %v5759_v16, 4  ;;  %v5758_v48 = vsel %vm5630_vm7, %v9269_v52, %v5694_v13  ;;  %v9301_v26 = vadd.f32 %v11878_v22, %v11816_v59  ;;  %7369 = vmatpush1.bf16.msra.mxu0 %v9974_v2  ;;  %v9983_v18 = vld [vmem:[#allocation11 + $0x1e8] ss:$16 sps:$4 sm:$0xff]  }
 0x4da   :  { %v6330_v10 = vpack.c.bf16 %v5928_v58, %v5928_v58  ;;  %v5944_v39 = vadd.f32 %v5943_v36, %v5942_v5  ;;  %v5947_v27 = vrot.slane %v5758_v48, 4  ;;  %v9270_v14 = vadd.f32 %v11880_v32, %v11807_v63  ;;  %7455 = vmatpush1.bf16.msra.mxu1 %v9977_v30  ;;  %7370 = vmatprep.subr.bf16.mxu0 %v9982_v29  ;;  %v9991_v30 = vld [vmem:[#allocation11 + $0x20c] ss:$16 sps:$4 sm:$0xff]  }
 0x4db   :  { %v5939_v25 = vrot.slane %v5938_v28, 1  ;;  %v5954_v40 = vadd.f32 %v5953_v24, %v5759_v16  ;;  %vm5632_vm4 = vcmp.ge.f32.partialorder %v9301_v26, 0.0  ;;  %v5696_v35 = vmul.f32 0.2, %v9301_v26  ;;  %7456 = vmatprep.subr.bf16.mxu1 %v9985_v31 }
 0x4dc   :  { %v12041_v52 = vunpack.c.l.b16 %v6330_v10  ;;  %v5945_v22 = vrot.slane %v5944_v39, 1  ;;  %v5948_v9 = vadd.f32 %v5947_v27, %v5758_v48  ;;  %vm5633_vm14 = vcmp.ge.f32.partialorder %v9270_v14, 0.0 }
 0x4dd   :  { %v5940_v43 = vadd.f32 %v5939_v25, %v5938_v28  ;;  %v5955_v5 = vrot.slane %v5954_v40, 2  ;;  %v5760_v47 = vsel %vm5632_vm4, %v9301_v26, %v5696_v35  ;;  %v5697_v32 = vmul.f32 0.2, %v9270_v14  ;;  %7371 = vmatpush1.bf16.msra.mxu0 %v9980_v34 }
 0x4de   :  { %v5946_v2 = vadd.f32 %v5945_v22, %v5944_v39  ;;  %v5949_v13 = vrot.slane %v5948_v9, 2  ;;  %v5959_v6 = vrot.slane %v5760_v47, 4  ;;  %v9302_v16 = vadd.f32 %v11882_v44, %v11810_v12  ;;  %7457 = vmatpush1.bf16.msra.mxu1 %v9983_v18  ;;  %7383 = vmatprep.subr.bf16.mxu0 %v9988_v7 }
 0x4df   :  { %v6332_v58 = vpack.c.bf16 %v5940_v43, %v5940_v43  ;;  %v5956_v36 = vadd.f32 %v5955_v5, %v5954_v40  ;;  %v5761_v29 = vsel %vm5633_vm14, %v9270_v14, %v5697_v32  ;;  %v9271_v24 = vadd.f32 %v11884_v4, %v11813_v46  ;;  %7469 = vmatprep.subr.bf16.mxu1 %v9991_v30 }
 0x4e0   :  { %v6333_v48 = vpack.c.bf16 %v5946_v2, %v5946_v2  ;;  %v5950_v28 = vadd.f32 %v5949_v13, %v5948_v9  ;;  %v5960_v31 = vadd.f32 %v5959_v6, %v5760_v47  ;;  %v5965_v26 = vrot.slane %v5761_v29, 4 }
 0x4e1   :  { %v12047_v10 = vunpack.c.l.b16 %v6332_v58  ;;  %v5957_v39 = vrot.slane %v5956_v36, 1  ;;  %vm5635_vm8 = vcmp.ge.f32.partialorder %v9302_v16, 0.0  ;;  %v5699_v44 = vmul.f32 0.2, %v9302_v16 }
 0x4e2   :  { %v12049_v27 = vunpack.c.l.b16 %v6333_v48  ;;  %v5951_v34 = vrot.slane %v5950_v28, 1  ;;  %v5961_v25 = vrot.slane %v5960_v31, 2  ;;  %v5966_v14 = vadd.f32 %v5965_v26, %v5761_v29 }
 0x4e3   :  { %v5958_v40 = vadd.f32 %v5957_v39, %v5956_v36  ;;  %v5763_v35 = vsel %vm5635_vm8, %v9302_v16, %v5699_v44  ;;  %vm5634_vm9 = vcmp.ge.f32.partialorder %v9271_v24, 0.0  ;;  %v5698_v4 = vmul.f32 0.2, %v9271_v24 }
 0x4e4   :  { %v5952_v18 = vadd.f32 %v5951_v34, %v5950_v28  ;;  %v5962_v22 = vadd.f32 %v5961_v25, %v5960_v31  ;;  %v5967_v9 = vrot.slane %v5966_v14, 2  ;;  %v5977_v43 = vrot.slane %v5763_v35, 4 }
 0x4e5   :  { %v6335_v7 = vpack.c.bf16 %v5958_v40, %v5958_v40  ;;  %v5762_v5 = vsel %vm5634_vm9, %v9271_v24, %v5698_v4  ;;  %v9303_v47 = vadd.f32 %v11888_v54, %v11816_v59  ;;  %v9272_v32 = vadd.f32 %v11899_v0, %v11807_v63 }
 0x4e6   :  { %v6334_v2 = vpack.c.bf16 %v5952_v18, %v5952_v18  ;;  %v5963_v13 = vrot.slane %v5962_v22, 1  ;;  %v5968_v6 = vadd.f32 %v5967_v9, %v5966_v14  ;;  %v5978_v30 = vadd.f32 %v5977_v43, %v5763_v35 }
 0x4e7   :  { %v12055_v58 = vunpack.c.l.b16 %v6335_v7  ;;  %v5971_v16 = vrot.slane %v5762_v5, 4  ;;  %vm5636_vm12 = vcmp.ge.f32.partialorder %v9303_v47, 0.0  ;;  %v5700_v36 = vmul.f32 0.2, %v9303_v47 }
 0x4e8   :  { %v12057_v29 = vunpack.c.l.b16 %v6334_v2  ;;  %v5964_v48 = vadd.f32 %v5963_v13, %v5962_v22  ;;  %v5969_v28 = vrot.slane %v5968_v6, 1  ;;  %v5979_v24 = vrot.slane %v5978_v30, 2 }
 0x4e9   :  { %v5972_v31 = vadd.f32 %v5971_v16, %v5762_v5  ;;  %v5764_v26 = vsel %vm5636_vm12, %v9303_v47, %v5700_v36  ;;  %vm5637_vm15 = vcmp.ge.f32.partialorder %v9272_v32, 0.0  ;;  %v5701_v54 = vmul.f32 0.2, %v9272_v32 }
 0x4ea   :  { %v6336_v39 = vpack.c.bf16 %v5964_v48, %v5964_v48  ;;  %v5970_v0 = vadd.f32 %v5969_v28, %v5968_v6  ;;  %v5980_v44 = vadd.f32 %v5979_v24, %v5978_v30  ;;  %v5983_v34 = vrot.slane %v5764_v26, 4 }
 0x4eb   :  { %v5973_v25 = vrot.slane %v5972_v31, 2  ;;  %v5765_v14 = vsel %vm5637_vm15, %v9272_v32, %v5701_v54  ;;  %v9304_v40 = vadd.f32 %v11903_v19, %v11810_v12  ;;  %v9273_v35 = vadd.f32 %v11905_v62, %v11813_v46 }
 0x4ec   :  { %v12063_v4 = vunpack.c.l.b16 %v6336_v39  ;;  %v6337_v18 = vpack.c.bf16 %v5970_v0, %v5970_v0  ;;  %v5981_v22 = vrot.slane %v5980_v44, 1  ;;  %v5984_v9 = vadd.f32 %v5983_v34, %v5764_v26 }
 0x4ed   :  { %v5974_v43 = vadd.f32 %v5973_v25, %v5972_v31  ;;  %v5989_v7 = vrot.slane %v5765_v14, 4  ;;  %vm5639_vm1 = vcmp.ge.f32.partialorder %v9304_v40, 0.0  ;;  %v5703_v5 = vmul.f32 0.2, %v9304_v40 }
 0x4ee   :  { %v12065_v47 = vunpack.c.l.b16 %v6337_v18  ;;  %v5982_v2 = vadd.f32 %v5981_v22, %v5980_v44  ;;  %v5985_v13 = vrot.slane %v5984_v9, 2  ;;  %vm5638_vm3 = vcmp.ge.f32.partialorder %v9273_v35, 0.0 }
 0x4ef   :  { %v5975_v32 = vrot.slane %v5974_v43, 1  ;;  %v5990_v6 = vadd.f32 %v5989_v7, %v5765_v14  ;;  %v5767_v19 = vsel %vm5639_vm1, %v9304_v40, %v5703_v5  ;;  %v5702_v30 = vmul.f32 0.2, %v9273_v35 }
 0x4f0   :  { %v6339_v16 = vpack.c.bf16 %v5982_v2, %v5982_v2  ;;  %v5986_v62 = vadd.f32 %v5985_v13, %v5984_v9  ;;  %v6001_v36 = vrot.slane %v5767_v19, 4  ;;  %v9305_v48 = vadd.f32 %v11907_v15, %v11816_v59 }
 0x4f1   :  { %v12069_v28 = vadd.f32 %v5975_v32, %v5974_v43  ;;  %v5991_v24 = vrot.slane %v5990_v6, 2  ;;  %v5766_v31 = vsel %vm5638_vm3, %v9273_v35, %v5702_v30  ;;  %v9274_v26 = vadd.f32 %v11909_v3, %v11807_v63 }
 0x4f2   :  { %v12073_v54 = vunpack.c.l.b16 %v6339_v16  ;;  %v5987_v39 = vrot.slane %v5986_v62, 1  ;;  %v6002_v0 = vadd.f32 %v6001_v36, %v5767_v19  ;;  %v5995_v44 = vrot.slane %v5766_v31, 4 }
 0x4f3   :  { %v5992_v34 = vadd.f32 %v5991_v24, %v5990_v6  ;;  %vm5640_vm13 = vcmp.ge.f32.partialorder %v9305_v48, 0.0  ;;  %v5704_v25 = vmul.f32 0.2, %v9305_v48  ;;  %vm5641_vm5 = vcmp.ge.f32.partialorder %v9274_v26, 0.0 }
 0x4f4   :  { %v12075_v14 = vadd.f32 %v5987_v39, %v5986_v62  ;;  %v6003_v40 = vrot.slane %v6002_v0, 2  ;;  %v5996_v15 = vadd.f32 %v5995_v44, %v5766_v31  ;;  %v5705_v18 = vmul.f32 0.2, %v9274_v26 }
 0x4f5   :  { %v5993_v22 = vrot.slane %v5992_v34, 1  ;;  %v5768_v9 = vsel %vm5640_vm13, %v9305_v48, %v5704_v25  ;;  %v9306_v35 = vadd.f32 %v11912_v57, %v11810_v12  ;;  %v9275_v3 = vadd.f32 %v11914_v37, %v11813_v46 }
 0x4f6   :  { %v6004_v43 = vadd.f32 %v6003_v40, %v6002_v0  ;;  %v5997_v7 = vrot.slane %v5996_v15, 2  ;;  %v6007_v5 = vrot.slane %v5768_v9, 4  ;;  %v5769_v2 = vsel %vm5641_vm5, %v9274_v26, %v5705_v18 }
 0x4f7   :  { %v5994_v13 = vadd.f32 %v5993_v22, %v5992_v34  ;;  %v6013_v32 = vrot.slane %v5769_v2, 4  ;;  %vm5643_vm7 = vcmp.ge.f32.partialorder %v9306_v35, 0.0  ;;  %v5707_v6 = vmul.f32 0.2, %v9306_v35 }
 0x4f8   :  { %v6005_v19 = vrot.slane %v6004_v43, 1  ;;  %v5998_v30 = vadd.f32 %v5997_v7, %v5996_v15  ;;  %v6008_v16 = vadd.f32 %v6007_v5, %v5768_v9  ;;  %vm5642_vm4 = vcmp.ge.f32.partialorder %v9275_v3, 0.0 }
 0x4f9   :  { %v6341_v62 = vpack.c.bf16 %v5994_v13, %v5994_v13  ;;  %v6014_v36 = vadd.f32 %v6013_v32, %v5769_v2  ;;  %v5771_v48 = vsel %vm5643_vm7, %v9306_v35, %v5707_v6  ;;  %v5706_v24 = vmul.f32 0.2, %v9275_v3 }
 0x4fa   :  { %v6006_v57 = vadd.f32 %v6005_v19, %v6004_v43  ;;  %v5999_v31 = vrot.slane %v5998_v30, 1  ;;  %v6009_v39 = vrot.slane %v6008_v16, 2  ;;  %v6025_v37 = vrot.slane %v5771_v48, 4 }
 0x4fb   :  { %v6597_v0 = vunpack.c.l.b16 %v6341_v62  ;;  %v6015_v44 = vrot.slane %v6014_v36, 2  ;;  %v5770_v25 = vsel %vm5642_vm4, %v9275_v3, %v5706_v24  ;;  %v9307_v26 = vadd.f32 %v11920_v53, %v11816_v59 }
 0x4fc   :  { %v6343_v34 = vpack.c.bf16 %v6006_v57, %v6006_v57  ;;  %v6000_v40 = vadd.f32 %v5999_v31, %v5998_v30  ;;  %v6010_v18 = vadd.f32 %v6009_v39, %v6008_v16  ;;  %v6026_v15 = vadd.f32 %v6025_v37, %v5771_v48 }
 0x4fd   :  { %v6016_v22 = vadd.f32 %v6015_v44, %v6014_v36  ;;  %v6019_v9 = vrot.slane %v5770_v25, 4  ;;  %vm5644_vm14 = vcmp.ge.f32.partialorder %v9307_v26, 0.0  ;;  %v5708_v7 = vmul.f32 0.2, %v9307_v26 }
 0x4fe   :  { %v6599_v35 = vunpack.c.l.b16 %v6343_v34  ;;  %v6342_v5 = vpack.c.bf16 %v6000_v40, %v6000_v40  ;;  %v6011_v43 = vrot.slane %v6010_v18, 1  ;;  %v6027_v2 = vrot.slane %v6026_v15, 2 }
 0x4ff   :  { %v6017_v13 = vrot.slane %v6016_v22, 1  ;;  %v6020_v32 = vadd.f32 %v6019_v9, %v5770_v25  ;;  %v5772_v6 = vsel %vm5644_vm14, %v9307_v26, %v5708_v7  ;;  %v9276_v3 = vadd.f32 %v11924_v17, %v11807_v63 }
 0x500   :  { %v6598_v19 = vunpack.c.l.b16 %v6342_v5  ;;  %v6012_v53 = vadd.f32 %v6011_v43, %v6010_v18  ;;  %v6028_v62 = vadd.f32 %v6027_v2, %v6026_v15  ;;  %v6031_v30 = vrot.slane %v5772_v6, 4 }
 0x501   :  { %v6018_v16 = vadd.f32 %v6017_v13, %v6016_v22  ;;  %v6021_v48 = vrot.slane %v6020_v32, 2  ;;  %vm5645_vm8 = vcmp.ge.f32.partialorder %v9276_v3, 0.0  ;;  %v5709_v36 = vmul.f32 0.2, %v9276_v3 }
 0x502   :  { %v6344_v24 = vpack.c.bf16 %v6012_v53, %v6012_v53  ;;  %v6029_v57 = vrot.slane %v6028_v62, 1  ;;  %v6032_v31 = vadd.f32 %v6031_v30, %v5772_v6  ;;  %v9308_v39 = vadd.f32 %v11928_v56, %v11810_v12 }
 0x503   :  { %v6345_v37 = vpack.c.bf16 %v6018_v16, %v6018_v16  ;;  %v6022_v44 = vadd.f32 %v6021_v48, %v6020_v32  ;;  %v5773_v25 = vsel %vm5645_vm8, %v9276_v3, %v5709_v36  ;;  %v9277_v17 = vadd.f32 %v11930_v60, %v11813_v46 }
 0x504   :  { %v6600_v26 = vunpack.c.l.b16 %v6344_v24  ;;  %v6030_v34 = vadd.f32 %v6029_v57, %v6028_v62  ;;  %v6033_v40 = vrot.slane %v6032_v31, 2  ;;  %v6037_v18 = vrot.slane %v5773_v25, 4 }
 0x505   :  { %v6601_v15 = vunpack.c.l.b16 %v6345_v37  ;;  %v6023_v22 = vrot.slane %v6022_v44, 1  ;;  %vm5647_vm9 = vcmp.ge.f32.partialorder %v9308_v39, 0.0  ;;  %v5711_v9 = vmul.f32 0.2, %v9308_v39 }
 0x506   :  { %v6347_v7 = vpack.c.bf16 %v6030_v34, %v6030_v34  ;;  %v6034_v5 = vadd.f32 %v6033_v40, %v6032_v31  ;;  %v6038_v43 = vadd.f32 %v6037_v18, %v5773_v25  ;;  %vm5646_vm12 = vcmp.ge.f32.partialorder %v9277_v17, 0.0 }
 0x507   :  { %v6664_v56 = vsel %vm6629_vm10, %v6601_v15, %v6597_v0  ;;  %v6024_v2 = vadd.f32 %v6023_v22, %v6022_v44  ;;  %v5775_v13 = vsel %vm5647_vm9, %v9308_v39, %v5711_v9  ;;  %v5710_v32 = vmul.f32 0.2, %v9277_v17 }
 0x508   :  { %v6603_v6 = vunpack.c.l.b16 %v6347_v7  ;;  %v6035_v3 = vrot.slane %v6034_v5, 1  ;;  %v6039_v60 = vrot.slane %v6038_v43, 2  ;;  %v6049_v53 = vrot.slane %v5775_v13, 4 }
 0x509   :  { %v6346_v62 = vpack.c.bf16 %v6024_v2, %v6024_v2  ;;  %v5774_v30 = vsel %vm5646_vm12, %v9277_v17, %v5710_v32  ;;  %v9309_v16 = vadd.f32 %v11932_v50, %v11816_v59  ;;  %v9278_v48 = vadd.f32 %v11934_v51, %v11807_v63 }
 0x50a   :  { %v6678_v36 = vsel %vm6629_vm10, %v6603_v6, %v6599_v35  ;;  %v6036_v24 = vadd.f32 %v6035_v3, %v6034_v5  ;;  %v6040_v57 = vadd.f32 %v6039_v60, %v6038_v43  ;;  %v6050_v0 = vadd.f32 %v6049_v53, %v5775_v13 }
 0x50b   :  { %v6602_v31 = vunpack.c.l.b16 %v6346_v62  ;;  %v6043_v39 = vrot.slane %v5774_v30, 4  ;;  %vm5648_vm15 = vcmp.ge.f32.partialorder %v9309_v16, 0.0  ;;  %v5712_v37 = vmul.f32 0.2, %v9309_v16 }
 0x50c   :  { %v6348_v44 = vpack.c.bf16 %v6036_v24, %v6036_v24  ;;  %v6041_v25 = vrot.slane %v6040_v57, 1  ;;  %v6051_v34 = vrot.slane %v6050_v0, 2  ;;  %vm5649_vm1 = vcmp.ge.f32.partialorder %v9278_v48, 0.0 }
 0x50d   :  { %v6671_v17 = vsel %vm6629_vm10, %v6602_v31, %v6598_v19  ;;  %v6044_v40 = vadd.f32 %v6043_v39, %v5774_v30  ;;  %v5776_v50 = vsel %vm5648_vm15, %v9309_v16, %v5712_v37  ;;  %v5713_v18 = vmul.f32 0.2, %v9278_v48 }
 0x50e   :  { %v6604_v15 = vunpack.c.l.b16 %v6348_v44  ;;  %v6042_v51 = vadd.f32 %v6041_v25, %v6040_v57  ;;  %v6052_v22 = vadd.f32 %v6051_v34, %v6050_v0  ;;  %v6055_v35 = vrot.slane %v5776_v50, 4 }
 0x50f   :  { %v6045_v9 = vrot.slane %v6044_v40, 2  ;;  %v5777_v7 = vsel %vm5649_vm1, %v9278_v48, %v5713_v18  ;;  %v9310_v5 = vadd.f32 %v11938_v55, %v11810_v12  ;;  %v9279_v43 = vadd.f32 %v11940_v49, %v11813_v46 }
 0x510   :  { %v6685_v2 = vsel %vm6629_vm10, %v6604_v15, %v6600_v26  ;;  %v6349_v13 = vpack.c.bf16 %v6042_v51, %v6042_v51  ;;  %v6053_v32 = vrot.slane %v6052_v22, 1  ;;  %v6056_v19 = vadd.f32 %v6055_v35, %v5776_v50 }
 0x511   :  { %v6046_v6 = vadd.f32 %v6045_v9, %v6044_v40  ;;  %v6061_v3 = vrot.slane %v5777_v7, 4  ;;  %vm5651_vm3 = vcmp.ge.f32.partialorder %v9310_v5, 0.0  ;;  %v5715_v60 = vmul.f32 0.2, %v9310_v5 }
 0x512   :  { %v6605_v53 = vunpack.c.l.b16 %v6349_v13  ;;  %v6054_v62 = vadd.f32 %v6053_v32, %v6052_v22  ;;  %v6057_v30 = vrot.slane %v6056_v19, 2  ;;  %vm5650_vm13 = vcmp.ge.f32.partialorder %v9279_v43, 0.0 }
 0x513   :  { %v6047_v16 = vrot.slane %v6046_v6, 1  ;;  %v6062_v48 = vadd.f32 %v6061_v3, %v5777_v7  ;;  %v5779_v24 = vsel %vm5651_vm3, %v9310_v5, %v5715_v60  ;;  %v5714_v55 = vmul.f32 0.2, %v9279_v43 }
 0x514   :  { %v6665_v57 = vsel %vm6631_vm11, %v6605_v53, %v6664_v56  ;;  %v6351_v49 = vpack.c.bf16 %v6054_v62, %v6054_v62  ;;  %v6058_v0 = vadd.f32 %v6057_v30, %v6056_v19  ;;  %v6073_v26 = vrot.slane %v5779_v24, 4 }
 0x515   :  { %v6048_v31 = vadd.f32 %v6047_v16, %v6046_v6  ;;  %v6063_v39 = vrot.slane %v6062_v48, 2  ;;  %v5778_v37 = vsel %vm5650_vm13, %v9279_v43, %v5714_v55  ;;  %v9311_v44 = vadd.f32 %v11944_v23, %v11816_v59 }
 0x516   :  { %v6607_v25 = vunpack.c.l.b16 %v6351_v49  ;;  %v6059_v34 = vrot.slane %v6058_v0, 1  ;;  %v6074_v40 = vadd.f32 %v6073_v26, %v5779_v24  ;;  %v6067_v50 = vrot.slane %v5778_v37, 4 }
 0x517   :  { %v6350_v18 = vpack.c.bf16 %v6048_v31, %v6048_v31  ;;  %v6064_v15 = vadd.f32 %v6063_v39, %v6062_v48  ;;  %vm5652_vm10 = vcmp.ge.f32.partialorder %v9311_v44, 0.0  ;;  %v5716_v51 = vmul.f32 0.2, %v9311_v44 }
 0x518   :  { %v6679_v22 = vsel %vm6631_vm11, %v6607_v25, %v6678_v36  ;;  %v6060_v56 = vadd.f32 %v6059_v34, %v6058_v0  ;;  %v6075_v35 = vrot.slane %v6074_v40, 2  ;;  %v6068_v9 = vadd.f32 %v6067_v50, %v5778_v37 }
 0x519   :  { %v6606_v7 = vunpack.c.l.b16 %v6350_v18  ;;  %v6065_v5 = vrot.slane %v6064_v15, 1  ;;  %v5780_v13 = vsel %vm5652_vm10, %v9311_v44, %v5716_v51  ;;  %v9280_v43 = vadd.f32 %v11955_v45, %v11807_v63  ;;  %v12390_v45 = vld [vmem:[#allocation26_spill] sm:$0xff] }
 0x51a   :  { %v6352_v23 = vpack.c.bf16 %v6060_v56, %v6060_v56  ;;  %v6076_v32 = vadd.f32 %v6075_v35, %v6074_v40  ;;  %v6069_v19 = vrot.slane %v6068_v9, 2  ;;  %v6079_v6 = vrot.slane %v5780_v13, 4 }
 0x51b   :  { %v12108_v3 = vsel %vm6631_vm11, %v6606_v7, %v6671_v17  ;;  %v6066_v60 = vadd.f32 %v6065_v5, %v6064_v15  ;;  %vm5653_vm5 = vcmp.ge.f32.partialorder %v9280_v43, 0.0  ;;  %v5717_v53 = vmul.f32 0.2, %v9280_v43 }
 0x51c   :  { %v6608_v36 = vunpack.c.l.b16 %v6352_v23  ;;  %v6077_v62 = vrot.slane %v6076_v32, 1  ;;  %v6070_v30 = vadd.f32 %v6069_v19, %v6068_v9  ;;  %v6080_v16 = vadd.f32 %v6079_v6, %v5780_v13 }
 0x51d   :  { %v6353_v48 = vpack.c.bf16 %v6066_v60, %v6066_v60  ;;  %v5781_v24 = vsel %vm5653_vm5, %v9280_v43, %v5717_v53  ;;  %v9312_v55 = vadd.f32 %v11957_v8, %v11810_v12  ;;  %v9281_v49 = vadd.f32 %v12390_v45, %v11813_v46 }
 0x51e   :  { %v12115_v0 = vsel %vm6631_vm11, %v6608_v36, %v6685_v2  ;;  %v6078_v17 = vadd.f32 %v6077_v62, %v6076_v32  ;;  %v6071_v26 = vrot.slane %v6070_v30, 1  ;;  %v6081_v31 = vrot.slane %v6080_v16, 2 }
 0x51f   :  { %v6609_v39 = vunpack.c.l.b16 %v6353_v48  ;;  %v6085_v37 = vrot.slane %v5781_v24, 4  ;;  %vm5655_vm7 = vcmp.ge.f32.partialorder %v9312_v55, 0.0  ;;  %v5719_v44 = vmul.f32 0.2, %v9312_v55 }
 0x520   :  { %v6355_v25 = vpack.c.bf16 %v6078_v17, %v6078_v17  ;;  %v6072_v34 = vadd.f32 %v6071_v26, %v6070_v30  ;;  %v6082_v40 = vadd.f32 %v6081_v31, %v6080_v16  ;;  %vm5654_vm4 = vcmp.ge.f32.partialorder %v9281_v49, 0.0 }
 0x521   :  { %v6666_v50 = vsel %vm6633_vm6, %v6609_v39, %v6665_v57  ;;  %v6086_v8 = vadd.f32 %v6085_v37, %v5781_v24  ;;  %v5783_v18 = vsel %vm5655_vm7, %v9312_v55, %v5719_v44  ;;  %v5718_v15 = vmul.f32 0.2, %v9281_v49  ;;  %v12391_v37 = vld [vmem:[#allocation25_spill] sm:$0xff] }
 0x522   :  { %v6611_v51 = vunpack.c.l.b16 %v6355_v25  ;;  %v6354_v56 = vpack.c.bf16 %v6072_v34, %v6072_v34  ;;  %v6083_v2 = vrot.slane %v6082_v40, 1  ;;  %v6097_v35 = vrot.slane %v5783_v18, 4 }
 0x523   :  { %v6087_v9 = vrot.slane %v6086_v8, 2  ;;  %v5782_v7 = vsel %vm5654_vm4, %v9281_v49, %v5718_v15  ;;  %v9313_v5 = vadd.f32 %v11965_v33, %v11816_v59  ;;  %v9282_v13 = vadd.f32 %v11967_v38, %v11807_v63 }
 0x524   :  { %v12123_v43 = vsel %vm6633_vm6, %v6611_v51, %v6679_v22  ;;  %v12125_v23 = vunpack.c.l.b16 %v6354_v56  ;;  %v6084_v57 = vadd.f32 %v6083_v2, %v6082_v40  ;;  %v6098_v32 = vadd.f32 %v6097_v35, %v5783_v18 }
 0x525   :  { %v6088_v19 = vadd.f32 %v6087_v9, %v6086_v8  ;;  %v6091_v6 = vrot.slane %v5782_v7, 4  ;;  %vm5656_vm11 = vcmp.ge.f32.partialorder %v9313_v5, 0.0  ;;  %v5720_v60 = vmul.f32 0.2, %v9313_v5 }
 0x526   :  { %v6356_v53 = vpack.c.bf16 %v6084_v57, %v6084_v57  ;;  %v6099_v36 = vrot.slane %v6098_v32, 2  ;;  %vm5657_vm14 = vcmp.ge.f32.partialorder %v9282_v13, 0.0  ;;  %v5721_v62 = vmul.f32 0.2, %v9282_v13 }
 0x527   :  { %v6089_v30 = vrot.slane %v6088_v19, 1  ;;  %v6092_v33 = vadd.f32 %v6091_v6, %v5782_v7  ;;  %v5784_v16 = vsel %vm5656_vm11, %v9313_v5, %v5720_v60  ;;  %v9314_v38 = vadd.f32 %v11969_v41, %v11810_v12  ;;  %v12392_v41 = vld [vmem:[#allocation27_spill] sm:$0xff] }
 0x528   :  { %v12129_v22 = vunpack.c.l.b16 %v6356_v53  ;;  %v6100_v48 = vadd.f32 %v6099_v36, %v6098_v32  ;;  %v6103_v24 = vrot.slane %v5784_v16, 4  ;;  %v5785_v55 = vsel %vm5657_vm14, %v9282_v13, %v5721_v62 }
 0x529   :  { %v6090_v45 = vadd.f32 %v6089_v30, %v6088_v19  ;;  %v6093_v49 = vrot.slane %v6092_v33, 2  ;;  %v6109_v17 = vrot.slane %v5785_v55, 4  ;;  %vm5659_vm8 = vcmp.ge.f32.partialorder %v9314_v38, 0.0 }
 0x52a   :  { %v6101_v26 = vrot.slane %v6100_v48, 1  ;;  %v6104_v31 = vadd.f32 %v6103_v24, %v5784_v16  ;;  %v5723_v39 = vmul.f32 0.2, %v9314_v38  ;;  %v9283_v44 = vadd.f32 %v12391_v37, %v11813_v46 }
 0x52b   :  { %v6357_v25 = vpack.c.bf16 %v6090_v45, %v6090_v45  ;;  %v6094_v34 = vadd.f32 %v6093_v49, %v6092_v33  ;;  %v6110_v40 = vadd.f32 %v6109_v17, %v5785_v55  ;;  %v9315_v8 = vadd.f32 %v12392_v41, %v11816_v59  ;;  %v12393_v55 = vld [vmem:[#allocation32_spill] sm:$0xff]  ;;  %v12394_v49 = vld [vmem:[#allocation31_spill] sm:$0xff] }
 0x52c   :  { %v6102_v18 = vadd.f32 %v6101_v26, %v6100_v48  ;;  %v6105_v15 = vrot.slane %v6104_v31, 2  ;;  %v5787_v51 = vsel %vm5659_vm8, %v9314_v38, %v5723_v39  ;;  %vm5658_vm9 = vcmp.ge.f32.partialorder %v9283_v44, 0.0 }
 0x52d   :  { %v6613_v56 = vunpack.c.l.b16 %v6357_v25  ;;  %v6095_v2 = vrot.slane %v6094_v34, 1  ;;  %v6111_v35 = vrot.slane %v6110_v40, 2  ;;  %v6121_v9 = vrot.slane %v5787_v51, 4 }
 0x52e   :  { %v6359_v7 = vpack.c.bf16 %v6102_v18, %v6102_v18  ;;  %v6106_v5 = vadd.f32 %v6105_v15, %v6104_v31  ;;  %v5722_v13 = vmul.f32 0.2, %v9283_v44  ;;  %vm5660_vm12 = vcmp.ge.f32.partialorder %v9315_v8, 0.0 }
 0x52f   :  { %v6667_v57 = vsel %vm6635_vm0, %v6613_v56, %v6666_v50  ;;  %v6096_v32 = vadd.f32 %v6095_v2, %v6094_v34  ;;  %v6112_v19 = vadd.f32 %v6111_v35, %v6110_v40  ;;  %v6122_v6 = vadd.f32 %v6121_v9, %v5787_v51 }
 0x530   :  { %v12136_v60 = vunpack.c.l.b16 %v6359_v7  ;;  %v6107_v53 = vrot.slane %v6106_v5, 1  ;;  %v5786_v36 = vsel %vm5658_vm9, %v9283_v44, %v5722_v13  ;;  %v5724_v62 = vmul.f32 0.2, %v9315_v8  ;;  %v12395_v13 = vld [vmem:[#allocation23_spill] sm:$0xff] }
 0x531   :  { %v6358_v30 = vpack.c.bf16 %v6096_v32, %v6096_v32  ;;  %v6113_v33 = vrot.slane %v6112_v19, 1  ;;  %v6123_v16 = vrot.slane %v6122_v6, 2  ;;  %v6115_v38 = vrot.slane %v5786_v36, 4 }
 0x532   :  { %v6108_v48 = vadd.f32 %v6107_v53, %v6106_v5  ;;  %v5788_v24 = vsel %vm5660_vm12, %v9315_v8, %v5724_v62  ;;  %v9284_v45 = vadd.f32 %v12393_v55, %v11807_v63  ;;  %v9316_v50 = vadd.f32 %v12394_v49, %v11810_v12 }
 0x533   :  { %v12142_v17 = vunpack.c.l.b16 %v6358_v30  ;;  %v6114_v26 = vadd.f32 %v6113_v33, %v6112_v19  ;;  %v6124_v31 = vadd.f32 %v6123_v16, %v6122_v6  ;;  %v6116_v39 = vadd.f32 %v6115_v38, %v5786_v36  ;;  %v12396_v19 = vld [vmem:[#allocation33_spill] sm:$0xff] }
 0x534   :  { %v6360_v37 = vpack.c.bf16 %v6108_v48, %v6108_v48  ;;  %v6127_v44 = vrot.slane %v5788_v24, 4  ;;  %vm5661_vm15 = vcmp.ge.f32.partialorder %v9284_v45, 0.0  ;;  %v5725_v25 = vmul.f32 0.2, %v9284_v45 }
 0x535   :  { %v6361_v34 = vpack.c.bf16 %v6114_v26, %v6114_v26  ;;  %v6125_v40 = vrot.slane %v6124_v31, 1  ;;  %v6117_v41 = vrot.slane %v6116_v39, 2  ;;  %vm5663_vm1 = vcmp.ge.f32.partialorder %v9316_v50, 0.0 }
 0x536   :  { %v12144_v8 = vunpack.c.l.b16 %v6360_v37  ;;  %v6128_v18 = vadd.f32 %v6127_v44, %v5788_v24  ;;  %v5789_v15 = vsel %vm5661_vm15, %v9284_v45, %v5725_v25  ;;  %v5727_v51 = vmul.f32 0.2, %v9316_v50  ;;  %v12397_v37 = vld [vmem:[#allocation22_spill] sm:$0xff] }
 0x537   :  { %v6617_v56 = vunpack.c.l.b16 %v6361_v34  ;;  %v6126_v2 = vadd.f32 %v6125_v40, %v6124_v31  ;;  %v6118_v35 = vadd.f32 %v6117_v41, %v6116_v39  ;;  %v6133_v9 = vrot.slane %v5789_v15, 4  ;;  %v12398_v41 = vld [vmem:[#allocation20_spill] sm:$0xff] }
 0x538   :  { %v6129_v7 = vrot.slane %v6128_v18, 2  ;;  %v5791_v5 = vsel %vm5663_vm1, %v9316_v50, %v5727_v51  ;;  %v9285_v32 = vadd.f32 %v12395_v13, %v11813_v46  ;;  %v9317_v6 = vadd.f32 %v12396_v19, %v11816_v59 }
 0x539   :  { %v12151_v53 = vsel %vm6637_vm2, %v6617_v56, %v6667_v57  ;;  %v6363_v36 = vpack.c.bf16 %v6126_v2, %v6126_v2  ;;  %v6119_v62 = vrot.slane %v6118_v35, 1  ;;  %v6134_v30 = vadd.f32 %v6133_v9, %v5789_v15 }
 0x53a   :  { %v6130_v33 = vadd.f32 %v6129_v7, %v6128_v18  ;;  %v6145_v16 = vrot.slane %v5791_v5, 4  ;;  %vm5662_vm3 = vcmp.ge.f32.partialorder %v9285_v32, 0.0  ;;  %v5726_v38 = vmul.f32 0.2, %v9285_v32 }
 0x53b   :  { %v12153_v48 = vunpack.c.l.b16 %v6363_v36  ;;  %v6120_v24 = vadd.f32 %v6119_v62, %v6118_v35  ;;  %v6135_v55 = vrot.slane %v6134_v30, 2  ;;  %vm5664_vm13 = vcmp.ge.f32.partialorder %v9317_v6, 0.0 }
 0x53c   :  { %v6131_v45 = vrot.slane %v6130_v33, 1  ;;  %v6146_v49 = vadd.f32 %v6145_v16, %v5791_v5  ;;  %v5790_v50 = vsel %vm5662_vm3, %v9285_v32, %v5726_v38  ;;  %v5728_v26 = vmul.f32 0.2, %v9317_v6 }
 0x53d   :  { %v6362_v31 = vpack.c.bf16 %v6120_v24, %v6120_v24  ;;  %v6136_v39 = vadd.f32 %v6135_v55, %v6134_v30  ;;  %v6139_v57 = vrot.slane %v5790_v50, 4  ;;  %v9286_v44 = vadd.f32 %v12397_v37, %v11807_v63  ;;  %v12399_v55 = vld [vmem:[#allocation34_spill] sm:$0xff] }
 0x53e   :  { %v6132_v25 = vadd.f32 %v6131_v45, %v6130_v33  ;;  %v6147_v34 = vrot.slane %v6146_v49, 2  ;;  %v5792_v40 = vsel %vm5664_vm13, %v9317_v6, %v5728_v26  ;;  %v9318_v18 = vadd.f32 %v12398_v41, %v11810_v12 }
 0x53f   :  { %v12159_v15 = vunpack.c.l.b16 %v6362_v31  ;;  %v6137_v51 = vrot.slane %v6136_v39, 1  ;;  %v6140_v56 = vadd.f32 %v6139_v57, %v5790_v50  ;;  %v6151_v2 = vrot.slane %v5792_v40, 4 }
 0x540   :  { %v6364_v35 = vpack.c.bf16 %v6132_v25, %v6132_v25  ;;  %v6148_v9 = vadd.f32 %v6147_v34, %v6146_v49  ;;  %vm5665_vm10 = vcmp.ge.f32.partialorder %v9286_v44, 0.0  ;;  %v5729_v7 = vmul.f32 0.2, %v9286_v44 }
 0x541   :  { %v6138_v5 = vadd.f32 %v6137_v51, %v6136_v39  ;;  %v6141_v13 = vrot.slane %v6140_v56, 2  ;;  %v6152_v32 = vadd.f32 %v6151_v2, %v5792_v40  ;;  %vm5667_vm5 = vcmp.ge.f32.partialorder %v9318_v18, 0.0 }
 0x542   :  { %v12161_v63 = vunpack.c.l.b16 %v6364_v35  ;;  %v6149_v19 = vrot.slane %v6148_v9, 1  ;;  %v5793_v6 = vsel %vm5665_vm10, %v9286_v44, %v5729_v7  ;;  %v5731_v36 = vmul.f32 0.2, %v9318_v18 }
 0x543   :  { %v6365_v62 = vpack.c.bf16 %v6138_v5, %v6138_v5  ;;  %v6142_v12 = vadd.f32 %v6141_v13, %v6140_v56  ;;  %v6153_v30 = vrot.slane %v6152_v32, 2  ;;  %v6157_v33 = vrot.slane %v5793_v6, 4 }
 0x544   :  { %v6150_v16 = vadd.f32 %v6149_v19, %v6148_v9  ;;  %v5795_v38 = vsel %vm5667_vm5, %v9318_v18, %v5731_v36  ;;  %v9287_v24 = vadd.f32 %v12004_v1, %v11813_v46  ;;  %v9319_v45 = vadd.f32 %v12399_v55, %v11816_v59 }
 0x545   :  { %v6621_v49 = vunpack.c.l.b16 %v6365_v62  ;;  %v6143_v50 = vrot.slane %v6142_v12, 1  ;;  %v6154_v26 = vadd.f32 %v6153_v30, %v6152_v32  ;;  %v6158_v31 = vadd.f32 %v6157_v33, %v5793_v6  ;;  %v12400_v33 = vld [vmem:[#allocation24_spill] sm:$0xff] }
 0x546   :  { %v6367_v39 = vpack.c.bf16 %v6150_v16, %v6150_v16  ;;  %v6169_v57 = vrot.slane %v5795_v38, 4  ;;  %vm5666_vm7 = vcmp.ge.f32.partialorder %v9287_v24, 0.0  ;;  %v5730_v37 = vmul.f32 0.2, %v9287_v24  ;;  %v12401_v16 = vld [vmem:[#allocation29_spill] sm:$0xff] }
 0x547   :  { %v6144_v44 = vadd.f32 %v6143_v50, %v6142_v12  ;;  %v6155_v25 = vrot.slane %v6154_v26, 1  ;;  %v6159_v34 = vrot.slane %v6158_v31, 2  ;;  %vm5668_vm4 = vcmp.ge.f32.partialorder %v9319_v45, 0.0 }
 0x548   :  { %v12167_v40 = vunpack.c.l.b16 %v6367_v39  ;;  %v6170_v41 = vadd.f32 %v6169_v57, %v5795_v38  ;;  %v5794_v18 = vsel %vm5666_vm7, %v9287_v24, %v5730_v37  ;;  %v5732_v46 = vmul.f32 0.2, %v9319_v45 }
 0x549   :  { %v6366_v1 = vpack.c.bf16 %v6144_v44, %v6144_v44  ;;  %v6156_v51 = vadd.f32 %v6155_v25, %v6154_v26  ;;  %v6160_v59 = vadd.f32 %v6159_v34, %v6158_v31  ;;  %v6163_v56 = vrot.slane %v5794_v18, 4 }
 0x54a   :  { %v6171_v2 = vrot.slane %v6170_v41, 2  ;;  %v5796_v35 = vsel %vm5668_vm4, %v9319_v45, %v5732_v46  ;;  %v6338_v9 = vpack.c.bf16 %v12069_v28, %v12069_v28  ;;  %vm6639_vm11 = vcmask 1046534  }
 0x54b   :  { %v6622_v7 = vunpack.c.l.b16 %v6366_v1  ;;  %v6368_v5 = vpack.c.bf16 %v6156_v51, %v6156_v51  ;;  %v6161_v13 = vrot.slane %v6160_v59, 1  ;;  %v6164_v32 = vadd.f32 %v6163_v56, %v5794_v18 }
 0x54c   :  { %v6172_v19 = vadd.f32 %v6171_v2, %v6170_v41  ;;  %v6175_v6 = vrot.slane %v5796_v35, 4  ;;  %v6594_v36 = vunpack.c.l.b16 %v6338_v9  ;;  %vm6641_vm14 = vcmask 1047559   ;;  %v12402_v2 = vld [vmem:[#allocation28_spill] sm:$0xff] }
 0x54d   :  { %v6624_v62 = vunpack.c.l.b16 %v6368_v5  ;;  %v6162_v12 = vadd.f32 %v6161_v13, %v6160_v59  ;;  %v6165_v30 = vrot.slane %v6164_v32, 2  ;;  %v6645_v38 = vsel %vm6633_vm6, %v12401_v16, %v12400_v33  ;;  %v12404_v5 = vld [vmem:[#allocation30_spill] sm:$0xff]  ;;  %v9994_v16 = vld [vmem:[#allocation11 + $0x224] ss:$16 sps:$4 sm:$0xff]  }
 0x54e   :  { %v6173_v24 = vrot.slane %v6172_v19, 1  ;;  %v6176_v55 = vadd.f32 %v6175_v6, %v5796_v35  ;;  %v6646_v28 = vsel %vm6635_vm0, %v12023_v20, %v6645_v38  ;;  %v6673_v45 = vsel %vm6633_vm6, %v12125_v23, %v12108_v3  ;;  %v12403_v35 = vld [vmem:[#allocation35_spill] sm:$0xff] }
 0x54f   :  { %v6369_v50 = vpack.c.bf16 %v6162_v12, %v6162_v12  ;;  %v6166_v26 = vadd.f32 %v6165_v30, %v6164_v32  ;;  %v6647_v31 = vsel %vm6637_vm2, %v12041_v52, %v6646_v28  ;;  %v6674_v39 = vsel %vm6635_vm0, %v12142_v17, %v6673_v45  ;;  %v9986_v12 = vld [vmem:[#allocation11 + $0x200] ss:$16 sps:$4 sm:$0xff]   ;;  %v10001_v45 = vld [vmem:[#allocation11 + $0x248] ss:$16 sps:$4 sm:$0xff]  }
 0x550   :  { %v6174_v57 = vadd.f32 %v6173_v24, %v6172_v19  ;;  %v6177_v37 = vrot.slane %v6176_v55, 2  ;;  %v6648_v44 = vsel %vm6639_vm11, %v12057_v29, %v6647_v31  ;;  %v6675_v20 = vsel %vm6637_vm2, %v12159_v15, %v6674_v39  ;;  %v9992_v24 = vld [vmem:[#allocation11 + $0x220] ss:$16 sps:$4 sm:$0xff]   ;;  %v10007_v39 = vld [vmem:[#allocation11 + $0x268] ss:$16 sps:$4 sm:$0xff]  }
 0x551   :  { %v6625_v25 = vunpack.c.l.b16 %v6369_v50  ;;  %v6167_v34 = vrot.slane %v6166_v26, 1  ;;  %v6649_v3 = vsel %vm6641_vm14, %v6594_v36, %v6648_v44  ;;  %v6676_v23 = vsel %vm6639_vm11, %v6622_v7, %v6675_v20  ;;  %v9998_v28 = vld [vmem:[#allocation11 + $0x240] ss:$16 sps:$4 sm:$0xff]   ;;  %v10006_v50 = vld [vmem:[#allocation11 + $0x264] ss:$16 sps:$4 sm:$0xff]  }
 0x552   :  { %v6371_v41 = vpack.c.bf16 %v6174_v57, %v6174_v57  ;;  %v6178_v18 = vadd.f32 %v6177_v37, %v6176_v55  ;;  %v6640_v52 = vsel %vm6639_vm11, %v12049_v27, %v12033_v61  ;;  %v6669_v17 = vsel %vm6639_vm11, %v6621_v49, %v12151_v53  ;;  %v10003_v55 = vld [vmem:[#allocation11 + $0x24c] ss:$16 sps:$4 sm:$0xff]   ;;  %v10004_v31 = vld [vmem:[#allocation11 + $0x260] ss:$16 sps:$4 sm:$0xff]   ;;  %v10012_v57 = vld [vmem:[#allocation11 + $0x284] ss:$16 sps:$4 sm:$0xff]  }
 0x553   :  { %v6168_v46 = vadd.f32 %v6167_v34, %v6166_v26  ;;  %v6642_v29 = vsel %vm6641_vm14, %v12065_v47, %v6640_v52  ;;  %v6670_v15 = vsel %vm6641_vm14, %v6625_v25, %v6669_v17  ;;  %v6340_v1 = vpack.c.bf16 %v12075_v14, %v12075_v14  ;;  %v10009_v26 = vld [vmem:[#allocation11 + $0x26c] ss:$16 sps:$4 sm:$0xff]   ;;  %v10010_v44 = vld [vmem:[#allocation11 + $0x280] ss:$16 sps:$4 sm:$0xff]   ;;  %v10013_v20 = vld [vmem:[#allocation11 + $0x288] ss:$16 sps:$4 sm:$0xff]  }
 0x554   :  { %v6627_v51 = vunpack.c.l.b16 %v6371_v41  ;;  %v6179_v59 = vrot.slane %v6178_v18, 1  ;;  %v6692_v56 = vpack.c.b16 %v6670_v15, %v6642_v29  ;;  %v6659_v9 = vsel %vm6633_vm6, %v12403_v35, %v12402_v2  ;;  %v10015_v37 = vld [vmem:[#allocation11 + $0x28c] ss:$16 sps:$4 sm:$0xff]   ;;  %v10018_v25 = vld [vmem:[#allocation11 + $0x2a4] ss:$16 sps:$4 sm:$0xff]  }
 0x555   :  { %v6370_v61 = vpack.c.bf16 %v6168_v46, %v6168_v46  ;;  %v6596_v27 = vunpack.c.l.b16 %v6340_v1  ;;  %v6660_v53 = vsel %vm6635_vm0, %v12025_v42, %v6659_v9  ;;  %v6687_v47 = vsel %vm6633_vm6, %v12129_v22, %v12115_v0  ;;  %v10021_v34 = vld [vmem:[#allocation11 + $0x2ac] ss:$16 sps:$4 sm:$0xff]   ;;  %v10024_v41 = vld [vmem:[#allocation11 + $0x2c4] ss:$16 sps:$4 sm:$0xff]   ;;  %v10022_v52 = vld [vmem:[#allocation11 + $0x2c0] ss:$16 sps:$4 sm:$0xff]  }
 0x556   :  { %v6180_v49 = vadd.f32 %v6179_v59, %v6178_v18  ;;  %v6661_v14 = vsel %vm6637_vm2, %v12047_v10, %v6660_v53  ;;  %v6688_v7 = vsel %vm6635_vm0, %v12144_v8, %v6687_v47  ;;  %v6653_v13 = vsel %vm6635_vm0, %v12013_v21, %v12404_v5  ;;  %v10027_v18 = vld [vmem:[#allocation11 + $0x2cc] ss:$16 sps:$4 sm:$0xff]   ;;  %v10025_v17 = vld [vmem:[#allocation11 + $0x2c8] ss:$16 sps:$4 sm:$0xff]   ;;  %v10030_v46 = vld [vmem:[#allocation11 + $0x2e4] ss:$16 sps:$4 sm:$0xff]  }
 0x557   :  { %v6626_v32 = vunpack.c.l.b16 %v6370_v61  ;;  %v6662_v19 = vsel %vm6639_vm11, %v12063_v4, %v6661_v14  ;;  %v6689_v42 = vsel %vm6637_vm2, %v12161_v63, %v6688_v7  ;;  %v6654_v0 = vsel %vm6637_vm2, %v12035_v11, %v6653_v13  ;;  %v9989_v11 = vld [vmem:[#allocation11 + $0x208] ss:$16 sps:$4 sm:$0xff]   ;;  %v10033_v29 = vld [vmem:[#allocation11 + $0x2ec] ss:$16 sps:$4 sm:$0xff]   ;;  %v10028_v15 = vld [vmem:[#allocation11 + $0x2e0] ss:$16 sps:$4 sm:$0xff]  }
 0x558   :  { %v6372_v22 = vpack.c.bf16 %v6180_v49, %v6180_v49  ;;  %v6663_v10 = vsel %vm6641_vm14, %v6596_v27, %v6662_v19  ;;  %v6690_v6 = vsel %vm6639_vm11, %v6624_v62, %v6689_v42  ;;  %v6655_v8 = vsel %vm6639_vm11, %v12055_v58, %v6654_v0  ;;  %v10031_v1 = vld [vmem:[#allocation11 + $0x2e8] ss:$16 sps:$4 sm:$0xff]   ;;  %v10039_v59 = vld [vmem:[#allocation11 + $0x30c] ss:$16 sps:$4 sm:$0xff]   ;;  %v10042_v35 = vld [vmem:[#allocation11 + $0x324] ss:$16 sps:$4 sm:$0xff]  }
 0x559   :  { %v6677_v21 = vsel %vm6641_vm14, %v6626_v32, %v6676_v23  ;;  %v6656_v36 = vsel %vm6641_vm14, %v12073_v54, %v6655_v8  ;;  %v6681_v4 = vsel %vm6635_vm0, %v12136_v60, %v12123_v43  ;;  %v9997_v54 = vld [vmem:[#allocation11 + $0x22c] ss:$16 sps:$4 sm:$0xff]   ;;  %v10019_v23 = vld [vmem:[#allocation11 + $0x2a8] ss:$16 sps:$4 sm:$0xff]   ;;  %v10040_v61 = vld [vmem:[#allocation11 + $0x320] ss:$16 sps:$4 sm:$0xff]  }
 0x55a   :  { %v6693_v63 = vpack.c.b16 %v6677_v21, %v6649_v3  ;;  %v6628_v30 = vunpack.c.l.b16 %v6372_v22  ;;  %v6682_v33 = vsel %vm6637_vm2, %v12153_v48, %v6681_v4  ;;  %v9995_v48 = vld [vmem:[#allocation11 + $0x228] ss:$16 sps:$4 sm:$0xff]   ;;  %v10016_v3 = vld [vmem:[#allocation11 + $0x2a0] ss:$16 sps:$4 sm:$0xff]   ;;  %v10045_v9 = vld [vmem:[#allocation11 + $0x32c] ss:$16 sps:$4 sm:$0xff]  }
 0x55b   :  { %v6683_v62 = vsel %vm6639_vm11, %v12167_v40, %v6682_v33  ;;  %v10000_v40 = vld [vmem:[#allocation11 + $0x244] ss:$16 sps:$4 sm:$0xff]   ;;  %v10037_v2 = vld [vmem:[#allocation11 + $0x308] ss:$16 sps:$4 sm:$0xff]   ;;  %v10051_v47 = vld [vmem:[#allocation11 + $0x34c] ss:$16 sps:$4 sm:$0xff]  }
 0x55c   :  { %7372 = vmatprep.mubr.bf16.mxu0 %v6693_v63  ;;  %7458 = vmatprep.mubr.bf16.mxu1 %v6693_v63  ;;  %v6691_v58 = vsel %vm6641_vm14, %v6628_v30, %v6690_v6  ;;  %v6684_v38 = vsel %vm6641_vm14, %v6627_v51, %v6683_v62  ;;  %v10036_v51 = vld [vmem:[#allocation11 + $0x304] ss:$16 sps:$4 sm:$0xff]   ;;  %v10043_v27 = vld [vmem:[#allocation11 + $0x328] ss:$16 sps:$4 sm:$0xff]   ;;  %v10046_v49 = vld [vmem:[#allocation11 + $0x340] ss:$16 sps:$4 sm:$0xff]  }
 0x55d   :  { %7373 = vmatmul.mubr.bf16.vlgmr.msra.gmra.mrb[72].mxu0 %v6692_v56  ;;  %7459 = vmatmul.mubr.bf16.vlgmr.msra.gmra.mrb[72].mxu1 %v6692_v56  ;;  %v6695_v43 = vpack.c.b16 %v6691_v58, %v6663_v10  ;;  %v12236_v60 = vpack.c.b16 %v6684_v38, %v6656_v36  ;;  %v10034_v56 = vld [vmem:[#allocation11 + $0x300] ss:$16 sps:$4 sm:$0xff]   ;;  %v10048_v53 = vld [vmem:[#allocation11 + $0x344] ss:$16 sps:$4 sm:$0xff]   ;;  %v10049_v14 = vld [vmem:[#allocation11 + $0x348] ss:$16 sps:$4 sm:$0xff]  }
 0x55e   :  { %7384 = vmatpush1.bf16.msra.mxu0 %v9986_v12  ;;  %7470 = vmatpush1.bf16.msra.mxu1 %v9989_v11  ;;  %v10054_v7 = vld [vmem:[#allocation11 + $0x364] ss:$16 sps:$4 sm:$0xff]   ;;  %v10057_v5 = vld [vmem:[#allocation11 + $0x36c] ss:$16 sps:$4 sm:$0xff]   ;;  %v10052_v13 = vld [vmem:[#allocation11 + $0x360] ss:$16 sps:$4 sm:$0xff]  }
 0x55f   :  { %7415 = vmatprep.mubr.bf16.mxu0 %v6695_v43  ;;  %7501 = vmatprep.mubr.bf16.mxu1 %v6695_v43  ;;  %v10055_v32 = vld [vmem:[#allocation11 + $0x368] ss:$16 sps:$4 sm:$0xff]   ;;  %v10060_v19 = vld [vmem:[#allocation11 + $0x384] ss:$16 sps:$4 sm:$0xff]   ;;  %v10063_v42 = vld [vmem:[#allocation11 + $0x38c] ss:$16 sps:$4 sm:$0xff]  }
 0x560   :  { %7385 = vmatprep.subr.bf16.mxu0 %v9994_v16  ;;  %7471 = vmatprep.subr.bf16.mxu1 %v9997_v54  ;;  %v10058_v0 = vld [vmem:[#allocation11 + $0x380] ss:$16 sps:$4 sm:$0xff]   ;;  %v10061_v22 = vld [vmem:[#allocation11 + $0x388] ss:$16 sps:$4 sm:$0xff]   ;;  %v10066_v10 = vld [vmem:[#allocation11 + $0x3a4] ss:$16 sps:$4 sm:$0xff]  }
 0x561   :  { %v10069_v6 = vld [vmem:[#allocation11 + $0x3ac] ss:$16 sps:$4 sm:$0xff]   ;;  %v10064_v8 = vld [vmem:[#allocation11 + $0x3a0] ss:$16 sps:$4 sm:$0xff]   ;;  %v10067_v21 = vld [vmem:[#allocation11 + $0x3a8] ss:$16 sps:$4 sm:$0xff]  }
 0x562   :  { %7386 = vmatpush1.bf16.msra.mxu0 %v9992_v24  ;;  %7472 = vmatpush1.bf16.msra.mxu1 %v9995_v48  ;;  %v10072_v36 = vld [vmem:[#allocation11 + $0x3c4] ss:$16 sps:$4 sm:$0xff]   ;;  %v10075_v4 = vld [vmem:[#allocation11 + $0x3cc] ss:$16 sps:$4 sm:$0xff]   ;;  %v10070_v63 = vld [vmem:[#allocation11 + $0x3c0] ss:$16 sps:$4 sm:$0xff]  }
 0x563   :  { %7387 = vmatprep.subr.bf16.mxu0 %v10000_v40  ;;  %7473 = vmatprep.subr.bf16.mxu1 %v10003_v55  ;;  %v10073_v12 = vld [vmem:[#allocation11 + $0x3c8] ss:$16 sps:$4 sm:$0xff]   ;;  %v10078_v11 = vld [vmem:[#allocation11 + $0x3e4] ss:$16 sps:$4 sm:$0xff]   ;;  %v10081_v30 = vld [vmem:[#allocation11 + $0x3ec] ss:$16 sps:$4 sm:$0xff]  }
 0x564   :  { %v10076_v33 = vld [vmem:[#allocation11 + $0x3e0] ss:$16 sps:$4 sm:$0xff]   ;;  %v10079_v62 = vld [vmem:[#allocation11 + $0x3e8] ss:$16 sps:$4 sm:$0xff]   ;;  %v10084_v58 = vld [vmem:[#allocation10 + $0x4] ss:$16 sps:$4 sm:$0xff]  }
 0x565   :  { %v10087_v16 = vld [vmem:[#allocation10 + $0xc] ss:$16 sps:$4 sm:$0xff]   ;;  %v10082_v54 = vld [vmem:[#allocation10] ss:$16 sps:$4 sm:$0xff]   ;;  %v10085_v38 = vld [vmem:[#allocation10 + $0x8] ss:$16 sps:$4 sm:$0xff]  }
 0x566   :  { %7388 = vmatpush1.bf16.msra.mxu0 %v9998_v28  ;;  %7474 = vmatpush1.bf16.msra.mxu1 %v10001_v45  ;;  %v10090_v43 = vld [vmem:[#allocation10 + $0x24] ss:$16 sps:$4 sm:$0xff]   ;;  %v10093_v24 = vld [vmem:[#allocation10 + $0x2c] ss:$16 sps:$4 sm:$0xff]   ;;  %v10088_v48 = vld [vmem:[#allocation10 + $0x20] ss:$16 sps:$4 sm:$0xff]  }
 0x567   :  { %7389 = vmatprep.subr.bf16.mxu0 %v10006_v50  ;;  %7475 = vmatprep.subr.bf16.mxu1 %v10009_v26  ;;  %v10091_v40 = vld [vmem:[#allocation10 + $0x28] ss:$16 sps:$4 sm:$0xff]   ;;  %v10096_v55 = vld [vmem:[#allocation10 + $0x44] ss:$16 sps:$4 sm:$0xff]   ;;  %v10099_v28 = vld [vmem:[#allocation10 + $0x4c] ss:$16 sps:$4 sm:$0xff]  }
 0x568   :  { %v10281_v45 = vld [vmem:[#allocation2 + $0x4] ss:$16 sps:$4 sm:$0xff]   ;;  %v10094_v50 = vld [vmem:[#allocation10 + $0x40] ss:$16 sps:$4 sm:$0xff]   ;;  %v10097_v26 = vld [vmem:[#allocation10 + $0x48] ss:$16 sps:$4 sm:$0xff]  }
 0x56a   :  { %7390 = vmatpush1.bf16.msra.mxu0 %v10004_v31  ;;  %7476 = vmatpush1.bf16.msra.mxu1 %v10007_v39  ;;  %v10102_v31 = vld [vmem:[#allocation10 + $0x64] ss:$16 sps:$4 sm:$0xff]   ;;  %v10105_v39 = vld [vmem:[#allocation10 + $0x6c] ss:$16 sps:$4 sm:$0xff]  }
 0x56b   :  { %7391 = vmatprep.subr.bf16.mxu0 %v10012_v57  ;;  %7477 = vmatprep.subr.bf16.mxu1 %v10015_v37  ;;  %v10103_v57 = vld [vmem:[#allocation10 + $0x68] ss:$16 sps:$4 sm:$0xff]   ;;  %v10108_v37 = vld [vmem:[#allocation10 + $0x84] ss:$16 sps:$4 sm:$0xff]  }
 0x56e   :  { %7392 = vmatpush1.bf16.msra.mxu0 %v10010_v44  ;;  %7478 = vmatpush1.bf16.msra.mxu1 %v10013_v20  ;;  %v10111_v44 = vld [vmem:[#allocation10 + $0x8c] ss:$16 sps:$4 sm:$0xff]   ;;  %v10106_v20 = vld [vmem:[#allocation10 + $0x80] ss:$16 sps:$4 sm:$0xff]  }
 0x56f   :  { %7393 = vmatprep.subr.bf16.mxu0 %v10018_v25  ;;  %7479 = vmatprep.subr.bf16.mxu1 %v10021_v34  ;;  %v10109_v25 = vld [vmem:[#allocation10 + $0x88] ss:$16 sps:$4 sm:$0xff]   ;;  %v10114_v34 = vld [vmem:[#allocation10 + $0xa4] ss:$16 sps:$4 sm:$0xff]  }
 0x572   :  { %7394 = vmatpush1.bf16.msra.mxu0 %v10016_v3  ;;  %7480 = vmatpush1.bf16.msra.mxu1 %v10019_v23  ;;  %v10117_v3 = vld [vmem:[#allocation10 + $0xac] ss:$16 sps:$4 sm:$0xff]   ;;  %v10112_v23 = vld [vmem:[#allocation10 + $0xa0] ss:$16 sps:$4 sm:$0xff]  }
 0x573   :  { %7395 = vmatprep.subr.bf16.mxu0 %v10024_v41  ;;  %7481 = vmatprep.subr.bf16.mxu1 %v10027_v18  ;;  %v10115_v41 = vld [vmem:[#allocation10 + $0xa8] ss:$16 sps:$4 sm:$0xff]   ;;  %v10120_v18 = vld [vmem:[#allocation10 + $0xc4] ss:$16 sps:$4 sm:$0xff]  }
 0x576   :  { %7396 = vmatpush1.bf16.msra.mxu0 %v10022_v52  ;;  %7482 = vmatpush1.bf16.msra.mxu1 %v10025_v17  ;;  %v10123_v52 = vld [vmem:[#allocation10 + $0xcc] ss:$16 sps:$4 sm:$0xff]   ;;  %v10118_v17 = vld [vmem:[#allocation10 + $0xc0] ss:$16 sps:$4 sm:$0xff]  }
 0x577   :  { %7397 = vmatprep.subr.bf16.mxu0 %v10030_v46  ;;  %7483 = vmatprep.subr.bf16.mxu1 %v10033_v29  ;;  %v10121_v46 = vld [vmem:[#allocation10 + $0xc8] ss:$16 sps:$4 sm:$0xff]   ;;  %v10126_v29 = vld [vmem:[#allocation10 + $0xe4] ss:$16 sps:$4 sm:$0xff]  }
 0x57a   :  { %7398 = vmatpush1.bf16.msra.mxu0 %v10028_v15  ;;  %7484 = vmatpush1.bf16.msra.mxu1 %v10031_v1  ;;  %v10129_v15 = vld [vmem:[#allocation10 + $0xec] ss:$16 sps:$4 sm:$0xff]   ;;  %v10124_v1 = vld [vmem:[#allocation10 + $0xe0] ss:$16 sps:$4 sm:$0xff]  }
 0x57b   :  { %7399 = vmatprep.subr.bf16.mxu0 %v10036_v51  ;;  %7485 = vmatprep.subr.bf16.mxu1 %v10039_v59  ;;  %v10127_v51 = vld [vmem:[#allocation10 + $0xe8] ss:$16 sps:$4 sm:$0xff]   ;;  %v10132_v59 = vld [vmem:[#allocation10 + $0x104] ss:$16 sps:$4 sm:$0xff]  }
 0x57e   :  { %7400 = vmatpush1.bf16.msra.mxu0 %v10034_v56  ;;  %7486 = vmatpush1.bf16.msra.mxu1 %v10037_v2  ;;  %v10135_v56 = vld [vmem:[#allocation10 + $0x10c] ss:$16 sps:$4 sm:$0xff]   ;;  %v10130_v2 = vld [vmem:[#allocation10 + $0x100] ss:$16 sps:$4 sm:$0xff]  }
 0x57f   :  { %7401 = vmatprep.subr.bf16.mxu0 %v10042_v35  ;;  %7487 = vmatprep.subr.bf16.mxu1 %v10045_v9  ;;  %v10133_v35 = vld [vmem:[#allocation10 + $0x108] ss:$16 sps:$4 sm:$0xff]   ;;  %v10138_v9 = vld [vmem:[#allocation10 + $0x124] ss:$16 sps:$4 sm:$0xff]  }
 0x582   :  { %7402 = vmatpush1.bf16.msra.mxu0 %v10040_v61  ;;  %7488 = vmatpush1.bf16.msra.mxu1 %v10043_v27  ;;  %v10141_v61 = vld [vmem:[#allocation10 + $0x12c] ss:$16 sps:$4 sm:$0xff]   ;;  %v10136_v27 = vld [vmem:[#allocation10 + $0x120] ss:$16 sps:$4 sm:$0xff]  }
 0x583   :  { %7403 = vmatprep.subr.bf16.mxu0 %v10048_v53  ;;  %7489 = vmatprep.subr.bf16.mxu1 %v10051_v47  ;;  %v10139_v53 = vld [vmem:[#allocation10 + $0x128] ss:$16 sps:$4 sm:$0xff]   ;;  %v10144_v47 = vld [vmem:[#allocation10 + $0x144] ss:$16 sps:$4 sm:$0xff]  }
 0x586   :  { %7404 = vmatpush1.bf16.msra.mxu0 %v10046_v49  ;;  %7490 = vmatpush1.bf16.msra.mxu1 %v10049_v14  ;;  %v10147_v49 = vld [vmem:[#allocation10 + $0x14c] ss:$16 sps:$4 sm:$0xff]   ;;  %v10142_v14 = vld [vmem:[#allocation10 + $0x140] ss:$16 sps:$4 sm:$0xff]  }
 0x587   :  { %7405 = vmatprep.subr.bf16.mxu0 %v10054_v7  ;;  %7491 = vmatprep.subr.bf16.mxu1 %v10057_v5  ;;  %v10145_v7 = vld [vmem:[#allocation10 + $0x148] ss:$16 sps:$4 sm:$0xff]   ;;  %v10150_v5 = vld [vmem:[#allocation10 + $0x164] ss:$16 sps:$4 sm:$0xff]  }
 0x58a   :  { %7406 = vmatpush1.bf16.msra.mxu0 %v10052_v13  ;;  %7492 = vmatpush1.bf16.msra.mxu1 %v10055_v32  ;;  %v10153_v13 = vld [vmem:[#allocation10 + $0x16c] ss:$16 sps:$4 sm:$0xff]   ;;  %v10148_v32 = vld [vmem:[#allocation10 + $0x160] ss:$16 sps:$4 sm:$0xff]  }
 0x58b   :  { %7407 = vmatprep.subr.bf16.mxu0 %v10060_v19  ;;  %7493 = vmatprep.subr.bf16.mxu1 %v10063_v42  ;;  %v10151_v19 = vld [vmem:[#allocation10 + $0x168] ss:$16 sps:$4 sm:$0xff]   ;;  %v10156_v42 = vld [vmem:[#allocation10 + $0x184] ss:$16 sps:$4 sm:$0xff]  }
 0x58e   :  { %7408 = vmatpush1.bf16.msra.mxu0 %v10058_v0  ;;  %7494 = vmatpush1.bf16.msra.mxu1 %v10061_v22  ;;  %v10159_v0 = vld [vmem:[#allocation10 + $0x18c] ss:$16 sps:$4 sm:$0xff]   ;;  %v10154_v22 = vld [vmem:[#allocation10 + $0x180] ss:$16 sps:$4 sm:$0xff]  }
 0x58f   :  { %7409 = vmatprep.subr.bf16.mxu0 %v10066_v10  ;;  %7495 = vmatprep.subr.bf16.mxu1 %v10069_v6  ;;  %v10157_v10 = vld [vmem:[#allocation10 + $0x188] ss:$16 sps:$4 sm:$0xff]   ;;  %v10162_v6 = vld [vmem:[#allocation10 + $0x1a4] ss:$16 sps:$4 sm:$0xff]  }
 0x592   :  { %7410 = vmatpush1.bf16.msra.mxu0 %v10064_v8  ;;  %7496 = vmatpush1.bf16.msra.mxu1 %v10067_v21  ;;  %v10165_v8 = vld [vmem:[#allocation10 + $0x1ac] ss:$16 sps:$4 sm:$0xff]   ;;  %v10160_v21 = vld [vmem:[#allocation10 + $0x1a0] ss:$16 sps:$4 sm:$0xff]  }
 0x593   :  { %7411 = vmatprep.subr.bf16.mxu0 %v10072_v36  ;;  %7497 = vmatprep.subr.bf16.mxu1 %v10075_v4  ;;  %v10163_v36 = vld [vmem:[#allocation10 + $0x1a8] ss:$16 sps:$4 sm:$0xff]   ;;  %v10168_v4 = vld [vmem:[#allocation10 + $0x1c4] ss:$16 sps:$4 sm:$0xff]  }
 0x596   :  { %7412 = vmatpush1.bf16.msra.mxu0 %v10070_v63  ;;  %7498 = vmatpush1.bf16.msra.mxu1 %v10073_v12  ;;  %v10171_v63 = vld [vmem:[#allocation10 + $0x1cc] ss:$16 sps:$4 sm:$0xff]   ;;  %v10166_v12 = vld [vmem:[#allocation10 + $0x1c0] ss:$16 sps:$4 sm:$0xff]  }
 0x597   :  { %7413 = vmatprep.subr.bf16.mxu0 %v10078_v11  ;;  %7499 = vmatprep.subr.bf16.mxu1 %v10081_v30  ;;  %v10169_v11 = vld [vmem:[#allocation10 + $0x1c8] ss:$16 sps:$4 sm:$0xff]   ;;  %v10174_v30 = vld [vmem:[#allocation10 + $0x1e4] ss:$16 sps:$4 sm:$0xff]  }
 0x59a   :  { %7414 = vmatpush1.bf16.msra.mxu0 %v10076_v33  ;;  %7500 = vmatpush1.bf16.msra.mxu1 %v10079_v62  ;;  %v10177_v33 = vld [vmem:[#allocation10 + $0x1ec] ss:$16 sps:$4 sm:$0xff]   ;;  %v10172_v62 = vld [vmem:[#allocation10 + $0x1e0] ss:$16 sps:$4 sm:$0xff]  }
 0x59b   :  { %8152 = vmatprep.subr.bf16.mxu0 %v10084_v58  ;;  %8238 = vmatprep.subr.bf16.mxu1 %v10087_v16  ;;  %v10175_v58 = vld [vmem:[#allocation10 + $0x1e8] ss:$16 sps:$4 sm:$0xff]   ;;  %v10180_v16 = vld [vmem:[#allocation10 + $0x204] ss:$16 sps:$4 sm:$0xff]  }
 0x59d   :  { %7416 = vmatmul.mubr.bf16.vlgmr.msra.gmra.mrb[72].mxu0 %v12236_v60  ;;  %7502 = vmatmul.mubr.bf16.vlgmr.msra.gmra.mrb[72].mxu1 %v12236_v60  ;;  %v10100_v60 = vld [vmem:[#allocation10 + $0x60] ss:$16 sps:$4 sm:$0xff]  }
 0x59e   :  { %8153 = vmatpush1.bf16.msra.mxu0 %v10082_v54  ;;  %8239 = vmatpush1.bf16.msra.mxu1 %v10085_v38  ;;  %v10183_v54 = vld [vmem:[#allocation10 + $0x20c] ss:$16 sps:$4 sm:$0xff]   ;;  %v10178_v38 = vld [vmem:[#allocation10 + $0x200] ss:$16 sps:$4 sm:$0xff]  }
 0x59f   :  { %8154 = vmatprep.subr.bf16.mxu0 %v10090_v43  ;;  %8240 = vmatprep.subr.bf16.mxu1 %v10093_v24  ;;  %v10181_v43 = vld [vmem:[#allocation10 + $0x208] ss:$16 sps:$4 sm:$0xff]   ;;  %v10186_v24 = vld [vmem:[#allocation10 + $0x224] ss:$16 sps:$4 sm:$0xff]  }
 0x5a0   :  { %8184 = vmatprep.mubr.bf16.mxu0 %v10281_v45  ;;  %8270 = vmatprep.mubr.bf16.mxu1 %v10281_v45  ;;  %v10192_v45 = vld [vmem:[#allocation10 + $0x244] ss:$16 sps:$4 sm:$0xff]  }
 0x5a2   :  { %8155 = vmatpush1.bf16.msra.mxu0 %v10088_v48  ;;  %8241 = vmatpush1.bf16.msra.mxu1 %v10091_v40  ;;  %v10189_v48 = vld [vmem:[#allocation10 + $0x22c] ss:$16 sps:$4 sm:$0xff]   ;;  %v10282_v40 = vld [vmem:[#allocation2] ss:$16 sps:$4 sm:$0xff]  }
 0x5a3   :  { %8156 = vmatprep.subr.bf16.mxu0 %v10096_v55  ;;  %8242 = vmatprep.subr.bf16.mxu1 %v10099_v28  ;;  %v10184_v55 = vld [vmem:[#allocation10 + $0x220] ss:$16 sps:$4 sm:$0xff]   ;;  %v10187_v28 = vld [vmem:[#allocation10 + $0x228] ss:$16 sps:$4 sm:$0xff]  }
 0x5a6   :  { %8157 = vmatpush1.bf16.msra.mxu0 %v10094_v50  ;;  %8243 = vmatpush1.bf16.msra.mxu1 %v10097_v26  ;;  %v10195_v50 = vld [vmem:[#allocation10 + $0x24c] ss:$16 sps:$4 sm:$0xff]  }
 0x5a7   :  { %8158 = vmatprep.subr.bf16.mxu0 %v10102_v31  ;;  %8244 = vmatprep.subr.bf16.mxu1 %v10105_v39  ;;  %v10283_v26 = vld [vmem:[#allocation2 + $0xc] ss:$16 sps:$4 sm:$0xff]   ;;  %v10190_v31 = vld [vmem:[#allocation10 + $0x240] ss:$16 sps:$4 sm:$0xff]   ;;  %v10193_v39 = vld [vmem:[#allocation10 + $0x248] ss:$16 sps:$4 sm:$0xff]  }
 0x5aa   :  { %8159 = vmatpush1.bf16.msra.mxu0 %v10100_v60  ;;  %8245 = vmatpush1.bf16.msra.mxu1 %v10103_v57  ;;  %v10198_v60 = vld [vmem:[#allocation10 + $0x264] ss:$16 sps:$4 sm:$0xff]   ;;  %v10201_v57 = vld [vmem:[#allocation10 + $0x26c] ss:$16 sps:$4 sm:$0xff]  }
 0x5ab   :  { %8160 = vmatprep.subr.bf16.mxu0 %v10108_v37  ;;  %8246 = vmatprep.subr.bf16.mxu1 %v10111_v44  ;;  %v10196_v37 = vld [vmem:[#allocation10 + $0x260] ss:$16 sps:$4 sm:$0xff]   ;;  %v10199_v44 = vld [vmem:[#allocation10 + $0x268] ss:$16 sps:$4 sm:$0xff]  }
 0x5ae   :  { %8161 = vmatpush1.bf16.msra.mxu0 %v10106_v20  ;;  %8247 = vmatpush1.bf16.msra.mxu1 %v10109_v25  ;;  %v10204_v20 = vld [vmem:[#allocation10 + $0x284] ss:$16 sps:$4 sm:$0xff]   ;;  %v10207_v25 = vld [vmem:[#allocation10 + $0x28c] ss:$16 sps:$4 sm:$0xff]  }
 0x5af   :  { %8162 = vmatprep.subr.bf16.mxu0 %v10114_v34  ;;  %8248 = vmatprep.subr.bf16.mxu1 %v10117_v3  ;;  %v10202_v34 = vld [vmem:[#allocation10 + $0x280] ss:$16 sps:$4 sm:$0xff]   ;;  %v10205_v3 = vld [vmem:[#allocation10 + $0x288] ss:$16 sps:$4 sm:$0xff]  }
 0x5b2   :  { %8163 = vmatpush1.bf16.msra.mxu0 %v10112_v23  ;;  %8249 = vmatpush1.bf16.msra.mxu1 %v10115_v41  ;;  %v10210_v23 = vld [vmem:[#allocation10 + $0x2a4] ss:$16 sps:$4 sm:$0xff]   ;;  %v10213_v41 = vld [vmem:[#allocation10 + $0x2ac] ss:$16 sps:$4 sm:$0xff]  }
 0x5b3   :  { %8164 = vmatprep.subr.bf16.mxu0 %v10120_v18  ;;  %8250 = vmatprep.subr.bf16.mxu1 %v10123_v52  ;;  %v10208_v18 = vld [vmem:[#allocation10 + $0x2a0] ss:$16 sps:$4 sm:$0xff]   ;;  %v10211_v52 = vld [vmem:[#allocation10 + $0x2a8] ss:$16 sps:$4 sm:$0xff]  }
 0x5b6   :  { %8165 = vmatpush1.bf16.msra.mxu0 %v10118_v17  ;;  %8251 = vmatpush1.bf16.msra.mxu1 %v10121_v46  ;;  %v10216_v17 = vld [vmem:[#allocation10 + $0x2c4] ss:$16 sps:$4 sm:$0xff]   ;;  %v10219_v46 = vld [vmem:[#allocation10 + $0x2cc] ss:$16 sps:$4 sm:$0xff]  }
 0x5b7   :  { %8166 = vmatprep.subr.bf16.mxu0 %v10126_v29  ;;  %8252 = vmatprep.subr.bf16.mxu1 %v10129_v15  ;;  %v10214_v29 = vld [vmem:[#allocation10 + $0x2c0] ss:$16 sps:$4 sm:$0xff]   ;;  %v10217_v15 = vld [vmem:[#allocation10 + $0x2c8] ss:$16 sps:$4 sm:$0xff]  }
 0x5ba   :  { %8167 = vmatpush1.bf16.msra.mxu0 %v10124_v1  ;;  %8253 = vmatpush1.bf16.msra.mxu1 %v10127_v51  ;;  %v10222_v1 = vld [vmem:[#allocation10 + $0x2e4] ss:$16 sps:$4 sm:$0xff]   ;;  %v10225_v51 = vld [vmem:[#allocation10 + $0x2ec] ss:$16 sps:$4 sm:$0xff]  }
 0x5bb   :  { %8168 = vmatprep.subr.bf16.mxu0 %v10132_v59  ;;  %8254 = vmatprep.subr.bf16.mxu1 %v10135_v56  ;;  %v10220_v59 = vld [vmem:[#allocation10 + $0x2e0] ss:$16 sps:$4 sm:$0xff]   ;;  %v10223_v56 = vld [vmem:[#allocation10 + $0x2e8] ss:$16 sps:$4 sm:$0xff]  }
 0x5be   :  { %8169 = vmatpush1.bf16.msra.mxu0 %v10130_v2  ;;  %8255 = vmatpush1.bf16.msra.mxu1 %v10133_v35  ;;  %v10228_v2 = vld [vmem:[#allocation10 + $0x304] ss:$16 sps:$4 sm:$0xff]   ;;  %v10231_v35 = vld [vmem:[#allocation10 + $0x30c] ss:$16 sps:$4 sm:$0xff]  }
 0x5bf   :  { %8170 = vmatprep.subr.bf16.mxu0 %v10138_v9  ;;  %8256 = vmatprep.subr.bf16.mxu1 %v10141_v61  ;;  %v10226_v9 = vld [vmem:[#allocation10 + $0x300] ss:$16 sps:$4 sm:$0xff]   ;;  %v10229_v61 = vld [vmem:[#allocation10 + $0x308] ss:$16 sps:$4 sm:$0xff]  }
 0x5c2   :  { %8171 = vmatpush1.bf16.msra.mxu0 %v10136_v27  ;;  %8257 = vmatpush1.bf16.msra.mxu1 %v10139_v53  ;;  %v10234_v27 = vld [vmem:[#allocation10 + $0x324] ss:$16 sps:$4 sm:$0xff]   ;;  %v10237_v53 = vld [vmem:[#allocation10 + $0x32c] ss:$16 sps:$4 sm:$0xff]  }
 0x5c3   :  { %8172 = vmatprep.subr.bf16.mxu0 %v10144_v47  ;;  %8258 = vmatprep.subr.bf16.mxu1 %v10147_v49  ;;  %v10232_v47 = vld [vmem:[#allocation10 + $0x320] ss:$16 sps:$4 sm:$0xff]   ;;  %v10235_v49 = vld [vmem:[#allocation10 + $0x328] ss:$16 sps:$4 sm:$0xff]  }
 0x5c6   :  { %8173 = vmatpush1.bf16.msra.mxu0 %v10142_v14  ;;  %8259 = vmatpush1.bf16.msra.mxu1 %v10145_v7  ;;  %v10240_v14 = vld [vmem:[#allocation10 + $0x344] ss:$16 sps:$4 sm:$0xff]   ;;  %v10243_v7 = vld [vmem:[#allocation10 + $0x34c] ss:$16 sps:$4 sm:$0xff]  }
 0x5c7   :  { %8174 = vmatprep.subr.bf16.mxu0 %v10150_v5  ;;  %8260 = vmatprep.subr.bf16.mxu1 %v10153_v13  ;;  %v10238_v5 = vld [vmem:[#allocation10 + $0x340] ss:$16 sps:$4 sm:$0xff]   ;;  %v10241_v13 = vld [vmem:[#allocation10 + $0x348] ss:$16 sps:$4 sm:$0xff]  }
 0x5ca   :  { %8175 = vmatpush1.bf16.msra.mxu0 %v10148_v32  ;;  %8261 = vmatpush1.bf16.msra.mxu1 %v10151_v19  ;;  %v10246_v32 = vld [vmem:[#allocation10 + $0x364] ss:$16 sps:$4 sm:$0xff]   ;;  %v10249_v19 = vld [vmem:[#allocation10 + $0x36c] ss:$16 sps:$4 sm:$0xff]  }
 0x5cb   :  { %8176 = vmatprep.subr.bf16.mxu0 %v10156_v42  ;;  %8262 = vmatprep.subr.bf16.mxu1 %v10159_v0  ;;  %v10244_v42 = vld [vmem:[#allocation10 + $0x360] ss:$16 sps:$4 sm:$0xff]   ;;  %v10247_v0 = vld [vmem:[#allocation10 + $0x368] ss:$16 sps:$4 sm:$0xff]  }
 0x5ce   :  { %8177 = vmatpush1.bf16.msra.mxu0 %v10154_v22  ;;  %8263 = vmatpush1.bf16.msra.mxu1 %v10157_v10  ;;  %v10252_v22 = vld [vmem:[#allocation10 + $0x384] ss:$16 sps:$4 sm:$0xff]   ;;  %v10255_v10 = vld [vmem:[#allocation10 + $0x38c] ss:$16 sps:$4 sm:$0xff]  }
 0x5cf   :  { %8178 = vmatprep.subr.bf16.mxu0 %v10162_v6  ;;  %8264 = vmatprep.subr.bf16.mxu1 %v10165_v8  ;;  %v10250_v6 = vld [vmem:[#allocation10 + $0x380] ss:$16 sps:$4 sm:$0xff]   ;;  %v10253_v8 = vld [vmem:[#allocation10 + $0x388] ss:$16 sps:$4 sm:$0xff]  }
 0x5d2   :  { %8179 = vmatpush1.bf16.msra.mxu0 %v10160_v21  ;;  %8265 = vmatpush1.bf16.msra.mxu1 %v10163_v36  ;;  %v10258_v21 = vld [vmem:[#allocation10 + $0x3a4] ss:$16 sps:$4 sm:$0xff]   ;;  %v10261_v36 = vld [vmem:[#allocation10 + $0x3ac] ss:$16 sps:$4 sm:$0xff]  }
 0x5d3   :  { %8180 = vmatprep.subr.bf16.mxu0 %v10168_v4  ;;  %8266 = vmatprep.subr.bf16.mxu1 %v10171_v63  ;;  %v10256_v4 = vld [vmem:[#allocation10 + $0x3a0] ss:$16 sps:$4 sm:$0xff]   ;;  %v10259_v63 = vld [vmem:[#allocation10 + $0x3a8] ss:$16 sps:$4 sm:$0xff]  }
 0x5d6   :  { %8181 = vmatpush1.bf16.msra.mxu0 %v10166_v12  ;;  %8267 = vmatpush1.bf16.msra.mxu1 %v10169_v11  ;;  %v10264_v12 = vld [vmem:[#allocation10 + $0x3c4] ss:$16 sps:$4 sm:$0xff]   ;;  %v10267_v11 = vld [vmem:[#allocation10 + $0x3cc] ss:$16 sps:$4 sm:$0xff]  }
 0x5d7   :  { %8182 = vmatprep.subr.bf16.mxu0 %v10174_v30  ;;  %8268 = vmatprep.subr.bf16.mxu1 %v10177_v33  ;;  %v10262_v30 = vld [vmem:[#allocation10 + $0x3c0] ss:$16 sps:$4 sm:$0xff]   ;;  %v10265_v33 = vld [vmem:[#allocation10 + $0x3c8] ss:$16 sps:$4 sm:$0xff]  }
 0x5da   :  { %8183 = vmatpush1.bf16.msra.mxu0 %v10172_v62  ;;  %8269 = vmatpush1.bf16.msra.mxu1 %v10175_v58  ;;  %v10270_v62 = vld [vmem:[#allocation10 + $0x3e4] ss:$16 sps:$4 sm:$0xff]   ;;  %v10273_v58 = vld [vmem:[#allocation10 + $0x3ec] ss:$16 sps:$4 sm:$0xff]  }
 0x5db   :  { %8195 = vmatprep.subr.bf16.mxu0 %v10180_v16  ;;  %8281 = vmatprep.subr.bf16.mxu1 %v10183_v54  ;;  %v10268_v16 = vld [vmem:[#allocation10 + $0x3e0] ss:$16 sps:$4 sm:$0xff]   ;;  %v10271_v54 = vld [vmem:[#allocation10 + $0x3e8] ss:$16 sps:$4 sm:$0xff]  }
 0x5dd   :  { %8185 = vmatmul.mubr.bf16.vlgmr.msra.gmra.mrb[72].mxu0 %v10282_v40  ;;  %8271 = vmatmul.mubr.bf16.vlgmr.msra.gmra.mrb[72].mxu1 %v10282_v40  ;;  %v12406_v40 = vld [vmem:[#allocation21_spill] sm:$0xff] }
 0x5de   :  { %8196 = vmatpush1.bf16.msra.mxu0 %v10178_v38  ;;  %8282 = vmatpush1.bf16.msra.mxu1 %v10181_v43  ;;  %v10284_v38 = vld [vmem:[#allocation2 + $0x8] ss:$16 sps:$4 sm:$0xff]   ;;  %v12405_v43 = vld [vmem:[#allocation19_spill] sm:$0xff] }
 0x5df   :  { %8197 = vmatprep.subr.bf16.mxu0 %v10186_v24  ;;  %8283 = vmatprep.subr.bf16.mxu1 %v10189_v48  ;;  %v8330_v24 = vsub.s32 7, %v12405_v43  ;;  %v10285_v48 = vld [vmem:[%s12274_s6] sm:$0xff] }
 0x5e0   :  { %8227 = vmatprep.mubr.bf16.mxu0 %v10283_v26  ;;  %8313 = vmatprep.mubr.bf16.mxu1 %v10283_v26 }
 0x5e2   :  { %8198 = vmatpush1.bf16.msra.mxu0 %v10184_v55  ;;  %8284 = vmatpush1.bf16.msra.mxu1 %v10187_v28  ;;  %v8327_v55 = vrot.slane %v10285_v48, %v12406_v40  ;;  %v10286_v28 = vld [vmem:[%s12274_s6 + $0x8] sm:$0xff]  ;;  %s10462_s6 = smov [#allocation13]  }
 0x5e3   :  { %8199 = vmatprep.subr.bf16.mxu0 %v10192_v45  ;;  %8285 = vmatprep.subr.bf16.mxu1 %v10195_v50  ;;  %v8335_v45 = vrot.slane %v10286_v28, %v12406_v40  ;;  %v8331_v50 = vrot.slane %v10285_v48, %v8330_v24  ;;  %v8339_v26 = vrot.slane %v10286_v28, %v8330_v24  ;;  %s8405_s21 = sshll.u32 %s10462_s6, 4  ;;  %s8406_s21 = int_to_ptr.vmem [resolvable:$true] %s8405_s21 }
 0x5e4   :  { %s10419_s23 = scalar_lea.vmem %s8406_s21, 1024  ;;  %p10424_p7 = scmp.lt.s32.totalorder %s8406_s21, %s8406_s21 }
 0x5e5   :  { %p10420_p6 = scmp.ne.s32.totalorder %s8406_s21, %s10419_s23  ;;  %p10425_p8 = scmp.lt.s32.totalorder %s10419_s23, %s10419_s23 }
 0x5e6   :  { %8200 = vmatpush1.bf16.msra.mxu0 %v10190_v31  ;;  %8286 = vmatpush1.bf16.msra.mxu1 %v10193_v39  ;;  %v8347_v31 = vrot.slane %v8327_v55, %v12406_v40  ;;  %v8355_v39 = vrot.slane %v8335_v45, %v12406_v40 }
 0x5e7   :  { %8201 = vmatprep.subr.bf16.mxu0 %v10198_v60  ;;  %8287 = vmatprep.subr.bf16.mxu1 %v10201_v57  ;;  %v8351_v60 = vrot.slane %v8331_v50, %v12406_v40  ;;  %v8359_v57 = vrot.slane %v8339_v26, %v12406_v40  ;;  %p10426_p9 = por %p10425_p8, %p10424_p7 }
 0x5e9   :  { %p10427_p10 = pnand %p10426_p9, %p10420_p6 }
 0x5ea   :  { %8202 = vmatpush1.bf16.msra.mxu0 %v10196_v37  ;;  %8288 = vmatpush1.bf16.msra.mxu1 %v10199_v44 }
 0x5eb   :  { %8203 = vmatprep.subr.bf16.mxu0 %v10204_v20  ;;  %8289 = vmatprep.subr.bf16.mxu1 %v10207_v25 }
 0x5ee   :  { %8204 = vmatpush1.bf16.msra.mxu0 %v10202_v34  ;;  %8290 = vmatpush1.bf16.msra.mxu1 %v10205_v3 }
 0x5ef   :  { %8205 = vmatprep.subr.bf16.mxu0 %v10210_v23  ;;  %8291 = vmatprep.subr.bf16.mxu1 %v10213_v41 }
 0x5f2   :  { %8206 = vmatpush1.bf16.msra.mxu0 %v10208_v18  ;;  %8292 = vmatpush1.bf16.msra.mxu1 %v10211_v52 }
 0x5f3   :  { %8207 = vmatprep.subr.bf16.mxu0 %v10216_v17  ;;  %8293 = vmatprep.subr.bf16.mxu1 %v10219_v46 }
 0x5f6   :  { %8208 = vmatpush1.bf16.msra.mxu0 %v10214_v29  ;;  %8294 = vmatpush1.bf16.msra.mxu1 %v10217_v15 }
 0x5f7   :  { %8209 = vmatprep.subr.bf16.mxu0 %v10222_v1  ;;  %8295 = vmatprep.subr.bf16.mxu1 %v10225_v51 }
 0x5fa   :  { %8210 = vmatpush1.bf16.msra.mxu0 %v10220_v59  ;;  %8296 = vmatpush1.bf16.msra.mxu1 %v10223_v56 }
 0x5fb   :  { %8211 = vmatprep.subr.bf16.mxu0 %v10228_v2  ;;  %8297 = vmatprep.subr.bf16.mxu1 %v10231_v35 }
 0x5fe   :  { %8212 = vmatpush1.bf16.msra.mxu0 %v10226_v9  ;;  %8298 = vmatpush1.bf16.msra.mxu1 %v10229_v61 }
 0x5ff   :  { %8213 = vmatprep.subr.bf16.mxu0 %v10234_v27  ;;  %8299 = vmatprep.subr.bf16.mxu1 %v10237_v53 }
 0x602   :  { %8214 = vmatpush1.bf16.msra.mxu0 %v10232_v47  ;;  %8300 = vmatpush1.bf16.msra.mxu1 %v10235_v49 }
 0x603   :  { %8215 = vmatprep.subr.bf16.mxu0 %v10240_v14  ;;  %8301 = vmatprep.subr.bf16.mxu1 %v10243_v7 }
 0x606   :  { %8216 = vmatpush1.bf16.msra.mxu0 %v10238_v5  ;;  %8302 = vmatpush1.bf16.msra.mxu1 %v10241_v13 }
 0x607   :  { %8217 = vmatprep.subr.bf16.mxu0 %v10246_v32  ;;  %8303 = vmatprep.subr.bf16.mxu1 %v10249_v19 }
 0x60a   :  { %8218 = vmatpush1.bf16.msra.mxu0 %v10244_v42  ;;  %8304 = vmatpush1.bf16.msra.mxu1 %v10247_v0 }
 0x60b   :  { %8219 = vmatprep.subr.bf16.mxu0 %v10252_v22  ;;  %8305 = vmatprep.subr.bf16.mxu1 %v10255_v10 }
 0x60e   :  { %8220 = vmatpush1.bf16.msra.mxu0 %v10250_v6  ;;  %8306 = vmatpush1.bf16.msra.mxu1 %v10253_v8 }
 0x60f   :  { %8221 = vmatprep.subr.bf16.mxu0 %v10258_v21  ;;  %8307 = vmatprep.subr.bf16.mxu1 %v10261_v36 }
 0x612   :  { %8222 = vmatpush1.bf16.msra.mxu0 %v10256_v4  ;;  %8308 = vmatpush1.bf16.msra.mxu1 %v10259_v63 }
 0x613   :  { %8223 = vmatprep.subr.bf16.mxu0 %v10264_v12  ;;  %8309 = vmatprep.subr.bf16.mxu1 %v10267_v11 }
 0x616   :  { %8224 = vmatpush1.bf16.msra.mxu0 %v10262_v30  ;;  %8310 = vmatpush1.bf16.msra.mxu1 %v10265_v33 }
 0x617   :  { %8225 = vmatprep.subr.bf16.mxu0 %v10270_v62  ;;  %8311 = vmatprep.subr.bf16.mxu1 %v10273_v58 }
 0x61a   :  { %8226 = vmatpush1.bf16.msra.mxu0 %v10268_v16  ;;  %8312 = vmatpush1.bf16.msra.mxu1 %v10271_v54 }
 0x61d   :  { %8228 = vmatmul.mubr.bf16.vlgmr.msra.gmra.mrb[72].mxu0 %v10284_v38  ;;  %8314 = vmatmul.mubr.bf16.vlgmr.msra.gmra.mrb[72].mxu1 %v10284_v38 }
 0x6f0   :  { %v8229_v37 = vpop.f32.mrb[72].mxu0  ;;  %v8315_v44 = vpop.f32.mrb[72].mxu1 }
 0x6f1   :  { %v8360_v20 = vadd.f32 %v8347_v31, %v8229_v37  ;;  %v8362_v25 = vadd.f32 %v8355_v39, %v8315_v44  ;;  %v8231_v34 = vpop.f32.mrb[73].mxu0  ;;  %v8317_v3 = vpop.f32.mrb[73].mxu1 }
 0x6f2   :  { %v8361_v23 = vadd.f32 %v8351_v60, %v8231_v34  ;;  %v8363_v41 = vadd.f32 %v8359_v57, %v8317_v3  ;;  %v8233_v18 = vpop.f32.mrb[74].mxu0  ;;  %v8319_v52 = vpop.f32.mrb[74].mxu1 }
 0x6f3   :  { %vm8368_vm6 = vcmp.ge.f32.partialorder %v8360_v20, 0.0  ;;  %v8376_v17 = vmul.f32 0.2, %v8360_v20  ;;  %vm8370_vm0 = vcmp.ge.f32.partialorder %v8362_v25, 0.0  ;;  %v8378_v46 = vmul.f32 0.2, %v8362_v25 }
 0x6f4   :  { %vm8369_vm2 = vcmp.ge.f32.partialorder %v8361_v23, 0.0  ;;  %v8377_v29 = vmul.f32 0.2, %v8361_v23  ;;  %vm8371_vm8 = vcmp.ge.f32.partialorder %v8363_v41, 0.0  ;;  %v8379_v15 = vmul.f32 0.2, %v8363_v41 }
 0x6f5   :  { %v8384_v1 = vsel %vm8368_vm6, %v8360_v20, %v8376_v17  ;;  %v8386_v51 = vsel %vm8370_vm0, %v8362_v25, %v8378_v46  ;;  %v8364_v59 = vadd.f32 %v8347_v31, %v8233_v18  ;;  %v8366_v56 = vadd.f32 %v8355_v39, %v8319_v52  ;;  %v8235_v2 = vpop.f32.mrb[75].mxu0  ;;  %v8321_v35 = vpop.f32.mrb[75].mxu1 }
 0x6f6   :  { %8392 = vst [vmem:[#allocation13] sm:$0xff] %v8384_v1  ;;  %8394 = vst [vmem:[#allocation13 + $0x10] sm:$0xff] %v8386_v51  ;;  %v8385_v9 = vsel %vm8369_vm2, %v8361_v23, %v8377_v29  ;;  %v8387_v61 = vsel %vm8371_vm8, %v8363_v41, %v8379_v15  ;;  %v8365_v27 = vadd.f32 %v8351_v60, %v8235_v2 }
 0x6f7   :  { %v8367_v53 = vadd.f32 %v8359_v57, %v8321_v35  ;;  %8393 = vst [vmem:[#allocation13 + $0x8] sm:$0xff] %v8385_v9  ;;  %8395 = vst [vmem:[#allocation13 + $0x18] sm:$0xff] %v8387_v61  ;;  %vm8372_vm9 = vcmp.ge.f32.partialorder %v8364_v59, 0.0  ;;  %v8380_v47 = vmul.f32 0.2, %v8364_v59  ;;  %vm8374_vm12 = vcmp.ge.f32.partialorder %v8366_v56, 0.0 }
 0x6f8   :  { %v8382_v49 = vmul.f32 0.2, %v8366_v56  ;;  %vm8373_vm15 = vcmp.ge.f32.partialorder %v8365_v27, 0.0  ;;  %v8381_v14 = vmul.f32 0.2, %v8365_v27 }
 0x6f9   :  { %vm8375_vm1 = vcmp.ge.f32.partialorder %v8367_v53, 0.0  ;;  %v8383_v7 = vmul.f32 0.2, %v8367_v53  ;;  %v8388_v5 = vsel %vm8372_vm9, %v8364_v59, %v8380_v47 }
 0x6fa   :  { %v8390_v13 = vsel %vm8374_vm12, %v8366_v56, %v8382_v49  ;;  %8396 = vst [vmem:[#allocation13 + $0x20] sm:$0xff] %v8388_v5  ;;  %v8389_v32 = vsel %vm8373_vm15, %v8365_v27, %v8381_v14 }
 0x6fb   :  { %8398 = vst [vmem:[#allocation13 + $0x30] sm:$0xff] %v8390_v13  ;;  %v8391_v19 = vsel %vm8375_vm1, %v8367_v53, %v8383_v7  ;;  %8397 = vst [vmem:[#allocation13 + $0x28] sm:$0xff] %v8389_v32 }
 0x6fc   :  { %8399 = vst [vmem:[#allocation13 + $0x38] sm:$0xff] %v8391_v19 }
 0x6fd   :  { %10430 = shalt.err (!%p10427_p10)
}
 0x6fe   :  { %s10431_s1 = scalar_lea.hbm %s12275_s7, 1024 }
 0x6ff   :  { %p10432_p11 = scmp.ne.s32.totalorder %s12275_s7, %s10431_s1  ;;  %p10435_p12 = scmp.lt.u32.totalorder %s10431_s1, %s12275_s7 }
 0x701   :  { %p10437_p13 = pnand %p10435_p12, %p10432_p11 }
 0x703   :  { %10440 = shalt.err (!%p10437_p13)
}
 0x704   :  { %8411 = dma.vmem_to_hbm [thread:$0]  %s8406_s21, 1024, %s12275_s7, [#allocation4], %s10452_s11, %s10452_s11, %s10453_s12  }
 0x705   :  { %10449 = dma.done.wait [#allocation4], 1024  }
 0x706   :  { %10450 = vsyncadd [#allocation4], 4294966272 }
 0x707   :  { %8415 = vsyncpa [#allocation3], 1 }
 0x708   :  { %8416 = vsyncpa [#allocation6], 1 }
 0x709   :  { %8417 = vsyncpa [#allocation9], 1 }
 0x70a   :  { %8418 = vsyncpa [#allocation12], 1 }
 0x70b   :  { %8419 = vsyncpa [#allocation4], 1 }

</bundles_post_ra>
